<compile_context>
chip_gen: v5e
topology: v5e:2x2
jax: 0.10.0
libtpu: 0.0.40
codegen_flags: <defaults>
</compile_context>

<pallas_src>
import functools

import jax
import jax.numpy as jnp
from jax.experimental import pallas as pl
from jax.experimental.pallas import tpu as pltpu

_VMEM_LIMIT = 64 * 1024 * 1024


def _pick_tile(m, max_tile=256):
    # Largest divisor of m (<= max_tile) that still leaves >= 2 grid steps
    # so the 'parallel' axis can be sharded across 2 TensorCores (v7x).
    for t in (1024, 512, 256, 128, 64, 32, 16, 8):
        if t <= max_tile and m % t == 0 and m // t >= 2:
            return t
    for t in (1024, 512, 256, 128, 64, 32, 16, 8):
        if t <= max_tile and m % t == 0:
            return t
    return m


def _pick_group(bh, max_g=32):
    # Batch G windows per attention grid step, keeping >= 2 grid steps.
    for g in (32, 16, 8, 4, 2, 1):
        if g <= max_g and bh % g == 0 and bh // g >= 2:
            return g
    return bh


# ----------------------------- Pallas kernels -----------------------------

def _ln_matmul_kernel(x_ref, g_ref, b_ref, w_ref, o_ref, *, eps):
    # custom channel LayerNorm: (x - mean) / (var + eps) * g + b
    # (divides by (var + eps), NOT sqrt(var + eps) — exactly as in the torch source)
    # fused with the bias-free to_qkv 1x1 conv (rows @ w).
    x = x_ref[...].astype(jnp.float32)
    mean = jnp.mean(x, axis=-1, keepdims=True)
    var = jnp.mean((x - mean) ** 2, axis=-1, keepdims=True)   # unbiased=False
    xn = (x - mean) / (var + eps) * g_ref[...] + b_ref[...]
    o_ref[...] = jnp.dot(xn, w_ref[...],
                         preferred_element_type=jnp.float32).astype(o_ref.dtype)


def ln_matmul(x_rows, g, b, w, eps=1e-5):
    m, c = x_rows.shape
    n = w.shape[1]
    tm = _pick_tile(m, max_tile=512)
    return pl.pallas_call(
        functools.partial(_ln_matmul_kernel, eps=eps),
        out_shape=jax.ShapeDtypeStruct((m, n), jnp.float32),
        grid_spec=pltpu.PrefetchScalarGridSpec(
            num_scalar_prefetch=0,
            grid=(m // tm,),
            in_specs=[pl.BlockSpec((tm, c), lambda i: (i, 0)),
                      pl.BlockSpec((1, c), lambda i: (0, 0)),
                      pl.BlockSpec((1, c), lambda i: (0, 0)),
                      pl.BlockSpec((c, n), lambda i: (0, 0))],
            out_specs=pl.BlockSpec((tm, n), lambda i: (i, 0))),
        compiler_params=pltpu.CompilerParams(
            dimension_semantics=("parallel",), vmem_limit_bytes=_VMEM_LIMIT),
    )(x_rows, g.reshape(1, c), b.reshape(1, c), w)


def _matmul_bias_res_kernel(x_ref, w_ref, b_ref, r_ref, o_ref):
    # 1x1 conv (rows @ w + bias) with the residual add fused before the store.
    o_ref[...] = (jnp.dot(x_ref[...], w_ref[...],
                          preferred_element_type=jnp.float32)
                  + b_ref[...] + r_ref[...]).astype(o_ref.dtype)


def matmul_bias_res(x, w, b, res):
    m, k = x.shape
    n = w.shape[1]
    tm = _pick_tile(m, max_tile=512)
    return pl.pallas_call(
        _matmul_bias_res_kernel,
        out_shape=jax.ShapeDtypeStruct((m, n), jnp.float32),
        grid_spec=pltpu.PrefetchScalarGridSpec(
            num_scalar_prefetch=0,
            grid=(m // tm,),
            in_specs=[pl.BlockSpec((tm, k), lambda i: (i, 0)),
                      pl.BlockSpec((k, n), lambda i: (0, 0)),
                      pl.BlockSpec((1, n), lambda i: (0, 0)),
                      pl.BlockSpec((tm, n), lambda i: (i, 0))],
            out_specs=pl.BlockSpec((tm, n), lambda i: (i, 0))),
        compiler_params=pltpu.CompilerParams(
            dimension_semantics=("parallel",), vmem_limit_bytes=_VMEM_LIMIT),
    )(x, w, b.reshape(1, n), res)


def _attn_kernel(q_ref, k_ref, v_ref, bias_ref, o_ref):
    # Batched over G windows per grid step.  Q is pre-scaled (scale folded
    # into the to_qkv weights), softmax denominator uses the EUP reciprocal.
    q = q_ref[...].astype(jnp.float32)
    k = k_ref[...].astype(jnp.float32)
    v = v_ref[...].astype(jnp.float32)
    s = jnp.einsum('bqd,bkd->bqk', q, k, preferred_element_type=jnp.float32)
    s = s + bias_ref[...]                       # (w2, w2) broadcasts over G
    m = jnp.max(s, axis=-1, keepdims=True)
    p = jnp.exp(s - m)
    l = jnp.sum(p, axis=-1, keepdims=True)
    attn = p * pl.reciprocal(l, approx=True)
    o_ref[...] = jnp.einsum('bqk,bkd->bqd', attn, v,
                            preferred_element_type=jnp.float32).astype(o_ref.dtype)


def attention_core(q, k, v, bias):
    # q,k,v: (B*heads, w2, dim_head); bias: (w2, w2)
    bh, w2, d = q.shape
    g = _pick_group(bh)
    return pl.pallas_call(
        _attn_kernel,
        out_shape=jax.ShapeDtypeStruct((bh, w2, d), jnp.float32),
        grid_spec=pltpu.PrefetchScalarGridSpec(
            num_scalar_prefetch=0,
            grid=(bh // g,),
            in_specs=[pl.BlockSpec((g, w2, d), lambda i: (i, 0, 0)),
                      pl.BlockSpec((g, w2, d), lambda i: (i, 0, 0)),
                      pl.BlockSpec((g, w2, d), lambda i: (i, 0, 0)),
                      pl.BlockSpec((w2, w2), lambda i: (0, 0))],
            out_specs=pl.BlockSpec((g, w2, d), lambda i: (i, 0, 0))),
        compiler_params=pltpu.CompilerParams(
            dimension_semantics=("parallel",), vmem_limit_bytes=_VMEM_LIMIT),
    )(q, k, v, bias)


def _ffn_kernel(x_ref, g_ref, beta_ref, w1_ref, b1_ref, w2_ref, b2_ref, o_ref, *, eps):
    x = x_ref[...].astype(jnp.float32)
    mean = jnp.mean(x, axis=-1, keepdims=True)
    var = jnp.mean((x - mean) ** 2, axis=-1, keepdims=True)
    xn = (x - mean) / (var + eps) * g_ref[...] + beta_ref[...]
    h = jnp.dot(xn, w1_ref[...], preferred_element_type=jnp.float32) + b1_ref[...]
    # exact GELU (erf-based), matching torch.nn.GELU(approximate='none')
    h = 0.5 * h * (1.0 + jax.lax.erf(h * 0.7071067811865476))
    o = jnp.dot(h, w2_ref[...], preferred_element_type=jnp.float32) + b2_ref[...]
    o_ref[...] = (o + x).astype(o_ref.dtype)     # fused residual add


def feedforward_rows(x_rows, p, eps=1e-5):
    m, c = x_rows.shape
    hdim = p['w1'].shape[1]
    tm = _pick_tile(m, max_tile=128)   # cap: f32 hidden tile tm*hdim stays small
    return pl.pallas_call(
        functools.partial(_ffn_kernel, eps=eps),
        out_shape=jax.ShapeDtypeStruct((m, c), jnp.float32),
        grid_spec=pltpu.PrefetchScalarGridSpec(
            num_scalar_prefetch=0,
            grid=(m // tm,),
            in_specs=[pl.BlockSpec((tm, c), lambda i: (i, 0)),
                      pl.BlockSpec((1, c), lambda i: (0, 0)),
                      pl.BlockSpec((1, c), lambda i: (0, 0)),
                      pl.BlockSpec((c, hdim), lambda i: (0, 0)),
                      pl.BlockSpec((1, hdim), lambda i: (0, 0)),
                      pl.BlockSpec((hdim, c), lambda i: (0, 0)),
                      pl.BlockSpec((1, c), lambda i: (0, 0))],
            out_specs=pl.BlockSpec((tm, c), lambda i: (i, 0))),
        compiler_params=pltpu.CompilerParams(
            dimension_semantics=("parallel",), vmem_limit_bytes=_VMEM_LIMIT),
    )(x_rows, p['g'].reshape(1, c), p['beta'].reshape(1, c),
      p['w1'], p['b1'].reshape(1, hdim), p['w2'], p['b2'].reshape(1, c))


# ----------------------------- JAX glue -----------------------------------

def _std_layernorm(x, w, b, eps=1e-5):
    m = jnp.mean(x, axis=-1, keepdims=True)
    v = jnp.mean((x - m) ** 2, axis=-1, keepdims=True)
    return (x - m) / jnp.sqrt(v + eps) * w + b


def dynamic_position_bias(wsz, p):
    # DynamicPositionBias MLP + rel-pos gather. Input-independent (depends only
    # on window size + params), so it is computed as plain-JAX parameter glue.
    pos = jnp.arange(-wsz, wsz + 1)
    gy, gx = jnp.meshgrid(pos, pos, indexing='ij')
    rel_pos = jnp.stack([gy, gx], axis=-1).reshape(-1, 2).astype(jnp.float32)
    h = rel_pos @ p['dpb_w0'].T + p['dpb_b0']
    h = _std_layernorm(h, p['dpb_ln0_w'], p['dpb_ln0_b'])
    h = jnp.maximum(h, 0.0)
    h = h @ p['dpb_w1'].T + p['dpb_b1']
    h = _std_layernorm(h, p['dpb_ln1_w'], p['dpb_ln1_b'])
    h = jnp.maximum(h, 0.0)
    h = h @ p['dpb_w2'].T + p['dpb_b2']
    biases = h.reshape(-1)                       # ((2*wsz+1)^2,)

    pos_w = jnp.arange(wsz)
    gy, gx = jnp.meshgrid(pos_w, pos_w, indexing='ij')
    grid = jnp.stack([gy, gx], axis=0).reshape(2, -1).T          # (wsz^2, 2)
    real_pos = grid[:, None, :] - grid[None, :, :] + (wsz - 1)
    idx = (real_pos * jnp.array([2 * wsz - 1, 1])).sum(-1)       # (wsz^2, wsz^2)
    return biases[idx]


def attention_rows(x_rows, p, b, H, W, wsz, heads, dim_head):
    """One Attention block on rows-layout activations, residual included."""
    dim = x_rows.shape[-1]
    inner = heads * dim_head
    scale = dim_head ** -0.5
    w2 = wsz * wsz
    hh, ww = H // wsz, W // wsz
    bp = b * hh * ww

    # window partition = row permutation (channels stay on the lane axis)
    xw = x_rows.reshape(b, hh, wsz, ww, wsz, dim)
    xw = jnp.transpose(xw, (0, 1, 3, 2, 4, 5)).reshape(bp * w2, dim)

    # fold the q scale into the first `inner` output columns of w_qkv
    # (to_qkv has no bias, so this is exact) — removes a per-step VALU multiply.
    col_scale = jnp.concatenate(
        [jnp.full((inner,), scale, jnp.float32),
         jnp.ones((2 * inner,), jnp.float32)])
    w_qkv = p['w_qkv'] * col_scale[None, :]

    # fused pre-norm channel LayerNorm + bias-free to_qkv 1x1 conv — Pallas
    qkv_rows = ln_matmul(xw, p['norm_g'], p['norm_b'], w_qkv)      # (bp*w2, 3*inner)

    # reproduce torch's contiguous NCHW chunk + raw `.view(-1, heads, w2, dim_head)`
    qkv_nchw = jnp.transpose(qkv_rows.reshape(bp, w2, 3 * inner), (0, 2, 1))
    q = qkv_nchw[:, :inner, :].reshape(bp * heads, w2, dim_head)
    k = qkv_nchw[:, inner:2 * inner, :].reshape(bp * heads, w2, dim_head)
    v = qkv_nchw[:, 2 * inner:, :].reshape(bp * heads, w2, dim_head)

    bias = dynamic_position_bias(wsz, p)                           # (w2, w2)

    # QK^T + bias + softmax + PV, batched over windows — Pallas
    out = attention_core(q, k, v, bias)                            # (bp*heads, w2, dim_head)

    # torch: out.permute(0,1,3,2).view(-1, inner, wsz, wsz) ; rows layout for 1x1 conv
    out = out.reshape(bp, heads, w2, dim_head)
    out_rows = jnp.transpose(out, (0, 2, 1, 3)).reshape(bp * w2, inner)

    # fused to_out 1x1 conv + bias + residual add (residual = pre-norm x, same row order)
    y_rows = matmul_bias_res(out_rows, p['w_out'], p['b_out'], xw)  # (bp*w2, dim)

    # reverse window partition (row permutation back to (b, H, W) order)
    y = y_rows.reshape(b, hh, ww, wsz, wsz, dim)
    y = jnp.transpose(y, (0, 1, 3, 2, 4, 5)).reshape(b * H * W, dim)
    return y


def transformer_forward(x, layers, *, local_ws, global_ws, heads, dim_head):
    # TODO(synk): dropout (attn_dropout / ff_dropout) is identity at p=0.0 / eval.
    b, c, H, W = x.shape
    # NCHW -> rows once; everything below stays channels-last.
    rows = jnp.transpose(x, (0, 2, 3, 1)).reshape(b * H * W, c)
    for lp in layers:
        rows = attention_rows(rows, lp['short_attn'], b, H, W, local_ws, heads, dim_head)
        rows = feedforward_rows(rows, lp['short_ff'])
        rows = attention_rows(rows, lp['long_attn'], b, H, W, global_ws, heads, dim_head)
        rows = feedforward_rows(rows, lp['long_ff'])
    return jnp.transpose(rows.reshape(b, H, W, c), (0, 3, 1, 2))


# ----------------------------- parameter init ------------------------------

def init_attention_params(key, dim, dim_head):
    heads = dim // dim_head
    inner = heads * dim_head
    d4 = dim // 4
    ks = jax.random.split(key, 5)
    s = 0.05
    return dict(
        norm_g=jnp.ones((dim,), jnp.float32),
        norm_b=jnp.zeros((dim,), jnp.float32),
        w_qkv=s * jax.random.normal(ks[0], (dim, 3 * inner), jnp.float32),
        w_out=s * jax.random.normal(ks[1], (inner, dim), jnp.float32),
        b_out=jnp.zeros((dim,), jnp.float32),
        dpb_w0=s * jax.random.normal(ks[2], (d4, 2), jnp.float32),
        dpb_b0=jnp.zeros((d4,), jnp.float32),
        dpb_ln0_w=jnp.ones((d4,), jnp.float32),
        dpb_ln0_b=jnp.zeros((d4,), jnp.float32),
        dpb_w1=s * jax.random.normal(ks[3], (d4, d4), jnp.float32),
        dpb_b1=jnp.zeros((d4,), jnp.float32),
        dpb_ln1_w=jnp.ones((d4,), jnp.float32),
        dpb_ln1_b=jnp.zeros((d4,), jnp.float32),
        dpb_w2=s * jax.random.normal(ks[4], (1, d4), jnp.float32),
        dpb_b2=jnp.zeros((1,), jnp.float32),
    )


def init_ff_params(key, dim, mult=4):
    ks = jax.random.split(key, 2)
    s = 0.05
    return dict(
        g=jnp.ones((dim,), jnp.float32),
        beta=jnp.zeros((dim,), jnp.float32),
        w1=s * jax.random.normal(ks[0], (dim, dim * mult), jnp.float32),
        b1=jnp.zeros((dim * mult,), jnp.float32),
        w2=s * jax.random.normal(ks[1], (dim * mult, dim), jnp.float32),
        b2=jnp.zeros((dim,), jnp.float32),
    )


def init_transformer_params(key, dim, dim_head, depth):
    layers = []
    for _ in range(depth):
        k1, k2, k3, k4, key = jax.random.split(key, 5)
        layers.append(dict(
            short_attn=init_attention_params(k1, dim, dim_head),
            short_ff=init_ff_params(k2, dim),
            long_attn=init_attention_params(k3, dim, dim_head),
            long_ff=init_ff_params(k4, dim),
        ))
    return layers


# ----------------------------- driver ---------------------------------------

if __name__ == "__main__":
    dim, dim_head = 32, 32          # heads = dim // dim_head = 1
    local_ws, global_ws = 4, 8
    depth = 2
    b, H, W = 2, 16, 16

    key = jax.random.PRNGKey(0)
    kx, kp = jax.random.split(key)
    x = jax.random.normal(kx, (b, dim, H, W), jnp.float32)   # NCHW, like PyTorch
    layers = init_transformer_params(kp, dim, dim_head, depth)

    fwd = jax.jit(functools.partial(transformer_forward,
                                    local_ws=local_ws, global_ws=global_ws,
                                    heads=dim // dim_head, dim_head=dim_head))
    y = fwd(x, layers)
    jax.block_until_ready(y)
    assert y.shape == x.shape and y.dtype == jnp.float32
    assert bool(jnp.all(jnp.isfinite(y)))
    print("KERNEL_OK")
</pallas_src>

<mosaic_0001>
module attributes {stable_mosaic.version = 11 : i64} {
  func.func @_ln_matmul_kernel(%arg0: i32, %arg1: memref<256x32xf32, #tpu.memory_space<vmem>>, %arg2: memref<1x32xf32, #tpu.memory_space<vmem>>, %arg3: memref<1x32xf32, #tpu.memory_space<vmem>>, %arg4: memref<32x96xf32, #tpu.memory_space<vmem>>, %arg5: memref<256x96xf32, #tpu.memory_space<vmem>>) attributes {dimension_semantics = [#tpu.dimension_semantics<parallel>], iteration_bounds = array<i64: 2>, scalar_prefetch = 0 : i64, scratch_operands = 0 : i64, tpu.core_type = #tpu.core_type<tc>, window_params = [{transform_indices = @transform_0, window_bounds = array<i64: 256, 32>}, {pipeline_mode = #tpu.pipeline_mode<synchronous>, transform_indices = @transform_1, window_bounds = array<i64: 1, 32>}, {pipeline_mode = #tpu.pipeline_mode<synchronous>, transform_indices = @transform_2, window_bounds = array<i64: 1, 32>}, {pipeline_mode = #tpu.pipeline_mode<synchronous>, transform_indices = @transform_3, window_bounds = array<i64: 32, 96>}, {transform_indices = @transform_4, window_bounds = array<i64: 256, 96>}]} {
    %c0 = arith.constant 0 : index
    %c0_0 = arith.constant 0 : index
    %0 = vector.load %arg1[%c0, %c0_0] : memref<256x32xf32, #tpu.memory_space<vmem>>, vector<256x32xf32>
    %cst = arith.constant dense<0.000000e+00> : vector<256xf32>
    %1 = vector.multi_reduction <add>, %0, %cst [1] : vector<256x32xf32> to vector<256xf32>
    %2 = vector.shape_cast %1 : vector<256xf32> to vector<256x1xf32>
    %cst_1 = arith.constant 3.200000e+01 : f32
    %3 = vector.broadcast %cst_1 : f32 to vector<256x1xf32>
    %4 = arith.divf %2, %3 : vector<256x1xf32>
    %5 = vector.broadcast %4 : vector<256x1xf32> to vector<256x32xf32>
    %6 = arith.subf %0, %5 : vector<256x32xf32>
    %7 = arith.mulf %6, %6 : vector<256x32xf32>
    %cst_2 = arith.constant dense<0.000000e+00> : vector<256xf32>
    %8 = vector.multi_reduction <add>, %7, %cst_2 [1] : vector<256x32xf32> to vector<256xf32>
    %9 = vector.shape_cast %8 : vector<256xf32> to vector<256x1xf32>
    %cst_3 = arith.constant 3.200000e+01 : f32
    %10 = vector.broadcast %cst_3 : f32 to vector<256x1xf32>
    %11 = arith.divf %9, %10 : vector<256x1xf32>
    %12 = vector.broadcast %4 : vector<256x1xf32> to vector<256x32xf32>
    %13 = arith.subf %0, %12 : vector<256x32xf32>
    %cst_4 = arith.constant 9.99999974E-6 : f32
    %14 = vector.broadcast %cst_4 : f32 to vector<256x1xf32>
    %15 = arith.addf %11, %14 : vector<256x1xf32>
    %16 = vector.broadcast %15 : vector<256x1xf32> to vector<256x32xf32>
    %17 = arith.divf %13, %16 : vector<256x32xf32>
    %c0_5 = arith.constant 0 : index
    %c0_6 = arith.constant 0 : index
    %18 = vector.load %arg2[%c0_5, %c0_6] : memref<1x32xf32, #tpu.memory_space<vmem>>, vector<1x32xf32>
    %19 = vector.broadcast %18 : vector<1x32xf32> to vector<256x32xf32>
    %20 = arith.mulf %17, %19 : vector<256x32xf32>
    %c0_7 = arith.constant 0 : index
    %c0_8 = arith.constant 0 : index
    %21 = vector.load %arg3[%c0_7, %c0_8] : memref<1x32xf32, #tpu.memory_space<vmem>>, vector<1x32xf32>
    %22 = vector.broadcast %21 : vector<1x32xf32> to vector<256x32xf32>
    %23 = arith.addf %20, %22 : vector<256x32xf32>
    %c0_9 = arith.constant 0 : index
    %c0_10 = arith.constant 0 : index
    %24 = vector.load %arg4[%c0_9, %c0_10] : memref<32x96xf32, #tpu.memory_space<vmem>>, vector<32x96xf32>
    %cst_11 = arith.constant dense<0.000000e+00> : vector<256x96xf32>
    %25 = tpu.matmul %23, %24, %cst_11 {dimension_numbers = #tpu.dot_dimension_numbers<[1], [0], [0], [1], [0, 0, 1, 1], [], []>} : vector<256x32xf32>, vector<32x96xf32>, vector<256x96xf32> -> vector<256x96xf32>
    %c0_12 = arith.constant 0 : index
    %c0_13 = arith.constant 0 : index
    %26 = vector.load %arg5[%c0_12, %c0_13] : memref<256x96xf32, #tpu.memory_space<vmem>>, vector<256x96xf32>
    tpu.vector_store %arg5[%c0_12, %c0_13], %25 {strides = array<i32>} : memref<256x96xf32, #tpu.memory_space<vmem>>, vector<256x96xf32>,
    return
  }
  func.func @transform_0(%arg0: i32) -> (i32, i32) {
    %c0_i32 = arith.constant 0 : i32
    %c0_i32_0 = arith.constant 0 : i32
    return %arg0, %c0_i32 : i32, i32
  }
  func.func @transform_1(%arg0: i32) -> (i32, i32) {
    %c0_i32 = arith.constant 0 : i32
    %c0_i32_0 = arith.constant 0 : i32
    %c0_i32_1 = arith.constant 0 : i32
    return %c0_i32, %c0_i32_0 : i32, i32
  }
  func.func @transform_2(%arg0: i32) -> (i32, i32) {
    %c0_i32 = arith.constant 0 : i32
    %c0_i32_0 = arith.constant 0 : i32
    %c0_i32_1 = arith.constant 0 : i32
    return %c0_i32, %c0_i32_0 : i32, i32
  }
  func.func @transform_3(%arg0: i32) -> (i32, i32) {
    %c0_i32 = arith.constant 0 : i32
    %c0_i32_0 = arith.constant 0 : i32
    %c0_i32_1 = arith.constant 0 : i32
    return %c0_i32, %c0_i32_0 : i32, i32
  }
  func.func @transform_4(%arg0: i32) -> (i32, i32) {
    %c0_i32 = arith.constant 0 : i32
    %c0_i32_0 = arith.constant 0 : i32
    return %arg0, %c0_i32 : i32, i32
  }
}

module attributes {stable_mosaic.version = 11 : i64} {
  func.func @_attn_kernel(%arg0: i32, %arg1: memref<16x16x32xf32, #tpu.memory_space<vmem>>, %arg2: memref<16x16x32xf32, #tpu.memory_space<vmem>>, %arg3: memref<16x16x32xf32, #tpu.memory_space<vmem>>, %arg4: memref<16x16xf32, #tpu.memory_space<vmem>>, %arg5: memref<16x16x32xf32, #tpu.memory_space<vmem>>) attributes {dimension_semantics = [#tpu.dimension_semantics<parallel>], iteration_bounds = array<i64: 2>, scalar_prefetch = 0 : i64, scratch_operands = 0 : i64, tpu.core_type = #tpu.core_type<tc>, window_params = [{transform_indices = @transform_0, window_bounds = array<i64: 16, 16, 32>}, {transform_indices = @transform_1, window_bounds = array<i64: 16, 16, 32>}, {transform_indices = @transform_2, window_bounds = array<i64: 16, 16, 32>}, {pipeline_mode = #tpu.pipeline_mode<synchronous>, transform_indices = @transform_3, window_bounds = array<i64: 16, 16>}, {transform_indices = @transform_4, window_bounds = array<i64: 16, 16, 32>}]} {
    %c0 = arith.constant 0 : index
    %c0_0 = arith.constant 0 : index
    %c0_1 = arith.constant 0 : index
    %0 = vector.load %arg1[%c0, %c0_0, %c0_1] : memref<16x16x32xf32, #tpu.memory_space<vmem>>, vector<16x16x32xf32>
    %c0_2 = arith.constant 0 : index
    %c0_3 = arith.constant 0 : index
    %c0_4 = arith.constant 0 : index
    %1 = vector.load %arg2[%c0_2, %c0_3, %c0_4] : memref<16x16x32xf32, #tpu.memory_space<vmem>>, vector<16x16x32xf32>
    %c0_5 = arith.constant 0 : index
    %c0_6 = arith.constant 0 : index
    %c0_7 = arith.constant 0 : index
    %2 = vector.load %arg3[%c0_5, %c0_6, %c0_7] : memref<16x16x32xf32, #tpu.memory_space<vmem>>, vector<16x16x32xf32>
    "tpu.trace_start"() <{level = 10 : i32, message = "bqd,bkd->bqk"}> : () -> ()
    %cst = arith.constant dense<0.000000e+00> : vector<16x16x16xf32>
    %3 = tpu.matmul %0, %1, %cst {dimension_numbers = #tpu.dot_dimension_numbers<[2], [2], [1], [1], [0, 0, 0, 1, 1, 1], [0], [0]>} : vector<16x16x32xf32>, vector<16x16x32xf32>, vector<16x16x16xf32> -> vector<16x16x16xf32>
    "tpu.trace_stop"() : () -> ()
    %c0_8 = arith.constant 0 : index
    %c0_9 = arith.constant 0 : index
    %4 = vector.load %arg4[%c0_8, %c0_9] : memref<16x16xf32, #tpu.memory_space<vmem>>, vector<16x16xf32>
    %5 = vector.shape_cast %4 : vector<16x16xf32> to vector<1x16x16xf32>
    %6 = vector.broadcast %5 : vector<1x16x16xf32> to vector<16x16x16xf32>
    %7 = arith.addf %3, %6 : vector<16x16x16xf32>
    %cst_10 = arith.constant dense<0xFF800000> : vector<16x16xf32>
    %8 = vector.multi_reduction <maximumf>, %7, %cst_10 [2] : vector<16x16x16xf32> to vector<16x16xf32>
    %9 = vector.shape_cast %8 : vector<16x16xf32> to vector<16x16x1xf32>
    %10 = vector.broadcast %9 : vector<16x16x1xf32> to vector<16x16x16xf32>
    %11 = arith.subf %7, %10 : vector<16x16x16xf32>
    %12 = math.exp %11 : vector<16x16x16xf32>
    %cst_11 = arith.constant dense<0.000000e+00> : vector<16x16xf32>
    %13 = vector.multi_reduction <add>, %12, %cst_11 [2] : vector<16x16x16xf32> to vector<16x16xf32>
    %14 = vector.shape_cast %13 : vector<16x16xf32> to vector<16x16x1xf32>
    %15 = tpu.reciprocal %14 {approx = true} : vector<16x16x1xf32> -> vector<16x16x1xf32>
    %16 = vector.broadcast %15 : vector<16x16x1xf32> to vector<16x16x16xf32>
    %17 = arith.mulf %12, %16 : vector<16x16x16xf32>
    "tpu.trace_start"() <{level = 10 : i32, message = "bqk,bkd->bqd"}> : () -> ()
    %cst_12 = arith.constant dense<0.000000e+00> : vector<16x16x32xf32>
    %18 = tpu.matmul %17, %2, %cst_12 {dimension_numbers = #tpu.dot_dimension_numbers<[2], [1], [1], [2], [0, 0, 0, 1, 1, 2], [0], [0]>} : vector<16x16x16xf32>, vector<16x16x32xf32>, vector<16x16x32xf32> -> vector<16x16x32xf32>
    "tpu.trace_stop"() : () -> ()
    %c0_13 = arith.constant 0 : index
    %c0_14 = arith.constant 0 : index
    %c0_15 = arith.constant 0 : index
    %19 = vector.load %arg5[%c0_13, %c0_14, %c0_15] : memref<16x16x32xf32, #tpu.memory_space<vmem>>, vector<16x16x32xf32>
    tpu.vector_store %arg5[%c0_13, %c0_14, %c0_15], %18 {strides = array<i32>} : memref<16x16x32xf32, #tpu.memory_space<vmem>>, vector<16x16x32xf32>,
    return
  }
  func.func @transform_0(%arg0: i32) -> (i32, i32, i32) {
    %c0_i32 = arith.constant 0 : i32
    %c0_i32_0 = arith.constant 0 : i32
    %c0_i32_1 = arith.constant 0 : i32
    return %arg0, %c0_i32, %c0_i32_0 : i32, i32, i32
  }
  func.func @transform_1(%arg0: i32) -> (i32, i32, i32) {
    %c0_i32 = arith.constant 0 : i32
    %c0_i32_0 = arith.constant 0 : i32
    %c0_i32_1 = arith.constant 0 : i32
    return %arg0, %c0_i32, %c0_i32_0 : i32, i32, i32
  }
  func.func @transform_2(%arg0: i32) -> (i32, i32, i32) {
    %c0_i32 = arith.constant 0 : i32
    %c0_i32_0 = arith.constant 0 : i32
    %c0_i32_1 = arith.constant 0 : i32
    return %arg0, %c0_i32, %c0_i32_0 : i32, i32, i32
  }
  func.func @transform_3(%arg0: i32) -> (i32, i32) {
    %c0_i32 = arith.constant 0 : i32
    %c0_i32_0 = arith.constant 0 : i32
    %c0_i32_1 = arith.constant 0 : i32
    return %c0_i32, %c0_i32_0 : i32, i32
  }
  func.func @transform_4(%arg0: i32) -> (i32, i32, i32) {
    %c0_i32 = arith.constant 0 : i32
    %c0_i32_0 = arith.constant 0 : i32
    %c0_i32_1 = arith.constant 0 : i32
    return %arg0, %c0_i32, %c0_i32_0 : i32, i32, i32
  }
}

module attributes {stable_mosaic.version = 11 : i64} {
  func.func @_matmul_bias_res_kernel(%arg0: i32, %arg1: memref<256x32xf32, #tpu.memory_space<vmem>>, %arg2: memref<32x32xf32, #tpu.memory_space<vmem>>, %arg3: memref<1x32xf32, #tpu.memory_space<vmem>>, %arg4: memref<256x32xf32, #tpu.memory_space<vmem>>, %arg5: memref<256x32xf32, #tpu.memory_space<vmem>>) attributes {dimension_semantics = [#tpu.dimension_semantics<parallel>], iteration_bounds = array<i64: 2>, scalar_prefetch = 0 : i64, scratch_operands = 0 : i64, tpu.core_type = #tpu.core_type<tc>, window_params = [{transform_indices = @transform_0, window_bounds = array<i64: 256, 32>}, {pipeline_mode = #tpu.pipeline_mode<synchronous>, transform_indices = @transform_1, window_bounds = array<i64: 32, 32>}, {pipeline_mode = #tpu.pipeline_mode<synchronous>, transform_indices = @transform_2, window_bounds = array<i64: 1, 32>}, {transform_indices = @transform_3, window_bounds = array<i64: 256, 32>}, {transform_indices = @transform_4, window_bounds = array<i64: 256, 32>}]} {
    %c0 = arith.constant 0 : index
    %c0_0 = arith.constant 0 : index
    %0 = vector.load %arg1[%c0, %c0_0] : memref<256x32xf32, #tpu.memory_space<vmem>>, vector<256x32xf32>
    %c0_1 = arith.constant 0 : index
    %c0_2 = arith.constant 0 : index
    %1 = vector.load %arg2[%c0_1, %c0_2] : memref<32x32xf32, #tpu.memory_space<vmem>>, vector<32x32xf32>
    %cst = arith.constant dense<0.000000e+00> : vector<256x32xf32>
    %2 = tpu.matmul %0, %1, %cst {dimension_numbers = #tpu.dot_dimension_numbers<[1], [0], [0], [1], [0, 0, 1, 1], [], []>} : vector<256x32xf32>, vector<32x32xf32>, vector<256x32xf32> -> vector<256x32xf32>
    %c0_3 = arith.constant 0 : index
    %c0_4 = arith.constant 0 : index
    %3 = vector.load %arg3[%c0_3, %c0_4] : memref<1x32xf32, #tpu.memory_space<vmem>>, vector<1x32xf32>
    %4 = vector.broadcast %3 : vector<1x32xf32> to vector<256x32xf32>
    %5 = arith.addf %2, %4 : vector<256x32xf32>
    %c0_5 = arith.constant 0 : index
    %c0_6 = arith.constant 0 : index
    %6 = vector.load %arg4[%c0_5, %c0_6] : memref<256x32xf32, #tpu.memory_space<vmem>>, vector<256x32xf32>
    %7 = arith.addf %5, %6 : vector<256x32xf32>
    %c0_7 = arith.constant 0 : index
    %c0_8 = arith.constant 0 : index
    %8 = vector.load %arg5[%c0_7, %c0_8] : memref<256x32xf32, #tpu.memory_space<vmem>>, vector<256x32xf32>
    tpu.vector_store %arg5[%c0_7, %c0_8], %7 {strides = array<i32>} : memref<256x32xf32, #tpu.memory_space<vmem>>, vector<256x32xf32>,
    return
  }
  func.func @transform_0(%arg0: i32) -> (i32, i32) {
    %c0_i32 = arith.constant 0 : i32
    %c0_i32_0 = arith.constant 0 : i32
    return %arg0, %c0_i32 : i32, i32
  }
  func.func @transform_1(%arg0: i32) -> (i32, i32) {
    %c0_i32 = arith.constant 0 : i32
    %c0_i32_0 = arith.constant 0 : i32
    %c0_i32_1 = arith.constant 0 : i32
    return %c0_i32, %c0_i32_0 : i32, i32
  }
  func.func @transform_2(%arg0: i32) -> (i32, i32) {
    %c0_i32 = arith.constant 0 : i32
    %c0_i32_0 = arith.constant 0 : i32
    %c0_i32_1 = arith.constant 0 : i32
    return %c0_i32, %c0_i32_0 : i32, i32
  }
  func.func @transform_3(%arg0: i32) -> (i32, i32) {
    %c0_i32 = arith.constant 0 : i32
    %c0_i32_0 = arith.constant 0 : i32
    return %arg0, %c0_i32 : i32, i32
  }
  func.func @transform_4(%arg0: i32) -> (i32, i32) {
    %c0_i32 = arith.constant 0 : i32
    %c0_i32_0 = arith.constant 0 : i32
    return %arg0, %c0_i32 : i32, i32
  }
}

module attributes {stable_mosaic.version = 11 : i64} {
  func.func @_ffn_kernel(%arg0: i32, %arg1: memref<128x32xf32, #tpu.memory_space<vmem>>, %arg2: memref<1x32xf32, #tpu.memory_space<vmem>>, %arg3: memref<1x32xf32, #tpu.memory_space<vmem>>, %arg4: memref<32x128xf32, #tpu.memory_space<vmem>>, %arg5: memref<1x128xf32, #tpu.memory_space<vmem>>, %arg6: memref<128x32xf32, #tpu.memory_space<vmem>>, %arg7: memref<1x32xf32, #tpu.memory_space<vmem>>, %arg8: memref<128x32xf32, #tpu.memory_space<vmem>>) attributes {dimension_semantics = [#tpu.dimension_semantics<parallel>], iteration_bounds = array<i64: 4>, scalar_prefetch = 0 : i64, scratch_operands = 0 : i64, tpu.core_type = #tpu.core_type<tc>, window_params = [{transform_indices = @transform_0, window_bounds = array<i64: 128, 32>}, {pipeline_mode = #tpu.pipeline_mode<synchronous>, transform_indices = @transform_1, window_bounds = array<i64: 1, 32>}, {pipeline_mode = #tpu.pipeline_mode<synchronous>, transform_indices = @transform_2, window_bounds = array<i64: 1, 32>}, {pipeline_mode = #tpu.pipeline_mode<synchronous>, transform_indices = @transform_3, window_bounds = array<i64: 32, 128>}, {pipeline_mode = #tpu.pipeline_mode<synchronous>, transform_indices = @transform_4, window_bounds = array<i64: 1, 128>}, {pipeline_mode = #tpu.pipeline_mode<synchronous>, transform_indices = @transform_5, window_bounds = array<i64: 128, 32>}, {pipeline_mode = #tpu.pipeline_mode<synchronous>, transform_indices = @transform_6, window_bounds = array<i64: 1, 32>}, {transform_indices = @transform_7, window_bounds = array<i64: 128, 32>}]} {
    %c0 = arith.constant 0 : index
    %c0_0 = arith.constant 0 : index
    %0 = vector.load %arg1[%c0, %c0_0] : memref<128x32xf32, #tpu.memory_space<vmem>>, vector<128x32xf32>
    %cst = arith.constant dense<0.000000e+00> : vector<128xf32>
    %1 = vector.multi_reduction <add>, %0, %cst [1] : vector<128x32xf32> to vector<128xf32>
    %2 = vector.shape_cast %1 : vector<128xf32> to vector<128x1xf32>
    %cst_1 = arith.constant 3.200000e+01 : f32
    %3 = vector.broadcast %cst_1 : f32 to vector<128x1xf32>
    %4 = arith.divf %2, %3 : vector<128x1xf32>
    %5 = vector.broadcast %4 : vector<128x1xf32> to vector<128x32xf32>
    %6 = arith.subf %0, %5 : vector<128x32xf32>
    %7 = arith.mulf %6, %6 : vector<128x32xf32>
    %cst_2 = arith.constant dense<0.000000e+00> : vector<128xf32>
    %8 = vector.multi_reduction <add>, %7, %cst_2 [1] : vector<128x32xf32> to vector<128xf32>
    %9 = vector.shape_cast %8 : vector<128xf32> to vector<128x1xf32>
    %cst_3 = arith.constant 3.200000e+01 : f32
    %10 = vector.broadcast %cst_3 : f32 to vector<128x1xf32>
    %11 = arith.divf %9, %10 : vector<128x1xf32>
    %12 = vector.broadcast %4 : vector<128x1xf32> to vector<128x32xf32>
    %13 = arith.subf %0, %12 : vector<128x32xf32>
    %cst_4 = arith.constant 9.99999974E-6 : f32
    %14 = vector.broadcast %cst_4 : f32 to vector<128x1xf32>
    %15 = arith.addf %11, %14 : vector<128x1xf32>
    %16 = vector.broadcast %15 : vector<128x1xf32> to vector<128x32xf32>
    %17 = arith.divf %13, %16 : vector<128x32xf32>
    %c0_5 = arith.constant 0 : index
    %c0_6 = arith.constant 0 : index
    %18 = vector.load %arg2[%c0_5, %c0_6] : memref<1x32xf32, #tpu.memory_space<vmem>>, vector<1x32xf32>
    %19 = vector.broadcast %18 : vector<1x32xf32> to vector<128x32xf32>
    %20 = arith.mulf %17, %19 : vector<128x32xf32>
    %c0_7 = arith.constant 0 : index
    %c0_8 = arith.constant 0 : index
    %21 = vector.load %arg3[%c0_7, %c0_8] : memref<1x32xf32, #tpu.memory_space<vmem>>, vector<1x32xf32>
    %22 = vector.broadcast %21 : vector<1x32xf32> to vector<128x32xf32>
    %23 = arith.addf %20, %22 : vector<128x32xf32>
    %c0_9 = arith.constant 0 : index
    %c0_10 = arith.constant 0 : index
    %24 = vector.load %arg4[%c0_9, %c0_10] : memref<32x128xf32, #tpu.memory_space<vmem>>, vector<32x128xf32>
    %cst_11 = arith.constant dense<0.000000e+00> : vector<128x128xf32>
    %25 = tpu.matmul %23, %24, %cst_11 {dimension_numbers = #tpu.dot_dimension_numbers<[1], [0], [0], [1], [0, 0, 1, 1], [], []>} : vector<128x32xf32>, vector<32x128xf32>, vector<128x128xf32> -> vector<128x128xf32>
    %c0_12 = arith.constant 0 : index
    %c0_13 = arith.constant 0 : index
    %26 = vector.load %arg5[%c0_12, %c0_13] : memref<1x128xf32, #tpu.memory_space<vmem>>, vector<1x128xf32>
    %27 = vector.broadcast %26 : vector<1x128xf32> to vector<128x128xf32>
    %28 = arith.addf %25, %27 : vector<128x128xf32>
    %cst_14 = arith.constant 5.000000e-01 : f32
    %29 = vector.broadcast %cst_14 : f32 to vector<128x128xf32>
    %30 = arith.mulf %29, %28 : vector<128x128xf32>
    %cst_15 = arith.constant 0.707106769 : f32
    %31 = vector.broadcast %cst_15 : f32 to vector<128x128xf32>
    %32 = arith.mulf %28, %31 : vector<128x128xf32>
    %33 = math.erf %32 : vector<128x128xf32>
    %cst_16 = arith.constant 1.000000e+00 : f32
    %34 = vector.broadcast %cst_16 : f32 to vector<128x128xf32>
    %35 = arith.addf %34, %33 : vector<128x128xf32>
    %36 = arith.mulf %30, %35 : vector<128x128xf32>
    %c0_17 = arith.constant 0 : index
    %c0_18 = arith.constant 0 : index
    %37 = vector.load %arg6[%c0_17, %c0_18] : memref<128x32xf32, #tpu.memory_space<vmem>>, vector<128x32xf32>
    %cst_19 = arith.constant dense<0.000000e+00> : vector<128x32xf32>
    %38 = tpu.matmul %36, %37, %cst_19 {dimension_numbers = #tpu.dot_dimension_numbers<[1], [0], [0], [1], [0, 0, 1, 1], [], []>} : vector<128x128xf32>, vector<128x32xf32>, vector<128x32xf32> -> vector<128x32xf32>
    %c0_20 = arith.constant 0 : index
    %c0_21 = arith.constant 0 : index
    %39 = vector.load %arg7[%c0_20, %c0_21] : memref<1x32xf32, #tpu.memory_space<vmem>>, vector<1x32xf32>
    %40 = vector.broadcast %39 : vector<1x32xf32> to vector<128x32xf32>
    %41 = arith.addf %38, %40 : vector<128x32xf32>
    %42 = arith.addf %41, %0 : vector<128x32xf32>
    %c0_22 = arith.constant 0 : index
    %c0_23 = arith.constant 0 : index
    %43 = vector.load %arg8[%c0_22, %c0_23] : memref<128x32xf32, #tpu.memory_space<vmem>>, vector<128x32xf32>
    tpu.vector_store %arg8[%c0_22, %c0_23], %42 {strides = array<i32>} : memref<128x32xf32, #tpu.memory_space<vmem>>, vector<128x32xf32>,
    return
  }
  func.func @transform_0(%arg0: i32) -> (i32, i32) {
    %c0_i32 = arith.constant 0 : i32
    %c0_i32_0 = arith.constant 0 : i32
    return %arg0, %c0_i32 : i32, i32
  }
  func.func @transform_1(%arg0: i32) -> (i32, i32) {
    %c0_i32 = arith.constant 0 : i32
    %c0_i32_0 = arith.constant 0 : i32
    %c0_i32_1 = arith.constant 0 : i32
    return %c0_i32, %c0_i32_0 : i32, i32
  }
  func.func @transform_2(%arg0: i32) -> (i32, i32) {
    %c0_i32 = arith.constant 0 : i32
    %c0_i32_0 = arith.constant 0 : i32
    %c0_i32_1 = arith.constant 0 : i32
    return %c0_i32, %c0_i32_0 : i32, i32
  }
  func.func @transform_3(%arg0: i32) -> (i32, i32) {
    %c0_i32 = arith.constant 0 : i32
    %c0_i32_0 = arith.constant 0 : i32
    %c0_i32_1 = arith.constant 0 : i32
    return %c0_i32, %c0_i32_0 : i32, i32
  }
  func.func @transform_4(%arg0: i32) -> (i32, i32) {
    %c0_i32 = arith.constant 0 : i32
    %c0_i32_0 = arith.constant 0 : i32
    %c0_i32_1 = arith.constant 0 : i32
    return %c0_i32, %c0_i32_0 : i32, i32
  }
  func.func @transform_5(%arg0: i32) -> (i32, i32) {
    %c0_i32 = arith.constant 0 : i32
    %c0_i32_0 = arith.constant 0 : i32
    %c0_i32_1 = arith.constant 0 : i32
    return %c0_i32, %c0_i32_0 : i32, i32
  }
  func.func @transform_6(%arg0: i32) -> (i32, i32) {
    %c0_i32 = arith.constant 0 : i32
    %c0_i32_0 = arith.constant 0 : i32
    %c0_i32_1 = arith.constant 0 : i32
    return %c0_i32, %c0_i32_0 : i32, i32
  }
  func.func @transform_7(%arg0: i32) -> (i32, i32) {
    %c0_i32 = arith.constant 0 : i32
    %c0_i32_0 = arith.constant 0 : i32
    return %arg0, %c0_i32 : i32, i32
  }
}

module attributes {stable_mosaic.version = 11 : i64} {
  func.func @_attn_kernel(%arg0: i32, %arg1: memref<4x64x32xf32, #tpu.memory_space<vmem>>, %arg2: memref<4x64x32xf32, #tpu.memory_space<vmem>>, %arg3: memref<4x64x32xf32, #tpu.memory_space<vmem>>, %arg4: memref<64x64xf32, #tpu.memory_space<vmem>>, %arg5: memref<4x64x32xf32, #tpu.memory_space<vmem>>) attributes {dimension_semantics = [#tpu.dimension_semantics<parallel>], iteration_bounds = array<i64: 2>, scalar_prefetch = 0 : i64, scratch_operands = 0 : i64, tpu.core_type = #tpu.core_type<tc>, window_params = [{transform_indices = @transform_0, window_bounds = array<i64: 4, 64, 32>}, {transform_indices = @transform_1, window_bounds = array<i64: 4, 64, 32>}, {transform_indices = @transform_2, window_bounds = array<i64: 4, 64, 32>}, {pipeline_mode = #tpu.pipeline_mode<synchronous>, transform_indices = @transform_3, window_bounds = array<i64: 64, 64>}, {transform_indices = @transform_4, window_bounds = array<i64: 4, 64, 32>}]} {
    %c0 = arith.constant 0 : index
    %c0_0 = arith.constant 0 : index
    %c0_1 = arith.constant 0 : index
    %0 = vector.load %arg1[%c0, %c0_0, %c0_1] : memref<4x64x32xf32, #tpu.memory_space<vmem>>, vector<4x64x32xf32>
    %c0_2 = arith.constant 0 : index
    %c0_3 = arith.constant 0 : index
    %c0_4 = arith.constant 0 : index
    %1 = vector.load %arg2[%c0_2, %c0_3, %c0_4] : memref<4x64x32xf32, #tpu.memory_space<vmem>>, vector<4x64x32xf32>
    %c0_5 = arith.constant 0 : index
    %c0_6 = arith.constant 0 : index
    %c0_7 = arith.constant 0 : index
    %2 = vector.load %arg3[%c0_5, %c0_6, %c0_7] : memref<4x64x32xf32, #tpu.memory_space<vmem>>, vector<4x64x32xf32>
    "tpu.trace_start"() <{level = 10 : i32, message = "bqd,bkd->bqk"}> : () -> ()
    %cst = arith.constant dense<0.000000e+00> : vector<4x64x64xf32>
    %3 = tpu.matmul %0, %1, %cst {dimension_numbers = #tpu.dot_dimension_numbers<[2], [2], [1], [1], [0, 0, 0, 1, 1, 1], [0], [0]>} : vector<4x64x32xf32>, vector<4x64x32xf32>, vector<4x64x64xf32> -> vector<4x64x64xf32>
    "tpu.trace_stop"() : () -> ()
    %c0_8 = arith.constant 0 : index
    %c0_9 = arith.constant 0 : index
    %4 = vector.load %arg4[%c0_8, %c0_9] : memref<64x64xf32, #tpu.memory_space<vmem>>, vector<64x64xf32>
    %5 = vector.shape_cast %4 : vector<64x64xf32> to vector<1x64x64xf32>
    %6 = vector.broadcast %5 : vector<1x64x64xf32> to vector<4x64x64xf32>
    %7 = arith.addf %3, %6 : vector<4x64x64xf32>
    %cst_10 = arith.constant dense<0xFF800000> : vector<4x64xf32>
    %8 = vector.multi_reduction <maximumf>, %7, %cst_10 [2] : vector<4x64x64xf32> to vector<4x64xf32>
    %9 = vector.shape_cast %8 : vector<4x64xf32> to vector<4x64x1xf32>
    %10 = vector.broadcast %9 : vector<4x64x1xf32> to vector<4x64x64xf32>
    %11 = arith.subf %7, %10 : vector<4x64x64xf32>
    %12 = math.exp %11 : vector<4x64x64xf32>
    %cst_11 = arith.constant dense<0.000000e+00> : vector<4x64xf32>
    %13 = vector.multi_reduction <add>, %12, %cst_11 [2] : vector<4x64x64xf32> to vector<4x64xf32>
    %14 = vector.shape_cast %13 : vector<4x64xf32> to vector<4x64x1xf32>
    %15 = tpu.reciprocal %14 {approx = true} : vector<4x64x1xf32> -> vector<4x64x1xf32>
    %16 = vector.broadcast %15 : vector<4x64x1xf32> to vector<4x64x64xf32>
    %17 = arith.mulf %12, %16 : vector<4x64x64xf32>
    "tpu.trace_start"() <{level = 10 : i32, message = "bqk,bkd->bqd"}> : () -> ()
    %cst_12 = arith.constant dense<0.000000e+00> : vector<4x64x32xf32>
    %18 = tpu.matmul %17, %2, %cst_12 {dimension_numbers = #tpu.dot_dimension_numbers<[2], [1], [1], [2], [0, 0, 0, 1, 1, 2], [0], [0]>} : vector<4x64x64xf32>, vector<4x64x32xf32>, vector<4x64x32xf32> -> vector<4x64x32xf32>
    "tpu.trace_stop"() : () -> ()
    %c0_13 = arith.constant 0 : index
    %c0_14 = arith.constant 0 : index
    %c0_15 = arith.constant 0 : index
    %19 = vector.load %arg5[%c0_13, %c0_14, %c0_15] : memref<4x64x32xf32, #tpu.memory_space<vmem>>, vector<4x64x32xf32>
    tpu.vector_store %arg5[%c0_13, %c0_14, %c0_15], %18 {strides = array<i32>} : memref<4x64x32xf32, #tpu.memory_space<vmem>>, vector<4x64x32xf32>,
    return
  }
  func.func @transform_0(%arg0: i32) -> (i32, i32, i32) {
    %c0_i32 = arith.constant 0 : i32
    %c0_i32_0 = arith.constant 0 : i32
    %c0_i32_1 = arith.constant 0 : i32
    return %arg0, %c0_i32, %c0_i32_0 : i32, i32, i32
  }
  func.func @transform_1(%arg0: i32) -> (i32, i32, i32) {
    %c0_i32 = arith.constant 0 : i32
    %c0_i32_0 = arith.constant 0 : i32
    %c0_i32_1 = arith.constant 0 : i32
    return %arg0, %c0_i32, %c0_i32_0 : i32, i32, i32
  }
  func.func @transform_2(%arg0: i32) -> (i32, i32, i32) {
    %c0_i32 = arith.constant 0 : i32
    %c0_i32_0 = arith.constant 0 : i32
    %c0_i32_1 = arith.constant 0 : i32
    return %arg0, %c0_i32, %c0_i32_0 : i32, i32, i32
  }
  func.func @transform_3(%arg0: i32) -> (i32, i32) {
    %c0_i32 = arith.constant 0 : i32
    %c0_i32_0 = arith.constant 0 : i32
    %c0_i32_1 = arith.constant 0 : i32
    return %c0_i32, %c0_i32_0 : i32, i32
  }
  func.func @transform_4(%arg0: i32) -> (i32, i32, i32) {
    %c0_i32 = arith.constant 0 : i32
    %c0_i32_0 = arith.constant 0 : i32
    %c0_i32_1 = arith.constant 0 : i32
    return %arg0, %c0_i32, %c0_i32_0 : i32, i32, i32
  }
}

module attributes {stable_mosaic.version = 11 : i64} {
  func.func @_ffn_kernel(%arg0: i32, %arg1: memref<128x32xf32, #tpu.memory_space<vmem>>, %arg2: memref<1x32xf32, #tpu.memory_space<vmem>>, %arg3: memref<1x32xf32, #tpu.memory_space<vmem>>, %arg4: memref<32x128xf32, #tpu.memory_space<vmem>>, %arg5: memref<1x128xf32, #tpu.memory_space<vmem>>, %arg6: memref<128x32xf32, #tpu.memory_space<vmem>>, %arg7: memref<1x32xf32, #tpu.memory_space<vmem>>, %arg8: memref<128x32xf32, #tpu.memory_space<vmem>>) attributes {dimension_semantics = [#tpu.dimension_semantics<parallel>], iteration_bounds = array<i64: 4>, scalar_prefetch = 0 : i64, scratch_operands = 0 : i64, tpu.core_type = #tpu.core_type<tc>, window_params = [{transform_indices = @transform_0, window_bounds = array<i64: 128, 32>}, {pipeline_mode = #tpu.pipeline_mode<synchronous>, transform_indices = @transform_1, window_bounds = array<i64: 1, 32>}, {pipeline_mode = #tpu.pipeline_mode<synchronous>, transform_indices = @transform_2, window_bounds = array<i64: 1, 32>}, {pipeline_mode = #tpu.pipeline_mode<synchronous>, transform_indices = @transform_3, window_bounds = array<i64: 32, 128>}, {pipeline_mode = #tpu.pipeline_mode<synchronous>, transform_indices = @transform_4, window_bounds = array<i64: 1, 128>}, {pipeline_mode = #tpu.pipeline_mode<synchronous>, transform_indices = @transform_5, window_bounds = array<i64: 128, 32>}, {pipeline_mode = #tpu.pipeline_mode<synchronous>, transform_indices = @transform_6, window_bounds = array<i64: 1, 32>}, {transform_indices = @transform_7, window_bounds = array<i64: 128, 32>}]} {
    %c0 = arith.constant 0 : index
    %c0_0 = arith.constant 0 : index
    %0 = vector.load %arg1[%c0, %c0_0] : memref<128x32xf32, #tpu.memory_space<vmem>>, vector<128x32xf32>
    %cst = arith.constant dense<0.000000e+00> : vector<128xf32>
    %1 = vector.multi_reduction <add>, %0, %cst [1] : vector<128x32xf32> to vector<128xf32>
    %2 = vector.shape_cast %1 : vector<128xf32> to vector<128x1xf32>
    %cst_1 = arith.constant 3.200000e+01 : f32
    %3 = vector.broadcast %cst_1 : f32 to vector<128x1xf32>
    %4 = arith.divf %2, %3 : vector<128x1xf32>
    %5 = vector.broadcast %4 : vector<128x1xf32> to vector<128x32xf32>
    %6 = arith.subf %0, %5 : vector<128x32xf32>
    %7 = arith.mulf %6, %6 : vector<128x32xf32>
    %cst_2 = arith.constant dense<0.000000e+00> : vector<128xf32>
    %8 = vector.multi_reduction <add>, %7, %cst_2 [1] : vector<128x32xf32> to vector<128xf32>
    %9 = vector.shape_cast %8 : vector<128xf32> to vector<128x1xf32>
    %cst_3 = arith.constant 3.200000e+01 : f32
    %10 = vector.broadcast %cst_3 : f32 to vector<128x1xf32>
    %11 = arith.divf %9, %10 : vector<128x1xf32>
    %12 = vector.broadcast %4 : vector<128x1xf32> to vector<128x32xf32>
    %13 = arith.subf %0, %12 : vector<128x32xf32>
    %cst_4 = arith.constant 9.99999974E-6 : f32
    %14 = vector.broadcast %cst_4 : f32 to vector<128x1xf32>
    %15 = arith.addf %11, %14 : vector<128x1xf32>
    %16 = vector.broadcast %15 : vector<128x1xf32> to vector<128x32xf32>
    %17 = arith.divf %13, %16 : vector<128x32xf32>
    %c0_5 = arith.constant 0 : index
    %c0_6 = arith.constant 0 : index
    %18 = vector.load %arg2[%c0_5, %c0_6] : memref<1x32xf32, #tpu.memory_space<vmem>>, vector<1x32xf32>
    %19 = vector.broadcast %18 : vector<1x32xf32> to vector<128x32xf32>
    %20 = arith.mulf %17, %19 : vector<128x32xf32>
    %c0_7 = arith.constant 0 : index
    %c0_8 = arith.constant 0 : index
    %21 = vector.load %arg3[%c0_7, %c0_8] : memref<1x32xf32, #tpu.memory_space<vmem>>, vector<1x32xf32>
    %22 = vector.broadcast %21 : vector<1x32xf32> to vector<128x32xf32>
    %23 = arith.addf %20, %22 : vector<128x32xf32>
    %c0_9 = arith.constant 0 : index
    %c0_10 = arith.constant 0 : index
    %24 = vector.load %arg4[%c0_9, %c0_10] : memref<32x128xf32, #tpu.memory_space<vmem>>, vector<32x128xf32>
    %cst_11 = arith.constant dense<0.000000e+00> : vector<128x128xf32>
    %25 = tpu.matmul %23, %24, %cst_11 {dimension_numbers = #tpu.dot_dimension_numbers<[1], [0], [0], [1], [0, 0, 1, 1], [], []>} : vector<128x32xf32>, vector<32x128xf32>, vector<128x128xf32> -> vector<128x128xf32>
    %c0_12 = arith.constant 0 : index
    %c0_13 = arith.constant 0 : index
    %26 = vector.load %arg5[%c0_12, %c0_13] : memref<1x128xf32, #tpu.memory_space<vmem>>, vector<1x128xf32>
    %27 = vector.broadcast %26 : vector<1x128xf32> to vector<128x128xf32>
    %28 = arith.addf %25, %27 : vector<128x128xf32>
    %cst_14 = arith.constant 5.000000e-01 : f32
    %29 = vector.broadcast %cst_14 : f32 to vector<128x128xf32>
    %30 = arith.mulf %29, %28 : vector<128x128xf32>
    %cst_15 = arith.constant 0.707106769 : f32
    %31 = vector.broadcast %cst_15 : f32 to vector<128x128xf32>
    %32 = arith.mulf %28, %31 : vector<128x128xf32>
    %33 = math.erf %32 : vector<128x128xf32>
    %cst_16 = arith.constant 1.000000e+00 : f32
    %34 = vector.broadcast %cst_16 : f32 to vector<128x128xf32>
    %35 = arith.addf %34, %33 : vector<128x128xf32>
    %36 = arith.mulf %30, %35 : vector<128x128xf32>
    %c0_17 = arith.constant 0 : index
    %c0_18 = arith.constant 0 : index
    %37 = vector.load %arg6[%c0_17, %c0_18] : memref<128x32xf32, #tpu.memory_space<vmem>>, vector<128x32xf32>
    %cst_19 = arith.constant dense<0.000000e+00> : vector<128x32xf32>
    %38 = tpu.matmul %36, %37, %cst_19 {dimension_numbers = #tpu.dot_dimension_numbers<[1], [0], [0], [1], [0, 0, 1, 1], [], []>} : vector<128x128xf32>, vector<128x32xf32>, vector<128x32xf32> -> vector<128x32xf32>
    %c0_20 = arith.constant 0 : index
    %c0_21 = arith.constant 0 : index
    %39 = vector.load %arg7[%c0_20, %c0_21] : memref<1x32xf32, #tpu.memory_space<vmem>>, vector<1x32xf32>
    %40 = vector.broadcast %39 : vector<1x32xf32> to vector<128x32xf32>
    %41 = arith.addf %38, %40 : vector<128x32xf32>
    %42 = arith.addf %41, %0 : vector<128x32xf32>
    %c0_22 = arith.constant 0 : index
    %c0_23 = arith.constant 0 : index
    %43 = vector.load %arg8[%c0_22, %c0_23] : memref<128x32xf32, #tpu.memory_space<vmem>>, vector<128x32xf32>
    tpu.vector_store %arg8[%c0_22, %c0_23], %42 {strides = array<i32>} : memref<128x32xf32, #tpu.memory_space<vmem>>, vector<128x32xf32>,
    return
  }
  func.func @transform_0(%arg0: i32) -> (i32, i32) {
    %c0_i32 = arith.constant 0 : i32
    %c0_i32_0 = arith.constant 0 : i32
    return %arg0, %c0_i32 : i32, i32
  }
  func.func @transform_1(%arg0: i32) -> (i32, i32) {
    %c0_i32 = arith.constant 0 : i32
    %c0_i32_0 = arith.constant 0 : i32
    %c0_i32_1 = arith.constant 0 : i32
    return %c0_i32, %c0_i32_0 : i32, i32
  }
  func.func @transform_2(%arg0: i32) -> (i32, i32) {
    %c0_i32 = arith.constant 0 : i32
    %c0_i32_0 = arith.constant 0 : i32
    %c0_i32_1 = arith.constant 0 : i32
    return %c0_i32, %c0_i32_0 : i32, i32
  }
  func.func @transform_3(%arg0: i32) -> (i32, i32) {
    %c0_i32 = arith.constant 0 : i32
    %c0_i32_0 = arith.constant 0 : i32
    %c0_i32_1 = arith.constant 0 : i32
    return %c0_i32, %c0_i32_0 : i32, i32
  }
  func.func @transform_4(%arg0: i32) -> (i32, i32) {
    %c0_i32 = arith.constant 0 : i32
    %c0_i32_0 = arith.constant 0 : i32
    %c0_i32_1 = arith.constant 0 : i32
    return %c0_i32, %c0_i32_0 : i32, i32
  }
  func.func @transform_5(%arg0: i32) -> (i32, i32) {
    %c0_i32 = arith.constant 0 : i32
    %c0_i32_0 = arith.constant 0 : i32
    %c0_i32_1 = arith.constant 0 : i32
    return %c0_i32, %c0_i32_0 : i32, i32
  }
  func.func @transform_6(%arg0: i32) -> (i32, i32) {
    %c0_i32 = arith.constant 0 : i32
    %c0_i32_0 = arith.constant 0 : i32
    %c0_i32_1 = arith.constant 0 : i32
    return %c0_i32, %c0_i32_0 : i32, i32
  }
  func.func @transform_7(%arg0: i32) -> (i32, i32) {
    %c0_i32 = arith.constant 0 : i32
    %c0_i32_0 = arith.constant 0 : i32
    return %arg0, %c0_i32 : i32, i32
  }
}

</mosaic_0001>

<bundles_post_ra>
// kernel: transformer_forward.16
= control target key start
LH: loop header
LB: loop body
LE: loop exit
PB: predicated region body
PF: predicated region fallthrough
CT: control target
= control target key end

     0   :  { %s1615_s15 = smov 0   ;;  %s3018_s0 = inlined_call_operand.vmem [shape: f32[512,32], index: 0, kind: input, shape index: {}]   ;;  %s3019_s1 = inlined_call_operand.vmem [shape: f32[1,32], index: 1, kind: input, shape index: {}]   ;;  %s3020_s2 = inlined_call_operand.vmem [shape: f32[1,32], index: 2, kind: input, shape index: {}]   ;;  %s3021_s3 = inlined_call_operand.vmem [shape: f32[32,96], index: 3, kind: input, shape index: {}]   ;;  %s3022_s4 = inlined_call_operand.vmem [shape: f32[512,96], index: 4, kind: output, shape index: {}]  }
   0x1 LB: > { %s1447_s16 = sadd.s32 4294967295, %s1587_s15   ;;  %p1451_p0 = scmp.ge.s32.totalorder %s1587_s15, 1  ;;  %s1587_s15 = sphi %s1615_s15, %s14_s15  }
   0x2   : > { %p163_p1 = scmp.lt.s32.totalorder %s1587_s15, 3 }
   0x4   : > { %p164_p2 = pnand %p1451_p0, %p163_p1 }
   0x6   : > { %167 = sbr.rel (%p164_p2) target bundleno = 552 (0x228), region = 36 }
   0xb   : > { %s1452_s17 = sshll.u32 %s1447_s16, 5  ;;  %vm233_vm0 = vcmask 261120  }
   0xc   : > { %p190_p3 = scmp.lt.s32.totalorder %s1452_s17, 63 }
   0xe   : > { %s3099_s17 = smov (!%p190_p3, %s1452_s17), 63 }
   0xf   : > { %s1453_s18 = sshll.u32 %s3099_s17, 3 }
  0x10   : > { %s1631_s21 = scalar_lea.vmem %s3018_s0, %s1453_s18  ;;  %s2949_s14 = scalar_lea.vmem %s3022_s4, %s1453_s18 }
  0x11   : > { %v1634_v0 = vld [vmem:[%s1631_s21 + $0x88] sm:$0xff]  ;;  %v1637_v1 = vld [vmem:[%s1631_s21 + $0x80] sm:$0xff]  ;;  %v1664_v12 = vld [vmem:[%s1631_s21 + $0x90] sm:$0xff] }
  0x12   : > { %v1640_v2 = vld [vmem:[%s1631_s21] sm:$0xff]  ;;  %v285_v3 = vsel %vm233_vm0, %v1634_v0, 0.0  ;;  %v282_v4 = vsel %vm233_vm0, %v1637_v1, 0.0  ;;  %v1649_v6 = vld [vmem:[%s1631_s21 + $0xc8] sm:$0xff]  ;;  %v288_v15 = vsel %vm233_vm0, %v1664_v12, 0.0  ;;  %v1679_v18 = vld [vmem:[%s1631_s21 + $0x50] sm:$0xff] }
  0x13   : > { %v234_v5 = vsel %vm233_vm0, %v1640_v2, 0.0  ;;  %286 = vadd.xlane.f32.xlu2 %v285_v3  ;;  %283 = vadd.xlane.f32.xlu0 %v282_v4  ;;  %v1652_v7 = vld [vmem:[%s1631_s21 + $0xc0] sm:$0xff]  ;;  %v309_v9 = vsel %vm233_vm0, %v1649_v6, 0.0  ;;  %v1667_v13 = vld [vmem:[%s1631_s21 + $0x8] sm:$0xff]  ;;  %v1682_v19 = vld [vmem:[%s1631_s21 + $0xd0] sm:$0xff]  ;;  %v264_v21 = vsel %vm233_vm0, %v1679_v18, 0.0 }
  0x14   : > { %235 = vadd.xlane.f32.xlu1 %v234_v5  ;;  %v1655_v8 = vld [vmem:[%s1631_s21 + $0x40] sm:$0xff]  ;;  %v306_v10 = vsel %vm233_vm0, %v1652_v7, 0.0  ;;  %v1670_v14 = vld [vmem:[%s1631_s21 + $0x48] sm:$0xff]  ;;  %v237_v16 = vsel %vm233_vm0, %v1667_v13, 0.0  ;;  %v1685_v20 = vld [vmem:[%s1631_s21 + $0x10] sm:$0xff]  ;;  %v312_v22 = vsel %vm233_vm0, %v1682_v19, 0.0 }
  0x15   : > { %v258_v11 = vsel %vm233_vm0, %v1655_v8, 0.0  ;;  %v261_v17 = vsel %vm233_vm0, %v1670_v14, 0.0  ;;  %v240_v23 = vsel %vm233_vm0, %v1685_v20, 0.0  ;;  %v1694_v24 = vld [vmem:[%s1631_s21 + $0x18] sm:$0xff]  ;;  %v1709_v30 = vld [vmem:[%s1631_s21 + $0xe0] sm:$0xff]  ;;  %v1724_v36 = vld [vmem:[%s1631_s21 + $0xa8] sm:$0xff] }
  0x16   : > { %v1697_v25 = vld [vmem:[%s1631_s21 + $0x98] sm:$0xff]  ;;  %v243_v27 = vsel %vm233_vm0, %v1694_v24, 0.0  ;;  %v1715_v32 = vld [vmem:[%s1631_s21 + $0xa0] sm:$0xff]  ;;  %v318_v33 = vsel %vm233_vm0, %v1709_v30, 0.0  ;;  %v297_v39 = vsel %vm233_vm0, %v1724_v36, 0.0  ;;  %v1739_v42 = vld [vmem:[%s1631_s21 + $0x68] sm:$0xff] }
  0x17   : > { %v1700_v26 = vld [vmem:[%s1631_s21 + $0xd8] sm:$0xff]  ;;  %v291_v28 = vsel %vm233_vm0, %v1697_v25, 0.0  ;;  %v294_v35 = vsel %vm233_vm0, %v1715_v32, 0.0  ;;  %v1727_v37 = vld [vmem:[%s1631_s21 + $0x20] sm:$0xff]  ;;  %v1742_v43 = vld [vmem:[%s1631_s21 + $0xe8] sm:$0xff]  ;;  %v273_v45 = vsel %vm233_vm0, %v1739_v42, 0.0 }
  0x18   : > { %v315_v29 = vsel %vm233_vm0, %v1700_v26, 0.0  ;;  %v1712_v31 = vld [vmem:[%s1631_s21 + $0x58] sm:$0xff]  ;;  %v1730_v38 = vld [vmem:[%s1631_s21 + $0x60] sm:$0xff]  ;;  %v246_v40 = vsel %vm233_vm0, %v1727_v37, 0.0  ;;  %v1745_v44 = vld [vmem:[%s1631_s21 + $0x28] sm:$0xff]  ;;  %v321_v46 = vsel %vm233_vm0, %v1742_v43, 0.0 }
  0x19   : > { %v267_v34 = vsel %vm233_vm0, %v1712_v31, 0.0  ;;  %v270_v41 = vsel %vm233_vm0, %v1730_v38, 0.0  ;;  %v249_v47 = vsel %vm233_vm0, %v1745_v44, 0.0  ;;  %v1754_v48 = vld [vmem:[%s1631_s21 + $0xb0] sm:$0xff]  ;;  %v1769_v54 = vld [vmem:[%s1631_s21 + $0xf8] sm:$0xff]  ;;  %v1589_v3 = vmov 32.0  }
  0x1a   : > { %v1757_v49 = vld [vmem:[%s1631_s21 + $0xf0] sm:$0xff]  ;;  %v300_v51 = vsel %vm233_vm0, %v1754_v48, 0.0  ;;  %v1775_v56 = vld [vmem:[%s1631_s21 + $0xb8] sm:$0xff]  ;;  %v327_v57 = vsel %vm233_vm0, %v1769_v54, 0.0  ;;  %1513 = vrcp.f32 %v1589_v3 }
  0x1b   : > { %310 = vadd.xlane.f32.xlu2 %v309_v9  ;;  %307 = vadd.xlane.f32.xlu0 %v306_v10  ;;  %v1760_v50 = vld [vmem:[%s1631_s21 + $0x70] sm:$0xff]  ;;  %v324_v52 = vsel %vm233_vm0, %v1757_v49, 0.0  ;;  %v303_v59 = vsel %vm233_vm0, %v1775_v56, 0.0  ;;  %v1784_v60 = vld [vmem:[%s1631_s21 + $0x38] sm:$0xff] }
  0x1c   : > { %259 = vadd.xlane.f32.xlu1 %v258_v11  ;;  %v276_v53 = vsel %vm233_vm0, %v1760_v50, 0.0  ;;  %v1772_v55 = vld [vmem:[%s1631_s21 + $0x30] sm:$0xff]  ;;  %v1787_v61 = vld [vmem:[%s1631_s21 + $0x78] sm:$0xff]  ;;  %v255_v62 = vsel %vm233_vm0, %v1784_v60, 0.0 }
  0x1d   : > { %v252_v58 = vsel %vm233_vm0, %v1772_v55, 0.0  ;;  %v279_v63 = vsel %vm233_vm0, %v1787_v61, 0.0 }
  0x20   : > { %v1514_v4 = vpop.eup %1513 }
  0x21   : > { %v331_v5 = vmul.f32 32.0, %v1514_v4  ;;  %vm335_vm1 = vweird.f32 %v1514_v4 }
  0x23   : > { %289 = vadd.xlane.f32.xlu2 %v288_v15  ;;  %238 = vadd.xlane.f32.xlu0 %v237_v16  ;;  %v332_v9 = vsub.f32 1.0, %v331_v5 }
  0x24   : > { %262 = vadd.xlane.f32.xlu1 %v261_v17 }
  0x25   : > { %v333_v10 = vmul.f32 %v1514_v4, %v332_v9 }
  0x27   : > { %v334_v11 = vadd.f32 %v1514_v4, %v333_v10 }
  0x29   : > { %v1793_v15 = vsel %vm335_vm1, %v1514_v4, %v334_v11 }
  0x2b   : > { %265 = vadd.xlane.f32.xlu2 %v264_v21  ;;  %313 = vadd.xlane.f32.xlu0 %v312_v22 }
  0x2c   : > { %241 = vadd.xlane.f32.xlu1 %v240_v23 }
  0x33   : > { %244 = vadd.xlane.f32.xlu2 %v243_v27  ;;  %292 = vadd.xlane.f32.xlu0 %v291_v28 }
  0x34   : > { %316 = vadd.xlane.f32.xlu1 %v315_v29 }
  0x3b   : > { %319 = vadd.xlane.f32.xlu2 %v318_v33  ;;  %268 = vadd.xlane.f32.xlu0 %v267_v34 }
  0x3c   : > { %295 = vadd.xlane.f32.xlu1 %v294_v35 }
  0x43   : > { %298 = vadd.xlane.f32.xlu2 %v297_v39  ;;  %247 = vadd.xlane.f32.xlu0 %v246_v40 }
  0x44   : > { %271 = vadd.xlane.f32.xlu1 %v270_v41 }
  0x4b   : > { %274 = vadd.xlane.f32.xlu2 %v273_v45  ;;  %322 = vadd.xlane.f32.xlu0 %v321_v46 }
  0x4c   : > { %250 = vadd.xlane.f32.xlu1 %v249_v47 }
  0x53   : > { %301 = vadd.xlane.f32.xlu2 %v300_v51  ;;  %325 = vadd.xlane.f32.xlu0 %v324_v52 }
  0x54   : > { %277 = vadd.xlane.f32.xlu1 %v276_v53 }
  0x5b   : > { %328 = vadd.xlane.f32.xlu2 %v327_v57  ;;  %253 = vadd.xlane.f32.xlu0 %v252_v58 }
  0x5c   : > { %304 = vadd.xlane.f32.xlu1 %v303_v59 }
  0x63   : > { %256 = vadd.xlane.f32.xlu2 %v255_v62  ;;  %280 = vadd.xlane.f32.xlu0 %v279_v63 }
  0x86   : > { %v287_v16 = vpop.xlane.xlu2 %286  ;;  %v284_v17 = vpop.xlane.xlu0 %283 }
  0x87   : > { %v353_v21 = vmul.f32 %v1793_v15, %v284_v17  ;;  %v236_v22 = vpop.xlane.xlu1 %235  ;;  %v354_v46 = vmul.f32 %v1793_v15, %v287_v16 }
  0x88   : > { %v337_v41 = vmul.f32 %v1793_v15, %v236_v22 }
  0x89   : > { %v1797_v23 = vsub.f32 %v1637_v1, %v353_v21  ;;  %v1828_v58 = vsub.f32 %v1634_v0, %v354_v46 }
  0x8b   : > { %v417_v27 = vmul.f32 %v1797_v23, %v1797_v23  ;;  %v418_v0 = vmul.f32 %v1828_v58, %v1828_v58 }
  0x8d   : > { %v481_v28 = vsel %vm233_vm0, %v417_v27, 0.0  ;;  %v484_v21 = vsel %vm233_vm0, %v418_v0, 0.0 }
  0x8e   : > { %v311_v29 = vpop.xlane.xlu2 %310  ;;  %v308_v33 = vpop.xlane.xlu0 %307  ;;  %482 = vadd.xlane.f32.xlu0 %v481_v28 }
  0x8f   : > { %v362_v34 = vmul.f32 %v1793_v15, %v311_v29  ;;  %v361_v35 = vmul.f32 %v1793_v15, %v308_v33  ;;  %v260_v39 = vpop.xlane.xlu1 %259 }
  0x90   : > { %v345_v40 = vmul.f32 %v1793_v15, %v260_v39 }
  0x91   : > { %v1807_v1 = vsub.f32 %v1649_v6, %v362_v34  ;;  %v1810_v45 = vsub.f32 %v1652_v7, %v361_v35  ;;  %v1823_v6 = vsub.f32 %v1640_v2, %v337_v41 }
  0x92   : > { %v1814_v47 = vsub.f32 %v1655_v8, %v345_v40 }
  0x93   : > { %v426_v51 = vmul.f32 %v1807_v1, %v1807_v1  ;;  %v425_v52 = vmul.f32 %v1810_v45, %v1810_v45  ;;  %v401_v5 = vmul.f32 %v1823_v6, %v1823_v6 }
  0x94   : > { %v409_v53 = vmul.f32 %v1814_v47, %v1814_v47 }
  0x95   : > { %v508_v7 = vsel %vm233_vm0, %v426_v51, 0.0  ;;  %v505_v57 = vsel %vm233_vm0, %v425_v52, 0.0  ;;  %v433_v16 = vsel %vm233_vm0, %v401_v5, 0.0 }
  0x96   : > { %v290_v8 = vpop.xlane.xlu2 %289  ;;  %509 = vadd.xlane.f32.xlu0 %v508_v7  ;;  %v239_v59 = vpop.xlane.xlu0 %238  ;;  %506 = vadd.xlane.f32.xlu1 %v505_v57  ;;  %v457_v62 = vsel %vm233_vm0, %v409_v53, 0.0 }
  0x97   : > { %v338_v63 = vmul.f32 %v1793_v15, %v239_v59  ;;  %458 = vadd.xlane.f32.xlu2 %v457_v62  ;;  %v263_v3 = vpop.xlane.xlu1 %262  ;;  %v355_v29 = vmul.f32 %v1793_v15, %v290_v8 }
  0x98   : > { %v346_v2 = vmul.f32 %v1793_v15, %v263_v3 }
  0x99   : > { %v1834_v4 = vsub.f32 %v1667_v13, %v338_v63  ;;  %v1865_v41 = vsub.f32 %v1664_v12, %v355_v29 }
  0x9a   : > { %v1841_v9 = vsub.f32 %v1670_v14, %v346_v2 }
  0x9b   : > { %v402_v10 = vmul.f32 %v1834_v4, %v1834_v4  ;;  %v419_v12 = vmul.f32 %v1865_v41, %v1865_v41 }
  0x9c   : > { %v410_v14 = vmul.f32 %v1841_v9, %v1841_v9 }
  0x9d   : > { %v436_v11 = vsel %vm233_vm0, %v402_v10, 0.0 }
  0x9e   : > { %v266_v17 = vpop.xlane.xlu2 %265  ;;  %437 = vadd.xlane.f32.xlu0 %v436_v11  ;;  %v314_v13 = vpop.xlane.xlu0 %313  ;;  %434 = vadd.xlane.f32.xlu1 %v433_v16  ;;  %v460_v39 = vsel %vm233_vm0, %v410_v14, 0.0 }
  0x9f   : > { %v363_v22 = vmul.f32 %v1793_v15, %v314_v13  ;;  %485 = vadd.xlane.f32.xlu2 %v484_v21  ;;  %v242_v27 = vpop.xlane.xlu1 %241  ;;  %v347_v57 = vmul.f32 %v1793_v15, %v266_v17 }
  0xa0   : > { %v339_v28 = vmul.f32 %v1793_v15, %v242_v27 }
  0xa1   : > { %v1854_v33 = vsub.f32 %v1682_v19, %v363_v22  ;;  %v1885_v3 = vsub.f32 %v1679_v18, %v347_v57 }
  0xa2   : > { %v1857_v34 = vsub.f32 %v1685_v20, %v339_v28 }
  0xa3   : > { %v427_v35 = vmul.f32 %v1854_v33, %v1854_v33  ;;  %v411_v13 = vmul.f32 %v1885_v3, %v1885_v3 }
  0xa4   : > { %v403_v40 = vmul.f32 %v1857_v34, %v1857_v34 }
  0xa5   : > { %v511_v46 = vsel %vm233_vm0, %v427_v35, 0.0 }
  0xa6   : > { %v245_v51 = vpop.xlane.xlu2 %244  ;;  %v293_v52 = vpop.xlane.xlu0 %292  ;;  %461 = vadd.xlane.f32.xlu1 %v460_v39  ;;  %v439_v19 = vsel %vm233_vm0, %v403_v40, 0.0 }
  0xa7   : > { %v356_v20 = vmul.f32 %v1793_v15, %v293_v52  ;;  %512 = vadd.xlane.f32.xlu2 %v511_v46  ;;  %440 = vadd.xlane.f32.xlu0 %v439_v19  ;;  %v317_v53 = vpop.xlane.xlu1 %316  ;;  %v340_v17 = vmul.f32 %v1793_v15, %v245_v51 }
  0xa8   : > { %v364_v7 = vmul.f32 %v1793_v15, %v317_v53 }
  0xa9   : > { %v1873_v8 = vsub.f32 %v1697_v25, %v356_v20  ;;  %v487_v25 = vsel %vm233_vm0, %v419_v12, 0.0  ;;  %v1906_v14 = vsub.f32 %v1694_v24, %v340_v17 }
  0xaa   : > { %v1878_v59 = vsub.f32 %v1700_v26, %v364_v7 }
  0xab   : > { %v420_v62 = vmul.f32 %v1873_v8, %v1873_v8  ;;  %v404_v52 = vmul.f32 %v1906_v14, %v1906_v14 }
  0xac   : > { %v428_v63 = vmul.f32 %v1878_v59, %v1878_v59 }
  0xad   : > { %v490_v2 = vsel %vm233_vm0, %v420_v62, 0.0 }
  0xae   : > { %v320_v5 = vpop.xlane.xlu2 %319  ;;  %v269_v0 = vpop.xlane.xlu0 %268  ;;  %488 = vadd.xlane.f32.xlu1 %v487_v25  ;;  %v514_v10 = vsel %vm233_vm0, %v428_v63, 0.0 }
  0xaf   : > { %v348_v26 = vmul.f32 %v1793_v15, %v269_v0  ;;  %491 = vadd.xlane.f32.xlu2 %v490_v2  ;;  %515 = vadd.xlane.f32.xlu0 %v514_v10  ;;  %v296_v11 = vpop.xlane.xlu1 %295  ;;  %v365_v51 = vmul.f32 %v1793_v15, %v320_v5 }
  0xb0   : > { %v357_v16 = vmul.f32 %v1793_v15, %v296_v11 }
  0xb1   : > { %v1894_v18 = vsub.f32 %v1712_v31, %v348_v26  ;;  %v463_v31 = vsel %vm233_vm0, %v411_v13, 0.0  ;;  %v1927_v7 = vsub.f32 %v1709_v30, %v365_v51 }
  0xb2   : > { %v1899_v21 = vsub.f32 %v1715_v32, %v357_v16 }
  0xb3   : > { %v412_v22 = vmul.f32 %v1894_v18, %v1894_v18  ;;  %v429_v0 = vmul.f32 %v1927_v7, %v1927_v7 }
  0xb4   : > { %v421_v27 = vmul.f32 %v1899_v21, %v1899_v21 }
  0xb5   : > { %v466_v28 = vsel %vm233_vm0, %v412_v22, 0.0 }
  0xb6   : > { %v299_v29 = vpop.xlane.xlu2 %298  ;;  %v248_v35 = vpop.xlane.xlu0 %247  ;;  %464 = vadd.xlane.f32.xlu1 %v463_v31  ;;  %v493_v39 = vsel %vm233_vm0, %v421_v27, 0.0 }
  0xb7   : > { %v341_v32 = vmul.f32 %v1793_v15, %v248_v35  ;;  %467 = vadd.xlane.f32.xlu2 %v466_v28  ;;  %494 = vadd.xlane.f32.xlu0 %v493_v39  ;;  %v272_v40 = vpop.xlane.xlu1 %271  ;;  %v358_v5 = vmul.f32 %v1793_v15, %v299_v29 }
  0xb8   : > { %v349_v46 = vmul.f32 %v1793_v15, %v272_v40 }
  0xb9   : > { %v1915_v24 = vsub.f32 %v1727_v37, %v341_v32  ;;  %v442_v37 = vsel %vm233_vm0, %v404_v52, 0.0  ;;  %v1948_v16 = vsub.f32 %v1724_v36, %v358_v5 }
  0xba   : > { %v1920_v19 = vsub.f32 %v1730_v38, %v349_v46 }
  0xbb   : > { %v405_v20 = vmul.f32 %v1915_v24, %v1915_v24  ;;  %v422_v32 = vmul.f32 %v1948_v16, %v1948_v16 }
  0xbc   : > { %v413_v53 = vmul.f32 %v1920_v19, %v1920_v19 }
  0xbd   : > { %v445_v57 = vsel %vm233_vm0, %v405_v20, 0.0 }
  0xbe   : > { %v275_v12 = vpop.xlane.xlu2 %274  ;;  %v323_v62 = vpop.xlane.xlu0 %322  ;;  %443 = vadd.xlane.f32.xlu1 %v442_v37  ;;  %v469_v63 = vsel %vm233_vm0, %v413_v53, 0.0 }
  0xbf   : > { %v366_v38 = vmul.f32 %v1793_v15, %v323_v62  ;;  %446 = vadd.xlane.f32.xlu2 %v445_v57  ;;  %470 = vadd.xlane.f32.xlu0 %v469_v63  ;;  %v251_v2 = vpop.xlane.xlu1 %250  ;;  %v350_v36 = vmul.f32 %v1793_v15, %v275_v12 }
  0xc0   : > { %v342_v25 = vmul.f32 %v1793_v15, %v251_v2 }
  0xc1   : > { %v1936_v30 = vsub.f32 %v1742_v43, %v366_v38  ;;  %v517_v43 = vsel %vm233_vm0, %v429_v0, 0.0  ;;  %v1973_v52 = vsub.f32 %v1739_v42, %v350_v36 }
  0xc2   : > { %v1941_v10 = vsub.f32 %v1745_v44, %v342_v25 }
  0xc3   : > { %3033 = vst [vmem:[#allocation2_spill] sm:$0xff] %v1936_v30  ;;  %v430_v26 = vmul.f32 %v1936_v30, %v1936_v30  ;;  %v414_v62 = vmul.f32 %v1973_v52, %v1973_v52 }
  0xc4   : > { %v406_v11 = vmul.f32 %v1941_v10, %v1941_v10  ;;  %3037 = vst [vmem:[#allocation6_spill] sm:$0xff] %v1973_v52 }
  0xc5   : > { %v520_v17 = vsel %vm233_vm0, %v430_v26, 0.0  ;;  %v472_v5 = vsel %vm233_vm0, %v414_v62, 0.0 }
  0xc6   : > { %v302_v13 = vpop.xlane.xlu2 %301  ;;  %v326_v22 = vpop.xlane.xlu0 %325  ;;  %518 = vadd.xlane.f32.xlu1 %v517_v43  ;;  %v448_v27 = vsel %vm233_vm0, %v406_v11, 0.0 }
  0xc7   : > { %v359_v44 = vmul.f32 %v1793_v15, %v302_v13  ;;  %v367_v28 = vmul.f32 %v1793_v15, %v326_v22  ;;  %521 = vadd.xlane.f32.xlu2 %v520_v17  ;;  %449 = vadd.xlane.f32.xlu0 %v448_v27  ;;  %v278_v31 = vpop.xlane.xlu1 %277 }
  0xc8   : > { %v351_v29 = vmul.f32 %v1793_v15, %v278_v31 }
  0xc9   : > { %v1958_v35 = vsub.f32 %v1754_v48, %v359_v44  ;;  %v1961_v39 = vsub.f32 %v1757_v49, %v367_v28  ;;  %v496_v49 = vsel %vm233_vm0, %v422_v32, 0.0  ;;  %v1148_v32 = vld [vmem:[%s3021_s3 + $0x18] sm:$0xff] }
  0xca   : > { %v1970_v51 = vsub.f32 %v1760_v50, %v351_v29  ;;  %1491 = vmatpush.msra.mxu2 %v1148_v32  ;;  %1490 = vmatpush.msra.mxu1 %v1148_v32 }
  0xcb   : > { %3034 = vst [vmem:[#allocation3_spill] sm:$0xff] %v1958_v35  ;;  %v423_v40 = vmul.f32 %v1958_v35, %v1958_v35  ;;  %v431_v46 = vmul.f32 %v1961_v39, %v1961_v39  ;;  %1492 = vmatpush.msra.mxu3 %v1148_v32  ;;  %1257 = vmatpush.msra.mxu0 %v1148_v32 }
  0xcc   : > { %3035 = vst [vmem:[#allocation4_spill] sm:$0xff] %v1961_v39  ;;  %v415_v42 = vmul.f32 %v1970_v51, %v1970_v51 }
  0xcd   : > { %3036 = vst [vmem:[#allocation5_spill] sm:$0xff] %v1970_v51  ;;  %v499_v48 = vsel %vm233_vm0, %v423_v40, 0.0  ;;  %v523_v20 = vsel %vm233_vm0, %v431_v46, 0.0  ;;  %v1146_v40 = vld [vmem:[%s3021_s3 + $0x8] sm:$0xff]  ;;  %v1145_v46 = vld [vmem:[%s3021_s3] sm:$0xff] }
  0xce   : > { %v329_v53 = vpop.xlane.xlu2 %328  ;;  %v254_v57 = vpop.xlane.xlu0 %253  ;;  %497 = vadd.xlane.f32.xlu1 %v496_v49  ;;  %v475_v2 = vsel %vm233_vm0, %v415_v42, 0.0 }
  0xcf   : > { %v343_v37 = vmul.f32 %v1793_v15, %v254_v57  ;;  %500 = vadd.xlane.f32.xlu2 %v499_v48  ;;  %524 = vadd.xlane.f32.xlu0 %v523_v20  ;;  %v305_v12 = vpop.xlane.xlu1 %304  ;;  %v368_v43 = vmul.f32 %v1793_v15, %v329_v53 }
  0xd0   : > { %v360_v50 = vmul.f32 %v1793_v15, %v305_v12 }
  0xd1   : > { %v1988_v38 = vsub.f32 %v1772_v55, %v343_v37  ;;  %v2012_v31 = vsub.f32 %v1769_v54, %v368_v43  ;;  %v1147_v54 = vld [vmem:[%s3021_s3 + $0x10] sm:$0xff] }
  0xd2   : > { %v1985_v63 = vsub.f32 %v1775_v56, %v360_v50  ;;  %1494 = vmatpush.msra.mxu2 %v1147_v54  ;;  %1493 = vmatpush.msra.mxu1 %v1147_v54 }
  0xd3   : > { %3039 = vst [vmem:[#allocation8_spill] sm:$0xff] %v1988_v38  ;;  %v407_v55 = vmul.f32 %v1988_v38, %v1988_v38  ;;  %1495 = vmatpush.msra.mxu3 %v1147_v54  ;;  %1258 = vmatpush.msra.mxu0 %v1147_v54 }
  0xd4   : > { %3038 = vst [vmem:[#allocation7_spill] sm:$0xff] %v1985_v63  ;;  %v424_v25 = vmul.f32 %v1985_v63, %v1985_v63  ;;  %1497 = vmatpush.msra.mxu2 %v1146_v40  ;;  %1496 = vmatpush.msra.mxu1 %v1146_v40 }
  0xd5   : > { %v451_v27 = vsel %vm233_vm0, %v407_v55, 0.0  ;;  %3042 = vst [vmem:[#allocation11_spill] sm:$0xff] %v2012_v31  ;;  %1498 = vmatpush.msra.mxu3 %v1146_v40  ;;  %1259 = vmatpush.msra.mxu0 %v1146_v40 }
  0xd6   : > { %v257_v0 = vpop.xlane.xlu2 %256  ;;  %v281_v26 = vpop.xlane.xlu0 %280  ;;  %473 = vadd.xlane.f32.xlu1 %v472_v5  ;;  %v502_v11 = vsel %vm233_vm0, %v424_v25, 0.0  ;;  %1500 = vmatpush.msra.mxu2 %v1145_v46 }
  0xd7   : > { %v344_v17 = vmul.f32 %v1793_v15, %v257_v0  ;;  %v352_v56 = vmul.f32 %v1793_v15, %v281_v26  ;;  %476 = vadd.xlane.f32.xlu2 %v475_v2  ;;  %503 = vadd.xlane.f32.xlu0 %v502_v11 }
  0xd8   : > { %1499 = vmatpush.msra.mxu1 %v1145_v46  ;;  %1501 = vmatpush.msra.mxu3 %v1145_v46 }
  0xd9   : > { %v2001_v13 = vsub.f32 %v1784_v60, %v344_v17  ;;  %v2004_v22 = vsub.f32 %v1787_v61, %v352_v56  ;;  %v432_v60 = vmul.f32 %v2012_v31, %v2012_v31  ;;  %1260 = vmatpush.msra.mxu0 %v1145_v46 }
  0xdb   : > { %3040 = vst [vmem:[#allocation9_spill] sm:$0xff] %v2001_v13  ;;  %v408_v44 = vmul.f32 %v2001_v13, %v2001_v13  ;;  %v416_v28 = vmul.f32 %v2004_v22, %v2004_v22  ;;  %v526_v61 = vsel %vm233_vm0, %v432_v60, 0.0 }
  0xdc   : > { %3041 = vst [vmem:[#allocation10_spill] sm:$0xff] %v2004_v22 }
  0xdd   : > { %v454_v29 = vsel %vm233_vm0, %v408_v44, 0.0  ;;  %v478_v36 = vsel %vm233_vm0, %v416_v28, 0.0 }
  0xde   : > { %452 = vadd.xlane.f32.xlu1 %v451_v27 }
  0xdf   : > { %455 = vadd.xlane.f32.xlu2 %v454_v29  ;;  %479 = vadd.xlane.f32.xlu0 %v478_v36 }
  0xe6   : > { %527 = vadd.xlane.f32.xlu1 %v526_v61 }
 0x101   : > { %v483_v48 = vpop.xlane.xlu0 %482 }
 0x102   : > { %v545_v49 = vmul.f32 %v483_v48, %v1793_v15 }
 0x104   : > { %v577_v20 = vadd.f32 1e-05, %v545_v49 }
 0x106   : > { %1515 = vrcp.f32 %v577_v20  ;;  %v844_v27 = vand.u32 2147483648, %v577_v20  ;;  %vm838_vm3 = vweird.f32 %v577_v20  ;;  %v842_v60 = vand.u32 2147483647, %v577_v20 }
 0x108   : > { %v845_v49 = vor.u32 1.1754944e-38, %v844_v27  ;;  %vm843_vm5 = vcmp.eq.f32.partialorder %v842_v60, 8.507059e+37 }
 0x109   : > { %v510_v53 = vpop.xlane.xlu0 %509  ;;  %v507_v57 = vpop.xlane.xlu1 %506 }
 0x10a   : > { %v459_v37 = vpop.xlane.xlu2 %458  ;;  %v553_v12 = vmul.f32 %v507_v57, %v1793_v15  ;;  %v554_v5 = vmul.f32 %v510_v53, %v1793_v15 }
 0x10b   : > { %v537_v50 = vmul.f32 %v459_v37, %v1793_v15 }
 0x10c   : > { %v1516_v42 = vpop.eup %1515  ;;  %v2034_v62 = vadd.f32 1e-05, %v553_v12  ;;  %v2041_v56 = vadd.f32 1e-05, %v554_v5 }
 0x10d   : > { %v834_v2 = vmul.f32 %v1516_v42, %v577_v20  ;;  %v2036_v25 = vadd.f32 1e-05, %v537_v50  ;;  %vm839_vm2 = vweird.f32 %v1516_v42  ;;  %v2065_v50 = vld [vmem:[%s3019_s1] ss:$0 sm:$0xff] }
 0x10e   : > { %vm840_vm4 = vmor %vm838_vm3, %vm839_vm2  ;;  %v964_v27 = vand.u32 2147483648, %v2034_v62  ;;  %vm958_vm9 = vweird.f32 %v2034_v62  ;;  %vm973_vm15 = vweird.f32 %v2041_v56 }
 0x10f   : > { %v835_v0 = vsub.f32 1.0, %v834_v2  ;;  %1517 = vrcp.f32 %v2036_v25  ;;  %vm718_vm6 = vweird.f32 %v2036_v25  ;;  %v722_v60 = vand.u32 2147483647, %v2036_v25 }
 0x110   : > { %1519 = vrcp.f32 %v2034_v62 }
 0x111   : > { %v836_v26 = vmul.f32 %v1516_v42, %v835_v0  ;;  %v438_v11 = vpop.xlane.xlu0 %437  ;;  %v435_v17 = vpop.xlane.xlu1 %434  ;;  %1521 = vrcp.f32 %v2041_v56  ;;  %vm723_vm11 = vcmp.eq.f32.partialorder %v722_v60, 8.507059e+37 }
 0x112   : > { %v486_v55 = vpop.xlane.xlu2 %485  ;;  %v529_v43 = vmul.f32 %v435_v17, %v1793_v15  ;;  %v530_v44 = vmul.f32 %v438_v11, %v1793_v15 }
 0x113   : > { %v837_v28 = vadd.f32 %v1516_v42, %v836_v26  ;;  %v546_v29 = vmul.f32 %v486_v55, %v1793_v15 }
 0x114   : > { %v2046_v36 = vadd.f32 1e-05, %v529_v43  ;;  %v2057_v48 = vadd.f32 1e-05, %v530_v44  ;;  %v724_v43 = vand.u32 2147483648, %v2036_v25 }
 0x115   : > { %v2048_v61 = vpop.eup %1517  ;;  %v841_v40 = vsel %vm840_vm4, %v1516_v42, %v837_v28  ;;  %v2059_v57 = vadd.f32 1e-05, %v546_v29  ;;  %v2086_v29 = vld [vmem:[%s3020_s2] ss:$0 sm:$0xff] }
 0x116   : > { %v2050_v32 = vpop.eup %1519  ;;  %v714_v54 = vmul.f32 %v2048_v61, %v2036_v25  ;;  %1523 = vrcp.f32 %v2046_v36  ;;  %v846_v12 = vsel %vm843_vm5, %v845_v49, %v841_v40  ;;  %vm719_vm7 = vweird.f32 %v2048_v61 }
 0x117   : > { %v954_v46 = vmul.f32 %v2050_v32, %v2034_v62  ;;  %v847_v26 = vmul.f32 %v846_v12, %v1797_v23  ;;  %1525 = vrcp.f32 %v2057_v48  ;;  %v2074_v55 = vpop.eup %1521  ;;  %vm959_vm8 = vweird.f32 %v2050_v32  ;;  %vm2107_vm10 = vmor %vm718_vm6, %vm719_vm7 }
 0x118   : > { %v715_v53 = vsub.f32 1.0, %v714_v54  ;;  %1527 = vrcp.f32 %v2059_v57  ;;  %v969_v49 = vmul.f32 %v2074_v55, %v2041_v56  ;;  %vm2115_vm12 = vmor %vm958_vm9, %vm959_vm8  ;;  %vm598_vm14 = vweird.f32 %v2046_v36 }
 0x119   : > { %v955_v20 = vsub.f32 1.0, %v954_v46  ;;  %v462_v37 = vpop.xlane.xlu1 %461  ;;  %v1093_v23 = vmul.f32 %v2065_v50, %v847_v26  ;;  %vm853_vm1 = vweird.f32 %v2059_v57  ;;  %vm613_vm5 = vweird.f32 %v2057_v48 }
 0x11a   : > { %v716_v42 = vmul.f32 %v2048_v61, %v715_v53  ;;  %v513_v2 = vpop.xlane.xlu2 %512  ;;  %v441_v5 = vpop.xlane.xlu0 %440  ;;  %v538_v0 = vmul.f32 %v462_v37, %v1793_v15  ;;  %v962_v37 = vand.u32 2147483647, %v2034_v62  ;;  %v965_v62 = vor.u32 1.1754944e-38, %v964_v27 }
 0x11b   : > { %v956_v11 = vmul.f32 %v2050_v32, %v955_v20  ;;  %v555_v17 = vmul.f32 %v513_v2, %v1793_v15  ;;  %v531_v44 = vmul.f32 %v441_v5, %v1793_v15  ;;  %v725_v2 = vor.u32 1.1754944e-38, %v724_v43 }
 0x11c   : > { %v2080_v28 = vadd.f32 1e-05, %v538_v0  ;;  %v2090_v54 = vpop.eup %1523  ;;  %v717_v40 = vadd.f32 %v2048_v61, %v716_v42  ;;  %v1129_v0 = vadd.f32 %v2086_v29, %v1093_v23  ;;  %v970_v60 = vsub.f32 1.0, %v969_v49 }
 0x11d   : > { %v957_v46 = vadd.f32 %v2050_v32, %v956_v11  ;;  %v594_v53 = vmul.f32 %v2090_v54, %v2046_v36  ;;  %v2099_v20 = vadd.f32 1e-05, %v555_v17  ;;  %v2103_v12 = vadd.f32 1e-05, %v531_v44  ;;  %v2111_v5 = vpop.eup %1525 }
 0x11e   : > { %1529 = vrcp.f32 %v2080_v28  ;;  %v2119_v17 = vpop.eup %1527  ;;  %v721_v22 = vsel %vm2107_vm10, %v2048_v61, %v717_v40  ;;  %1472 = vmatmul.msk.f32.vlgmr.msra.gmra.mxu2 %vm233_vm0, %v1129_v0  ;;  %vm963_vm13 = vcmp.eq.f32.partialorder %v962_v37, 8.507059e+37  ;;  %v609_v61 = vmul.f32 %v2111_v5, %v2057_v48 }
 0x11f   : > { %v595_v25 = vsub.f32 1.0, %v594_v53  ;;  %v961_v23 = vsel %vm2115_vm12, %v2050_v32, %v957_v46  ;;  %1531 = vrcp.f32 %v2099_v20  ;;  %v726_v27 = vsel %vm723_vm11, %v725_v2, %v721_v22 }
 0x120   : > { %1533 = vrcp.f32 %v2103_v12  ;;  %v966_v13 = vsel %vm963_vm13, %v965_v62, %v961_v23  ;;  %v849_v32 = vmul.f32 %v2119_v17, %v2059_v57  ;;  %v727_v46 = vmul.f32 %v726_v27, %v1814_v47 }
 0x121   : > { %v489_v26 = vpop.xlane.xlu1 %488  ;;  %v596_v22 = vmul.f32 %v2090_v54, %v595_v25  ;;  %v967_v49 = vmul.f32 %v966_v13, %v1810_v45  ;;  %v859_v0 = vand.u32 2147483648, %v2059_v57  ;;  %v971_v11 = vmul.f32 %v2074_v55, %v970_v60 }
 0x122   : > { %v492_v44 = vpop.xlane.xlu2 %491  ;;  %v516_v31 = vpop.xlane.xlu0 %515  ;;  %v547_v43 = vmul.f32 %v489_v26, %v1793_v15  ;;  %v610_v45 = vsub.f32 1.0, %v609_v61  ;;  %v850_v13 = vsub.f32 1.0, %v849_v32  ;;  %vm599_vm2 = vweird.f32 %v2090_v54 }
 0x123   : > { %v548_v53 = vmul.f32 %v492_v44, %v1793_v15  ;;  %v556_v40 = vmul.f32 %v516_v31, %v1793_v15  ;;  %v604_v31 = vand.u32 2147483648, %v2046_v36  ;;  %v1085_v44 = vmul.f32 %v2065_v50, %v727_v46  ;;  %vm2184_vm3 = vmor %vm598_vm14, %vm599_vm2 }
 0x124   : > { %v2132_v26 = vadd.f32 1e-05, %v547_v43  ;;  %v2142_v37 = vpop.eup %1529  ;;  %v1101_v60 = vmul.f32 %v2065_v50, %v967_v49  ;;  %v597_v61 = vadd.f32 %v2090_v54, %v596_v22  ;;  %v602_v42 = vand.u32 2147483647, %v2046_v36 }
 0x125   : > { %v2150_v62 = vadd.f32 1e-05, %v548_v53  ;;  %v2153_v47 = vpop.eup %1531  ;;  %v2155_v25 = vadd.f32 1e-05, %v556_v40  ;;  %v1121_v40 = vadd.f32 %v2086_v29, %v1085_v44  ;;  %v729_v49 = vmul.f32 %v2142_v37, %v2080_v28 }
 0x126   : > { %1535 = vrcp.f32 %v2132_v26  ;;  %v2158_v23 = vpop.eup %1533  ;;  %v984_v63 = vmul.f32 %v2153_v47, %v2099_v20  ;;  %v1137_v22 = vadd.f32 %v2086_v29, %v1101_v60  ;;  %v2191_v60 = vmul.f32 %v2111_v5, %v610_v45 }
 0x127   : > { %1537 = vrcp.f32 %v2150_v62  ;;  %v624_v32 = vmul.f32 %v2158_v23, %v2103_v12  ;;  %1464 = vmatmul.msk.f32.vlgmr.msra.gmra.mxu1 %vm233_vm0, %v1121_v40  ;;  %v634_v36 = vand.u32 2147483648, %v2103_v12  ;;  %v605_v35 = vor.u32 1.1754944e-38, %v604_v31 }
 0x128   : > { %1539 = vrcp.f32 %v2155_v25  ;;  %1480 = vmatmul.msk.f32.vlgmr.msra.gmra.mxu3 %vm233_vm0, %v1137_v22  ;;  %v985_v52 = vsub.f32 1.0, %v984_v63  ;;  %v730_v45 = vsub.f32 1.0, %v729_v49  ;;  %vm603_vm4 = vcmp.eq.f32.partialorder %v602_v42, 8.507059e+37 }
 0x129   : > { %v465_v43 = vpop.xlane.xlu1 %464  ;;  %vm854_vm6 = vweird.f32 %v2119_v17  ;;  %vm974_vm8 = vweird.f32 %v2074_v55  ;;  %vm733_vm11 = vweird.f32 %v2080_v28  ;;  %vm988_vm13 = vweird.f32 %v2099_v20 }
 0x12a   : > { %v468_v27 = vpop.xlane.xlu2 %467  ;;  %v495_v53 = vpop.xlane.xlu0 %494  ;;  %v539_v2 = vmul.f32 %v465_v43, %v1793_v15  ;;  %v851_v43 = vmul.f32 %v2119_v17, %v850_v13  ;;  %v625_v13 = vsub.f32 1.0, %v624_v32  ;;  %vm2221_vm7 = vmor %vm853_vm1, %vm854_vm6  ;;  %v860_v32 = vor.u32 1.1754944e-38, %v859_v0 }
 0x12b   : > { %v540_v46 = vmul.f32 %v468_v27, %v1793_v15  ;;  %v549_v44 = vmul.f32 %v495_v53, %v1793_v15  ;;  %v601_v53 = vsel %vm2184_vm3, %v2090_v54, %v597_v61  ;;  %v857_v61 = vand.u32 2147483647, %v2059_v57  ;;  %vm2240_vm10 = vmor %vm973_vm15, %vm974_vm8 }
 0x12c   : > { %v2188_v51 = vpop.eup %1535  ;;  %v2195_v38 = vadd.f32 1e-05, %v539_v2  ;;  %v606_v27 = vsel %vm603_vm4, %v605_v35, %v601_v53  ;;  %v852_v63 = vadd.f32 %v2119_v17, %v851_v43  ;;  %v977_v43 = vand.u32 2147483647, %v2041_v56 }
 0x12d   : > { %v2202_v39 = vadd.f32 1e-05, %v540_v46  ;;  %v864_v2 = vmul.f32 %v2188_v51, %v2132_v26  ;;  %v2207_v22 = vadd.f32 1e-05, %v549_v44  ;;  %v2209_v54 = vpop.eup %1537  ;;  %v607_v31 = vmul.f32 %v606_v27, %v1823_v6 }
 0x12e   : > { %1541 = vrcp.f32 %v2195_v38  ;;  %v2216_v42 = vpop.eup %1539  ;;  %v972_v46 = vadd.f32 %v2074_v55, %v971_v11  ;;  %v856_v49 = vsel %vm2221_vm7, %v2119_v17, %v852_v63  ;;  %v2235_v53 = vmul.f32 %v2209_v54, %v2150_v62 }
 0x12f   : > { %1543 = vrcp.f32 %v2202_v39  ;;  %v1077_v6 = vmul.f32 %v2065_v50, %v607_v31  ;;  %vm858_vm9 = vcmp.eq.f32.partialorder %v857_v61, 8.507059e+37  ;;  %v3053_v17 = vand.u32 2147483648, %v2041_v56 }
 0x130   : > { %1545 = vrcp.f32 %v2207_v22  ;;  %v2248_v11 = vmul.f32 %v2216_v42, %v2155_v25  ;;  %v861_v31 = vsel %vm858_vm9, %v860_v32, %v856_v49  ;;  %v976_v63 = vsel %vm2240_vm10, %v2074_v55, %v972_v46 }
 0x131   : > { %v980_v0 = vor.u32 1.1754944e-38, %v3053_v17  ;;  %v1113_v27 = vadd.f32 %v2086_v29, %v1077_v6  ;;  %v731_v61 = vmul.f32 %v2142_v37, %v730_v45  ;;  %v862_v30 = vmul.f32 %v861_v31, %v1828_v58 }
 0x132   : > { %v447_v44 = vpop.xlane.xlu2 %446  ;;  %v471_v35 = vpop.xlane.xlu0 %470  ;;  %vm978_vm12 = vcmp.eq.f32.partialorder %v977_v43, 8.507059e+37  ;;  %v986_v40 = vmul.f32 %v2153_v47, %v985_v52  ;;  %v2263_v32 = vmul.f32 %v2158_v23, %v625_v13  ;;  %v1009_v55 = vand.u32 2147483648, %v2155_v25 }
 0x133   : > { %v533_v56 = vmul.f32 %v447_v44, %v1793_v15  ;;  %1456 = vmatmul.msk.f32.vlgmr.msra.gmra.mxu0 %vm233_vm0, %v1113_v27  ;;  %v981_v45 = vsel %vm978_vm12, %v980_v0, %v976_v63  ;;  %v865_v58 = vsub.f32 1.0, %v864_v2  ;;  %v1094_v6 = vmul.f32 %v2065_v50, %v862_v30  ;;  %v444_v52 = vpop.xlane.xlu1 %443 }
 0x134   : > { %v2258_v17 = vpop.eup %1541  ;;  %v982_v49 = vmul.f32 %v981_v45, %v1807_v1  ;;  %v541_v43 = vmul.f32 %v471_v35, %v1793_v15  ;;  %v880_v44 = vsub.f32 1.0, %v2235_v53  ;;  %v1000_v13 = vsub.f32 1.0, %v2248_v11 }
 0x135   : > { %v2267_v46 = vpop.eup %1543  ;;  %v2280_v2 = vmul.f32 %v2258_v17, %v2195_v38  ;;  %v1130_v30 = vadd.f32 %v2086_v29, %v1094_v6  ;;  %v2284_v0 = vadd.f32 1e-05, %v533_v56  ;;  %v532_v53 = vmul.f32 %v444_v52, %v1793_v15 }
 0x136   : > { %v2276_v27 = vpop.eup %1545  ;;  %v1102_v1 = vmul.f32 %v2065_v50, %v982_v49  ;;  %v612_v63 = vadd.f32 %v2111_v5, %v2191_v60  ;;  %vm614_vm14 = vweird.f32 %v2111_v5  ;;  %v617_v35 = vand.u32 2147483647, %v2057_v48 }
 0x137   : > { %v2292_v45 = vmul.f32 %v2188_v51, %v865_v58  ;;  %v759_v57 = vmul.f32 %v2267_v46, %v2202_v39  ;;  %1473 = vmatmul.msk.f32.gmra.mxu2 %vm233_vm0, %v1130_v30  ;;  %v2298_v6 = vadd.f32 1e-05, %v541_v43  ;;  %vm615_vm15 = vmor %vm613_vm5, %vm614_vm14  ;;  %v2304_v60 = vmul.f32 %v2276_v27, %v2207_v22 }
 0x138   : > { %v1138_v56 = vadd.f32 %v2086_v29, %v1102_v1  ;;  %v2306_v49 = vadd.f32 1e-05, %v532_v53  ;;  %v616_v58 = vsel %vm615_vm15, %v2111_v5, %v612_v63  ;;  %v3054_v52 = vand.u32 2147483648, %v2057_v48 }
 0x139   : > { %vm618_vm1 = vcmp.eq.f32.partialorder %v617_v35, 8.507059e+37  ;;  %v732_v43 = vadd.f32 %v2142_v37, %v731_v61  ;;  %vm734_vm2 = vweird.f32 %v2142_v37  ;;  %v737_v30 = vand.u32 2147483647, %v2080_v28 }
 0x13a   : > { %v620_v31 = vor.u32 1.1754944e-38, %v3054_v52  ;;  %1481 = vmatmul.msk.f32.gmra.mxu3 %vm233_vm0, %v1138_v56  ;;  %vm628_vm3 = vweird.f32 %v2103_v12  ;;  %v745_v1 = vsub.f32 1.0, %v2280_v2  ;;  %1547 = vrcp.f32 %v2284_v0  ;;  %vm735_vm4 = vmor %vm733_vm11, %vm734_vm2  ;;  %v522_v35 = vpop.xlane.xlu2 %521  ;;  %v450_v52 = vpop.xlane.xlu0 %449 }
 0x13b   : > { %v3055_v48 = vand.u32 2147483648, %v2080_v28  ;;  %1549 = vrcp.f32 %v2298_v6  ;;  %v736_v63 = vsel %vm735_vm4, %v2142_v37, %v732_v43  ;;  %vm738_vm5 = vcmp.eq.f32.partialorder %v737_v30, 8.507059e+37 }
 0x13c   : > { %v621_v53 = vsel %vm618_vm1, %v620_v31, %v616_v58  ;;  %v987_v2 = vadd.f32 %v2153_v47, %v986_v40  ;;  %vm989_vm6 = vweird.f32 %v2153_v47  ;;  %v992_v31 = vand.u32 2147483647, %v2099_v20 }
 0x13d   : > { %v740_v5 = vor.u32 1.1754944e-38, %v3055_v48  ;;  %v622_v61 = vmul.f32 %v621_v53, %v1834_v4  ;;  %1551 = vrcp.f32 %v2306_v49  ;;  %vm990_vm7 = vmor %vm988_vm13, %vm989_vm6  ;;  %v3056_v4 = vand.u32 2147483648, %v2099_v20  ;;  %v519_v53 = vpop.xlane.xlu1 %518 }
 0x13e   : > { %vm1003_vm8 = vweird.f32 %v2155_v25  ;;  %v760_v40 = vsub.f32 1.0, %v759_v57  ;;  %v991_v43 = vsel %vm990_vm7, %v2153_v47, %v987_v2  ;;  %vm993_vm9 = vcmp.eq.f32.partialorder %v992_v31, 8.507059e+37 }
 0x13f   : > { %v741_v56 = vsel %vm738_vm5, %v740_v5, %v736_v63  ;;  %v1078_v28 = vmul.f32 %v2065_v50, %v622_v61  ;;  %v995_v37 = vor.u32 1.1754944e-38, %v3056_v4  ;;  %v558_v30 = vmul.f32 %v522_v35, %v1793_v15 }
 0x140   : > { %v742_v58 = vmul.f32 %v741_v56, %v1841_v9  ;;  %vm868_vm10 = vweird.f32 %v2132_v26  ;;  %v904_v9 = vand.u32 2147483648, %v2207_v22  ;;  %v2342_v61 = vpop.eup %1547  ;;  %v2345_v63 = vmul.f32 %v2209_v54, %v880_v44 }
 0x141   : > { %v1114_v48 = vadd.f32 %v2086_v29, %v1078_v28  ;;  %v996_v20 = vsel %vm993_vm9, %v995_v37, %v991_v43  ;;  %v2348_v57 = vadd.f32 1e-05, %v558_v30  ;;  %v534_v35 = vmul.f32 %v450_v52, %v1793_v15  ;;  %v2351_v56 = vpop.eup %1549 }
 0x142   : > { %v1086_v5 = vmul.f32 %v2065_v50, %v742_v58  ;;  %v997_v47 = vmul.f32 %v996_v20, %v1854_v33  ;;  %v1001_v2 = vmul.f32 %v2216_v42, %v1000_v13  ;;  %v895_v31 = vsub.f32 1.0, %v2304_v60 }
 0x143   : > { %1457 = vmatmul.msk.f32.gmra.mxu0 %vm233_vm0, %v1114_v48  ;;  %v557_v44 = vmul.f32 %v519_v53, %v1793_v15  ;;  %v2361_v33 = vmul.f32 %v2267_v46, %v760_v40  ;;  %v2364_v58 = vmul.f32 %v2258_v17, %v745_v1  ;;  %v627_v11 = vadd.f32 %v2158_v23, %v2263_v32  ;;  %v2369_v13 = vpop.eup %1551 }
 0x144   : > { %v1122_v28 = vadd.f32 %v2086_v29, %v1086_v5  ;;  %v1103_v4 = vmul.f32 %v2065_v50, %v997_v47  ;;  %v664_v60 = vand.u32 2147483648, %v2284_v0  ;;  %1553 = vrcp.f32 %v2348_v57 }
 0x145   : > { %v2374_v37 = vadd.f32 1e-05, %v534_v35  ;;  %v2376_v52 = vadd.f32 1e-05, %v557_v44  ;;  %vm629_vm11 = vweird.f32 %v2158_v23  ;;  %v632_v40 = vand.u32 2147483647, %v2103_v12  ;;  %v501_v44 = vpop.xlane.xlu2 %500 }
 0x146   : > { %1465 = vmatmul.msk.f32.gmra.mxu1 %vm233_vm0, %v1122_v28  ;;  %v1139_v1 = vadd.f32 %v2086_v29, %v1103_v4  ;;  %v635_v32 = vor.u32 1.1754944e-38, %v634_v36  ;;  %v2384_v43 = vmul.f32 %v2276_v27, %v895_v31  ;;  %v654_v30 = vmul.f32 %v2342_v61, %v2284_v0  ;;  %vm630_vm12 = vmor %vm628_vm3, %vm629_vm11 }
 0x147   : > { %v784_v53 = vand.u32 2147483648, %v2298_v6  ;;  %1555 = vrcp.f32 %v2374_v37  ;;  %v774_v48 = vmul.f32 %v2351_v56, %v2298_v6  ;;  %v639_v5 = vmul.f32 %v2369_v13, %v2306_v49 }
 0x148   : > { %1482 = vmatmul.msk.f32.gmra.mxu3 %vm233_vm0, %v1139_v1  ;;  %1557 = vrcp.f32 %v2376_v52  ;;  %v631_v36 = vsel %vm630_vm12, %v2158_v23, %v627_v11  ;;  %vm633_vm13 = vcmp.eq.f32.partialorder %v632_v40, 8.507059e+37  ;;  %v867_v20 = vadd.f32 %v2188_v51, %v2292_v45  ;;  %v498_v40 = vpop.xlane.xlu1 %497 }
 0x149   : > { %vm869_vm14 = vweird.f32 %v2188_v51  ;;  %v872_v12 = vand.u32 2147483647, %v2132_v26  ;;  %v636_v47 = vsel %vm633_vm13, %v635_v32, %v631_v36  ;;  %v3059_v31 = vand.u32 2147483648, %v2132_v26 }
 0x14a   : > { %vm2405_vm15 = vmor %vm868_vm10, %vm869_vm14  ;;  %v1002_v23 = vadd.f32 %v2216_v42, %v1001_v2  ;;  %vm1004_vm1 = vweird.f32 %v2216_v42  ;;  %v2413_v45 = vpop.eup %1553  ;;  %v655_v4 = vsub.f32 1.0, %v654_v30  ;;  %v637_v11 = vmul.f32 %v636_v47, %v1857_v34  ;;  %v525_v2 = vpop.xlane.xlu0 %524 }
 0x14b   : > { %v875_v28 = vor.u32 1.1754944e-38, %v3059_v31  ;;  %v871_v1 = vsel %vm2405_vm15, %v2188_v51, %v867_v20  ;;  %vm873_vm2 = vcmp.eq.f32.partialorder %v872_v12, 8.507059e+37  ;;  %vm2421_vm3 = vmor %vm1003_vm8, %vm1004_vm1  ;;  %vm883_vm4 = vweird.f32 %v2150_v62 }
 0x14c   : > { %v775_v32 = vsub.f32 1.0, %v774_v48  ;;  %v1007_v30 = vand.u32 2147483647, %v2155_v25  ;;  %v1010_v34 = vor.u32 1.1754944e-38, %v1009_v55  ;;  %vm748_vm5 = vweird.f32 %v2195_v38 }
 0x14d   : > { %v876_v36 = vsel %vm873_vm2, %v875_v28, %v871_v1  ;;  %v2429_v47 = vpop.eup %1555  ;;  %v1079_v51 = vmul.f32 %v2065_v50, %v637_v11  ;;  %v1006_v12 = vsel %vm2421_vm3, %v2216_v42, %v1002_v23  ;;  %v551_v48 = vmul.f32 %v501_v44, %v1793_v15 }
 0x14e   : > { %v877_v20 = vmul.f32 %v876_v36, %v1865_v41  ;;  %v2438_v35 = vpop.eup %1557  ;;  %v640_v31 = vsub.f32 1.0, %v639_v5  ;;  %vm1008_vm6 = vcmp.eq.f32.partialorder %v1007_v30, 8.507059e+37  ;;  %v559_v25 = vmul.f32 %v525_v2, %v1793_v15 }
 0x14f   : > { %v550_v55 = vmul.f32 %v498_v40, %v1793_v15  ;;  %v2444_v28 = vmul.f32 %v2413_v45, %v2348_v57  ;;  %v2448_v41 = vmul.f32 %v2429_v47, %v2374_v37  ;;  %v1115_v42 = vadd.f32 %v2086_v29, %v1079_v51 }
 0x150   : > { %v1095_v23 = vmul.f32 %v2065_v50, %v877_v20  ;;  %v2454_v5 = vmul.f32 %v2438_v35, %v2376_v52  ;;  %v1011_v44 = vsel %vm1008_vm6, %v1010_v34, %v1006_v12  ;;  %v2456_v11 = vadd.f32 1e-05, %v551_v48 }
 0x151   : > { %v2458_v1 = vadd.f32 1e-05, %v559_v25  ;;  %v649_v26 = vand.u32 2147483648, %v2306_v49  ;;  %1458 = vmatmul.msk.f32.gmra.mxu0 %vm233_vm0, %v1115_v42  ;;  %v1012_v40 = vmul.f32 %v1011_v44, %v1878_v59  ;;  %v2464_v36 = vadd.f32 1e-05, %v550_v55  ;;  %v477_v25 = vpop.xlane.xlu2 %476 }
 0x152   : > { %v1131_v2 = vadd.f32 %v2086_v29, %v1095_v23  ;;  %v2467_v30 = vmul.f32 %v2342_v61, %v655_v4  ;;  %v2470_v51 = vmul.f32 %v2351_v56, %v775_v32  ;;  %1559 = vrcp.f32 %v2456_v11  ;;  %v504_v23 = vpop.xlane.xlu0 %503 }
 0x153   : > { %v2475_v20 = vmul.f32 %v2369_v13, %v640_v31  ;;  %v1104_v59 = vmul.f32 %v2065_v50, %v1012_v40  ;;  %1561 = vrcp.f32 %v2458_v1  ;;  %v1030_v4 = vsub.f32 1.0, %v2444_v28 }
 0x154   : > { %1474 = vmatmul.msk.f32.gmra.mxu2 %vm233_vm0, %v1131_v2  ;;  %v670_v32 = vsub.f32 1.0, %v2448_v41  ;;  %v1015_v48 = vsub.f32 1.0, %v2454_v5  ;;  %1563 = vrcp.f32 %v2464_v36  ;;  %v747_v55 = vadd.f32 %v2258_v17, %v2364_v58 }
 0x155   : > { %v1140_v31 = vadd.f32 %v2086_v29, %v1104_v59  ;;  %vm749_vm7 = vweird.f32 %v2258_v17  ;;  %v752_v42 = vand.u32 2147483647, %v2195_v38  ;;  %vm763_vm8 = vweird.f32 %v2202_v39 }
 0x156   : > { %vm750_vm9 = vmor %vm748_vm5, %vm749_vm7  ;;  %v3062_v28 = vand.u32 2147483648, %v2195_v38  ;;  %v882_v5 = vadd.f32 %v2209_v54, %v2345_v63  ;;  %vm884_vm10 = vweird.f32 %v2209_v54  ;;  %v887_v58 = vand.u32 2147483647, %v2150_v62 }
 0x157   : > { %vm643_vm11 = vweird.f32 %v2306_v49  ;;  %1483 = vmatmul.msk.f32.gmra.mxu3 %vm233_vm0, %v1140_v31  ;;  %v751_v44 = vsel %vm750_vm9, %v2258_v17, %v747_v55  ;;  %vm753_vm12 = vcmp.eq.f32.partialorder %v752_v42, 8.507059e+37  ;;  %vm885_vm13 = vmor %vm883_vm4, %vm884_vm10  ;;  %v3063_v38 = vand.u32 2147483648, %v2150_v62  ;;  %v474_v31 = vpop.xlane.xlu1 %473 }
 0x158   : > { %v755_v41 = vor.u32 1.1754944e-38, %v3062_v28  ;;  %v543_v40 = vmul.f32 %v477_v25, %v1793_v15  ;;  %v2507_v63 = vpop.eup %1559  ;;  %v886_v28 = vsel %vm885_vm13, %v2209_v54, %v882_v5  ;;  %vm888_vm14 = vcmp.eq.f32.partialorder %v887_v58, 8.507059e+37 }
 0x159   : > { %v890_v2 = vor.u32 1.1754944e-38, %v3063_v38  ;;  %v552_v34 = vmul.f32 %v504_v23, %v1793_v15  ;;  %v2511_v12 = vpop.eup %1561  ;;  %vm898_vm15 = vweird.f32 %v2207_v22  ;;  %v924_v17 = vmul.f32 %v2507_v63, %v2456_v11 }
 0x15a   : > { %v756_v59 = vsel %vm753_vm12, %v755_v41, %v751_v44  ;;  %v2517_v25 = vadd.f32 1e-05, %v543_v40  ;;  %v2519_v42 = vpop.eup %1563  ;;  %v1024_v54 = vand.u32 2147483648, %v2376_v52  ;;  %v1044_v23 = vmul.f32 %v2511_v12, %v2458_v1 }
 0x15b   : > { %v757_v62 = vmul.f32 %v756_v59, %v1885_v3  ;;  %v891_v55 = vsel %vm888_vm14, %v890_v2, %v886_v28  ;;  %v2525_v5 = vadd.f32 1e-05, %v552_v34  ;;  %v2528_v58 = vmul.f32 %v2413_v45, %v1030_v4 }
 0x15c   : > { %v892_v41 = vmul.f32 %v891_v55, %v1873_v8  ;;  %1565 = vrcp.f32 %v2517_v25  ;;  %v542_v3 = vmul.f32 %v474_v31, %v1793_v15  ;;  %v2534_v38 = vmul.f32 %v2429_v47, %v670_v32 }
 0x15d   : > { %v1087_v44 = vmul.f32 %v2065_v50, %v757_v62  ;;  %v925_v2 = vsub.f32 1.0, %v924_v17  ;;  %v2539_v8 = vmul.f32 %v2438_v35, %v1015_v48  ;;  %v2543_v34 = vmul.f32 %v2519_v42, %v2464_v36 }
 0x15e   : > { %v1096_v59 = vmul.f32 %v2065_v50, %v892_v41  ;;  %1567 = vrcp.f32 %v2525_v5  ;;  %v1045_v28 = vsub.f32 1.0, %v1044_v23  ;;  %v2552_v62 = vadd.f32 1e-05, %v542_v3 }
 0x15f   : > { %v1123_v4 = vadd.f32 %v2086_v29, %v1087_v44  ;;  %v642_v55 = vadd.f32 %v2369_v13, %v2475_v20  ;;  %vm644_vm1 = vweird.f32 %v2369_v13  ;;  %v2558_v41 = vmul.f32 %v2507_v63, %v925_v2 }
 0x160   : > { %v1132_v17 = vadd.f32 %v2086_v29, %v1096_v59  ;;  %vm2563_vm2 = vmor %vm643_vm11, %vm644_vm1  ;;  %v647_v44 = vand.u32 2147483647, %v2306_v49  ;;  %v762_v3 = vadd.f32 %v2267_v46, %v2361_v33  ;;  %vm764_vm3 = vweird.f32 %v2267_v46 }
 0x161   : > { %1466 = vmatmul.msk.f32.gmra.mxu1 %vm233_vm0, %v1123_v4  ;;  %v910_v2 = vsub.f32 1.0, %v2543_v34  ;;  %1569 = vrcp.f32 %v2552_v62  ;;  %v646_v59 = vsel %vm2563_vm2, %v2369_v13, %v642_v55  ;;  %v650_v4 = vor.u32 1.1754944e-38, %v649_v26  ;;  %vm2582_vm4 = vmor %vm763_vm8, %vm764_vm3 }
 0x162   : > { %1475 = vmatmul.msk.f32.gmra.mxu2 %vm233_vm0, %v1132_v17  ;;  %v2571_v20 = vpop.eup %1565  ;;  %vm648_vm5 = vcmp.eq.f32.partialorder %v647_v44, 8.507059e+37  ;;  %v766_v34 = vsel %vm2582_vm4, %v2267_v46, %v762_v3  ;;  %v767_v23 = vand.u32 2147483647, %v2202_v39  ;;  %vm658_vm6 = vweird.f32 %v2284_v0  ;;  %v456_v44 = vpop.xlane.xlu2 %455 }
 0x163   : > { %v804_v33 = vmul.f32 %v2571_v20, %v2517_v25  ;;  %v651_v49 = vsel %vm648_vm5, %v650_v4, %v646_v59  ;;  %v3068_v26 = vand.u32 2147483648, %v2202_v39  ;;  %v897_v48 = vadd.f32 %v2276_v27, %v2384_v43  ;;  %v480_v59 = vpop.xlane.xlu0 %479  ;;  %v453_v43 = vpop.xlane.xlu1 %452 }
 0x164   : > { %v2592_v13 = vpop.eup %1567  ;;  %vm899_vm7 = vweird.f32 %v2276_v27  ;;  %v2601_v32 = vmul.f32 %v2511_v12, %v1045_v28  ;;  %v652_v3 = vmul.f32 %v651_v49, %v1906_v14  ;;  %vm768_vm8 = vcmp.eq.f32.partialorder %v767_v23, 8.507059e+37 }
 0x165   : > { %v770_v55 = vor.u32 1.1754944e-38, %v3068_v26  ;;  %v939_v46 = vmul.f32 %v2592_v13, %v2525_v5  ;;  %vm2608_vm9 = vmor %vm898_vm15, %vm899_vm7  ;;  %vm778_vm10 = vweird.f32 %v2298_v6  ;;  %v902_v17 = vand.u32 2147483647, %v2207_v22 }
 0x166   : > { %v905_v26 = vor.u32 1.1754944e-38, %v904_v9  ;;  %v805_v14 = vsub.f32 1.0, %v804_v33  ;;  %v1080_v23 = vmul.f32 %v2065_v50, %v652_v3  ;;  %v901_v40 = vsel %vm2608_vm9, %v2276_v27, %v897_v48 }
 0x167   : > { %v771_v28 = vsel %vm768_vm8, %v770_v55, %v766_v34  ;;  %v2622_v31 = vpop.eup %1569  ;;  %vm903_vm11 = vcmp.eq.f32.partialorder %v902_v17, 8.507059e+37  ;;  %v536_v4 = vmul.f32 %v456_v44, %v1793_v15  ;;  %v544_v34 = vmul.f32 %v480_v59, %v1793_v15 }
 0x168   : > { %v772_v49 = vmul.f32 %v771_v28, %v1894_v18  ;;  %v535_v55 = vmul.f32 %v453_v43, %v1793_v15  ;;  %vm1018_vm12 = vweird.f32 %v2376_v52  ;;  %v940_v22 = vsub.f32 1.0, %v939_v46 }
 0x169   : > { %v789_v9 = vmul.f32 %v2622_v31, %v2552_v62  ;;  %v1116_v18 = vadd.f32 %v2086_v29, %v1080_v23  ;;  %v906_v27 = vsel %vm903_vm11, %v905_v26, %v901_v40  ;;  %v2632_v48 = vadd.f32 1e-05, %v536_v4 }
 0x16a   : > { %v1088_v33 = vmul.f32 %v2065_v50, %v772_v49  ;;  %v2634_v3 = vadd.f32 1e-05, %v544_v34  ;;  %v2636_v44 = vadd.f32 1e-05, %v535_v55  ;;  %v2639_v39 = vmul.f32 %v2519_v42, %v910_v2 }
 0x16b   : > { %v790_v59 = vsub.f32 1.0, %v789_v9  ;;  %1459 = vmatmul.msk.f32.gmra.mxu0 %vm233_vm0, %v1116_v18  ;;  %v907_v43 = vmul.f32 %v906_v27, %v1899_v21  ;;  %v2645_v28 = vmul.f32 %v2571_v20, %v805_v14  ;;  %v799_v40 = vand.u32 2147483648, %v2552_v62 }
 0x16c   : > { %v1124_v46 = vadd.f32 %v2086_v29, %v1088_v33  ;;  %1571 = vrcp.f32 %v2632_v48  ;;  %v657_v4 = vadd.f32 %v2342_v61, %v2467_v30  ;;  %v2652_v2 = vmul.f32 %v2592_v13, %v940_v22 }
 0x16d   : > { %v1097_v17 = vmul.f32 %v2065_v50, %v907_v43  ;;  %v709_v26 = vand.u32 2147483648, %v2632_v48  ;;  %1573 = vrcp.f32 %v2634_v3  ;;  %v2659_v21 = vmul.f32 %v2622_v31, %v790_v59 }
 0x16e   : > { %1467 = vmatmul.msk.f32.gmra.mxu1 %vm233_vm0, %v1124_v46  ;;  %v829_v14 = vand.u32 2147483648, %v2634_v3  ;;  %1575 = vrcp.f32 %v2636_v44  ;;  %vm659_vm13 = vweird.f32 %v2342_v61  ;;  %vm673_vm14 = vweird.f32 %v2374_v37 }
 0x16f   : > { %v1133_v30 = vadd.f32 %v2086_v29, %v1097_v17  ;;  %vm2668_vm15 = vmor %vm658_vm6, %vm659_vm13  ;;  %v662_v49 = vand.u32 2147483647, %v2284_v0  ;;  %v665_v34 = vor.u32 1.1754944e-38, %v664_v60  ;;  %v777_v55 = vadd.f32 %v2351_v56, %v2470_v51  ;;  %v528_v51 = vpop.xlane.xlu1 %527 }
 0x170   : > { %v661_v22 = vsel %vm2668_vm15, %v2342_v61, %v657_v4  ;;  %vm779_vm1 = vweird.f32 %v2351_v56  ;;  %v782_v9 = vand.u32 2147483647, %v2298_v6  ;;  %v785_v18 = vor.u32 1.1754944e-38, %v784_v53 }
 0x171   : > { %1476 = vmatmul.msk.f32.gmra.mxu2 %vm233_vm0, %v1133_v30  ;;  %vm663_vm2 = vcmp.eq.f32.partialorder %v662_v49, 8.507059e+37  ;;  %vm2687_vm3 = vmor %vm778_vm10, %vm779_vm1  ;;  %v1017_v60 = vadd.f32 %v2438_v35, %v2539_v8  ;;  %vm1019_vm4 = vweird.f32 %v2438_v35  ;;  %v1022_v61 = vand.u32 2147483647, %v2376_v52 }
 0x172   : > { %v2695_v33 = vpop.eup %1571  ;;  %vm1033_vm5 = vweird.f32 %v2348_v57  ;;  %v666_v53 = vsel %vm663_vm2, %v665_v34, %v661_v22  ;;  %v781_v6 = vsel %vm2687_vm3, %v2351_v56, %v777_v55  ;;  %vm783_vm6 = vcmp.eq.f32.partialorder %v782_v9, 8.507059e+37  ;;  %vm2703_vm7 = vmor %vm1018_vm12, %vm1019_vm4 }
 0x173   : > { %v1025_v8 = vor.u32 1.1754944e-38, %v1024_v54  ;;  %v2709_v59 = vpop.eup %1573  ;;  %vm913_vm8 = vweird.f32 %v2464_v36  ;;  %v699_v46 = vmul.f32 %v2695_v33, %v2632_v48  ;;  %v667_v43 = vmul.f32 %v666_v53, %v1915_v24 }
 0x174   : > { %v786_v56 = vsel %vm783_vm6, %v785_v18, %v781_v6  ;;  %v1021_v4 = vsel %vm2703_vm7, %v2438_v35, %v1017_v60  ;;  %v2718_v17 = vpop.eup %1575  ;;  %v819_v52 = vmul.f32 %v2709_v59, %v2634_v3  ;;  %vm1023_vm9 = vcmp.eq.f32.partialorder %v1022_v61, 8.507059e+37 }
 0x175   : > { %v787_v54 = vmul.f32 %v786_v56, %v1920_v19  ;;  %v560_v30 = vmul.f32 %v528_v51, %v1793_v15  ;;  %v700_v23 = vsub.f32 1.0, %v699_v46  ;;  %v684_v49 = vmul.f32 %v2718_v17, %v2636_v44 }
 0x176   : > { %v1081_v24 = vmul.f32 %v2065_v50, %v667_v43  ;;  %v1026_v34 = vsel %vm1023_vm9, %v1025_v8, %v1021_v4  ;;  %v820_v55 = vsub.f32 1.0, %v819_v52  ;;  %v694_v19 = vand.u32 2147483648, %v2636_v44 }
 0x177   : > { %v1089_v35 = vmul.f32 %v2065_v50, %v787_v54  ;;  %v1027_v22 = vmul.f32 %v1026_v34, %v1927_v7  ;;  %v2729_v9 = vadd.f32 1e-05, %v560_v30  ;;  %v685_v18 = vsub.f32 1.0, %v684_v49 }
 0x178   : > { %v1117_v0 = vadd.f32 %v2086_v29, %v1081_v24  ;;  %v672_v15 = vadd.f32 %v2429_v47, %v2534_v38  ;;  %vm793_vm10 = vweird.f32 %v2552_v62  ;;  %v2737_v60 = vmul.f32 %v2695_v33, %v700_v23 }
 0x179   : > { %v1125_v61 = vadd.f32 %v2086_v29, %v1089_v35  ;;  %v1105_v51 = vmul.f32 %v2065_v50, %v1027_v22  ;;  %1577 = vrcp.f32 %v2729_v9  ;;  %vm928_vm11 = vweird.f32 %v2456_v11  ;;  %v3082_v35 = vld [vmem:[#allocation2_spill] sm:$0xff] }
 0x17a   : > { %v2744_v7 = vmul.f32 %v2709_v59, %v820_v55  ;;  %v2747_v53 = vmul.f32 %v2718_v17, %v685_v18  ;;  %1460 = vmatmul.msk.f32.gmra.mxu0 %vm233_vm0, %v1117_v0  ;;  %v1069_v38 = vand.u32 2147483648, %v2729_v9  ;;  %vm674_vm12 = vweird.f32 %v2429_v47 }
 0x17b   : > { %1468 = vmatmul.msk.f32.gmra.mxu1 %vm233_vm0, %v1125_v61  ;;  %v1141_v50 = vadd.f32 %v2086_v29, %v1105_v51  ;;  %vm2756_vm13 = vmor %vm673_vm14, %vm674_vm12  ;;  %v677_v27 = vand.u32 2147483647, %v2374_v37  ;;  %v3079_v8 = vand.u32 2147483648, %v2374_v37  ;;  %v912_v43 = vadd.f32 %v2519_v42, %v2639_v39  ;;  %v2815_v61 = vld [vmem:[%s3020_s2] ss:$0 sm:$0xff] }
 0x17c   : > { %vm1048_vm15 = vweird.f32 %v2458_v1  ;;  %v676_v29 = vsel %vm2756_vm13, %v2429_v47, %v672_v15  ;;  %vm914_vm1 = vweird.f32 %v2519_v42  ;;  %v917_v56 = vand.u32 2147483647, %v2464_v36 }
 0x17d   : > { %v680_v46 = vor.u32 1.1754944e-38, %v3079_v8  ;;  %v3080_v4 = vand.u32 2147483648, %v2464_v36  ;;  %1484 = vmatmul.msk.f32.gmra.mxu3 %vm233_vm0, %v1141_v50  ;;  %vm678_vm14 = vcmp.eq.f32.partialorder %v677_v27, 8.507059e+37  ;;  %vm915_vm2 = vmor %vm913_vm8, %vm914_vm1  ;;  %v1032_v37 = vadd.f32 %v2413_v45, %v2528_v58  ;;  %v3083_v8 = vld [vmem:[#allocation6_spill] sm:$0xff] }
 0x17e   : > { %vm1034_vm3 = vweird.f32 %v2413_v45  ;;  %v1037_v47 = vand.u32 2147483647, %v2348_v57  ;;  %v916_v54 = vsel %vm915_vm2, %v2519_v42, %v912_v43  ;;  %vm918_vm4 = vcmp.eq.f32.partialorder %v917_v56, 8.507059e+37 }
 0x17f   : > { %v920_v52 = vor.u32 1.1754944e-38, %v3080_v4  ;;  %v681_v39 = vsel %vm678_vm14, %v680_v46, %v676_v29  ;;  %vm1035_vm6 = vmor %vm1033_vm5, %vm1034_vm3  ;;  %v3081_v30 = vand.u32 2147483648, %v2348_v57  ;;  %v2785_v49 = vpop.eup %1577  ;;  %vm688_vm8 = vweird.f32 %v2636_v44 }
 0x180   : > { %v682_v36 = vmul.f32 %v681_v39, %v1941_v10  ;;  %v1036_v58 = vsel %vm1035_vm6, %v2413_v45, %v1032_v37  ;;  %vm1038_vm7 = vcmp.eq.f32.partialorder %v1037_v47, 8.507059e+37  ;;  %v1059_v42 = vmul.f32 %v2785_v49, %v2729_v9  ;;  %v2799_v10 = vld [vmem:[%s3019_s1] ss:$0 sm:$0xff] }
 0x181   : > { %v1040_v23 = vor.u32 1.1754944e-38, %v3081_v30  ;;  %v921_v24 = vsel %vm918_vm4, %v920_v52, %v916_v54  ;;  %v792_v57 = vadd.f32 %v2622_v31, %v2659_v21  ;;  %vm808_vm5 = vweird.f32 %v2517_v25 }
 0x182   : > { %v922_v34 = vmul.f32 %v921_v24, %v1948_v16  ;;  %v1082_v45 = vmul.f32 %v2799_v10, %v682_v36  ;;  %vm794_vm9 = vweird.f32 %v2622_v31  ;;  %v797_v18 = vand.u32 2147483647, %v2552_v62 }
 0x183   : > { %v1041_v55 = vsel %vm1038_vm7, %v1040_v23, %v1036_v58  ;;  %v1060_v16 = vsub.f32 1.0, %v1059_v42  ;;  %vm795_vm12 = vmor %vm793_vm10, %vm794_vm9  ;;  %v800_v21 = vor.u32 1.1754944e-38, %v799_v40  ;;  %v927_v15 = vadd.f32 %v2507_v63, %v2558_v41  ;;  %v3088_v23 = vld [vmem:[#allocation3_spill] sm:$0xff]  ;;  %v3089_v58 = vld [vmem:[#allocation4_spill] sm:$0xff] }
 0x184   : > { %v1042_v22 = vmul.f32 %v1041_v55, %v3082_v35  ;;  %v1098_v0 = vmul.f32 %v2799_v10, %v922_v34  ;;  %v1118_v51 = vadd.f32 %v2815_v61, %v1082_v45  ;;  %v796_v6 = vsel %vm795_vm12, %v2622_v31, %v792_v57 }
 0x185   : > { %vm798_vm13 = vcmp.eq.f32.partialorder %v797_v18, 8.507059e+37  ;;  %vm943_vm10 = vweird.f32 %v2525_v5  ;;  %v2822_v62 = vmul.f32 %v2785_v49, %v1060_v16  ;;  %vm929_vm1 = vweird.f32 %v2507_v63 }
 0x186   : > { %v1106_v50 = vmul.f32 %v2799_v10, %v1042_v22  ;;  %v1134_v40 = vadd.f32 %v2815_v61, %v1098_v0  ;;  %v801_v41 = vsel %vm798_vm13, %v800_v21, %v796_v6  ;;  %1461 = vmatmul.msk.f32.gmra.mxu0 %vm233_vm0, %v1118_v51  ;;  %vm2831_vm14 = vmor %vm928_vm11, %vm929_vm1  ;;  %v932_v43 = vand.u32 2147483647, %v2456_v11  ;;  %v3091_v22 = vld [vmem:[#allocation8_spill] sm:$0xff] }
 0x187   : > { %v802_v46 = vmul.f32 %v801_v41, %v3083_v8  ;;  %v3086_v29 = vand.u32 2147483648, %v2456_v11  ;;  %vm703_vm2 = vweird.f32 %v2632_v48  ;;  %v931_v4 = vsel %vm2831_vm14, %v2507_v63, %v927_v15  ;;  %v3092_v15 = vld [vmem:[#allocation5_spill] sm:$0xff] }
 0x188   : > { %v1142_v27 = vadd.f32 %v2815_v61, %v1106_v50  ;;  %1477 = vmatmul.msk.f32.gmra.mxu2 %vm233_vm0, %v1134_v40  ;;  %v1047_v52 = vadd.f32 %v2511_v12, %v2601_v32  ;;  %vm1049_vm11 = vweird.f32 %v2511_v12  ;;  %v1052_v37 = vand.u32 2147483647, %v2458_v1 }
 0x189   : > { %v935_v56 = vor.u32 1.1754944e-38, %v3086_v29  ;;  %v1090_v11 = vmul.f32 %v2799_v10, %v802_v46  ;;  %vm933_vm3 = vcmp.eq.f32.partialorder %v932_v43, 8.507059e+37  ;;  %vm1050_vm4 = vmor %vm1048_vm15, %vm1049_vm11  ;;  %v3087_v47 = vand.u32 2147483648, %v2458_v1 }
 0x18a   : > { %1485 = vmatmul.msk.f32.gmra.mxu3 %vm233_vm0, %v1142_v27  ;;  %v687_v63 = vadd.f32 %v2718_v17, %v2747_v53  ;;  %v1051_v32 = vsel %vm1050_vm4, %v2511_v12, %v1047_v52  ;;  %vm1053_vm6 = vcmp.eq.f32.partialorder %v1052_v37, 8.507059e+37  ;;  %vm689_vm7 = vweird.f32 %v2718_v17 }
 0x18b   : > { %v1055_v39 = vor.u32 1.1754944e-38, %v3087_v47  ;;  %v936_v54 = vsel %vm933_vm3, %v935_v56, %v931_v4  ;;  %vm823_vm9 = vweird.f32 %v2634_v3  ;;  %v1126_v30 = vadd.f32 %v2815_v61, %v1090_v11  ;;  %vm690_vm15 = vmor %vm688_vm8, %vm689_vm7 }
 0x18c   : > { %v937_v36 = vmul.f32 %v936_v54, %v3088_v23  ;;  %v692_v1 = vand.u32 2147483647, %v2636_v44  ;;  %v691_v42 = vsel %vm690_vm15, %v2718_v17, %v687_v63  ;;  %v695_v12 = vor.u32 1.1754944e-38, %v694_v19  ;;  %v3097_v23 = vld [vmem:[#allocation11_spill] sm:$0xff] }
 0x18d   : > { %v1056_v24 = vsel %vm1053_vm6, %v1055_v39, %v1051_v32  ;;  %v807_v34 = vadd.f32 %v2571_v20, %v2645_v28  ;;  %1469 = vmatmul.msk.f32.gmra.mxu1 %vm233_vm0, %v1126_v30  ;;  %vm809_vm13 = vweird.f32 %v2571_v20  ;;  %v812_v57 = vand.u32 2147483647, %v2517_v25 }
 0x18e   : > { %v1057_v53 = vmul.f32 %v1056_v24, %v3089_v58  ;;  %v1099_v55 = vmul.f32 %v2799_v10, %v937_v36  ;;  %vm693_vm12 = vcmp.eq.f32.partialorder %v692_v1, 8.507059e+37  ;;  %vm810_vm8 = vmor %vm808_vm5, %vm809_vm13  ;;  %v3090_v44 = vand.u32 2147483648, %v2517_v25 }
 0x18f   : > { %v696_v35 = vsel %vm693_vm12, %v695_v12, %v691_v42  ;;  %v942_v28 = vadd.f32 %v2592_v13, %v2652_v2  ;;  %vm1063_vm1 = vweird.f32 %v2729_v9  ;;  %v811_v16 = vsel %vm810_vm8, %v2571_v20, %v807_v34 }
 0x190   : > { %v1107_v45 = vmul.f32 %v2799_v10, %v1057_v53  ;;  %v815_v17 = vor.u32 1.1754944e-38, %v3090_v44  ;;  %v1135_v19 = vadd.f32 %v2815_v61, %v1099_v55  ;;  %v697_v18 = vmul.f32 %v696_v35, %v3091_v22 }
 0x191   : > { %vm813_vm14 = vcmp.eq.f32.partialorder %v812_v57, 8.507059e+37  ;;  %vm944_vm5 = vweird.f32 %v2592_v13  ;;  %v947_v25 = vand.u32 2147483647, %v2525_v5  ;;  %v3093_v50 = vand.u32 2147483648, %v2525_v5 }
 0x192   : > { %v1143_v0 = vadd.f32 %v2815_v61, %v1107_v45  ;;  %v816_v21 = vsel %vm813_vm14, %v815_v17, %v811_v16  ;;  %1478 = vmatmul.msk.f32.gmra.mxu2 %vm233_vm0, %v1135_v19  ;;  %v1083_v2 = vmul.f32 %v2799_v10, %v697_v18  ;;  %vm945_vm11 = vmor %vm943_vm10, %vm944_vm5  ;;  %v702_v6 = vadd.f32 %v2695_v33, %v2737_v60  ;;  %v3094_v60 = vld [vmem:[#allocation7_spill] sm:$0xff] }
 0x193   : > { %v817_v51 = vmul.f32 %v816_v21, %v3092_v15  ;;  %v950_v20 = vor.u32 1.1754944e-38, %v3093_v50  ;;  %v946_v40 = vsel %vm945_vm11, %v2592_v13, %v942_v28  ;;  %vm948_vm3 = vcmp.eq.f32.partialorder %v947_v25, 8.507059e+37 }
 0x194   : > { %1486 = vmatmul.msk.f32.gmra.mxu3 %vm233_vm0, %v1143_v0  ;;  %vm704_vm4 = vweird.f32 %v2695_v33  ;;  %v707_v41 = vand.u32 2147483647, %v2632_v48  ;;  %v1119_v27 = vadd.f32 %v2815_v61, %v1083_v2  ;;  %v710_v5 = vor.u32 1.1754944e-38, %v709_v26  ;;  %v3095_v26 = vld [vmem:[#allocation9_spill] sm:$0xff] }
 0x195   : > { %v1091_v8 = vmul.f32 %v2799_v10, %v817_v51  ;;  %v951_v46 = vsel %vm948_vm3, %v950_v20, %v946_v40  ;;  %vm705_vm10 = vmor %vm703_vm2, %vm704_vm4  ;;  %v822_v43 = vadd.f32 %v2709_v59, %v2744_v7  ;;  %vm824_vm7 = vweird.f32 %v2709_v59 }
 0x196   : > { %v952_v31 = vmul.f32 %v951_v46, %v3094_v60  ;;  %v706_v13 = vsel %vm705_vm10, %v2695_v33, %v702_v6  ;;  %vm708_vm6 = vcmp.eq.f32.partialorder %v707_v41, 8.507059e+37  ;;  %1462 = vmatmul.msk.f32.gmra.mxu0 %vm233_vm0, %v1119_v27  ;;  %v827_v4 = vand.u32 2147483647, %v2634_v3  ;;  %vm825_vm2 = vmor %vm823_vm9, %vm824_vm7 }
 0x197   : > { %v1127_v29 = vadd.f32 %v2815_v61, %v1091_v8  ;;  %v711_v56 = vsel %vm708_vm6, %v710_v5, %v706_v13  ;;  %v830_v33 = vor.u32 1.1754944e-38, %v829_v14  ;;  %v1062_v7 = vadd.f32 %v2785_v49, %v2822_v62  ;;  %v3096_v14 = vld [vmem:[#allocation10_spill] sm:$0xff] }
 0x198   : > { %v1100_v48 = vmul.f32 %v2799_v10, %v952_v31  ;;  %v712_v52 = vmul.f32 %v711_v56, %v3095_v26  ;;  %v826_v37 = vsel %vm825_vm2, %v2709_v59, %v822_v43  ;;  %vm828_vm15 = vcmp.eq.f32.partialorder %v827_v4, 8.507059e+37 }
 0x199   : > { %1470 = vmatmul.msk.f32.gmra.mxu1 %vm233_vm0, %v1127_v29  ;;  %vm1064_vm12 = vweird.f32 %v2785_v49  ;;  %v1067_v11 = vand.u32 2147483647, %v2729_v9  ;;  %v831_v63 = vsel %vm828_vm15, %v830_v33, %v826_v37  ;;  %v1070_v3 = vor.u32 1.1754944e-38, %v1069_v38 }
 0x19a   : > { %v1136_v47 = vadd.f32 %v2815_v61, %v1100_v48  ;;  %v1084_v39 = vmul.f32 %v2799_v10, %v712_v52  ;;  %vm1065_vm9 = vmor %vm1063_vm1, %vm1064_vm12  ;;  %v832_v62 = vmul.f32 %v831_v63, %v3096_v14  ;;  %vm1358_vm8 = vcmask 785408  }
 0x19b   : > { %v1066_v59 = vsel %vm1065_vm9, %v2785_v49, %v1062_v7  ;;  %vm1068_vm13 = vcmp.eq.f32.partialorder %v1067_v11, 8.507059e+37 }
 0x19c   : > { %1479 = vmatmul.msk.f32.gmra.mxu2 %vm233_vm0, %v1136_v47  ;;  %v1071_v54 = vsel %vm1068_vm13, %v1070_v3, %v1066_v59  ;;  %v1120_v32 = vadd.f32 %v2815_v61, %v1084_v39  ;;  %v1092_v30 = vmul.f32 %v2799_v10, %v832_v62 }
 0x19d   : > { %v1072_v36 = vmul.f32 %v1071_v54, %v3097_v23 }
 0x19e   : > { %1463 = vmatmul.msk.f32.gmra.mxu0 %vm233_vm0, %v1120_v32  ;;  %v1128_v9 = vadd.f32 %v2815_v61, %v1092_v30 }
 0x19f   : > { %v1108_v38 = vmul.f32 %v2799_v10, %v1072_v36 }
 0x1a1   : > { %1471 = vmatmul.msk.f32.gmra.mxu1 %vm233_vm0, %v1128_v9  ;;  %v1144_v49 = vadd.f32 %v2815_v61, %v1108_v38  ;;  %v1310_v10 = vpop.f32.mrf.mxu2 }
 0x1a2   : > { %1375 = vst.msk [vmem:[%s2949_s14 + $0x80] sm:$0xff] %vm1358_vm8, %v1310_v10 }
 0x1a3   : > { %1487 = vmatmul.msk.f32.gmra.mxu3 %vm233_vm0, %v1144_v49 }
 0x1a4   : > { %v1286_v61 = vpop.f32.mrf.mxu1 }
 0x1a5   : > { %1367 = vst.msk [vmem:[%s2949_s14 + $0x40] sm:$0xff] %vm1358_vm8, %v1286_v61 }
 0x1ab   : > { %v1334_v24 = vpop.f32.mrf.mxu3 }
 0x1ac   : > { %1383 = vst.msk [vmem:[%s2949_s14 + $0xc0] sm:$0xff] %vm1358_vm8, %v1334_v24 }
 0x1b0   : > { %v1262_v1 = vpop.f32.mrf.mxu0 }
 0x1b1   : > { %1359 = vst.msk [vmem:[%s2949_s14] sm:$0xff] %vm1358_vm8, %v1262_v1 }
 0x1ba   : > { %v1313_v58 = vpop.f32.mrf.mxu2 }
 0x1bb   : > { %1376 = vst.msk [vmem:[%s2949_s14 + $0x88] sm:$0xff] %vm1358_vm8, %v1313_v58 }
 0x1bd   : > { %v1337_v53 = vpop.f32.mrf.mxu3 }
 0x1be   : > { %1384 = vst.msk [vmem:[%s2949_s14 + $0xc8] sm:$0xff] %vm1358_vm8, %v1337_v53 }
 0x1c0   : > { %v1265_v42 = vpop.f32.mrf.mxu0 }
 0x1c1   : > { %1360 = vst.msk [vmem:[%s2949_s14 + $0x8] sm:$0xff] %vm1358_vm8, %v1265_v42 }
 0x1c3   : > { %v1289_v12 = vpop.f32.mrf.mxu1 }
 0x1c4   : > { %1368 = vst.msk [vmem:[%s2949_s14 + $0x48] sm:$0xff] %vm1358_vm8, %v1289_v12 }
 0x1cb   : > { %v1340_v34 = vpop.f32.mrf.mxu3 }
 0x1cc   : > { %1385 = vst.msk [vmem:[%s2949_s14 + $0xd0] sm:$0xff] %vm1358_vm8, %v1340_v34 }
 0x1ce   : > { %v1268_v55 = vpop.f32.mrf.mxu0 }
 0x1cf   : > { %1361 = vst.msk [vmem:[%s2949_s14 + $0x10] sm:$0xff] %vm1358_vm8, %v1268_v55 }
 0x1d7   : > { %v1316_v57 = vpop.f32.mrf.mxu2 }
 0x1d8   : > { %1377 = vst.msk [vmem:[%s2949_s14 + $0x90] sm:$0xff] %vm1358_vm8, %v1316_v57 }
 0x1da   : > { %v1343_v45 = vpop.f32.mrf.mxu3 }
 0x1db   : > { %1386 = vst.msk [vmem:[%s2949_s14 + $0xd8] sm:$0xff] %vm1358_vm8, %v1343_v45 }
 0x1de   : > { %v1292_v35 = vpop.f32.mrf.mxu1 }
 0x1df   : > { %1369 = vst.msk [vmem:[%s2949_s14 + $0x50] sm:$0xff] %vm1358_vm8, %v1292_v35 }
 0x1e5   : > { %v1319_v44 = vpop.f32.mrf.mxu2 }
 0x1e6   : > { %1378 = vst.msk [vmem:[%s2949_s14 + $0x98] sm:$0xff] %vm1358_vm8, %v1319_v44 }
 0x1e8   : > { %v1271_v17 = vpop.f32.mrf.mxu0 }
 0x1e9   : > { %1362 = vst.msk [vmem:[%s2949_s14 + $0x18] sm:$0xff] %vm1358_vm8, %v1271_v17 }
 0x1eb   : > { %v1295_v28 = vpop.f32.mrf.mxu1 }
 0x1ec   : > { %1370 = vst.msk [vmem:[%s2949_s14 + $0x58] sm:$0xff] %vm1358_vm8, %v1295_v28 }
 0x1f4   : > { %v1322_v19 = vpop.f32.mrf.mxu2 }
 0x1f5   : > { %1379 = vst.msk [vmem:[%s2949_s14 + $0xa0] sm:$0xff] %vm1358_vm8, %v1322_v19 }
 0x1f7   : > { %v1274_v22 = vpop.f32.mrf.mxu0 }
 0x1f8   : > { %1363 = vst.msk [vmem:[%s2949_s14 + $0x20] sm:$0xff] %vm1358_vm8, %v1274_v22  ;;  %v1298_v18 = vpop.f32.mrf.mxu1 }
 0x1f9   : > { %1371 = vst.msk [vmem:[%s2949_s14 + $0x60] sm:$0xff] %vm1358_vm8, %v1298_v18 }
 0x200   : > { %v1346_v16 = vpop.f32.mrf.mxu3 }
 0x201   : > { %1387 = vst.msk [vmem:[%s2949_s14 + $0xe0] sm:$0xff] %vm1358_vm8, %v1346_v16 }
 0x203   : > { %v1277_v0 = vpop.f32.mrf.mxu0 }
 0x204   : > { %1364 = vst.msk [vmem:[%s2949_s14 + $0x28] sm:$0xff] %vm1358_vm8, %v1277_v0 }
 0x20a   : > { %v1301_v21 = vpop.f32.mrf.mxu1 }
 0x20b   : > { %v1325_v25 = vpop.f32.mrf.mxu2  ;;  %1372 = vst.msk [vmem:[%s2949_s14 + $0x68] sm:$0xff] %vm1358_vm8, %v1301_v21 }
 0x20c   : > { %1380 = vst.msk [vmem:[%s2949_s14 + $0xa8] sm:$0xff] %vm1358_vm8, %v1325_v25 }
 0x20d   : > { %v1349_v2 = vpop.f32.mrf.mxu3 }
 0x20e   : > { %1388 = vst.msk [vmem:[%s2949_s14 + $0xe8] sm:$0xff] %vm1358_vm8, %v1349_v2 }
 0x213   : > { %v1280_v15 = vpop.f32.mrf.mxu0 }
 0x214   : > { %1365 = vst.msk [vmem:[%s2949_s14 + $0x30] sm:$0xff] %vm1358_vm8, %v1280_v15 }
 0x215   : > { %v1328_v51 = vpop.f32.mrf.mxu2 }
 0x216   : > { %v1304_v50 = vpop.f32.mrf.mxu1  ;;  %1381 = vst.msk [vmem:[%s2949_s14 + $0xb0] sm:$0xff] %vm1358_vm8, %v1328_v51 }
 0x217   : > { %v1352_v20 = vpop.f32.mrf.mxu3  ;;  %1373 = vst.msk [vmem:[%s2949_s14 + $0x70] sm:$0xff] %vm1358_vm8, %v1304_v50 }
 0x218   : > { %1389 = vst.msk [vmem:[%s2949_s14 + $0xf0] sm:$0xff] %vm1358_vm8, %v1352_v20 }
 0x21b   : > { %v1283_v6 = vpop.f32.mrf.mxu0 }
 0x21c   : > { %1366 = vst.msk [vmem:[%s2949_s14 + $0x38] sm:$0xff] %vm1358_vm8, %v1283_v6 }
 0x21e   : > { %v1307_v40 = vpop.f32.mrf.mxu1 }
 0x21f   : > { %v1331_v41 = vpop.f32.mrf.mxu2  ;;  %1374 = vst.msk [vmem:[%s2949_s14 + $0x78] sm:$0xff] %vm1358_vm8, %v1307_v40 }
 0x220   : > { %1382 = vst.msk [vmem:[%s2949_s14 + $0xb8] sm:$0xff] %vm1358_vm8, %v1331_v41 }
 0x226   : > { %v1355_v27 = vpop.f32.mrf.mxu3 }
 0x227   : > { %1390 = vst.msk [vmem:[%s2949_s14 + $0xf8] sm:$0xff] %vm1358_vm8, %v1355_v27 }
 0x228 PF: > { %s14_s15 = sadd.s32 1, %s1587_s15  }
 0x229   : > { %p11_p4 = scmp.ge.s32.totalorder %s14_s15, 4  }
 0x22b   :  { %13 = sbr.rel (!%p11_p4) target bundleno = 1 (0x1), region = 66 }

// kernel: transformer_forward.18
= control target key start
LH: loop header
LB: loop body
LE: loop exit
PB: predicated region body
PF: predicated region fallthrough
CT: control target
= control target key end

     0   :  { %s736_s15 = smov 0   ;;  %s976_s0 = inlined_call_operand.vmem [shape: f32[512,32], index: 0, kind: input, shape index: {}]   ;;  %s977_s1 = inlined_call_operand.vmem [shape: f32[32,32], index: 1, kind: input, shape index: {}]   ;;  %s978_s2 = inlined_call_operand.vmem [shape: f32[1,32], index: 2, kind: input, shape index: {}]   ;;  %s979_s3 = inlined_call_operand.vmem [shape: f32[512,32], index: 3, kind: input, shape index: {}]   ;;  %s980_s4 = inlined_call_operand.vmem [shape: f32[512,32], index: 4, kind: output, shape index: {}]  }
   0x1 LB: > { %s637_s16 = sadd.s32 4294967295, %s709_s15   ;;  %p641_p0 = scmp.ge.s32.totalorder %s709_s15, 1  ;;  %s709_s15 = sphi %s736_s15, %s14_s15  }
   0x2   : > { %p174_p1 = scmp.lt.s32.totalorder %s709_s15, 3 }
   0x4   : > { %p175_p2 = pnand %p641_p0, %p174_p1 }
   0x5   : > { %s642_s21 = sshll.u32 (!%p175_p2), %s637_s16, 5 }
   0x6   : > { %178 = sbr.rel (%p175_p2) target bundleno = 213 (0xd5), region = 36  ;;  %p206_p3 = scmp.lt.s32.totalorder (!%p175_p2), %s642_s21, 63 }
   0xb   : > { %v258_v0 = vld [vmem:[%s977_s1 + $0x18] sm:$0xff]  ;;  %v257_v1 = vld [vmem:[%s977_s1 + $0x10] sm:$0xff]  ;;  %v256_v2 = vld [vmem:[%s977_s1 + $0x8] sm:$0xff]  ;;  %s982_s21 = smov (!%p206_p3, %s642_s21), 63  ;;  %vm263_vm0 = vcmask 261120  }
   0xc   : > { %683 = vmatpush.msra.mxu2 %v258_v0  ;;  %684 = vmatpush.msra.mxu3 %v258_v0  ;;  %v255_v3 = vld [vmem:[%s977_s1] sm:$0xff]  ;;  %s756_s26 = sshll.u32 %s982_s21, 3 }
   0xd   : > { %372 = vmatpush.msra.mxu0 %v258_v0  ;;  %682 = vmatpush.msra.mxu1 %v258_v0  ;;  %s762_s29 = scalar_lea.vmem %s976_s0, %s756_s26  ;;  %s832_s6 = scalar_lea.vmem %s979_s3, %s756_s26  ;;  %v837_v36 = vld [vmem:[%s978_s2] ss:$0 sm:$0xff] }
   0xe   : > { %686 = vmatpush.msra.mxu2 %v257_v1  ;;  %687 = vmatpush.msra.mxu3 %v257_v1  ;;  %v239_v4 = vld [vmem:[%s762_s29 + $0x80] sm:$0xff]  ;;  %v240_v8 = vld [vmem:[%s762_s29 + $0x88] sm:$0xff]  ;;  %v241_v12 = vld [vmem:[%s762_s29 + $0x90] sm:$0xff]  ;;  %s847_s11 = scalar_lea.vmem %s980_s4, %s756_s26 }
   0xf   : > { %373 = vmatpush.msra.mxu0 %v257_v1  ;;  %685 = vmatpush.msra.mxu1 %v257_v1  ;;  %v247_v5 = vld [vmem:[%s762_s29 + $0xc0] sm:$0xff]  ;;  %v248_v9 = vld [vmem:[%s762_s29 + $0xc8] sm:$0xff]  ;;  %v249_v13 = vld [vmem:[%s762_s29 + $0xd0] sm:$0xff] }
  0x10   : > { %689 = vmatpush.msra.mxu2 %v256_v2  ;;  %690 = vmatpush.msra.mxu3 %v256_v2  ;;  %v223_v6 = vld [vmem:[%s762_s29] sm:$0xff]  ;;  %v224_v10 = vld [vmem:[%s762_s29 + $0x8] sm:$0xff]  ;;  %v225_v14 = vld [vmem:[%s762_s29 + $0x10] sm:$0xff] }
  0x11   : > { %374 = vmatpush.msra.mxu0 %v256_v2  ;;  %688 = vmatpush.msra.mxu1 %v256_v2  ;;  %v231_v7 = vld [vmem:[%s762_s29 + $0x40] sm:$0xff]  ;;  %v232_v11 = vld [vmem:[%s762_s29 + $0x48] sm:$0xff]  ;;  %v233_v15 = vld [vmem:[%s762_s29 + $0x50] sm:$0xff] }
  0x12   : > { %692 = vmatpush.msra.mxu2 %v255_v3  ;;  %693 = vmatpush.msra.mxu3 %v255_v3  ;;  %v242_v16 = vld [vmem:[%s762_s29 + $0x98] sm:$0xff]  ;;  %v243_v20 = vld [vmem:[%s762_s29 + $0xa0] sm:$0xff]  ;;  %v244_v24 = vld [vmem:[%s762_s29 + $0xa8] sm:$0xff] }
  0x13   : > { %664 = vmatmul.msk.f32.vlgmr.msra.gmra.mxu2 %vm263_vm0, %v239_v4  ;;  %672 = vmatmul.msk.f32.vlgmr.msra.gmra.mxu3 %vm263_vm0, %v247_v5  ;;  %v250_v17 = vld [vmem:[%s762_s29 + $0xd8] sm:$0xff]  ;;  %v251_v21 = vld [vmem:[%s762_s29 + $0xe0] sm:$0xff]  ;;  %v252_v25 = vld [vmem:[%s762_s29 + $0xe8] sm:$0xff] }
  0x14   : > { %375 = vmatpush.msra.mxu0 %v255_v3  ;;  %691 = vmatpush.msra.mxu1 %v255_v3  ;;  %v226_v18 = vld [vmem:[%s762_s29 + $0x18] sm:$0xff]  ;;  %v227_v22 = vld [vmem:[%s762_s29 + $0x20] sm:$0xff]  ;;  %v228_v26 = vld [vmem:[%s762_s29 + $0x28] sm:$0xff] }
  0x15   : > { %648 = vmatmul.msk.f32.vlgmr.msra.gmra.mxu0 %vm263_vm0, %v223_v6  ;;  %656 = vmatmul.msk.f32.vlgmr.msra.gmra.mxu1 %vm263_vm0, %v231_v7  ;;  %v234_v19 = vld [vmem:[%s762_s29 + $0x58] sm:$0xff]  ;;  %v235_v23 = vld [vmem:[%s762_s29 + $0x60] sm:$0xff]  ;;  %v236_v27 = vld [vmem:[%s762_s29 + $0x68] sm:$0xff] }
  0x16   : > { %v245_v28 = vld [vmem:[%s762_s29 + $0xb0] sm:$0xff]  ;;  %v246_v32 = vld [vmem:[%s762_s29 + $0xb8] sm:$0xff]  ;;  %v473_v38 = vld [vmem:[%s832_s6] sm:$0xff] }
  0x17   : > { %v253_v29 = vld [vmem:[%s762_s29 + $0xf0] sm:$0xff]  ;;  %v254_v33 = vld [vmem:[%s762_s29 + $0xf8] sm:$0xff]  ;;  %v481_v40 = vld [vmem:[%s832_s6 + $0x40] sm:$0xff] }
  0x18   : > { %v229_v30 = vld [vmem:[%s762_s29 + $0x30] sm:$0xff]  ;;  %v230_v34 = vld [vmem:[%s762_s29 + $0x38] sm:$0xff]  ;;  %v489_v46 = vld [vmem:[%s832_s6 + $0x80] sm:$0xff] }
  0x19   : > { %v237_v31 = vld [vmem:[%s762_s29 + $0x70] sm:$0xff]  ;;  %v238_v35 = vld [vmem:[%s762_s29 + $0x78] sm:$0xff]  ;;  %v497_v48 = vld [vmem:[%s832_s6 + $0xc0] sm:$0xff] }
  0x1a   : > { %v474_v54 = vld [vmem:[%s832_s6 + $0x8] sm:$0xff]  ;;  %v475_v6 = vld [vmem:[%s832_s6 + $0x10] sm:$0xff] }
  0x1b   : > { %665 = vmatmul.msk.f32.gmra.mxu2 %vm263_vm0, %v240_v8  ;;  %673 = vmatmul.msk.f32.gmra.mxu3 %vm263_vm0, %v248_v9  ;;  %v482_v56 = vld [vmem:[%s832_s6 + $0x48] sm:$0xff]  ;;  %v483_v8 = vld [vmem:[%s832_s6 + $0x50] sm:$0xff] }
  0x1c   : > { %v490_v62 = vld [vmem:[%s832_s6 + $0x88] sm:$0xff] }
  0x1d   : > { %649 = vmatmul.msk.f32.gmra.mxu0 %vm263_vm0, %v224_v10  ;;  %657 = vmatmul.msk.f32.gmra.mxu1 %vm263_vm0, %v232_v11  ;;  %v498_v0 = vld [vmem:[%s832_s6 + $0xc8] sm:$0xff] }
  0x23   : > { %666 = vmatmul.msk.f32.gmra.mxu2 %vm263_vm0, %v241_v12  ;;  %674 = vmatmul.msk.f32.gmra.mxu3 %vm263_vm0, %v249_v13 }
  0x25   : > { %650 = vmatmul.msk.f32.gmra.mxu0 %vm263_vm0, %v225_v14  ;;  %658 = vmatmul.msk.f32.gmra.mxu1 %vm263_vm0, %v233_v15  ;;  %v491_v14 = vld [vmem:[%s832_s6 + $0x90] sm:$0xff] }
  0x2b   : > { %667 = vmatmul.msk.f32.gmra.mxu2 %vm263_vm0, %v242_v16  ;;  %675 = vmatmul.msk.f32.gmra.mxu3 %vm263_vm0, %v250_v17  ;;  %v499_v16 = vld [vmem:[%s832_s6 + $0xd0] sm:$0xff] }
  0x2d   : > { %651 = vmatmul.msk.f32.gmra.mxu0 %vm263_vm0, %v226_v18  ;;  %659 = vmatmul.msk.f32.gmra.mxu1 %vm263_vm0, %v234_v19 }
  0x33   : > { %668 = vmatmul.msk.f32.gmra.mxu2 %vm263_vm0, %v243_v20  ;;  %676 = vmatmul.msk.f32.gmra.mxu3 %vm263_vm0, %v251_v21 }
  0x35   : > { %652 = vmatmul.msk.f32.gmra.mxu0 %vm263_vm0, %v227_v22  ;;  %660 = vmatmul.msk.f32.gmra.mxu1 %vm263_vm0, %v235_v23  ;;  %v476_v22 = vld [vmem:[%s832_s6 + $0x18] sm:$0xff] }
  0x3b   : > { %669 = vmatmul.msk.f32.gmra.mxu2 %vm263_vm0, %v244_v24  ;;  %677 = vmatmul.msk.f32.gmra.mxu3 %vm263_vm0, %v252_v25  ;;  %v484_v24 = vld [vmem:[%s832_s6 + $0x58] sm:$0xff] }
  0x3d   : > { %653 = vmatmul.msk.f32.gmra.mxu0 %vm263_vm0, %v228_v26  ;;  %661 = vmatmul.msk.f32.gmra.mxu1 %vm263_vm0, %v236_v27 }
  0x43   : > { %670 = vmatmul.msk.f32.gmra.mxu2 %vm263_vm0, %v245_v28  ;;  %678 = vmatmul.msk.f32.gmra.mxu3 %vm263_vm0, %v253_v29 }
  0x45   : > { %654 = vmatmul.msk.f32.gmra.mxu0 %vm263_vm0, %v229_v30  ;;  %662 = vmatmul.msk.f32.gmra.mxu1 %vm263_vm0, %v237_v31  ;;  %v492_v30 = vld [vmem:[%s832_s6 + $0x98] sm:$0xff] }
  0x4b   : > { %671 = vmatmul.msk.f32.gmra.mxu2 %vm263_vm0, %v246_v32  ;;  %679 = vmatmul.msk.f32.gmra.mxu3 %vm263_vm0, %v254_v33  ;;  %v500_v32 = vld [vmem:[%s832_s6 + $0xd8] sm:$0xff] }
  0x4d   : > { %655 = vmatmul.msk.f32.gmra.mxu0 %vm263_vm0, %v230_v34  ;;  %663 = vmatmul.msk.f32.gmra.mxu1 %vm263_vm0, %v238_v35 }
  0x92   : > { %v377_v37 = vpop.f32.mrf.mxu0  ;;  %v401_v39 = vpop.f32.mrf.mxu1 }
  0x93   : > { %v378_v41 = vadd.f32 %v837_v36, %v377_v37  ;;  %v402_v42 = vadd.f32 %v837_v36, %v401_v39  ;;  %v477_v39 = vld [vmem:[%s832_s6 + $0x20] sm:$0xff] }
  0x95   : > { %v505_v43 = vadd.f32 %v473_v38, %v378_v41  ;;  %v513_v44 = vadd.f32 %v481_v40, %v402_v42  ;;  %v485_v41 = vld [vmem:[%s832_s6 + $0x60] sm:$0xff] }
  0x96   : > { %v425_v45 = vpop.f32.mrf.mxu2  ;;  %v449_v47 = vpop.f32.mrf.mxu3 }
  0x97   : > { %537 = vst.msk [vmem:[%s847_s11] sm:$0xff] %vm263_vm0, %v505_v43  ;;  %v426_v49 = vadd.f32 %v837_v36, %v425_v45  ;;  %v450_v50 = vadd.f32 %v837_v36, %v449_v47  ;;  %v493_v47 = vld [vmem:[%s832_s6 + $0xa0] sm:$0xff] }
  0x98   : > { %545 = vst.msk [vmem:[%s847_s11 + $0x40] sm:$0xff] %vm263_vm0, %v513_v44 }
  0x99   : > { %v521_v51 = vadd.f32 %v489_v46, %v426_v49  ;;  %v529_v52 = vadd.f32 %v497_v48, %v450_v50  ;;  %v501_v49 = vld [vmem:[%s832_s6 + $0xe0] sm:$0xff] }
  0x9a   : > { %v380_v53 = vpop.f32.mrf.mxu0  ;;  %v404_v55 = vpop.f32.mrf.mxu1 }
  0x9b   : > { %553 = vst.msk [vmem:[%s847_s11 + $0x80] sm:$0xff] %vm263_vm0, %v521_v51  ;;  %v381_v57 = vadd.f32 %v837_v36, %v380_v53  ;;  %v405_v58 = vadd.f32 %v837_v36, %v404_v55  ;;  %v478_v55 = vld [vmem:[%s832_s6 + $0x28] sm:$0xff] }
  0x9c   : > { %561 = vst.msk [vmem:[%s847_s11 + $0xc0] sm:$0xff] %vm263_vm0, %v529_v52 }
  0x9d   : > { %v506_v59 = vadd.f32 %v474_v54, %v381_v57  ;;  %v514_v60 = vadd.f32 %v482_v56, %v405_v58  ;;  %v486_v57 = vld [vmem:[%s832_s6 + $0x68] sm:$0xff] }
  0x9e   : > { %v428_v61 = vpop.f32.mrf.mxu2  ;;  %v452_v63 = vpop.f32.mrf.mxu3 }
  0x9f   : > { %538 = vst.msk [vmem:[%s847_s11 + $0x8] sm:$0xff] %vm263_vm0, %v506_v59  ;;  %v429_v1 = vadd.f32 %v837_v36, %v428_v61  ;;  %v453_v2 = vadd.f32 %v837_v36, %v452_v63  ;;  %v494_v63 = vld [vmem:[%s832_s6 + $0xa8] sm:$0xff] }
  0xa0   : > { %546 = vst.msk [vmem:[%s847_s11 + $0x48] sm:$0xff] %vm263_vm0, %v514_v60 }
  0xa1   : > { %v522_v3 = vadd.f32 %v490_v62, %v429_v1  ;;  %v530_v4 = vadd.f32 %v498_v0, %v453_v2  ;;  %v502_v1 = vld [vmem:[%s832_s6 + $0xe8] sm:$0xff] }
  0xa2   : > { %v383_v5 = vpop.f32.mrf.mxu0  ;;  %v407_v7 = vpop.f32.mrf.mxu1 }
  0xa3   : > { %554 = vst.msk [vmem:[%s847_s11 + $0x88] sm:$0xff] %vm263_vm0, %v522_v3  ;;  %v384_v9 = vadd.f32 %v837_v36, %v383_v5  ;;  %v408_v10 = vadd.f32 %v837_v36, %v407_v7  ;;  %v479_v7 = vld [vmem:[%s832_s6 + $0x30] sm:$0xff] }
  0xa4   : > { %562 = vst.msk [vmem:[%s847_s11 + $0xc8] sm:$0xff] %vm263_vm0, %v530_v4 }
  0xa5   : > { %v507_v11 = vadd.f32 %v475_v6, %v384_v9  ;;  %v515_v12 = vadd.f32 %v483_v8, %v408_v10  ;;  %v487_v9 = vld [vmem:[%s832_s6 + $0x70] sm:$0xff] }
  0xa6   : > { %v431_v13 = vpop.f32.mrf.mxu2  ;;  %v455_v15 = vpop.f32.mrf.mxu3 }
  0xa7   : > { %539 = vst.msk [vmem:[%s847_s11 + $0x10] sm:$0xff] %vm263_vm0, %v507_v11  ;;  %v432_v17 = vadd.f32 %v837_v36, %v431_v13  ;;  %v456_v18 = vadd.f32 %v837_v36, %v455_v15  ;;  %v495_v15 = vld [vmem:[%s832_s6 + $0xb0] sm:$0xff] }
  0xa8   : > { %547 = vst.msk [vmem:[%s847_s11 + $0x50] sm:$0xff] %vm263_vm0, %v515_v12 }
  0xa9   : > { %v523_v19 = vadd.f32 %v491_v14, %v432_v17  ;;  %v531_v20 = vadd.f32 %v499_v16, %v456_v18  ;;  %v503_v17 = vld [vmem:[%s832_s6 + $0xf0] sm:$0xff] }
  0xaa   : > { %v386_v21 = vpop.f32.mrf.mxu0  ;;  %v410_v23 = vpop.f32.mrf.mxu1 }
  0xab   : > { %555 = vst.msk [vmem:[%s847_s11 + $0x90] sm:$0xff] %vm263_vm0, %v523_v19  ;;  %v387_v25 = vadd.f32 %v837_v36, %v386_v21  ;;  %v411_v26 = vadd.f32 %v837_v36, %v410_v23  ;;  %v480_v23 = vld [vmem:[%s832_s6 + $0x38] sm:$0xff] }
  0xac   : > { %563 = vst.msk [vmem:[%s847_s11 + $0xd0] sm:$0xff] %vm263_vm0, %v531_v20 }
  0xad   : > { %v508_v27 = vadd.f32 %v476_v22, %v387_v25  ;;  %v516_v28 = vadd.f32 %v484_v24, %v411_v26  ;;  %v488_v25 = vld [vmem:[%s832_s6 + $0x78] sm:$0xff] }
  0xae   : > { %v434_v29 = vpop.f32.mrf.mxu2  ;;  %v458_v31 = vpop.f32.mrf.mxu3 }
  0xaf   : > { %540 = vst.msk [vmem:[%s847_s11 + $0x18] sm:$0xff] %vm263_vm0, %v508_v27  ;;  %v435_v33 = vadd.f32 %v837_v36, %v434_v29  ;;  %v459_v34 = vadd.f32 %v837_v36, %v458_v31  ;;  %v496_v31 = vld [vmem:[%s832_s6 + $0xb8] sm:$0xff] }
  0xb0   : > { %548 = vst.msk [vmem:[%s847_s11 + $0x58] sm:$0xff] %vm263_vm0, %v516_v28 }
  0xb1   : > { %v524_v35 = vadd.f32 %v492_v30, %v435_v33  ;;  %v532_v37 = vadd.f32 %v500_v32, %v459_v34  ;;  %v504_v33 = vld [vmem:[%s832_s6 + $0xf8] sm:$0xff] }
  0xb2   : > { %v389_v38 = vpop.f32.mrf.mxu0  ;;  %v413_v40 = vpop.f32.mrf.mxu1 }
  0xb3   : > { %556 = vst.msk [vmem:[%s847_s11 + $0x98] sm:$0xff] %vm263_vm0, %v524_v35  ;;  %v390_v42 = vadd.f32 %v837_v36, %v389_v38  ;;  %v414_v43 = vadd.f32 %v837_v36, %v413_v40 }
  0xb4   : > { %564 = vst.msk [vmem:[%s847_s11 + $0xd8] sm:$0xff] %vm263_vm0, %v532_v37 }
  0xb5   : > { %v509_v44 = vadd.f32 %v477_v39, %v390_v42  ;;  %v517_v45 = vadd.f32 %v485_v41, %v414_v43 }
  0xb6   : > { %v437_v46 = vpop.f32.mrf.mxu2  ;;  %v461_v48 = vpop.f32.mrf.mxu3 }
  0xb7   : > { %541 = vst.msk [vmem:[%s847_s11 + $0x20] sm:$0xff] %vm263_vm0, %v509_v44  ;;  %v438_v50 = vadd.f32 %v837_v36, %v437_v46  ;;  %v462_v51 = vadd.f32 %v837_v36, %v461_v48 }
  0xb8   : > { %549 = vst.msk [vmem:[%s847_s11 + $0x60] sm:$0xff] %vm263_vm0, %v517_v45 }
  0xb9   : > { %v525_v52 = vadd.f32 %v493_v47, %v438_v50  ;;  %v533_v53 = vadd.f32 %v501_v49, %v462_v51 }
  0xba   : > { %v392_v54 = vpop.f32.mrf.mxu0  ;;  %v416_v56 = vpop.f32.mrf.mxu1 }
  0xbb   : > { %557 = vst.msk [vmem:[%s847_s11 + $0xa0] sm:$0xff] %vm263_vm0, %v525_v52  ;;  %v393_v58 = vadd.f32 %v837_v36, %v392_v54  ;;  %v417_v59 = vadd.f32 %v837_v36, %v416_v56 }
  0xbc   : > { %565 = vst.msk [vmem:[%s847_s11 + $0xe0] sm:$0xff] %vm263_vm0, %v533_v53 }
  0xbd   : > { %v510_v60 = vadd.f32 %v478_v55, %v393_v58  ;;  %v518_v61 = vadd.f32 %v486_v57, %v417_v59 }
  0xbe   : > { %v440_v62 = vpop.f32.mrf.mxu2  ;;  %v464_v0 = vpop.f32.mrf.mxu3 }
  0xbf   : > { %542 = vst.msk [vmem:[%s847_s11 + $0x28] sm:$0xff] %vm263_vm0, %v510_v60  ;;  %v441_v2 = vadd.f32 %v837_v36, %v440_v62  ;;  %v465_v3 = vadd.f32 %v837_v36, %v464_v0 }
  0xc0   : > { %550 = vst.msk [vmem:[%s847_s11 + $0x68] sm:$0xff] %vm263_vm0, %v518_v61 }
  0xc1   : > { %v526_v4 = vadd.f32 %v494_v63, %v441_v2  ;;  %v534_v5 = vadd.f32 %v502_v1, %v465_v3 }
  0xc2   : > { %v395_v6 = vpop.f32.mrf.mxu0  ;;  %v419_v8 = vpop.f32.mrf.mxu1 }
  0xc3   : > { %558 = vst.msk [vmem:[%s847_s11 + $0xa8] sm:$0xff] %vm263_vm0, %v526_v4  ;;  %v396_v10 = vadd.f32 %v837_v36, %v395_v6  ;;  %v420_v11 = vadd.f32 %v837_v36, %v419_v8 }
  0xc4   : > { %566 = vst.msk [vmem:[%s847_s11 + $0xe8] sm:$0xff] %vm263_vm0, %v534_v5 }
  0xc5   : > { %v511_v12 = vadd.f32 %v479_v7, %v396_v10  ;;  %v519_v13 = vadd.f32 %v487_v9, %v420_v11 }
  0xc6   : > { %v443_v14 = vpop.f32.mrf.mxu2  ;;  %v467_v16 = vpop.f32.mrf.mxu3 }
  0xc7   : > { %543 = vst.msk [vmem:[%s847_s11 + $0x30] sm:$0xff] %vm263_vm0, %v511_v12  ;;  %v444_v18 = vadd.f32 %v837_v36, %v443_v14  ;;  %v468_v19 = vadd.f32 %v837_v36, %v467_v16 }
  0xc8   : > { %551 = vst.msk [vmem:[%s847_s11 + $0x70] sm:$0xff] %vm263_vm0, %v519_v13 }
  0xc9   : > { %v527_v20 = vadd.f32 %v495_v15, %v444_v18  ;;  %v535_v21 = vadd.f32 %v503_v17, %v468_v19 }
  0xca   : > { %v398_v22 = vpop.f32.mrf.mxu0  ;;  %v422_v24 = vpop.f32.mrf.mxu1 }
  0xcb   : > { %559 = vst.msk [vmem:[%s847_s11 + $0xb0] sm:$0xff] %vm263_vm0, %v527_v20  ;;  %v399_v26 = vadd.f32 %v837_v36, %v398_v22  ;;  %v423_v27 = vadd.f32 %v837_v36, %v422_v24 }
  0xcc   : > { %567 = vst.msk [vmem:[%s847_s11 + $0xf0] sm:$0xff] %vm263_vm0, %v535_v21 }
  0xcd   : > { %v512_v28 = vadd.f32 %v480_v23, %v399_v26  ;;  %v520_v29 = vadd.f32 %v488_v25, %v423_v27 }
  0xce   : > { %v446_v30 = vpop.f32.mrf.mxu2  ;;  %v470_v32 = vpop.f32.mrf.mxu3 }
  0xcf   : > { %544 = vst.msk [vmem:[%s847_s11 + $0x38] sm:$0xff] %vm263_vm0, %v512_v28  ;;  %v447_v34 = vadd.f32 %v837_v36, %v446_v30  ;;  %v471_v35 = vadd.f32 %v837_v36, %v470_v32 }
  0xd0   : > { %552 = vst.msk [vmem:[%s847_s11 + $0x78] sm:$0xff] %vm263_vm0, %v520_v29 }
  0xd1   : > { %v528_v37 = vadd.f32 %v496_v31, %v447_v34  ;;  %v536_v38 = vadd.f32 %v504_v33, %v471_v35 }
  0xd3   : > { %560 = vst.msk [vmem:[%s847_s11 + $0xb8] sm:$0xff] %vm263_vm0, %v528_v37 }
  0xd4   : > { %568 = vst.msk [vmem:[%s847_s11 + $0xf8] sm:$0xff] %vm263_vm0, %v536_v38 }
  0xd5 PF: > { %s14_s15 = sadd.s32 1, %s709_s15  }
  0xd6   : > { %p11_p4 = scmp.ge.s32.totalorder %s14_s15, 4  }
  0xd8   :  { %13 = sbr.rel (!%p11_p4) target bundleno = 1 (0x1), region = 69 }

// kernel: transformer_forward.19
= control target key start
LH: loop header
LB: loop body
LE: loop exit
PB: predicated region body
PF: predicated region fallthrough
CT: control target
= control target key end

     0   :  { %s1984_s24 = smov 0   ;;  %s3109_s0 = inlined_call_operand.vmem [shape: f32[512,32], index: 0, kind: input, shape index: {}]   ;;  %s3110_s1 = inlined_call_operand.vmem [shape: f32[1,32], index: 1, kind: input, shape index: {}]   ;;  %s3111_s2 = inlined_call_operand.vmem [shape: f32[1,32], index: 2, kind: input, shape index: {}]   ;;  %s3112_s3 = inlined_call_operand.vmem [shape: f32[32,128], index: 3, kind: input, shape index: {}]   ;;  %s3113_s4 = inlined_call_operand.vmem [shape: f32[1,128], index: 4, kind: input, shape index: {}]   ;;  %s3114_s5 = inlined_call_operand.vmem [shape: f32[128,32], index: 5, kind: input, shape index: {}]   ;;  %s3115_s6 = inlined_call_operand.vmem [shape: f32[1,32], index: 6, kind: input, shape index: {}]   ;;  %s3116_s7 = inlined_call_operand.vmem [shape: f32[512,32], index: 7, kind: output, shape index: {}]  }
   0x1 LB: > { %s1760_s25 = sadd.s32 4294967295, %s1941_s24   ;;  %p1764_p0 = scmp.ge.s32.totalorder %s1941_s24, 1  ;;  %s1941_s24 = sphi %s1984_s24, %s17_s24  }
   0x2   : > { %p238_p1 = scmp.lt.s32.totalorder %s1941_s24, 5 }
   0x4   : > { %p239_p2 = pnand %p1764_p0, %p238_p1 }
   0x5   : > { %s1765_s26 = sshll.u32 (!%p239_p2), %s1760_s25, 4 }
   0x6   : > { %242 = sbr.rel (%p239_p2) target bundleno = 793 (0x319), region = 48  ;;  %p271_p3 = scmp.lt.s32.totalorder (!%p239_p2), %s1765_s26, 63 }
   0xb   : > { %s3138_s26 = smov (!%p271_p3, %s1765_s26), 63  ;;  %vm298_vm0 = vcmask 261120   ;;  %v1943_v18 = vmov 32.0  }
   0xc   : > { %s1766_s27 = sshll.u32 %s3138_s26, 3  ;;  %1852 = vrcp.f32 %v1943_v18 }
   0xd   : > { %s2000_s30 = scalar_lea.vmem %s3109_s0, %s1766_s27  ;;  %s2972_s22 = scalar_lea.vmem %s3116_s7, %s1766_s27 }
   0xe   : > { %v2003_v0 = vld [vmem:[%s2000_s30 + $0x20] sm:$0xff]  ;;  %v284_v4 = vld [vmem:[%s2000_s30 + $0x10] sm:$0xff]  ;;  %v287_v6 = vld [vmem:[%s2000_s30 + $0x28] sm:$0xff] }
   0xf   : > { %v282_v1 = vld [vmem:[%s2000_s30] sm:$0xff]  ;;  %v311_v2 = vsel %vm298_vm0, %v2003_v0, 0.0  ;;  %v305_v5 = vsel %vm298_vm0, %v284_v4, 0.0  ;;  %v283_v7 = vld [vmem:[%s2000_s30 + $0x8] sm:$0xff]  ;;  %v285_v8 = vld [vmem:[%s2000_s30 + $0x18] sm:$0xff]  ;;  %v314_v9 = vsel %vm298_vm0, %v287_v6, 0.0 }
  0x10   : > { %v299_v3 = vsel %vm298_vm0, %v282_v1, 0.0  ;;  %312 = vadd.xlane.f32.xlu2 %v311_v2  ;;  %306 = vadd.xlane.f32.xlu1 %v305_v5  ;;  %v302_v10 = vsel %vm298_vm0, %v283_v7, 0.0  ;;  %v308_v11 = vsel %vm298_vm0, %v285_v8, 0.0  ;;  %v2018_v12 = vld [vmem:[%s2000_s30 + $0x30] sm:$0xff]  ;;  %v2028_v16 = vld [vmem:[%s2000_s30 + $0x58] sm:$0xff]  ;;  %v2033_v19 = vld [vmem:[%s2000_s30 + $0x60] sm:$0xff] }
  0x11   : > { %300 = vadd.xlane.f32.xlu0 %v299_v3  ;;  %v317_v13 = vsel %vm298_vm0, %v2018_v12, 0.0  ;;  %v2023_v14 = vld [vmem:[%s2000_s30 + $0x50] sm:$0xff]  ;;  %v332_v17 = vsel %vm298_vm0, %v2028_v16, 0.0  ;;  %v335_v20 = vsel %vm298_vm0, %v2033_v19, 0.0  ;;  %v2049_v39 = vld [vmem:[%s2000_s30 + $0x38] sm:$0xff]  ;;  %v2067_v50 = vld [vmem:[%s2000_s30 + $0x40] sm:$0xff] }
  0x12   : > { %v329_v15 = vsel %vm298_vm0, %v2023_v14, 0.0  ;;  %v1853_v21 = vpop.eup %1852  ;;  %v320_v43 = vsel %vm298_vm0, %v2049_v39, 0.0  ;;  %v2072_v52 = vld [vmem:[%s2000_s30 + $0x78] sm:$0xff]  ;;  %v323_v53 = vsel %vm298_vm0, %v2067_v50, 0.0  ;;  %v2083_v58 = vld [vmem:[%s2000_s30 + $0x48] sm:$0xff] }
  0x13   : > { %v348_v22 = vmul.f32 32.0, %v1853_v21  ;;  %vm352_vm1 = vweird.f32 %v1853_v21  ;;  %v344_v54 = vsel %vm298_vm0, %v2072_v52, 0.0  ;;  %v326_v61 = vsel %vm298_vm0, %v2083_v58, 0.0  ;;  %v2095_v2 = vld [vmem:[%s2000_s30 + $0x68] sm:$0xff] }
  0x14   : > { %v338_v5 = vsel %vm298_vm0, %v2095_v2, 0.0 }
  0x15   : > { %v349_v23 = vsub.f32 1.0, %v348_v22 }
  0x17   : > { %v350_v24 = vmul.f32 %v1853_v21, %v349_v23 }
  0x18   : > { %315 = vadd.xlane.f32.xlu2 %v314_v9  ;;  %309 = vadd.xlane.f32.xlu1 %v308_v11  ;;  %v2109_v9 = vld [vmem:[%s2000_s30 + $0x70] sm:$0xff] }
  0x19   : > { %303 = vadd.xlane.f32.xlu0 %v302_v10  ;;  %v351_v25 = vadd.f32 %v1853_v21, %v350_v24 }
  0x1b   : > { %v2037_v26 = vsel %vm352_vm1, %v1853_v21, %v351_v25  ;;  %v762_v21 = vld [vmem:[%s3112_s3] sm:$0xff] }
  0x20   : > { %318 = vadd.xlane.f32.xlu1 %v317_v13 }
  0x28   : > { %330 = vadd.xlane.f32.xlu1 %v329_v15 }
  0x30   : > { %333 = vadd.xlane.f32.xlu1 %v332_v17  ;;  %v765_v17 = vld [vmem:[%s3112_s3 + $0x18] sm:$0xff] }
  0x31   : > { %830 = vmatpush.msra.mxu0 %v765_v17  ;;  %1803 = vmatpush.msra.mxu3 %v765_v17 }
  0x38   : > { %336 = vadd.xlane.f32.xlu1 %v335_v20  ;;  %v763_v20 = vld [vmem:[%s3112_s3 + $0x8] sm:$0xff] }
  0x83   : > { %v313_v27 = vpop.xlane.xlu2 %312  ;;  %v307_v32 = vpop.xlane.xlu1 %306 }
  0x84   : > { %v301_v28 = vpop.xlane.xlu0 %300  ;;  %v356_v38 = vmul.f32 %v2037_v26, %v307_v32  ;;  %v358_v57 = vmul.f32 %v2037_v26, %v313_v27 }
  0x85   : > { %v354_v29 = vmul.f32 %v2037_v26, %v301_v28 }
  0x86   : > { %v2061_v45 = vsub.f32 %v284_v4, %v356_v38  ;;  %v2090_v62 = vsub.f32 %v2003_v0, %v358_v57 }
  0x87   : > { %v2040_v30 = vsub.f32 %v282_v1, %v354_v29 }
  0x88   : > { %v388_v51 = vmul.f32 %v2061_v45, %v2061_v45  ;;  %v390_v3 = vmul.f32 %v2090_v62, %v2090_v62 }
  0x89   : > { %v386_v31 = vmul.f32 %v2040_v30, %v2040_v30 }
  0x8a   : > { %v408_v56 = vsel %vm298_vm0, %v388_v51, 0.0  ;;  %v414_v0 = vsel %vm298_vm0, %v390_v3, 0.0 }
  0x8b   : > { %v402_v33 = vsel %vm298_vm0, %v386_v31, 0.0  ;;  %v316_v34 = vpop.xlane.xlu2 %315  ;;  %v310_v48 = vpop.xlane.xlu1 %309 }
  0x8c   : > { %403 = vadd.xlane.f32.xlu0 %v402_v33  ;;  %v304_v35 = vpop.xlane.xlu0 %303  ;;  %v359_v36 = vmul.f32 %v2037_v26, %v316_v34  ;;  %v357_v49 = vmul.f32 %v2037_v26, %v310_v48 }
  0x8d   : > { %v355_v37 = vmul.f32 %v2037_v26, %v304_v35 }
  0x8e   : > { %v2051_v40 = vsub.f32 %v287_v6, %v359_v36  ;;  %v2078_v55 = vsub.f32 %v285_v8, %v357_v49 }
  0x8f   : > { %v2053_v41 = vsub.f32 %v283_v7, %v355_v37 }
  0x90   : > { %v391_v42 = vmul.f32 %v2051_v40, %v2051_v40  ;;  %v389_v59 = vmul.f32 %v2078_v55, %v2078_v55 }
  0x91   : > { %v387_v44 = vmul.f32 %v2053_v41, %v2053_v41 }
  0x92   : > { %v417_v46 = vsel %vm298_vm0, %v391_v42, 0.0  ;;  %v411_v63 = vsel %vm298_vm0, %v389_v59, 0.0 }
  0x93   : > { %v405_v47 = vsel %vm298_vm0, %v387_v44, 0.0  ;;  %418 = vadd.xlane.f32.xlu1 %v417_v46  ;;  %v319_v60 = vpop.xlane.xlu1 %318 }
  0x94   : > { %321 = vadd.xlane.f32.xlu0 %v320_v43  ;;  %406 = vadd.xlane.f32.xlu2 %v405_v47  ;;  %v360_v1 = vmul.f32 %v2037_v26, %v319_v60 }
  0x96   : > { %v2100_v4 = vsub.f32 %v2018_v12, %v360_v1  ;;  %v341_v12 = vsel %vm298_vm0, %v2109_v9, 0.0 }
  0x98   : > { %v392_v8 = vmul.f32 %v2100_v4, %v2100_v4 }
  0x9a   : > { %v420_v11 = vsel %vm298_vm0, %v392_v8, 0.0 }
  0x9b   : > { %345 = vadd.xlane.f32.xlu1 %v344_v54  ;;  %v331_v6 = vpop.xlane.xlu1 %330 }
  0x9c   : > { %324 = vadd.xlane.f32.xlu0 %v323_v53  ;;  %409 = vadd.xlane.f32.xlu2 %v408_v56  ;;  %v364_v7 = vmul.f32 %v2037_v26, %v331_v6 }
  0x9e   : > { %v2112_v10 = vsub.f32 %v2023_v14, %v364_v7  ;;  %v764_v14 = vld [vmem:[%s3112_s3 + $0x10] sm:$0xff] }
  0x9f   : > { %831 = vmatpush.msra.mxu0 %v764_v14  ;;  %1804 = vmatpush.msra.mxu3 %v764_v14 }
  0xa0   : > { %v396_v13 = vmul.f32 %v2112_v10, %v2112_v10 }
  0xa1   : > { %832 = vmatpush.msra.mxu0 %v763_v20  ;;  %1805 = vmatpush.msra.mxu3 %v763_v20 }
  0xa2   : > { %v432_v15 = vsel %vm298_vm0, %v396_v13, 0.0 }
  0xa3   : > { %v334_v18 = vpop.xlane.xlu1 %333  ;;  %833 = vmatpush.msra.mxu0 %v762_v21  ;;  %1806 = vmatpush.msra.mxu3 %v762_v21 }
  0xa4   : > { %327 = vadd.xlane.f32.xlu0 %v326_v61  ;;  %412 = vadd.xlane.f32.xlu2 %v411_v63  ;;  %v365_v28 = vmul.f32 %v2037_v26, %v334_v18 }
  0xa6   : > { %v2142_v37 = vsub.f32 %v2028_v16, %v365_v28 }
  0xa8   : > { %v397_v53 = vmul.f32 %v2142_v37, %v2142_v37 }
  0xab   : > { %v337_v24 = vpop.xlane.xlu1 %336 }
  0xac   : > { %339 = vadd.xlane.f32.xlu0 %v338_v5  ;;  %415 = vadd.xlane.f32.xlu2 %v414_v0  ;;  %v366_v43 = vmul.f32 %v2037_v26, %v337_v24 }
  0xae   : > { %v2153_v54 = vsub.f32 %v2033_v19, %v366_v43  ;;  %v435_v19 = vsel %vm298_vm0, %v397_v53, 0.0 }
  0xb0   : > { %v398_v8 = vmul.f32 %v2153_v54, %v2153_v54 }
  0xb4   : > { %421 = vadd.xlane.f32.xlu0 %v420_v11  ;;  %342 = vadd.xlane.f32.xlu2 %v341_v12 }
  0xbc   : > { %433 = vadd.xlane.f32.xlu0 %v432_v15  ;;  %v2179_v15 = vld [vmem:[%s3111_s2] ss:$0 sm:$0xff] }
  0xff   : > { %v404_v22 = vpop.xlane.xlu0 %403 }
 0x100   : > { %v450_v23 = vmul.f32 %v404_v22, %v2037_v26 }
 0x102   : > { %v466_v25 = vadd.f32 1e-05, %v450_v23 }
 0x104   : > { %1854 = vrcp.f32 %v466_v25  ;;  %v493_v46 = vand.u32 2147483648, %v466_v25  ;;  %v491_v49 = vand.u32 2147483647, %v466_v25  ;;  %vm487_vm3 = vweird.f32 %v466_v25 }
 0x106   : > { %v419_v38 = vpop.xlane.xlu1 %418  ;;  %v494_v60 = vor.u32 1.1754944e-38, %v493_v46  ;;  %vm492_vm5 = vcmp.eq.f32.partialorder %v491_v49, 8.507059e+37 }
 0x107   : > { %v322_v27 = vpop.xlane.xlu0 %321  ;;  %v407_v29 = vpop.xlane.xlu2 %406  ;;  %v455_v63 = vmul.f32 %v419_v38, %v2037_v26 }
 0x108   : > { %v361_v31 = vmul.f32 %v2037_v26, %v322_v27  ;;  %v451_v32 = vmul.f32 %v407_v29, %v2037_v26  ;;  %v438_v27 = vsel %vm298_vm0, %v398_v8, 0.0 }
 0x109   : > { %v2181_v17 = vadd.f32 1e-05, %v455_v63 }
 0x10a   : > { %v1855_v33 = vpop.eup %1854  ;;  %v2137_v34 = vsub.f32 %v2049_v39, %v361_v31  ;;  %v2139_v36 = vadd.f32 1e-05, %v451_v32 }
 0x10b   : > { %v483_v35 = vmul.f32 %v1855_v33, %v466_v25  ;;  %vm488_vm2 = vweird.f32 %v1855_v33 }
 0x10c   : > { %v393_v42 = vmul.f32 %v2137_v34, %v2137_v34  ;;  %1856 = vrcp.f32 %v2139_v36  ;;  %vm489_vm4 = vmor %vm487_vm3, %vm488_vm2  ;;  %v508_v14 = vand.u32 2147483648, %v2139_v36  ;;  %v506_v21 = vand.u32 2147483647, %v2139_v36 }
 0x10d   : > { %v484_v44 = vsub.f32 1.0, %v483_v35  ;;  %vm502_vm7 = vweird.f32 %v2139_v36  ;;  %vm562_vm3 = vweird.f32 %v2181_v17 }
 0x10e   : > { %v423_v47 = vsel %vm298_vm0, %v393_v42, 0.0  ;;  %v346_v7 = vpop.xlane.xlu1 %345  ;;  %v509_v38 = vor.u32 1.1754944e-38, %v508_v14  ;;  %vm507_vm9 = vcmp.eq.f32.partialorder %v506_v21, 8.507059e+37 }
 0x10f   : > { %v485_v39 = vmul.f32 %v1855_v33, %v484_v44  ;;  %424 = vadd.xlane.f32.xlu2 %v423_v47  ;;  %v325_v48 = vpop.xlane.xlu0 %324  ;;  %v410_v51 = vpop.xlane.xlu2 %409  ;;  %v369_v20 = vmul.f32 %v2037_v26, %v346_v7 }
 0x110   : > { %v362_v16 = vmul.f32 %v2037_v26, %v325_v48  ;;  %v452_v56 = vmul.f32 %v410_v51, %v2037_v26 }
 0x111   : > { %v486_v57 = vadd.f32 %v1855_v33, %v485_v39  ;;  %v2199_v35 = vsub.f32 %v2072_v52, %v369_v20 }
 0x112   : > { %v2157_v59 = vsub.f32 %v2067_v50, %v362_v16  ;;  %v1857_v61 = vpop.eup %1856  ;;  %v2160_v1 = vadd.f32 1e-05, %v452_v56  ;;  %v2169_v50 = vld [vmem:[%s3110_s1] ss:$0 sm:$0xff] }
 0x113   : > { %v490_v3 = vsel %vm489_vm4, %v1855_v33, %v486_v57  ;;  %v498_v5 = vmul.f32 %v1857_v61, %v2139_v36  ;;  %vm503_vm6 = vweird.f32 %v1857_v61  ;;  %v401_v48 = vmul.f32 %v2199_v35, %v2199_v35 }
 0x114   : > { %v394_v0 = vmul.f32 %v2157_v59, %v2157_v59  ;;  %v495_v6 = vsel %vm492_vm5, %v494_v60, %v490_v3  ;;  %1858 = vrcp.f32 %v2160_v1  ;;  %vm504_vm8 = vmor %vm502_vm7, %vm503_vm6  ;;  %v523_v47 = vand.u32 2147483648, %v2160_v1 }
 0x115   : > { %v499_v11 = vsub.f32 1.0, %v498_v5  ;;  %v496_v13 = vmul.f32 %v495_v6, %v2040_v30  ;;  %1860 = vrcp.f32 %v2181_v17  ;;  %v521_v49 = vand.u32 2147483647, %v2160_v1 }
 0x116   : > { %v426_v12 = vsel %vm298_vm0, %v394_v0, 0.0  ;;  %vm517_vm11 = vweird.f32 %v2160_v1  ;;  %v524_v0 = vor.u32 1.1754944e-38, %v523_v47 }
 0x117   : > { %436 = vadd.xlane.f32.xlu2 %v435_v19  ;;  %427 = vadd.xlane.f32.xlu1 %v426_v12  ;;  %v328_v18 = vpop.xlane.xlu0 %327  ;;  %v500_v22 = vmul.f32 %v1857_v61, %v499_v11  ;;  %v413_v23 = vpop.xlane.xlu2 %412  ;;  %v726_v24 = vmul.f32 %v2169_v50, %v496_v13  ;;  %v447_v19 = vsel %vm298_vm0, %v401_v48, 0.0  ;;  %vm522_vm13 = vcmp.eq.f32.partialorder %v521_v49, 8.507059e+37 }
 0x118   : > { %v363_v30 = vmul.f32 %v2037_v26, %v328_v18  ;;  %v453_v25 = vmul.f32 %v413_v23, %v2037_v26 }
 0x119   : > { %v746_v29 = vadd.f32 %v2179_v15, %v726_v24  ;;  %v501_v31 = vadd.f32 %v1857_v61, %v500_v22 }
 0x11a   : > { %v2192_v28 = vsub.f32 %v2083_v58, %v363_v30  ;;  %v1859_v32 = vpop.eup %1858  ;;  %v2196_v33 = vadd.f32 1e-05, %v453_v25 }
 0x11b   : > { %v513_v42 = vmul.f32 %v1859_v32, %v2160_v1  ;;  %1769 = vmatmul.msk.f32.vlgmr.msra.gmra.mxu0 %vm298_vm0, %v746_v29  ;;  %v505_v36 = vsel %vm504_vm8, %v1857_v61, %v501_v31  ;;  %vm518_vm10 = vweird.f32 %v1859_v32  ;;  %v2214_v57 = vpop.eup %1860 }
 0x11c   : > { %v395_v58 = vmul.f32 %v2192_v28, %v2192_v28  ;;  %1862 = vrcp.f32 %v2196_v33  ;;  %v510_v43 = vsel %vm507_vm9, %v509_v38, %v505_v36  ;;  %vm519_vm12 = vmor %vm517_vm11, %vm518_vm10  ;;  %v538_v20 = vand.u32 2147483648, %v2196_v33 }
 0x11d   : > { %v514_v44 = vsub.f32 1.0, %v513_v42  ;;  %v511_v52 = vmul.f32 %v510_v43, %v2053_v41  ;;  %v536_v25 = vand.u32 2147483647, %v2196_v33  ;;  %vm532_vm15 = vweird.f32 %v2196_v33 }
 0x11e   : > { %v429_v46 = vsel %vm298_vm0, %v395_v58, 0.0  ;;  %v539_v42 = vor.u32 1.1754944e-38, %v538_v20  ;;  %vm563_vm4 = vweird.f32 %v2214_v57 }
 0x11f   : > { %439 = vadd.xlane.f32.xlu1 %v438_v27  ;;  %430 = vadd.xlane.f32.xlu0 %v429_v46  ;;  %v340_v39 = vpop.xlane.xlu0 %339  ;;  %v515_v51 = vmul.f32 %v1859_v32, %v514_v44  ;;  %v416_v16 = vpop.xlane.xlu2 %415  ;;  %v727_v56 = vmul.f32 %v2169_v50, %v511_v52  ;;  %vm537_vm2 = vcmp.eq.f32.partialorder %v536_v25, 8.507059e+37  ;;  %vm2266_vm7 = vmor %vm562_vm3, %vm563_vm4 }
 0x120   : > { %v367_v53 = vmul.f32 %v2037_v26, %v340_v39  ;;  %v454_v41 = vmul.f32 %v416_v16, %v2037_v26 }
 0x121   : > { %v747_v61 = vadd.f32 %v2179_v15, %v727_v56  ;;  %v516_v63 = vadd.f32 %v1859_v32, %v515_v51  ;;  %v566_v56 = vand.u32 2147483647, %v2181_v17 }
 0x122   : > { %v2219_v60 = vsub.f32 %v2095_v2, %v367_v53  ;;  %v1863_v3 = vpop.eup %1862  ;;  %v2222_v5 = vadd.f32 1e-05, %v454_v41  ;;  %v558_v2 = vmul.f32 %v2214_v57, %v2181_v17 }
 0x123   : > { %v528_v6 = vmul.f32 %v1863_v3, %v2196_v33  ;;  %1770 = vmatmul.msk.f32.gmra.mxu0 %vm298_vm0, %v747_v61  ;;  %v520_v7 = vsel %vm519_vm12, %v1859_v32, %v516_v63  ;;  %vm533_vm14 = vweird.f32 %v1863_v3  ;;  %vm567_vm10 = vcmp.eq.f32.partialorder %v566_v56, 8.507059e+37 }
 0x124   : > { %v399_v1 = vmul.f32 %v2219_v60, %v2219_v60  ;;  %1864 = vrcp.f32 %v2222_v5  ;;  %v525_v8 = vsel %vm522_vm13, %v524_v0, %v520_v7  ;;  %v559_v30 = vsub.f32 1.0, %v558_v2  ;;  %vm534_vm1 = vmor %vm532_vm15, %vm533_vm14 }
 0x125   : > { %v529_v11 = vsub.f32 1.0, %v528_v6  ;;  %v526_v13 = vmul.f32 %v525_v8, %v2061_v45  ;;  %v553_v46 = vand.u32 2147483648, %v2222_v5  ;;  %v551_v51 = vand.u32 2147483647, %v2222_v5 }
 0x126   : > { %v441_v12 = vsel %vm298_vm0, %v399_v1, 0.0  ;;  %v560_v58 = vmul.f32 %v2214_v57, %v559_v30  ;;  %vm547_vm6 = vweird.f32 %v2222_v5 }
 0x127   : > { %448 = vadd.xlane.f32.xlu1 %v447_v19  ;;  %442 = vadd.xlane.f32.xlu2 %v441_v12  ;;  %v422_v14 = vpop.xlane.xlu0 %421  ;;  %v530_v18 = vmul.f32 %v1863_v3, %v529_v11  ;;  %v343_v21 = vpop.xlane.xlu2 %342  ;;  %v728_v23 = vmul.f32 %v2169_v50, %v526_v13  ;;  %v554_v0 = vor.u32 1.1754944e-38, %v553_v46  ;;  %vm552_vm9 = vcmp.eq.f32.partialorder %v551_v51, 8.507059e+37 }
 0x128   : > { %v456_v22 = vmul.f32 %v422_v14, %v2037_v26  ;;  %v368_v24 = vmul.f32 %v2037_v26, %v343_v21  ;;  %v561_v53 = vadd.f32 %v2214_v57, %v560_v58 }
 0x129   : > { %v748_v45 = vadd.f32 %v2179_v15, %v728_v23  ;;  %v531_v29 = vadd.f32 %v1863_v3, %v530_v18 }
 0x12a   : > { %v2239_v27 = vadd.f32 1e-05, %v456_v22  ;;  %v1865_v31 = vpop.eup %1864  ;;  %v2244_v32 = vsub.f32 %v2109_v9, %v368_v24  ;;  %v568_v9 = vand.u32 2147483648, %v2181_v17  ;;  %v565_v17 = vsel %vm2266_vm7, %v2214_v57, %v561_v53 }
 0x12b   : > { %v543_v38 = vmul.f32 %v1865_v31, %v2222_v5  ;;  %1771 = vmatmul.msk.f32.gmra.mxu0 %vm298_vm0, %v748_v45  ;;  %v535_v43 = vsel %vm534_vm1, %v1863_v3, %v531_v29  ;;  %vm548_vm5 = vweird.f32 %v1865_v31 }
 0x12c   : > { %1866 = vrcp.f32 %v2239_v27  ;;  %v400_v36 = vmul.f32 %v2244_v32, %v2244_v32  ;;  %v540_v44 = vsel %vm537_vm2, %v539_v42, %v535_v43  ;;  %vm549_vm8 = vmor %vm547_vm6, %vm548_vm5  ;;  %v569_v1 = vor.u32 1.1754944e-38, %v568_v9 }
 0x12d   : > { %v544_v33 = vsub.f32 1.0, %v543_v38  ;;  %v541_v39 = vmul.f32 %v540_v44, %v2078_v55  ;;  %vm577_vm11 = vweird.f32 %v2239_v27  ;;  %v583_v11 = vand.u32 2147483648, %v2239_v27 }
 0x12e   : > { %v444_v52 = vsel %vm298_vm0, %v400_v36, 0.0  ;;  %v570_v13 = vsel %vm567_vm10, %v569_v1, %v565_v17  ;;  %v581_v14 = vand.u32 2147483647, %v2239_v27 }
 0x12f   : > { %v434_v47 = vpop.xlane.xlu0 %433  ;;  %v545_v48 = vmul.f32 %v1865_v31, %v544_v33  ;;  %445 = vadd.xlane.f32.xlu0 %v444_v52  ;;  %v729_v16 = vmul.f32 %v2169_v50, %v541_v39  ;;  %v571_v22 = vmul.f32 %v570_v13, %v2051_v40  ;;  %v584_v23 = vor.u32 1.1754944e-38, %v583_v11 }
 0x130   : > { %v460_v49 = vmul.f32 %v434_v47, %v2037_v26  ;;  %vm582_vm15 = vcmp.eq.f32.partialorder %v581_v14, 8.507059e+37 }
 0x131   : > { %v546_v55 = vadd.f32 %v1865_v31, %v545_v48  ;;  %v749_v19 = vadd.f32 %v2179_v15, %v729_v16 }
 0x132   : > { %v1867_v41 = vpop.eup %1866  ;;  %v476_v61 = vadd.f32 1e-05, %v460_v49 }
 0x133   : > { %v573_v3 = vmul.f32 %v1867_v41, %v2239_v27  ;;  %v550_v6 = vsel %vm549_vm8, %v1865_v31, %v546_v55  ;;  %1772 = vmatmul.msk.f32.gmra.mxu0 %vm298_vm0, %v749_v19  ;;  %vm578_vm12 = vweird.f32 %v1867_v41  ;;  %v731_v27 = vmul.f32 %v2169_v50, %v571_v22 }
 0x134   : > { %1868 = vrcp.f32 %v476_v61  ;;  %v555_v5 = vsel %vm552_vm9, %v554_v0, %v550_v6  ;;  %vm579_vm13 = vmor %vm577_vm11, %vm578_vm12  ;;  %vm637_vm14 = vweird.f32 %v476_v61  ;;  %v641_v25 = vand.u32 2147483647, %v476_v61 }
 0x135   : > { %v574_v7 = vsub.f32 1.0, %v573_v3  ;;  %v556_v2 = vmul.f32 %v555_v5, %v2090_v62  ;;  %v643_v62 = vand.u32 2147483648, %v476_v61  ;;  %v751_v40 = vadd.f32 %v2179_v15, %v731_v27 }
 0x136   : > { %vm642_vm3 = vcmp.eq.f32.partialorder %v641_v25, 8.507059e+37 }
 0x137   : > { %v575_v8 = vmul.f32 %v1867_v41, %v574_v7  ;;  %v730_v12 = vmul.f32 %v2169_v50, %v556_v2  ;;  %v644_v31 = vor.u32 1.1754944e-38, %v643_v62 }
 0x139   : > { %v576_v18 = vadd.f32 %v1867_v41, %v575_v8  ;;  %v750_v21 = vadd.f32 %v2179_v15, %v730_v12 }
 0x13a   : > { %v1869_v20 = vpop.eup %1868 }
 0x13b   : > { %v633_v57 = vmul.f32 %v1869_v20, %v476_v61  ;;  %1773 = vmatmul.msk.f32.gmra.mxu0 %vm298_vm0, %v750_v21  ;;  %v580_v24 = vsel %vm579_vm13, %v1867_v41, %v576_v18  ;;  %vm638_vm1 = vweird.f32 %v1869_v20 }
 0x13c   : > { %v585_v29 = vsel %vm582_vm15, %v584_v23, %v580_v24  ;;  %vm639_vm2 = vmor %vm637_vm14, %vm638_vm1 }
 0x13d   : > { %v634_v30 = vsub.f32 1.0, %v633_v57  ;;  %v586_v42 = vmul.f32 %v585_v29, %v2100_v4 }
 0x13f   : > { %v635_v45 = vmul.f32 %v1869_v20, %v634_v30  ;;  %v732_v9 = vmul.f32 %v2169_v50, %v586_v42 }
 0x141   : > { %v636_v38 = vadd.f32 %v1869_v20, %v635_v45  ;;  %v752_v46 = vadd.f32 %v2179_v15, %v732_v9 }
 0x143   : > { %v640_v58 = vsel %vm639_vm2, %v1869_v20, %v636_v38  ;;  %1774 = vmatmul.msk.f32.gmra.mxu0 %vm298_vm0, %v751_v40  ;;  %v2321_v20 = vld [vmem:[%s3113_s4] ss:$0 sm:$0xff] }
 0x144   : > { %v645_v36 = vsel %vm642_vm3, %v644_v31, %v640_v58 }
 0x145   : > { %v646_v43 = vmul.f32 %v645_v36, %v2112_v10 }
 0x147   : > { %v736_v33 = vmul.f32 %v2169_v50, %v646_v43 }
 0x149   : > { %v756_v44 = vadd.f32 %v2179_v15, %v736_v33 }
 0x14b   : > { %1779 = vmatmul.msk.f32.vlgmr.msra.gmra.mxu3 %vm298_vm0, %v756_v44  ;;  %1775 = vmatmul.msk.f32.gmra.mxu0 %vm298_vm0, %v752_v46 }
 0x182   : > { %v425_v52 = vpop.xlane.xlu2 %424 }
 0x183   : > { %v457_v4 = vmul.f32 %v425_v52, %v2037_v26 }
 0x185   : > { %v473_v47 = vadd.f32 1e-05, %v457_v4 }
 0x187   : > { %1870 = vrcp.f32 %v473_v47  ;;  %v598_v3 = vand.u32 2147483648, %v473_v47  ;;  %vm592_vm5 = vweird.f32 %v473_v47  ;;  %v596_v1 = vand.u32 2147483647, %v473_v47 }
 0x189   : > { %v599_v13 = vor.u32 1.1754944e-38, %v598_v3  ;;  %vm597_vm7 = vcmp.eq.f32.partialorder %v596_v1, 8.507059e+37 }
 0x18a   : > { %v437_v39 = vpop.xlane.xlu2 %436  ;;  %v428_v48 = vpop.xlane.xlu1 %427 }
 0x18b   : > { %v461_v10 = vmul.f32 %v437_v39, %v2037_v26  ;;  %v458_v49 = vmul.f32 %v428_v48, %v2037_v26  ;;  %v1596_v39 = vld [vmem:[%s3114_s5 + $0x48] sm:$0xff] }
 0x18d   : > { %v1871_v51 = vpop.eup %1870  ;;  %v2298_v16 = vadd.f32 1e-05, %v461_v10  ;;  %v2300_v53 = vadd.f32 1e-05, %v458_v49  ;;  %v1602_v10 = vld [vmem:[%s3114_s5 + $0x78] sm:$0xff] }
 0x18e   : > { %v588_v56 = vmul.f32 %v1871_v51, %v473_v47  ;;  %vm593_vm4 = vweird.f32 %v1871_v51  ;;  %1607 = vmatpush.msra.mxu1 %v1602_v10  ;;  %1807 = vmatpush.msra.mxu2 %v1602_v10 }
 0x18f   : > { %1872 = vrcp.f32 %v2298_v16  ;;  %vm594_vm6 = vmor %vm592_vm5, %vm593_vm4  ;;  %vm652_vm8 = vweird.f32 %v2298_v16  ;;  %v658_v62 = vand.u32 2147483648, %v2298_v16  ;;  %v611_v29 = vand.u32 2147483647, %v2300_v53  ;;  %1808 = vmatpush.msrb.mxu3 %v1602_v10 }
 0x190   : > { %v589_v41 = vsub.f32 1.0, %v588_v56  ;;  %1874 = vrcp.f32 %v2300_v53  ;;  %v613_v31 = vand.u32 2147483648, %v2300_v53  ;;  %v656_v42 = vand.u32 2147483647, %v2298_v16 }
 0x191   : > { %vm607_vm12 = vweird.f32 %v2300_v53  ;;  %vm2359_vm13 = vcmp.eq.f32.partialorder %v611_v29, 8.507059e+37  ;;  %v659_v48 = vor.u32 1.1754944e-38, %v658_v62 }
 0x192   : > { %v590_v61 = vmul.f32 %v1871_v51, %v589_v41  ;;  %v440_v55 = vpop.xlane.xlu1 %439  ;;  %v431_v63 = vpop.xlane.xlu0 %430  ;;  %vm657_vm15 = vcmp.eq.f32.partialorder %v656_v42, 8.507059e+37 }
 0x193   : > { %v462_v19 = vmul.f32 %v440_v55, %v2037_v26  ;;  %v459_v0 = vmul.f32 %v431_v63, %v2037_v26  ;;  %v1601_v63 = vld [vmem:[%s3114_s5 + $0x70] sm:$0xff] }
 0x194   : > { %v591_v6 = vadd.f32 %v1871_v51, %v590_v61  ;;  %1608 = vmatpush.msra.mxu1 %v1601_v63  ;;  %1809 = vmatpush.msra.mxu2 %v1601_v63 }
 0x195   : > { %v1873_v7 = vpop.eup %1872  ;;  %v2306_v5 = vadd.f32 1e-05, %v462_v19  ;;  %v2308_v17 = vadd.f32 1e-05, %v459_v0  ;;  %1810 = vmatpush.msrb.mxu3 %v1601_v63 }
 0x196   : > { %v2310_v2 = vpop.eup %1874  ;;  %v648_v8 = vmul.f32 %v1873_v7, %v2298_v16  ;;  %v595_v11 = vsel %vm594_vm6, %v1871_v51, %v591_v6  ;;  %vm653_vm9 = vweird.f32 %v1873_v7  ;;  %v614_v16 = vor.u32 1.1754944e-38, %v613_v31 }
 0x197   : > { %v603_v12 = vmul.f32 %v2310_v2, %v2300_v53  ;;  %1876 = vrcp.f32 %v2306_v5  ;;  %v600_v57 = vsel %vm597_vm7, %v599_v13, %v595_v11  ;;  %vm608_vm10 = vweird.f32 %v2310_v2  ;;  %vm2343_vm11 = vmor %vm652_vm8, %vm653_vm9 }
 0x198   : > { %v649_v14 = vsub.f32 1.0, %v648_v8  ;;  %1878 = vrcp.f32 %v2308_v17  ;;  %v835_v21 = vpop.f32.mrf.mxu0  ;;  %v601_v24 = vmul.f32 %v600_v57, %v2137_v34  ;;  %v628_v49 = vand.u32 2147483648, %v2308_v17  ;;  %vm2371_vm14 = vmor %vm607_vm12, %vm608_vm10  ;;  %v1600_v8 = vld [vmem:[%s3114_s5 + $0x68] sm:$0xff] }
 0x199   : > { %v604_v18 = vsub.f32 1.0, %v603_v12  ;;  %v2335_v34 = vadd.f32 %v2321_v20, %v835_v21  ;;  %vm622_vm2 = vweird.f32 %v2308_v17  ;;  %v626_v13 = vand.u32 2147483647, %v2308_v17  ;;  %1609 = vmatpush.msra.mxu1 %v1600_v8  ;;  %v1599_v21 = vld [vmem:[%s3114_s5 + $0x60] sm:$0xff]  ;;  %1811 = vmatpush.msra.mxu2 %v1600_v8 }
 0x19a   : > { %v650_v22 = vmul.f32 %v1873_v7, %v649_v14  ;;  %v449_v23 = vpop.xlane.xlu1 %448  ;;  %v443_v30 = vpop.xlane.xlu2 %442  ;;  %v733_v38 = vmul.f32 %v2169_v50, %v601_v24  ;;  %1812 = vmatpush.msrb.mxu3 %v1600_v8  ;;  %vm667_vm5 = vweird.f32 %v2306_v5 }
 0x19b   : > { %v605_v25 = vmul.f32 %v2310_v2, %v604_v18  ;;  %v465_v45 = vmul.f32 %v449_v23, %v2037_v26  ;;  %v463_v27 = vmul.f32 %v443_v30, %v2037_v26  ;;  %v2382_v3 = vmul.f32 0.70710677, %v2335_v34  ;;  %1610 = vmatpush.msra.mxu1 %v1599_v21  ;;  %1813 = vmatpush.msra.mxu2 %v1599_v21 }
 0x19c   : > { %v651_v40 = vadd.f32 %v1873_v7, %v650_v22  ;;  %v753_v52 = vadd.f32 %v2179_v15, %v733_v38  ;;  %v629_v30 = vor.u32 1.1754944e-38, %v628_v49  ;;  %vm627_vm4 = vcmp.eq.f32.partialorder %v626_v13, 8.507059e+37  ;;  %1814 = vmatpush.msrb.mxu3 %v1599_v21 }
 0x19d   : > { %v2332_v58 = vpop.eup %1876  ;;  %v2337_v36 = vadd.f32 1e-05, %v463_v27  ;;  %v606_v43 = vadd.f32 %v2310_v2, %v605_v25  ;;  %v2351_v46 = vadd.f32 1e-05, %v465_v45  ;;  %v915_v22 = vmul.f32 %v2382_v3, %v2382_v3 }
 0x19e   : > { %v2347_v33 = vpop.eup %1878  ;;  %v663_v44 = vmul.f32 %v2332_v58, %v2306_v5  ;;  %v655_v4 = vsel %vm2343_vm11, %v1873_v7, %v651_v40  ;;  %1776 = vmatmul.msk.f32.gmra.mxu0 %vm298_vm0, %v753_v52  ;;  %v671_v38 = vand.u32 2147483647, %v2306_v5  ;;  %vm668_vm7 = vweird.f32 %v2332_v58 }
 0x19f   : > { %v618_v47 = vmul.f32 %v2347_v33, %v2308_v17  ;;  %1880 = vrcp.f32 %v2337_v36  ;;  %v610_v61 = vsel %vm2371_vm14, %v2310_v2, %v606_v43  ;;  %v660_v55 = vsel %vm657_vm15, %v659_v48, %v655_v4  ;;  %v1598_v17 = vld [vmem:[%s3114_s5 + $0x58] sm:$0xff]  ;;  %vm669_vm8 = vmor %vm667_vm5, %vm668_vm7 }
 0x1a0   : > { %v664_v53 = vsub.f32 1.0, %v663_v44  ;;  %v838_v41 = vpop.f32.mrf.mxu0  ;;  %1882 = vrcp.f32 %v2351_v46  ;;  %v615_v0 = vsel %vm2359_vm13, %v614_v16, %v610_v61  ;;  %v661_v2 = vmul.f32 %v660_v55, %v2142_v37  ;;  %1611 = vmatpush.msra.mxu1 %v1598_v17  ;;  %1815 = vmatpush.msra.mxu2 %v1598_v17 }
 0x1a1   : > { %v619_v56 = vsub.f32 1.0, %v618_v47  ;;  %v2386_v19 = vadd.f32 %v2321_v20, %v838_v41  ;;  %v616_v7 = vmul.f32 %v615_v0, %v2157_v59  ;;  %vm623_vm1 = vweird.f32 %v2347_v33  ;;  %1816 = vmatpush.msrb.mxu3 %v1598_v17 }
 0x1a2   : > { %v446_v1 = vpop.xlane.xlu0 %445  ;;  %v665_v37 = vmul.f32 %v2332_v58, %v664_v53  ;;  %v737_v14 = vmul.f32 %v2169_v50, %v661_v2  ;;  %vm2421_vm3 = vmor %vm622_vm2, %vm623_vm1  ;;  %v2448_v44 = vmin.f32 %v915_v22, 16.0  ;;  %vm682_vm6 = vweird.f32 %v2337_v36  ;;  %v1595_v53 = vld [vmem:[%s3114_s5 + $0x40] sm:$0xff] }
 0x1a3   : > { %v620_v6 = vmul.f32 %v2347_v33, %v619_v56  ;;  %v2399_v11 = vmul.f32 0.70710677, %v2386_v19  ;;  %v464_v12 = vmul.f32 %v446_v1, %v2037_v26  ;;  %v734_v59 = vmul.f32 %v2169_v50, %v616_v7  ;;  %v1594_v1 = vld [vmem:[%s3114_s5 + $0x38] sm:$0xff] }
 0x1a4   : > { %v673_v26 = vand.u32 2147483648, %v2306_v5  ;;  %v757_v45 = vadd.f32 %v2179_v15, %v737_v14  ;;  %v666_v9 = vadd.f32 %v2332_v58, %v665_v37  ;;  %vm672_vm9 = vcmp.eq.f32.partialorder %v671_v38, 8.507059e+37  ;;  %v1593_v14 = vld [vmem:[%s3114_s5 + $0x30] sm:$0xff] }
 0x1a5   : > { %v621_v18 = vadd.f32 %v2347_v33, %v620_v6  ;;  %v2410_v57 = vpop.eup %1880  ;;  %v2415_v62 = vadd.f32 1e-05, %v464_v12  ;;  %v754_v25 = vadd.f32 %v2179_v15, %v734_v59  ;;  %v955_v31 = vmul.f32 %v2399_v11, %v2399_v11 }
 0x1a6   : > { %v678_v24 = vmul.f32 %v2410_v57, %v2337_v36  ;;  %v2435_v29 = vpop.eup %1882  ;;  %1780 = vmatmul.msk.f32.gmra.mxu3 %vm298_vm0, %v757_v45  ;;  %v674_v10 = vor.u32 1.1754944e-38, %v673_v26  ;;  %v670_v51 = vsel %vm669_vm8, %v2332_v58, %v666_v9  ;;  %v917_v41 = vmul.f32 2.1237322e-06, %v2448_v44 }
 0x1a7   : > { %v625_v27 = vsel %vm2421_vm3, %v2347_v33, %v621_v18  ;;  %1884 = vrcp.f32 %v2415_v62  ;;  %1777 = vmatmul.msk.f32.gmra.mxu0 %vm298_vm0, %v754_v25  ;;  %v1597_v33 = vld [vmem:[%s3114_s5 + $0x50] sm:$0xff]  ;;  %v708_v5 = vmul.f32 %v2435_v29, %v2351_v46  ;;  %v2462_v48 = vmin.f32 %v955_v31, 16.0 }
 0x1a8   : > { %v679_v40 = vsub.f32 1.0, %v678_v24  ;;  %v841_v42 = vpop.f32.mrf.mxu0  ;;  %v630_v43 = vsel %vm627_vm4, %v629_v30, %v625_v27  ;;  %1612 = vmatpush.msra.mxu1 %v1597_v33  ;;  %1817 = vmatpush.msra.mxu2 %v1597_v33  ;;  %v688_v61 = vand.u32 2147483648, %v2337_v36  ;;  %v675_v55 = vsel %vm672_vm9, %v674_v10, %v670_v51  ;;  %v1592_v24 = vld [vmem:[%s3114_s5 + $0x28] sm:$0xff] }
 0x1a9   : > { %v2451_v52 = vadd.f32 %v2321_v20, %v841_v42  ;;  %v631_v47 = vmul.f32 %v630_v43, %v2192_v28  ;;  %1818 = vmatpush.msrb.mxu3 %v1597_v33  ;;  %vm683_vm10 = vweird.f32 %v2410_v57  ;;  %v676_v6 = vmul.f32 %v675_v55, %v2153_v54 }
 0x1aa   : > { %v680_v4 = vmul.f32 %v2410_v57, %v679_v40  ;;  %1613 = vmatpush.msra.mxu1 %v1596_v39  ;;  %1819 = vmatpush.msra.mxu2 %v1596_v39  ;;  %v709_v7 = vsub.f32 1.0, %v708_v5  ;;  %v957_v2 = vmul.f32 2.1237322e-06, %v2462_v48  ;;  %vm2490_vm11 = vmor %vm682_vm6, %vm683_vm10  ;;  %v686_v12 = vand.u32 2147483647, %v2337_v36  ;;  %v1591_v40 = vld [vmem:[%s3114_s5 + $0x20] sm:$0xff] }
 0x1ab   : > { %v2465_v49 = vmul.f32 0.70710677, %v2451_v52  ;;  %v735_v28 = vmul.f32 %v2169_v50, %v631_v47  ;;  %1820 = vmatpush.msrb.mxu3 %v1596_v39  ;;  %v738_v37 = vmul.f32 %v2169_v50, %v676_v6  ;;  %v918_v18 = vadd.f32 0.00028619796, %v917_v41 }
 0x1ac   : > { %v681_v16 = vadd.f32 %v2410_v57, %v680_v4  ;;  %1614 = vmatpush.msra.mxu1 %v1595_v53  ;;  %1821 = vmatpush.msra.mxu2 %v1595_v53  ;;  %v703_v36 = vand.u32 2147483648, %v2415_v62  ;;  %vm687_vm12 = vcmp.eq.f32.partialorder %v686_v12, 8.507059e+37  ;;  %v689_v26 = vor.u32 1.1754944e-38, %v688_v61 }
 0x1ad   : > { %v2473_v56 = vpop.eup %1884  ;;  %v995_v63 = vmul.f32 %v2465_v49, %v2465_v49  ;;  %v755_v0 = vadd.f32 %v2179_v15, %v735_v28  ;;  %1822 = vmatpush.msrb.mxu3 %v1595_v53  ;;  %v758_v30 = vadd.f32 %v2179_v15, %v738_v37  ;;  %v958_v25 = vadd.f32 0.00028619796, %v957_v2  ;;  %v1587_v2 = vld [vmem:[%s3114_s5] sm:$0xff] }
 0x1ae   : > { %v693_v58 = vmul.f32 %v2473_v56, %v2415_v62  ;;  %1615 = vmatpush.msra.mxu1 %v1594_v1  ;;  %v685_v59 = vsel %vm2490_vm11, %v2410_v57, %v681_v16  ;;  %1823 = vmatpush.msra.mxu2 %v1594_v1  ;;  %vm698_vm13 = vweird.f32 %v2473_v56  ;;  %v701_v27 = vand.u32 2147483647, %v2415_v62  ;;  %v1589_v16 = vld [vmem:[%s3114_s5 + $0x10] sm:$0xff] }
 0x1af   : > { %v2495_v54 = vmin.f32 %v995_v63, 16.0  ;;  %1778 = vmatmul.msk.f32.gmra.mxu0 %vm298_vm0, %v755_v0  ;;  %1824 = vmatpush.msrb.mxu3 %v1594_v1  ;;  %v690_v45 = vsel %vm687_vm12, %v689_v26, %v685_v59  ;;  %v710_v17 = vmul.f32 %v2435_v29, %v709_v7  ;;  %vm712_vm14 = vweird.f32 %v2351_v46  ;;  %v1588_v0 = vld [vmem:[%s3114_s5 + $0x8] sm:$0xff] }
 0x1b0   : > { %v694_v13 = vsub.f32 1.0, %v693_v58  ;;  %v844_v21 = vpop.f32.mrf.mxu0  ;;  %1616 = vmatpush.msra.mxu1 %v1593_v14  ;;  %1825 = vmatpush.msra.mxu2 %v1593_v14  ;;  %v691_v38 = vmul.f32 %v690_v45, %v2219_v60  ;;  %v718_v42 = vand.u32 2147483648, %v2351_v46  ;;  %vm697_vm15 = vweird.f32 %v2415_v62  ;;  %v1590_v62 = vld [vmem:[%s3114_s5 + $0x18] sm:$0xff] }
 0x1b1   : > { %v997_v23 = vmul.f32 2.1237322e-06, %v2495_v54  ;;  %v2510_v57 = vadd.f32 %v2321_v20, %v844_v21  ;;  %1781 = vmatmul.msk.f32.gmra.mxu3 %vm298_vm0, %v758_v30  ;;  %v919_v33 = vmul.f32 %v918_v18, %v2448_v44  ;;  %vm699_vm1 = vmor %vm697_vm15, %vm698_vm13  ;;  %v704_v47 = vor.u32 1.1754944e-38, %v703_v36 }
 0x1b2   : > { %v695_v22 = vmul.f32 %v2473_v56, %v694_v13  ;;  %1617 = vmatpush.msra.mxu1 %v1592_v24  ;;  %1827 = vmatpush.msra.mxu2 %v1592_v24  ;;  %v739_v60 = vmul.f32 %v2169_v50, %v691_v38  ;;  %v959_v39 = vmul.f32 %v958_v25, %v2462_v48  ;;  %vm702_vm2 = vcmp.eq.f32.partialorder %v701_v27, 8.507059e+37 }
 0x1b3   : > { %v2521_v31 = vmul.f32 0.70710677, %v2510_v57  ;;  %v998_v43 = vadd.f32 0.00028619796, %v997_v23  ;;  %1826 = vmatpush.msrb.mxu3 %v1593_v14  ;;  %vm713_vm3 = vweird.f32 %v2435_v29  ;;  %v711_v51 = vadd.f32 %v2435_v29, %v710_v17 }
 0x1b4   : > { %v696_v9 = vadd.f32 %v2473_v56, %v695_v22  ;;  %1618 = vmatpush.msra.mxu1 %v1591_v40  ;;  %1829 = vmatpush.msra.mxu2 %v1591_v40  ;;  %v759_v10 = vadd.f32 %v2179_v15, %v739_v60  ;;  %vm2551_vm4 = vmor %vm712_vm14, %vm713_vm3  ;;  %v716_v55 = vand.u32 2147483647, %v2351_v46  ;;  %v920_v58 = vadd.f32 0.0036580483, %v919_v33 }
 0x1b5   : > { %v1035_v4 = vmul.f32 %v2521_v31, %v2521_v31  ;;  %1828 = vmatpush.msrb.mxu3 %v1592_v24  ;;  %v999_v53 = vmul.f32 %v998_v43, %v2495_v54  ;;  %v960_v6 = vadd.f32 0.0036580483, %v959_v39  ;;  %v928_v1 = vmul.f32 3.8918573e-05, %v2448_v44 }
 0x1b6   : > { %v700_v5 = vsel %vm699_vm1, %v2473_v56, %v696_v9  ;;  %1619 = vmatpush.msra.mxu1 %v1590_v62  ;;  %1831 = vmatpush.msra.mxu2 %v1590_v62  ;;  %v715_v7 = vsel %vm2551_vm4, %v2435_v29, %v711_v51  ;;  %vm717_vm5 = vcmp.eq.f32.partialorder %v716_v55, 8.507059e+37  ;;  %v968_v37 = vmul.f32 3.8918573e-05, %v2462_v48 }
 0x1b7   : > { %v705_v28 = vsel %vm702_vm2, %v704_v47, %v700_v5  ;;  %v2556_v63 = vmin.f32 %v1035_v4, 16.0  ;;  %1830 = vmatpush.msrb.mxu3 %v1591_v40  ;;  %v1000_v8 = vadd.f32 0.0036580483, %v999_v53  ;;  %v929_v13 = vadd.f32 0.001143296, %v928_v1 }
 0x1b8   : > { %v847_v41 = vpop.f32.mrf.mxu0  ;;  %v706_v56 = vmul.f32 %v705_v28, %v2244_v32  ;;  %1620 = vmatpush.msra.mxu1 %v1589_v16  ;;  %v719_v32 = vor.u32 1.1754944e-38, %v718_v42  ;;  %1833 = vmatpush.msra.mxu2 %v1589_v16  ;;  %v921_v59 = vmul.f32 %v920_v58, %v2448_v44  ;;  %v961_v14 = vmul.f32 %v960_v6, %v2462_v48 }
 0x1b9   : > { %1782 = vmatmul.msk.f32.gmra.mxu3 %vm298_vm0, %v759_v10  ;;  %v1037_v12 = vmul.f32 2.1237322e-06, %v2556_v63  ;;  %v1008_v29 = vmul.f32 3.8918573e-05, %v2495_v54  ;;  %v2576_v36 = vadd.f32 %v2321_v20, %v847_v41  ;;  %v930_v26 = vmul.f32 %v929_v13, %v2448_v44 }
 0x1ba   : > { %1621 = vmatpush.msra.mxu1 %v1588_v0  ;;  %v740_v46 = vmul.f32 %v2169_v50, %v706_v56  ;;  %1835 = vmatpush.msra.mxu2 %v1588_v0  ;;  %v720_v18 = vsel %vm717_vm5, %v719_v32, %v715_v7  ;;  %v969_v22 = vadd.f32 0.001143296, %v968_v37  ;;  %v1001_v23 = vmul.f32 %v1000_v8, %v2495_v54 }
 0x1bb   : > { %1832 = vmatpush.msrb.mxu3 %v1590_v62  ;;  %v1009_v24 = vadd.f32 0.001143296, %v1008_v29  ;;  %v1038_v25 = vadd.f32 0.00028619796, %v1037_v12  ;;  %v721_v45 = vmul.f32 %v720_v18, %v2199_v35  ;;  %v931_v27 = vadd.f32 0.014752088, %v930_v26 }
 0x1bc   : > { %1622 = vmatpush.msra.mxu1 %v1587_v2  ;;  %1837 = vmatpush.msra.mxu2 %v1587_v2  ;;  %v760_v21 = vadd.f32 %v2179_v15, %v740_v46  ;;  %v922_v17 = vadd.f32 0.05243302, %v921_v59  ;;  %v970_v38 = vmul.f32 %v969_v22, %v2462_v48  ;;  %v962_v42 = vadd.f32 0.05243302, %v961_v14 }
 0x1bd   : > { %1834 = vmatpush.msrb.mxu3 %v1589_v16  ;;  %v1010_v40 = vmul.f32 %v1009_v24, %v2495_v54  ;;  %v2585_v43 = vmul.f32 0.70710677, %v2576_v36  ;;  %v932_v33 = vmul.f32 %v931_v27, %v2448_v44  ;;  %v1002_v4 = vadd.f32 0.05243302, %v1001_v23 }
 0x1be   : > { %v971_v35 = vadd.f32 0.014752088, %v970_v38  ;;  %v1048_v60 = vmul.f32 3.8918573e-05, %v2556_v63  ;;  %v1039_v47 = vmul.f32 %v1038_v25, %v2556_v63  ;;  %v741_v62 = vmul.f32 %v2169_v50, %v721_v45 }
 0x1bf   : > { %1836 = vmatpush.msrb.mxu3 %v1588_v0  ;;  %v933_v39 = vadd.f32 0.112945676, %v932_v33  ;;  %v1011_v5 = vadd.f32 0.014752088, %v1010_v40  ;;  %v923_v10 = vmul.f32 %v922_v17, %v2448_v44  ;;  %v1075_v51 = vmul.f32 %v2585_v43, %v2585_v43 }
 0x1c0   : > { %v850_v30 = vpop.f32.mrf.mxu0  ;;  %v972_v28 = vmul.f32 %v971_v35, %v2462_v48  ;;  %v963_v56 = vmul.f32 %v962_v42, %v2462_v48  ;;  %v1003_v50 = vmul.f32 %v1002_v4, %v2495_v54  ;;  %v1049_v58 = vadd.f32 0.001143296, %v1048_v60 }
 0x1c1   : > { %1783 = vmatmul.msk.f32.gmra.mxu3 %vm298_vm0, %v760_v21  ;;  %v2589_v9 = vadd.f32 %v2321_v20, %v850_v30  ;;  %v934_v53 = vmul.f32 %v933_v39, %v2448_v44  ;;  %v1012_v41 = vmul.f32 %v1011_v5, %v2495_v54  ;;  %v1040_v0 = vadd.f32 0.0036580483, %v1039_v47 }
 0x1c2   : > { %1838 = vmatpush.msrb.mxu3 %v1587_v2  ;;  %v973_v55 = vadd.f32 0.112945676, %v972_v28  ;;  %v761_v6 = vadd.f32 %v2179_v15, %v741_v62  ;;  %v924_v46 = vadd.f32 0.18741608, %v923_v10  ;;  %v2608_v2 = vmin.f32 %v1075_v51, 16.0 }
 0x1c3   : > { %v2600_v16 = vmul.f32 0.70710677, %v2589_v9  ;;  %v935_v32 = vadd.f32 0.4994258, %v934_v53  ;;  %v1013_v1 = vadd.f32 0.112945676, %v1012_v41  ;;  %v1050_v14 = vmul.f32 %v1049_v58, %v2556_v63 }
 0x1c4   : > { %v974_v7 = vmul.f32 %v973_v55, %v2462_v48  ;;  %v964_v37 = vadd.f32 0.18741608, %v963_v56  ;;  %v1004_v18 = vadd.f32 0.18741608, %v1003_v50  ;;  %v1041_v29 = vmul.f32 %v1040_v0, %v2556_v63 }
 0x1c5   : > { %v1115_v8 = vmul.f32 %v2600_v16, %v2600_v16  ;;  %v936_v13 = vmul.f32 %v935_v32, %v2448_v44  ;;  %v1014_v15 = vmul.f32 %v1013_v1, %v2495_v54  ;;  %v925_v26 = vmul.f32 %v924_v46, %v2448_v44 }
 0x1c6   : > { %v975_v59 = vadd.f32 0.4994258, %v974_v7  ;;  %v1077_v30 = vmul.f32 2.1237322e-06, %v2608_v2  ;;  %v965_v45 = vmul.f32 %v964_v37, %v2462_v48  ;;  %v1051_v27 = vadd.f32 0.014752088, %v1050_v14 }
 0x1c7   : > { %v937_v21 = vadd.f32 1.0, %v936_v13  ;;  %v1015_v23 = vadd.f32 0.4994258, %v1014_v15  ;;  %v2623_v24 = vmin.f32 %v1115_v8, 16.0  ;;  %v1005_v17 = vmul.f32 %v1004_v18, %v2495_v54 }
 0x1c8   : > { %v853_v61 = vpop.f32.mrf.mxu0  ;;  %v976_v22 = vmul.f32 %v975_v59, %v2462_v48  ;;  %v1042_v38 = vadd.f32 0.05243302, %v1041_v29  ;;  %v926_v42 = vadd.f32 1.1283791, %v925_v26  ;;  %v1078_v33 = vadd.f32 0.00028619796, %v1077_v30 }
 0x1c9   : > { %1784 = vmatmul.msk.f32.gmra.mxu3 %vm298_vm0, %v761_v6  ;;  %v2614_v12 = vadd.f32 %v2321_v20, %v853_v61  ;;  %1886 = vrcp.f32 %v937_v21  ;;  %v1016_v44 = vmul.f32 %v1015_v23, %v2495_v54  ;;  %v1117_v4 = vmul.f32 2.1237322e-06, %v2623_v24 }
 0x1ca   : > { %v977_v40 = vadd.f32 1.0, %v976_v22  ;;  %v966_v60 = vadd.f32 1.1283791, %v965_v45  ;;  %v1052_v47 = vmul.f32 %v1051_v27, %v2556_v63  ;;  %v1006_v48 = vadd.f32 1.1283791, %v1005_v17 }
 0x1cb   : > { %v2626_v25 = vmul.f32 0.70710677, %v2614_v12  ;;  %v1043_v39 = vmul.f32 %v1042_v38, %v2556_v63  ;;  %v2636_v5 = vadd.f32 1.0, %v1016_v44  ;;  %v2639_v10 = vmul.f32 0.5, %v2335_v34 }
 0x1cc   : > { %1888 = vrcp.f32 %v977_v40  ;;  %v927_v28 = vmul.f32 %v926_v42, %v2382_v3  ;;  %v1079_v51 = vmul.f32 %v1078_v33, %v2608_v2  ;;  %v1118_v53 = vadd.f32 0.00028619796, %v1117_v4 }
 0x1cd   : > { %v1155_v35 = vmul.f32 %v2626_v25, %v2626_v25  ;;  %v967_v56 = vmul.f32 %v966_v60, %v2399_v11  ;;  %1890 = vrcp.f32 %v2636_v5  ;;  %v1053_v61 = vadd.f32 0.112945676, %v1052_v47 }
 0x1ce   : > { %v2648_v58 = vmul.f32 %v1006_v48, %v2465_v49  ;;  %v1044_v34 = vadd.f32 0.18741608, %v1043_v39  ;;  %v947_v0 = vand.u32 2147483647, %v937_v21  ;;  %v949_v6 = vand.u32 2147483648, %v937_v21 }
 0x1cf   : > { %v1887_v62 = vpop.eup %1886  ;;  %v2643_v41 = vmin.f32 %v1155_v35, 16.0  ;;  %v1088_v1 = vmul.f32 3.8918573e-05, %v2608_v2  ;;  %v1080_v46 = vadd.f32 0.0036580483, %v1079_v51  ;;  %v1119_v7 = vmul.f32 %v1118_v53, %v2623_v24 }
 0x1d0   : > { %v939_v54 = vmul.f32 %v1887_v62, %v937_v21  ;;  %vm944_vm6 = vweird.f32 %v1887_v62  ;;  %vm943_vm7 = vweird.f32 %v937_v21  ;;  %v987_v37 = vand.u32 2147483647, %v977_v40 }
 0x1d1   : > { %v1157_v11 = vmul.f32 2.1237322e-06, %v2643_v41  ;;  %v1054_v49 = vmul.f32 %v1053_v61, %v2556_v63  ;;  %vm945_vm8 = vmor %vm943_vm7, %vm944_vm6  ;;  %vm948_vm9 = vcmp.eq.f32.partialorder %v947_v0, 8.507059e+37  ;;  %v950_v59 = vor.u32 1.1754944e-38, %v949_v6  ;;  %v865_v61 = vpop.f32.mrf.mxu3 }
 0x1d2   : > { %v940_v50 = vsub.f32 1.0, %v939_v54  ;;  %v1889_v55 = vpop.eup %1888  ;;  %v989_v15 = vand.u32 2147483648, %v977_v40  ;;  %v1089_v22 = vadd.f32 0.001143296, %v1088_v1  ;;  %vm983_vm11 = vweird.f32 %v977_v40 }
 0x1d3   : > { %v979_v3 = vmul.f32 %v1889_v55, %v977_v40  ;;  %vm984_vm10 = vweird.f32 %v1889_v55  ;;  %v1891_v14 = vpop.eup %1890  ;;  %v1055_v26 = vadd.f32 0.4994258, %v1054_v49  ;;  %v1128_v21 = vmul.f32 3.8918573e-05, %v2623_v24 }
 0x1d4   : > { %v941_v32 = vmul.f32 %v1887_v62, %v940_v50  ;;  %v1019_v30 = vmul.f32 %v1891_v14, %v2636_v5  ;;  %vm988_vm12 = vcmp.eq.f32.partialorder %v987_v37, 8.507059e+37  ;;  %vm985_vm13 = vmor %vm983_vm11, %vm984_vm10  ;;  %v990_v38 = vor.u32 1.1754944e-38, %v989_v15 }
 0x1d5   : > { %v980_v13 = vsub.f32 1.0, %v979_v3  ;;  %v1056_v17 = vmul.f32 %v1055_v26, %v2556_v63  ;;  %v1027_v44 = vand.u32 2147483647, %v2636_v5  ;;  %v1029_v33 = vand.u32 2147483648, %v2636_v5 }
 0x1d6   : > { %v942_v8 = vadd.f32 %v1887_v62, %v941_v32  ;;  %v1020_v42 = vsub.f32 1.0, %v1019_v30  ;;  %v1090_v60 = vmul.f32 %v1089_v22, %v2608_v2  ;;  %vm1024_vm14 = vweird.f32 %v1891_v14 }
 0x1d7   : > { %v981_v29 = vmul.f32 %v1889_v55, %v980_v13  ;;  %v2660_v40 = vadd.f32 1.0, %v1056_v17  ;;  %v1129_v48 = vadd.f32 0.001143296, %v1128_v21  ;;  %v1045_v39 = vmul.f32 %v1044_v34, %v2556_v63 }
 0x1d8   : > { %v946_v18 = vsel %vm945_vm8, %v1887_v62, %v942_v8  ;;  %v1021_v62 = vmul.f32 %v1891_v14, %v1020_v42  ;;  %v1081_v51 = vmul.f32 %v1080_v46, %v2608_v2  ;;  %v1120_v53 = vadd.f32 0.0036580483, %v1119_v7 }
 0x1d9   : > { %v951_v23 = vsel %vm948_vm9, %v950_v59, %v946_v18  ;;  %v982_v27 = vadd.f32 %v1889_v55, %v981_v29  ;;  %1892 = vrcp.f32 %v2660_v40  ;;  %vm1023_vm15 = vweird.f32 %v2636_v5 }
 0x1da   : > { %v952_v45 = vmul.f32 %v951_v23, %v927_v28  ;;  %v1022_v50 = vadd.f32 %v1891_v14, %v1021_v62  ;;  %vm1025_vm1 = vmor %vm1023_vm15, %vm1024_vm14  ;;  %v1030_v6 = vor.u32 1.1754944e-38, %v1029_v33  ;;  %v1091_v32 = vadd.f32 0.014752088, %v1090_v60 }
 0x1db   : > { %v986_v35 = vsel %vm985_vm13, %v1889_v55, %v982_v27  ;;  %v1158_v3 = vadd.f32 0.00028619796, %v1157_v11  ;;  %vm1028_vm2 = vcmp.eq.f32.partialorder %v1027_v44, 8.507059e+37  ;;  %v1130_v63 = vmul.f32 %v1129_v48, %v2623_v24 }
 0x1dc   : > { %v1785_v4 = vclamps-f32 %v952_v45, 1.0  ;;  %v991_v47 = vsel %vm988_vm12, %v990_v38, %v986_v35  ;;  %v1026_v1 = vsel %vm1025_vm1, %v1891_v14, %v1022_v50  ;;  %v1092_v7 = vmul.f32 %v1091_v32, %v2608_v2 }
 0x1dd   : > { %v992_v28 = vmul.f32 %v991_v47, %v967_v56  ;;  %v1046_v56 = vadd.f32 1.1283791, %v1045_v39  ;;  %v1031_v46 = vsel %vm1028_vm2, %v1030_v6, %v1026_v1  ;;  %v2671_v5 = vadd.f32 %v2321_v20, %v865_v61 }
 0x1de   : > { %v1555_v54 = vadd.f32 1.0, %v1785_v4  ;;  %v1131_v8 = vadd.f32 0.014752088, %v1130_v63  ;;  %v1168_v13 = vmul.f32 3.8918573e-05, %v2643_v41  ;;  %v884_v11 = vmul.f32 0.5, %v2386_v19 }
 0x1df   : > { %v1786_v0 = vclamps-f32 %v992_v28, 1.0  ;;  %v1893_v37 = vpop.eup %1892  ;;  %v885_v49 = vmul.f32 0.5, %v2451_v52  ;;  %v1121_v59 = vmul.f32 %v1120_v53, %v2623_v24  ;;  %v1093_v15 = vadd.f32 0.112945676, %v1092_v7 }
 0x1e0   : > { %v1571_v55 = vmul.f32 %v1555_v54, %v2639_v10  ;;  %v1032_v10 = vmul.f32 %v1031_v46, %v2648_v58  ;;  %v1082_v14 = vadd.f32 0.05243302, %v1081_v51  ;;  %v1159_v18 = vmul.f32 %v1158_v3, %v2643_v41 }
 0x1e1   : > { %v1556_v34 = vadd.f32 1.0, %v1786_v0  ;;  %v1059_v29 = vmul.f32 %v1893_v37, %v2660_v40  ;;  %v1132_v20 = vmul.f32 %v1131_v8, %v2623_v24  ;;  %v1094_v22 = vmul.f32 %v1093_v15, %v2608_v2 }
 0x1e2   : > { %1623 = vmatmul.f32.vlgmr.msra.gmra.mxu1 %v1571_v55  ;;  %v1787_v58 = vclamps-f32 %v1032_v10, 1.0  ;;  %v1169_v23 = vadd.f32 0.001143296, %v1168_v13  ;;  %v1047_v30 = vmul.f32 %v1046_v56, %v2521_v31  ;;  %v2684_v19 = vmul.f32 0.70710677, %v2671_v5 }
 0x1e3   : > { %v1572_v26 = vmul.f32 %v1556_v34, %v884_v11  ;;  %v1060_v52 = vsub.f32 1.0, %v1059_v29  ;;  %v1133_v21 = vadd.f32 0.112945676, %v1132_v20  ;;  %v1122_v45 = vadd.f32 0.05243302, %v1121_v59 }
 0x1e4   : > { %v1069_v27 = vand.u32 2147483648, %v2660_v40  ;;  %v1095_v17 = vadd.f32 0.4994258, %v1094_v22  ;;  %v1170_v38 = vmul.f32 %v1169_v23, %v2643_v41  ;;  %vm1064_vm3 = vweird.f32 %v1893_v37 }
 0x1e5   : > { %v1061_v42 = vmul.f32 %v1893_v37, %v1060_v52  ;;  %v1067_v44 = vand.u32 2147483647, %v2660_v40  ;;  %v1134_v33 = vmul.f32 %v1133_v21, %v2623_v24  ;;  %v1160_v4 = vadd.f32 0.0036580483, %v1159_v18 }
 0x1e6   : > { %v1557_v31 = vadd.f32 1.0, %v1787_v58  ;;  %v1096_v35 = vmul.f32 %v1095_v17, %v2608_v2  ;;  %v1171_v60 = vadd.f32 0.014752088, %v1170_v38  ;;  %v1315_v47 = vmul.f32 %v2684_v19, %v2684_v19 }
 0x1e7   : > { %v1062_v62 = vadd.f32 %v1893_v37, %v1061_v42  ;;  %vm1063_vm4 = vweird.f32 %v2660_v40  ;;  %v1135_v48 = vadd.f32 0.4994258, %v1134_v33  ;;  %v1083_v39 = vmul.f32 %v1082_v14, %v2608_v2 }
 0x1e8   : > { %vm1065_vm5 = vmor %vm1063_vm4, %vm1064_vm3  ;;  %v1070_v54 = vor.u32 1.1754944e-38, %v1069_v27  ;;  %v1097_v28 = vadd.f32 1.0, %v1096_v35  ;;  %v1172_v51 = vmul.f32 %v1171_v60, %v2643_v41  ;;  %v1123_v53 = vmul.f32 %v1122_v45, %v2623_v24 }
 0x1e9   : > { %v1066_v50 = vsel %vm1065_vm5, %v1893_v37, %v1062_v62  ;;  %vm1068_vm6 = vcmp.eq.f32.partialorder %v1067_v44, 8.507059e+37  ;;  %v1136_v61 = vmul.f32 %v1135_v48, %v2623_v24  ;;  %v1161_v55 = vmul.f32 %v1160_v4, %v2643_v41 }
 0x1ea   : > { %1626 = vmatmul.f32.gmra.mxu1 %v1572_v26  ;;  %v1573_v0 = vmul.f32 %v1557_v31, %v885_v49  ;;  %v1071_v6 = vsel %vm1068_vm6, %v1070_v54, %v1066_v50  ;;  %1894 = vrcp.f32 %v1097_v28  ;;  %v2699_v40 = vmin.f32 %v1315_v47, 16.0 }
 0x1eb   : > { %v1072_v32 = vmul.f32 %v1071_v6, %v1047_v30  ;;  %v1137_v3 = vadd.f32 1.0, %v1136_v61  ;;  %v1173_v1 = vadd.f32 0.112945676, %v1172_v51  ;;  %v1084_v63 = vadd.f32 0.18741608, %v1083_v39 }
 0x1ec   : > { %v1124_v34 = vadd.f32 0.18741608, %v1123_v53  ;;  %v1162_v46 = vadd.f32 0.05243302, %v1161_v55  ;;  %v1328_v8 = vmul.f32 3.8918573e-05, %v2699_v40  ;;  %vm1103_vm8 = vweird.f32 %v1097_v28 }
 0x1ed   : > { %v1788_v56 = vclamps-f32 %v1072_v32, 1.0  ;;  %1896 = vrcp.f32 %v1137_v3  ;;  %v1174_v7 = vmul.f32 %v1173_v1, %v2643_v41  ;;  %v886_v37 = vmul.f32 0.5, %v2510_v57 }
 0x1ee   : > { %v1085_v49 = vmul.f32 %v1084_v63, %v2608_v2  ;;  %v1125_v15 = vmul.f32 %v1124_v34, %v2623_v24  ;;  %v1163_v14 = vmul.f32 %v1162_v46, %v2643_v41  ;;  %v1329_v58 = vadd.f32 0.001143296, %v1328_v8 }
 0x1ef   : > { %v1558_v10 = vadd.f32 1.0, %v1788_v56  ;;  %v1175_v11 = vadd.f32 0.4994258, %v1174_v7  ;;  %v1109_v22 = vand.u32 2147483648, %v1097_v28  ;;  %v1107_v57 = vand.u32 2147483647, %v1097_v28 }
 0x1f0   : > { %v1895_v13 = vpop.eup %1894  ;;  %v1086_v52 = vadd.f32 1.1283791, %v1085_v49  ;;  %v1126_v45 = vadd.f32 1.1283791, %v1125_v15  ;;  %v1164_v2 = vadd.f32 0.18741608, %v1163_v14  ;;  %v1330_v38 = vmul.f32 %v1329_v58, %v2699_v40 }
 0x1f1   : > { %v1099_v59 = vmul.f32 %v1895_v13, %v1097_v28  ;;  %v1574_v18 = vmul.f32 %v1558_v10, %v886_v37  ;;  %v1176_v29 = vmul.f32 %v1175_v11, %v2643_v41  ;;  %vm1104_vm7 = vweird.f32 %v1895_v13  ;;  %v2723_v58 = vld [vmem:[%s3113_s4] ss:$0 sm:$0xff] }
 0x1f2   : > { %1629 = vmatmul.f32.gmra.mxu1 %v1573_v0  ;;  %v1149_v17 = vand.u32 2147483648, %v1137_v3  ;;  %vm1105_vm9 = vmor %vm1103_vm8, %vm1104_vm7  ;;  %v1110_v42 = vor.u32 1.1754944e-38, %v1109_v22  ;;  %v1147_v33 = vand.u32 2147483647, %v1137_v3  ;;  %v1087_v4 = vmul.f32 %v1086_v52, %v2585_v43 }
 0x1f3   : > { %v1897_v20 = vpop.eup %1896  ;;  %v1100_v26 = vsub.f32 1.0, %v1099_v59  ;;  %v1177_v30 = vadd.f32 1.0, %v1176_v29  ;;  %vm1108_vm11 = vcmp.eq.f32.partialorder %v1107_v57, 8.507059e+37  ;;  %vm1143_vm12 = vweird.f32 %v1137_v3 }
 0x1f4   : > { %v1139_v23 = vmul.f32 %v1897_v20, %v1137_v3  ;;  %vm1144_vm10 = vweird.f32 %v1897_v20  ;;  %v1127_v47 = vmul.f32 %v1126_v45, %v2600_v16  ;;  %v1150_v48 = vor.u32 1.1754944e-38, %v1149_v17 }
 0x1f5   : > { %v1101_v21 = vmul.f32 %v1895_v13, %v1100_v26  ;;  %1898 = vrcp.f32 %v1177_v30  ;;  %vm1145_vm13 = vmor %vm1143_vm12, %vm1144_vm10  ;;  %v1165_v54 = vmul.f32 %v1164_v2, %v2643_v41  ;;  %vm1148_vm14 = vcmp.eq.f32.partialorder %v1147_v33, 8.507059e+37 }
 0x1f6   : > { %v1140_v27 = vsub.f32 1.0, %v1139_v23  ;;  %v1331_v51 = vadd.f32 0.014752088, %v1330_v38  ;;  %v887_v55 = vmul.f32 0.5, %v2576_v36  ;;  %v1189_v16 = vand.u32 2147483648, %v1177_v30 }
 0x1f7   : > { %v1102_v24 = vadd.f32 %v1895_v13, %v1101_v21  ;;  %v1166_v32 = vadd.f32 1.1283791, %v1165_v54  ;;  %v1187_v41 = vand.u32 2147483647, %v1177_v30  ;;  %vm1183_vm1 = vweird.f32 %v1177_v30 }
 0x1f8   : > { %v1141_v44 = vmul.f32 %v1897_v20, %v1140_v27  ;;  %v1332_v1 = vmul.f32 %v1331_v51, %v2699_v40  ;;  %v888_v7 = vmul.f32 0.5, %v2589_v9  ;;  %v1190_v10 = vor.u32 1.1754944e-38, %v1189_v16 }
 0x1f9   : > { %v1106_v31 = vsel %vm1105_vm9, %v1895_v13, %v1102_v24  ;;  %v1167_v36 = vmul.f32 %v1166_v32, %v2626_v25  ;;  %vm1188_vm3 = vcmp.eq.f32.partialorder %v1187_v41, 8.507059e+37  ;;  %v1317_v9 = vmul.f32 2.1237322e-06, %v2699_v40 }
 0x1fa   : > { %1632 = vmatmul.f32.gmra.mxu1 %v1574_v18  ;;  %v1111_v35 = vsel %vm1108_vm11, %v1110_v42, %v1106_v31  ;;  %v1142_v60 = vadd.f32 %v1897_v20, %v1141_v44  ;;  %v1333_v13 = vadd.f32 0.112945676, %v1332_v1  ;;  %v889_v18 = vmul.f32 0.5, %v2614_v12 }
 0x1fb   : > { %v1112_v62 = vmul.f32 %v1111_v35, %v1087_v4  ;;  %v1899_v39 = vpop.eup %1898  ;;  %v1318_v23 = vadd.f32 0.00028619796, %v1317_v9 }
 0x1fc   : > { %v1146_v28 = vsel %vm1145_vm13, %v1897_v20, %v1142_v60  ;;  %v1179_v61 = vmul.f32 %v1899_v39, %v1177_v30  ;;  %vm1184_vm15 = vweird.f32 %v1899_v39  ;;  %v1334_v15 = vmul.f32 %v1333_v13, %v2699_v40 }
 0x1fd   : > { %v1789_v53 = vclamps-f32 %v1112_v62, 1.0  ;;  %v1151_v50 = vsel %vm1148_vm14, %v1150_v48, %v1146_v28  ;;  %vm1185_vm2 = vmor %vm1183_vm1, %vm1184_vm15  ;;  %v1319_v21 = vmul.f32 %v1318_v23, %v2699_v40 }
 0x1fe   : > { %v1152_v43 = vmul.f32 %v1151_v50, %v1127_v47  ;;  %v1180_v6 = vsub.f32 1.0, %v1179_v61  ;;  %v1335_v29 = vadd.f32 0.4994258, %v1334_v15 }
 0x1ff   : > { %v1559_v0 = vadd.f32 1.0, %v1789_v53  ;;  %v1320_v17 = vadd.f32 0.0036580483, %v1319_v21 }
 0x200   : > { %v1790_v3 = vclamps-f32 %v1152_v43, 1.0  ;;  %v1181_v56 = vmul.f32 %v1899_v39, %v1180_v6  ;;  %v1336_v25 = vmul.f32 %v1335_v29, %v2699_v40 }
 0x201   : > { %v1575_v63 = vmul.f32 %v1559_v0, %v887_v55  ;;  %v1321_v60 = vmul.f32 %v1320_v17, %v2699_v40 }
 0x202   : > { %v1560_v34 = vadd.f32 1.0, %v1790_v3  ;;  %v1182_v46 = vadd.f32 %v1899_v39, %v1181_v56  ;;  %v2731_v12 = vadd.f32 1.0, %v1336_v25 }
 0x203   : > { %1635 = vmatmul.f32.gmra.mxu1 %v1575_v63  ;;  %v1322_v0 = vadd.f32 0.05243302, %v1321_v60 }
 0x204   : > { %v1186_v8 = vsel %vm1185_vm2, %v1899_v39, %v1182_v46  ;;  %v1576_v11 = vmul.f32 %v1560_v34, %v888_v7  ;;  %1900 = vrcp.f32 %v2731_v12  ;;  %vm1343_vm5 = vweird.f32 %v2731_v12 }
 0x205   : > { %v1191_v37 = vsel %vm1188_vm3, %v1190_v10, %v1186_v8 }
 0x206   : > { %v1192_v49 = vmul.f32 %v1191_v37, %v1167_v36  ;;  %v1323_v36 = vmul.f32 %v1322_v0, %v2699_v40 }
 0x208   : > { %v1791_v59 = vclamps-f32 %v1192_v49, 1.0 }
 0x20a   : > { %v1561_v14 = vadd.f32 1.0, %v1791_v59  ;;  %v2749_v31 = vpop.eup %1900 }
 0x20b   : > { %1638 = vmatmul.f32.gmra.mxu1 %v1576_v11  ;;  %v1339_v53 = vmul.f32 %v2749_v31, %v2731_v12  ;;  %vm1344_vm4 = vweird.f32 %v2749_v31 }
 0x20c   : > { %v1577_v20 = vmul.f32 %v1561_v14, %v889_v18  ;;  %vm2819_vm6 = vmor %vm1343_vm5, %vm1344_vm4 }
 0x20d   : > { %v1340_v41 = vsub.f32 1.0, %v1339_v53 }
 0x20f   : > { %v1341_v14 = vmul.f32 %v2749_v31, %v1340_v41 }
 0x213   : > { %1641 = vmatmul.f32.gmra.mxu1 %v1577_v20 }
 0x21b   : > { %v856_v26 = vpop.f32.mrf.mxu0 }
 0x21c   : > { %v2726_v22 = vadd.f32 %v2723_v58, %v856_v26  ;;  %v1324_v26 = vadd.f32 0.18741608, %v1323_v36 }
 0x21e   : > { %v2729_v30 = vmul.f32 0.70710677, %v2726_v22 }
 0x220   : > { %v1195_v52 = vmul.f32 %v2729_v30, %v2729_v30 }
 0x222   : > { %v2736_v57 = vmin.f32 %v1195_v52, 16.0 }
 0x224   : > { %v1197_v45 = vmul.f32 2.1237322e-06, %v2736_v57  ;;  %v859_v2 = vpop.f32.mrf.mxu0  ;;  %v1208_v27 = vmul.f32 3.8918573e-05, %v2736_v57 }
 0x225   : > { %v2742_v24 = vadd.f32 %v2723_v58, %v859_v2 }
 0x226   : > { %v1198_v38 = vadd.f32 0.00028619796, %v1197_v45  ;;  %v1209_v42 = vadd.f32 0.001143296, %v1208_v27 }
 0x227   : > { %v2745_v44 = vmul.f32 0.70710677, %v2742_v24 }
 0x228   : > { %v1199_v33 = vmul.f32 %v1198_v38, %v2736_v57  ;;  %v1210_v4 = vmul.f32 %v1209_v42, %v2736_v57 }
 0x229   : > { %v1235_v35 = vmul.f32 %v2745_v44, %v2745_v44  ;;  %v868_v62 = vpop.f32.mrf.mxu3 }
 0x22a   : > { %v1200_v47 = vadd.f32 0.0036580483, %v1199_v33  ;;  %v1211_v48 = vadd.f32 0.014752088, %v1210_v4  ;;  %v2757_v54 = vadd.f32 %v2723_v58, %v868_v62  ;;  %v1342_v33 = vadd.f32 %v2749_v31, %v1341_v14 }
 0x22b   : > { %v2754_v39 = vmin.f32 %v1235_v35, 16.0  ;;  %v1325_v62 = vmul.f32 %v1324_v26, %v2699_v40 }
 0x22c   : > { %v862_v28 = vpop.f32.mrf.mxu0  ;;  %v1212_v51 = vmul.f32 %v1211_v48, %v2736_v57  ;;  %v1201_v50 = vmul.f32 %v1200_v47, %v2736_v57  ;;  %v2765_v43 = vmul.f32 0.70710677, %v2757_v54  ;;  %v1346_v41 = vsel %vm2819_vm6, %v2749_v31, %v1342_v33 }
 0x22d   : > { %v1237_v61 = vmul.f32 2.1237322e-06, %v2754_v39  ;;  %v2768_v55 = vadd.f32 %v2723_v58, %v862_v28  ;;  %v1248_v32 = vmul.f32 3.8918573e-05, %v2754_v39  ;;  %v1349_v28 = vand.u32 2147483648, %v2731_v12 }
 0x22e   : > { %v1213_v6 = vadd.f32 0.112945676, %v1212_v51  ;;  %v1355_v16 = vmul.f32 %v2765_v43, %v2765_v43  ;;  %v1202_v34 = vadd.f32 0.05243302, %v1201_v50 }
 0x22f   : > { %v1238_v3 = vadd.f32 0.00028619796, %v1237_v61  ;;  %v2774_v1 = vmul.f32 0.70710677, %v2768_v55  ;;  %v1249_v56 = vadd.f32 0.001143296, %v1248_v32 }
 0x230   : > { %v1214_v63 = vmul.f32 %v1213_v6, %v2736_v57  ;;  %v2778_v7 = vmin.f32 %v1355_v16, 16.0  ;;  %v1203_v18 = vmul.f32 %v1202_v34, %v2736_v57  ;;  %v1347_v61 = vand.u32 2147483647, %v2731_v12 }
 0x231   : > { %v1239_v46 = vmul.f32 %v1238_v3, %v2754_v39  ;;  %v1275_v10 = vmul.f32 %v2774_v1, %v2774_v1  ;;  %v1250_v13 = vmul.f32 %v1249_v56, %v2754_v39  ;;  %v1326_v34 = vadd.f32 1.1283791, %v1325_v62 }
 0x232   : > { %v1215_v8 = vadd.f32 0.4994258, %v1214_v63  ;;  %v1357_v11 = vmul.f32 2.1237322e-06, %v2778_v7  ;;  %v1368_v27 = vmul.f32 3.8918573e-05, %v2778_v7 }
 0x233   : > { %v1240_v37 = vadd.f32 0.0036580483, %v1239_v46  ;;  %v2785_v49 = vmin.f32 %v1275_v10, 16.0  ;;  %v1251_v15 = vadd.f32 0.014752088, %v1250_v13  ;;  %vm1348_vm7 = vcmp.eq.f32.partialorder %v1347_v61, 8.507059e+37 }
 0x234   : > { %v1216_v59 = vmul.f32 %v1215_v8, %v2736_v57  ;;  %v1358_v20 = vadd.f32 0.00028619796, %v1357_v11  ;;  %v871_v25 = vpop.f32.mrf.mxu3  ;;  %v1204_v17 = vadd.f32 0.18741608, %v1203_v18  ;;  %v1369_v51 = vadd.f32 0.001143296, %v1368_v27 }
 0x235   : > { %v1241_v29 = vmul.f32 %v1240_v37, %v2754_v39  ;;  %v1277_v9 = vmul.f32 2.1237322e-06, %v2785_v49  ;;  %v1252_v52 = vmul.f32 %v1251_v15, %v2754_v39  ;;  %v2796_v2 = vadd.f32 %v2723_v58, %v871_v25 }
 0x236   : > { %v2792_v23 = vadd.f32 1.0, %v1216_v59  ;;  %v1359_v38 = vmul.f32 %v1358_v20, %v2778_v7  ;;  %v1288_v47 = vmul.f32 3.8918573e-05, %v2785_v49  ;;  %v1205_v0 = vmul.f32 %v1204_v17, %v2736_v57 }
 0x237   : > { %v1242_v21 = vadd.f32 0.05243302, %v1241_v29  ;;  %v1278_v45 = vadd.f32 0.00028619796, %v1277_v9  ;;  %v2806_v35 = vmul.f32 0.70710677, %v2796_v2  ;;  %v1370_v46 = vmul.f32 %v1369_v51, %v2778_v7 }
 0x238   : > { %1902 = vrcp.f32 %v2792_v23  ;;  %v1253_v60 = vadd.f32 0.112945676, %v1252_v52  ;;  %v1360_v6 = vadd.f32 0.0036580483, %v1359_v38  ;;  %v1289_v56 = vadd.f32 0.001143296, %v1288_v47 }
 0x239   : > { %v1279_v42 = vmul.f32 %v1278_v45, %v2785_v49  ;;  %v1243_v4 = vmul.f32 %v1242_v21, %v2754_v39  ;;  %v1395_v53 = vmul.f32 %v2806_v35, %v2806_v35  ;;  %v1350_v57 = vor.u32 1.1754944e-38, %v1349_v28 }
 0x23a   : > { %v1254_v50 = vmul.f32 %v1253_v60, %v2754_v39  ;;  %v1206_v13 = vadd.f32 1.1283791, %v1205_v0  ;;  %v1361_v37 = vmul.f32 %v1360_v6, %v2778_v7  ;;  %v1227_v11 = vand.u32 2147483647, %v2792_v23 }
 0x23b   : > { %v1280_v48 = vadd.f32 0.0036580483, %v1279_v42  ;;  %v1244_v3 = vadd.f32 0.18741608, %v1243_v4  ;;  %v2828_v10 = vmin.f32 %v1395_v53, 16.0  ;;  %v1351_v59 = vsel %vm1348_vm7, %v1350_v57, %v1346_v41 }
 0x23c   : > { %v874_v16 = vpop.f32.mrf.mxu3  ;;  %v1255_v63 = vadd.f32 0.4994258, %v1254_v50  ;;  %v1290_v18 = vmul.f32 %v1289_v56, %v2785_v49  ;;  %v1327_v29 = vmul.f32 %v1326_v34, %v2684_v19  ;;  %v1229_v9 = vand.u32 2147483648, %v2792_v23 }
 0x23d   : > { %v1281_v12 = vmul.f32 %v1280_v48, %v2785_v49  ;;  %v1245_v31 = vmul.f32 %v1244_v3, %v2754_v39  ;;  %v1371_v26 = vadd.f32 0.014752088, %v1370_v46  ;;  %v1397_v25 = vmul.f32 2.1237322e-06, %v2828_v10 }
 0x23e   : > { %v1903_v32 = vpop.eup %1902  ;;  %v1256_v8 = vmul.f32 %v1255_v63, %v2754_v39  ;;  %v1207_v21 = vmul.f32 %v1206_v13, %v2729_v30  ;;  %vm1223_vm9 = vweird.f32 %v2792_v23  ;;  %v2844_v39 = vmul.f32 %v1351_v59, %v1327_v29 }
 0x23f   : > { %v1219_v36 = vmul.f32 %v1903_v32, %v2792_v23  ;;  %v1282_v20 = vadd.f32 0.05243302, %v1281_v12  ;;  %vm1224_vm8 = vweird.f32 %v1903_v32  ;;  %v1246_v45 = vadd.f32 1.1283791, %v1245_v31 }
 0x240   : > { %v2835_v14 = vadd.f32 1.0, %v1256_v8  ;;  %v1362_v27 = vadd.f32 0.05243302, %v1361_v37  ;;  %v1291_v38 = vadd.f32 0.014752088, %v1290_v18  ;;  %v2847_v42 = vadd.f32 %v2723_v58, %v874_v16  ;;  %vm1225_vm10 = vmor %vm1223_vm9, %vm1224_vm8 }
 0x241   : > { %v1220_v15 = vsub.f32 1.0, %v1219_v36  ;;  %v1230_v4 = vor.u32 1.1754944e-38, %v1229_v9  ;;  %v1372_v60 = vmul.f32 %v1371_v26, %v2778_v7  ;;  %v1283_v30 = vmul.f32 %v1282_v20, %v2785_v49 }
 0x242   : > { %1904 = vrcp.f32 %v2835_v14  ;;  %v1398_v23 = vadd.f32 0.00028619796, %v1397_v25  ;;  %vm1228_vm11 = vcmp.eq.f32.partialorder %v1227_v11, 8.507059e+37  ;;  %v890_v62 = vmul.f32 0.5, %v2726_v22 }
 0x243   : > { %v1221_v52 = vmul.f32 %v1903_v32, %v1220_v15  ;;  %v1795_v51 = vclamps-f32 %v2844_v39, 1.0  ;;  %v1247_v50 = vmul.f32 %v1246_v45, %v2745_v44  ;;  %v1363_v61 = vmul.f32 %v1362_v27, %v2778_v7 }
 0x244   : > { %v877_v17 = vpop.f32.mrf.mxu3  ;;  %v1292_v6 = vmul.f32 %v1291_v38, %v2785_v49  ;;  %v2863_v40 = vmul.f32 0.70710677, %v2847_v42  ;;  %v1373_v3 = vadd.f32 0.112945676, %v1372_v60  ;;  %v1284_v16 = vadd.f32 0.18741608, %v1283_v30 }
 0x245   : > { %v1222_v19 = vadd.f32 %v1903_v32, %v1221_v52  ;;  %v2850_v33 = vadd.f32 %v2723_v58, %v877_v17  ;;  %v1399_v63 = vmul.f32 %v1398_v23, %v2828_v10  ;;  %v1267_v12 = vand.u32 2147483647, %v2835_v14 }
 0x246   : > { %v1293_v41 = vadd.f32 0.112945676, %v1292_v6  ;;  %v1269_v57 = vand.u32 2147483648, %v2835_v14  ;;  %v1374_v13 = vmul.f32 %v1373_v3, %v2778_v7  ;;  %v1435_v15 = vmul.f32 %v2863_v40, %v2863_v40 }
 0x247   : > { %v1226_v47 = vsel %vm1225_vm10, %v1903_v32, %v1222_v19  ;;  %v2856_v48 = vmul.f32 0.70710677, %v2850_v33  ;;  %vm1263_vm13 = vweird.f32 %v2835_v14  ;;  %v1400_v20 = vadd.f32 0.0036580483, %v1399_v63 }
 0x248   : > { %v1231_v28 = vsel %vm1228_vm11, %v1230_v4, %v1226_v47  ;;  %v1905_v53 = vpop.eup %1904  ;;  %v1294_v8 = vmul.f32 %v1293_v41, %v2785_v49  ;;  %vm1268_vm15 = vcmp.eq.f32.partialorder %v1267_v12, 8.507059e+37  ;;  %v1375_v17 = vadd.f32 0.4994258, %v1374_v13 }
 0x249   : > { %v1232_v0 = vmul.f32 %v1231_v28, %v1207_v21  ;;  %v1475_v22 = vmul.f32 %v2856_v48, %v2856_v48  ;;  %v1259_v32 = vmul.f32 %v1905_v53, %v2835_v14  ;;  %vm1264_vm12 = vweird.f32 %v1905_v53 }
 0x24a   : > { %v1295_v29 = vadd.f32 0.4994258, %v1294_v8  ;;  %vm1265_vm14 = vmor %vm1263_vm13, %vm1264_vm12  ;;  %v2890_v19 = vmin.f32 %v1435_v15, 16.0  ;;  %v1408_v60 = vmul.f32 3.8918573e-05, %v2828_v10  ;;  %v1401_v63 = vmul.f32 %v1400_v20, %v2828_v10 }
 0x24b   : > { %v1792_v56 = vclamps-f32 %v1232_v0, 1.0  ;;  %v2869_v44 = vmin.f32 %v1475_v22, 16.0  ;;  %v1260_v34 = vsub.f32 1.0, %v1259_v32  ;;  %v1364_v28 = vadd.f32 0.18741608, %v1363_v61 }
 0x24c   : > { %v880_v46 = vpop.f32.mrf.mxu3  ;;  %v1296_v21 = vmul.f32 %v1295_v29, %v2785_v49  ;;  %v1285_v0 = vmul.f32 %v1284_v16, %v2785_v49  ;;  %v1409_v61 = vadd.f32 0.001143296, %v1408_v60  ;;  %v891_v49 = vmul.f32 0.5, %v2742_v24 }
 0x24d   : > { %v1562_v36 = vadd.f32 1.0, %v1792_v56  ;;  %v1477_v37 = vmul.f32 2.1237322e-06, %v2869_v44  ;;  %v1488_v11 = vmul.f32 3.8918573e-05, %v2869_v44  ;;  %v2878_v59 = vadd.f32 %v2723_v58, %v880_v46 }
 0x24e   : > { %v1261_v31 = vmul.f32 %v1905_v53, %v1260_v34  ;;  %v1270_v58 = vor.u32 1.1754944e-38, %v1269_v57  ;;  %v1365_v12 = vmul.f32 %v1364_v28, %v2778_v7  ;;  %v1286_v57 = vadd.f32 1.1283791, %v1285_v0 }
 0x24f   : > { %v1578_v18 = vmul.f32 %v1562_v36, %v890_v62  ;;  %v1478_v9 = vadd.f32 0.00028619796, %v1477_v37  ;;  %v1489_v26 = vadd.f32 0.001143296, %v1488_v11  ;;  %v2884_v52 = vmul.f32 0.70710677, %v2878_v59 }
 0x250   : > { %v1262_v25 = vadd.f32 %v1905_v53, %v1261_v31  ;;  %v2895_v62 = vadd.f32 1.0, %v1296_v21  ;;  %v1402_v37 = vadd.f32 0.05243302, %v1401_v63  ;;  %v2914_v31 = vadd.f32 1.0, %v1795_v51 }
 0x251   : > { %1644 = vmatmul.f32.vlgmr.msra.gmra.mxu2 %v1578_v18  ;;  %v1479_v45 = vmul.f32 %v1478_v9, %v2869_v44  ;;  %v1490_v27 = vmul.f32 %v1489_v26, %v2869_v44  ;;  %v1515_v38 = vmul.f32 %v2884_v52, %v2884_v52  ;;  %v2918_v15 = vmul.f32 0.5, %v2768_v55 }
 0x252   : > { %v1266_v14 = vsel %vm1265_vm14, %v1905_v53, %v1262_v25  ;;  %v1376_v53 = vmul.f32 %v1375_v17, %v2778_v7  ;;  %1906 = vrcp.f32 %v2895_v62  ;;  %v1410_v29 = vmul.f32 %v1409_v61, %v2828_v10 }
 0x253   : > { %v1271_v4 = vsel %vm1268_vm15, %v1270_v58, %v1266_v14  ;;  %v1480_v30 = vadd.f32 0.0036580483, %v1479_v45  ;;  %v1491_v23 = vadd.f32 0.014752088, %v1490_v27  ;;  %v2898_v6 = vmin.f32 %v1515_v38, 16.0 }
 0x254   : > { %v1272_v47 = vmul.f32 %v1271_v4, %v1247_v50  ;;  %v1437_v50 = vmul.f32 2.1237322e-06, %v2890_v19  ;;  %v2909_v36 = vadd.f32 1.0, %v1376_v53  ;;  %v2922_v20 = vadd.f32 1.1283791, %v1365_v12 }
 0x255   : > { %v1481_v22 = vmul.f32 %v1480_v30, %v2869_v44  ;;  %v1492_v32 = vmul.f32 %v1491_v23, %v2869_v44  ;;  %v1517_v56 = vmul.f32 2.1237322e-06, %v2898_v6  ;;  %v1287_v9 = vmul.f32 %v1286_v57, %v2774_v1  ;;  %v2946_v23 = vld [vmem:[%s3115_s6] ss:$0 sm:$0xff] }
 0x256   : > { %v1793_v3 = vclamps-f32 %v1272_v47, 1.0  ;;  %v1438_v11 = vadd.f32 0.00028619796, %v1437_v50  ;;  %1908 = vrcp.f32 %v2909_v36  ;;  %v1307_v25 = vand.u32 2147483647, %v2895_v62 }
 0x257   : > { %v1482_v16 = vadd.f32 0.05243302, %v1481_v22  ;;  %v1493_v41 = vadd.f32 0.112945676, %v1492_v32  ;;  %v1518_v46 = vadd.f32 0.00028619796, %v1517_v56  ;;  %v2931_v21 = vmul.f32 %v1402_v37, %v2828_v10 }
 0x258   : > { %v1563_v34 = vadd.f32 1.0, %v1793_v3  ;;  %v1907_v24 = vpop.eup %1906  ;;  %v1309_v55 = vand.u32 2147483648, %v2895_v62  ;;  %v1411_v58 = vadd.f32 0.014752088, %v1410_v29  ;;  %v2934_v45 = vmul.f32 %v1438_v11, %v2890_v19 }
 0x259   : > { %v1494_v8 = vmul.f32 %v1493_v41, %v2869_v44  ;;  %v1483_v7 = vmul.f32 %v1482_v16, %v2869_v44  ;;  %v1519_v39 = vmul.f32 %v1518_v46, %v2898_v6  ;;  %v1299_v51 = vmul.f32 %v1907_v24, %v2895_v62 }
 0x25a   : > { %v1579_v13 = vmul.f32 %v1563_v34, %v891_v49  ;;  %v1528_v1 = vmul.f32 3.8918573e-05, %v2898_v6  ;;  %v1387_v38 = vand.u32 2147483647, %v2909_v36  ;;  %v1412_v4 = vmul.f32 %v1411_v58, %v2828_v10 }
 0x25b   : > { %v1495_v18 = vadd.f32 0.4994258, %v1494_v8  ;;  %v1300_v27 = vsub.f32 1.0, %v1299_v51  ;;  %v1484_v14 = vadd.f32 0.18741608, %v1483_v7  ;;  %vm1304_vm1 = vweird.f32 %v1907_v24  ;;  %v1919_v8 = vld [vmem:[%s2000_s30] sm:$0xff] }
 0x25c   : > { %1647 = vmatmul.f32.gmra.mxu2 %v1579_v13  ;;  %v2941_v60 = vpop.eup %1908  ;;  %v1520_v30 = vadd.f32 0.0036580483, %v1519_v39  ;;  %v1529_v28 = vadd.f32 0.001143296, %v1528_v1  ;;  %vm1303_vm2 = vweird.f32 %v2895_v62  ;;  %vm2950_vm3 = vcmp.eq.f32.partialorder %v1307_v25, 8.507059e+37 }
 0x25d   : > { %v1496_v26 = vmul.f32 %v1495_v18, %v2869_v44  ;;  %v1301_v47 = vmul.f32 %v1907_v24, %v1300_v27  ;;  %v1310_v53 = vor.u32 1.1754944e-38, %v1309_v55  ;;  %v1379_v32 = vmul.f32 %v2941_v60, %v2909_v36  ;;  %vm1305_vm4 = vmor %vm1303_vm2, %vm1304_vm1 }
 0x25e   : > { %v1389_v3 = vand.u32 2147483648, %v2909_v36  ;;  %v1448_v63 = vmul.f32 3.8918573e-05, %v2890_v19  ;;  %v1485_v50 = vmul.f32 %v1484_v14, %v2869_v44  ;;  %vm1383_vm5 = vweird.f32 %v2909_v36 }
 0x25f   : > { %v2937_v17 = vadd.f32 1.0, %v1496_v26  ;;  %v1302_v22 = vadd.f32 %v1907_v24, %v1301_v47  ;;  %v1624_v56 = vpop.f32.mrf.mxu1  ;;  %v1413_v62 = vadd.f32 0.112945676, %v1412_v4  ;;  %v1530_v61 = vmul.f32 %v1529_v28, %v2898_v6 }
 0x260   : > { %v1521_v49 = vmul.f32 %v1520_v30, %v2898_v6  ;;  %v1625_v16 = vadd.f32 %v2946_v23, %v1624_v56  ;;  %vm2963_vm6 = vcmp.eq.f32.partialorder %v1387_v38, 8.507059e+37  ;;  %v1380_v12 = vsub.f32 1.0, %v1379_v32 }
 0x261   : > { %1910 = vrcp.f32 %v2937_v17  ;;  %v1306_v41 = vsel %vm1305_vm4, %v1907_v24, %v1302_v22  ;;  %v1414_v57 = vmul.f32 %v1413_v62, %v2828_v10  ;;  %v1531_v46 = vadd.f32 0.014752088, %v1530_v61  ;;  %v1920_v62 = vld [vmem:[%s2000_s30 + $0x8] sm:$0xff] }
 0x262   : > { %v1311_v44 = vsel %vm2950_vm3, %v1310_v53, %v1306_v41  ;;  %v1672_v13 = vadd.f32 %v1919_v8, %v1625_v16  ;;  %v1390_v11 = vor.u32 1.1754944e-38, %v1389_v3  ;;  %v1449_v24 = vadd.f32 0.001143296, %v1448_v63 }
 0x263   : > { %v1312_v37 = vmul.f32 %v1311_v44, %v1287_v9  ;;  %v1381_v18 = vmul.f32 %v2941_v60, %v1380_v12  ;;  %vm1384_vm7 = vweird.f32 %v2941_v60  ;;  %v1415_v29 = vadd.f32 0.4994258, %v1414_v57 }
 0x264   : > { %v1532_v39 = vmul.f32 %v1531_v46, %v2898_v6  ;;  %v1486_v51 = vadd.f32 1.1283791, %v1485_v50  ;;  %v1507_v25 = vand.u32 2147483647, %v2937_v17  ;;  %1688 = vst.msk [vmem:[%s2972_s22] sm:$0xff] %vm298_vm0, %v1672_v13  ;;  %v1450_v1 = vmul.f32 %v1449_v24, %v2890_v19  ;;  %vm1385_vm9 = vmor %vm1383_vm5, %vm1384_vm7 }
 0x265   : > { %v1794_v55 = vclamps-f32 %v1312_v37, 1.0  ;;  %v1382_v9 = vadd.f32 %v2941_v60, %v1381_v18  ;;  %v1416_v58 = vmul.f32 %v1415_v29, %v2828_v10  ;;  %v1509_v38 = vand.u32 2147483648, %v2937_v17 }
 0x266   : > { %v1533_v27 = vadd.f32 0.112945676, %v1532_v39  ;;  %v1451_v53 = vadd.f32 0.014752088, %v1450_v1  ;;  %v1367_v36 = vmul.f32 %v2922_v20, %v2765_v43  ;;  %v1404_v50 = vadd.f32 0.18741608, %v2931_v21 }
 0x267   : > { %v1911_v7 = vpop.eup %1910  ;;  %v1564_v4 = vadd.f32 1.0, %v1794_v55  ;;  %v1627_v30 = vpop.f32.mrf.mxu1  ;;  %v1386_v47 = vsel %vm1385_vm9, %v2941_v60, %v1382_v9  ;;  %v2994_v28 = vadd.f32 1.0, %v1416_v58  ;;  %v1440_v60 = vadd.f32 0.0036580483, %v2934_v45 }
 0x268   : > { %v1499_v26 = vmul.f32 %v1911_v7, %v2937_v17  ;;  %vm1504_vm8 = vweird.f32 %v1911_v7  ;;  %v1534_v0 = vmul.f32 %v1533_v27, %v2898_v6  ;;  %v1628_v32 = vadd.f32 %v2946_v23, %v1627_v30 }
 0x269   : > { %v1580_v3 = vmul.f32 %v1564_v4, %v2918_v15  ;;  %v1391_v63 = vsel %vm2963_vm6, %v1390_v11, %v1386_v47  ;;  %1912 = vrcp.f32 %v2994_v28  ;;  %vm1503_vm10 = vweird.f32 %v2937_v17 }
 0x26a   : > { %v1500_v14 = vsub.f32 1.0, %v1499_v26  ;;  %v1673_v61 = vadd.f32 %v1920_v62, %v1628_v32  ;;  %v1535_v15 = vadd.f32 0.4994258, %v1534_v0  ;;  %vm1505_vm11 = vmor %vm1503_vm10, %vm1504_vm8  ;;  %v1510_v16 = vor.u32 1.1754944e-38, %v1509_v38  ;;  %v1921_v26 = vld [vmem:[%s2000_s30 + $0x10] sm:$0xff] }
 0x26b   : > { %1650 = vmatmul.f32.gmra.mxu2 %v1580_v3  ;;  %v1522_v41 = vadd.f32 0.05243302, %v1521_v49  ;;  %v1392_v34 = vmul.f32 %v1391_v63, %v1367_v36  ;;  %v1452_v43 = vmul.f32 %v1451_v53, %v2890_v19  ;;  %v1487_v20 = vmul.f32 %v1486_v51, %v2856_v48 }
 0x26c   : > { %v1501_v22 = vmul.f32 %v1911_v7, %v1500_v14  ;;  %vm1508_vm12 = vcmp.eq.f32.partialorder %v1507_v25, 8.507059e+37  ;;  %1689 = vst.msk [vmem:[%s2972_s22 + $0x8] sm:$0xff] %vm298_vm0, %v1673_v61  ;;  %v1536_v45 = vmul.f32 %v1535_v15, %v2898_v6  ;;  %v1405_v17 = vmul.f32 %v1404_v50, %v2828_v10 }
 0x26d   : > { %v1441_v44 = vmul.f32 %v1440_v60, %v2890_v19  ;;  %v1453_v57 = vadd.f32 0.112945676, %v1452_v43  ;;  %v893_v46 = vmul.f32 0.5, %v2671_v5  ;;  %v1523_v48 = vmul.f32 %v1522_v41, %v2898_v6 }
 0x26e   : > { %v1502_v56 = vadd.f32 %v1911_v7, %v1501_v22  ;;  %v3017_v8 = vadd.f32 1.0, %v1536_v45  ;;  %v1796_v11 = vclamps-f32 %v1392_v34, 1.0  ;;  %v1406_v5 = vadd.f32 1.1283791, %v1405_v17 }
 0x26f   : > { %v1913_v13 = vpop.eup %1912  ;;  %v1630_v37 = vpop.f32.mrf.mxu1  ;;  %v1454_v24 = vmul.f32 %v1453_v57, %v2890_v19  ;;  %v1581_v10 = vmul.f32 %v2914_v31, %v893_v46  ;;  %v1442_v39 = vadd.f32 0.05243302, %v1441_v44  ;;  %v897_v51 = vmul.f32 0.5, %v2850_v33 }
 0x270   : > { %v1506_v21 = vsel %vm1505_vm11, %v1911_v7, %v1502_v56  ;;  %v1631_v7 = vadd.f32 %v2946_v23, %v1630_v37  ;;  %v1419_v29 = vmul.f32 %v1913_v13, %v2994_v28  ;;  %1914 = vrcp.f32 %v3017_v8 }
 0x271   : > { %v1511_v12 = vsel %vm1508_vm12, %v1510_v16, %v1506_v21  ;;  %v1455_v58 = vadd.f32 0.4994258, %v1454_v24  ;;  %v1524_v27 = vadd.f32 0.18741608, %v1523_v48  ;;  %v1566_v1 = vadd.f32 1.0, %v1796_v11 }
 0x272   : > { %v1512_v49 = vmul.f32 %v1511_v12, %v1487_v20  ;;  %v1674_v25 = vadd.f32 %v1921_v26, %v1631_v7  ;;  %v1420_v9 = vsub.f32 1.0, %v1419_v29  ;;  %v1427_v31 = vand.u32 2147483647, %v2994_v28 }
 0x273   : > { %1653 = vmatmul.f32.gmra.mxu2 %v1581_v10  ;;  %v1429_v14 = vand.u32 2147483648, %v2994_v28  ;;  %vm1424_vm13 = vweird.f32 %v1913_v13  ;;  %v1456_v33 = vmul.f32 %v1455_v58, %v2890_v19  ;;  %v894_v30 = vmul.f32 0.5, %v2757_v54 }
 0x274   : > { %v1799_v18 = vclamps-f32 %v1512_v49, 1.0  ;;  %1690 = vst.msk [vmem:[%s2972_s22 + $0x10] sm:$0xff] %vm298_vm0, %v1674_v25  ;;  %v1421_v4 = vmul.f32 %v1913_v13, %v1420_v9  ;;  %v1407_v47 = vmul.f32 %v1406_v5, %v2806_v35  ;;  %vm1423_vm14 = vweird.f32 %v2994_v28  ;;  %v1922_v28 = vld [vmem:[%s2000_s30 + $0x18] sm:$0xff] }
 0x275   : > { %v3035_v53 = vadd.f32 1.0, %v1456_v33  ;;  %v1443_v32 = vmul.f32 %v1442_v39, %v2890_v19  ;;  %v1525_v3 = vmul.f32 %v1524_v27, %v2898_v6  ;;  %vm1425_vm15 = vmor %vm1423_vm14, %vm1424_vm13  ;;  %vm1428_vm1 = vcmp.eq.f32.partialorder %v1427_v31, 8.507059e+37 }
 0x276   : > { %v1569_v55 = vadd.f32 1.0, %v1799_v18  ;;  %v1422_v0 = vadd.f32 %v1913_v13, %v1421_v4  ;;  %v1915_v22 = vpop.eup %1914  ;;  %v1430_v36 = vor.u32 1.1754944e-38, %v1429_v14  ;;  %v1582_v35 = vmul.f32 %v1566_v1, %v894_v30  ;;  %v1924_v4 = vld [vmem:[%s2000_s30 + $0x28] sm:$0xff] }
 0x277   : > { %v1633_v63 = vpop.f32.mrf.mxu1  ;;  %v1539_v60 = vmul.f32 %v1915_v22, %v3017_v8  ;;  %1916 = vrcp.f32 %v3035_v53  ;;  %v1444_v6 = vadd.f32 0.18741608, %v1443_v32  ;;  %v1526_v16 = vadd.f32 1.1283791, %v1525_v3  ;;  %v1926_v3 = vld [vmem:[%s2000_s30 + $0x38] sm:$0xff] }
 0x278   : > { %v1585_v38 = vmul.f32 %v1569_v55, %v897_v51  ;;  %v1634_v54 = vadd.f32 %v2946_v23, %v1633_v63  ;;  %v1426_v50 = vsel %vm1425_vm15, %v1913_v13, %v1422_v0  ;;  %v1549_v41 = vand.u32 2147483648, %v3017_v8  ;;  %v1923_v51 = vld [vmem:[%s2000_s30 + $0x20] sm:$0xff] }
 0x279   : > { %v1431_v56 = vsel %vm1428_vm1, %v1430_v36, %v1426_v50  ;;  %v1540_v15 = vsub.f32 1.0, %v1539_v60  ;;  %vm1544_vm2 = vweird.f32 %v1915_v22  ;;  %v1547_v20 = vand.u32 2147483647, %v3017_v8 }
 0x27a   : > { %1665 = vmatmul.f32.vlgmr.msrb.gmra.mxu3 %v1585_v38  ;;  %v1675_v62 = vadd.f32 %v1922_v28, %v1634_v54  ;;  %v1432_v61 = vmul.f32 %v1431_v56, %v1407_v47  ;;  %v895_v21 = vmul.f32 0.5, %v2796_v2  ;;  %vm1543_vm3 = vweird.f32 %v3017_v8  ;;  %v1928_v28 = vld [vmem:[%s2000_s30 + $0x48] sm:$0xff] }
 0x27b   : > { %1656 = vmatmul.f32.gmra.mxu2 %v1582_v35  ;;  %v1541_v43 = vmul.f32 %v1915_v22, %v1540_v15  ;;  %v1445_v12 = vmul.f32 %v1444_v6, %v2890_v19  ;;  %v1527_v57 = vmul.f32 %v1526_v16, %v2884_v52  ;;  %vm1545_vm4 = vmor %vm1543_vm3, %vm1544_vm2  ;;  %v1550_v46 = vor.u32 1.1754944e-38, %v1549_v41  ;;  %v1927_v35 = vld [vmem:[%s2000_s30 + $0x40] sm:$0xff]  ;;  %v1929_v6 = vld [vmem:[%s2000_s30 + $0x50] sm:$0xff] }
 0x27c   : > { %1691 = vst.msk [vmem:[%s2972_s22 + $0x18] sm:$0xff] %vm298_vm0, %v1675_v62  ;;  %v1797_v34 = vclamps-f32 %v1432_v61, 1.0  ;;  %vm1548_vm5 = vcmp.eq.f32.partialorder %v1547_v20, 8.507059e+37  ;;  %v1469_v8 = vand.u32 2147483648, %v3035_v53  ;;  %v1467_v52 = vand.u32 2147483647, %v3035_v53 }
 0x27d   : > { %v1542_v17 = vadd.f32 %v1915_v22, %v1541_v43  ;;  %v1917_v44 = vpop.eup %1916  ;;  %v1446_v24 = vadd.f32 1.1283791, %v1445_v12  ;;  %v898_v29 = vmul.f32 0.5, %v2878_v59  ;;  %vm1463_vm7 = vweird.f32 %v3035_v53  ;;  %v1930_v43 = vld [vmem:[%s2000_s30 + $0x70] sm:$0xff] }
 0x27e   : > { %v1567_v45 = vadd.f32 1.0, %v1797_v34  ;;  %v1459_v48 = vmul.f32 %v1917_v44, %v3035_v53  ;;  %vm1464_vm6 = vweird.f32 %v1917_v44  ;;  %v1470_v25 = vor.u32 1.1754944e-38, %v1469_v8  ;;  %v1925_v53 = vld [vmem:[%s2000_s30 + $0x30] sm:$0xff]  ;;  %v1934_v8 = vld [vmem:[%s2000_s30 + $0x68] sm:$0xff] }
 0x27f   : > { %v1546_v13 = vsel %vm1545_vm4, %v1915_v22, %v1542_v17  ;;  %vm1465_vm8 = vmor %vm1463_vm7, %vm1464_vm6  ;;  %v1447_v55 = vmul.f32 %v1446_v24, %v2863_v40  ;;  %vm1468_vm9 = vcmp.eq.f32.partialorder %v1467_v52, 8.507059e+37  ;;  %v896_v38 = vmul.f32 0.5, %v2847_v42  ;;  %v1931_v17 = vld [vmem:[%s2000_s30 + $0x58] sm:$0xff] }
 0x280   : > { %v1583_v49 = vmul.f32 %v1567_v45, %v895_v21  ;;  %v1551_v37 = vsel %vm1548_vm5, %v1550_v46, %v1546_v13  ;;  %v1460_v11 = vsub.f32 1.0, %v1459_v48  ;;  %v1636_v7 = vpop.f32.mrf.mxu1  ;;  %v1932_v46 = vld [vmem:[%s2000_s30 + $0x60] sm:$0xff] }
 0x281   : > { %v1552_v2 = vmul.f32 %v1551_v37, %v1527_v57  ;;  %v1637_v18 = vadd.f32 %v2946_v23, %v1636_v7  ;;  %v1933_v37 = vld [vmem:[%s2000_s30 + $0x78] sm:$0xff] }
 0x282   : > { %v1461_v19 = vmul.f32 %v1917_v44, %v1460_v11 }
 0x283   : > { %1659 = vmatmul.f32.gmra.mxu2 %v1583_v49  ;;  %v1800_v10 = vclamps-f32 %v1552_v2, 1.0  ;;  %v1676_v26 = vadd.f32 %v1923_v51, %v1637_v18 }
 0x284   : > { %v1462_v39 = vadd.f32 %v1917_v44, %v1461_v19 }
 0x285   : > { %v1570_v5 = vadd.f32 1.0, %v1800_v10  ;;  %1692 = vst.msk [vmem:[%s2972_s22 + $0x20] sm:$0xff] %vm298_vm0, %v1676_v26 }
 0x286   : > { %v1466_v58 = vsel %vm1465_vm8, %v1917_v44, %v1462_v39 }
 0x287   : > { %v1586_v9 = vmul.f32 %v1570_v5, %v898_v29  ;;  %v1471_v27 = vsel %vm1468_vm9, %v1470_v25, %v1466_v58 }
 0x288   : > { %v1472_v59 = vmul.f32 %v1471_v27, %v1447_v55  ;;  %v1639_v1 = vpop.f32.mrf.mxu1 }
 0x289   : > { %1668 = vmatmul.f32.gmra.mxu3 %v1586_v9  ;;  %v1640_v14 = vadd.f32 %v2946_v23, %v1639_v1 }
 0x28a   : > { %v1798_v31 = vclamps-f32 %v1472_v59, 1.0 }
 0x28b   : > { %v1677_v33 = vadd.f32 %v1924_v4, %v1640_v14 }
 0x28c   : > { %v1568_v40 = vadd.f32 1.0, %v1798_v31 }
 0x28d   : > { %1693 = vst.msk [vmem:[%s2972_s22 + $0x28] sm:$0xff] %vm298_vm0, %v1677_v33 }
 0x28e   : > { %v1584_v30 = vmul.f32 %v1568_v40, %v896_v38 }
 0x290   : > { %1662 = vmatmul.f32.gmra.mxu2 %v1584_v30  ;;  %v1642_v47 = vpop.f32.mrf.mxu1 }
 0x291   : > { %v1643_v0 = vadd.f32 %v2946_v23, %v1642_v47 }
 0x293   : > { %v1678_v22 = vadd.f32 %v1925_v53, %v1643_v0 }
 0x295   : > { %1694 = vst.msk [vmem:[%s2972_s22 + $0x30] sm:$0xff] %vm298_vm0, %v1678_v22 }
 0x2d4   : > { %v1645_v42 = vpop.f32.mrf.mxu2 }
 0x2d5   : > { %v1646_v32 = vadd.f32 %v2946_v23, %v1645_v42 }
 0x2d7   : > { %v1679_v63 = vadd.f32 %v1926_v3, %v1646_v32 }
 0x2d9   : > { %1695 = vst.msk [vmem:[%s2972_s22 + $0x38] sm:$0xff] %vm298_vm0, %v1679_v63 }
 0x2df   : > { %v1648_v36 = vpop.f32.mrf.mxu2 }
 0x2e0   : > { %v1649_v54 = vadd.f32 %v2946_v23, %v1648_v36 }
 0x2e2   : > { %v1680_v50 = vadd.f32 %v1927_v35, %v1649_v54 }
 0x2e4   : > { %1696 = vst.msk [vmem:[%s2972_s22 + $0x40] sm:$0xff] %vm298_vm0, %v1680_v50 }
 0x2ee   : > { %v1651_v60 = vpop.f32.mrf.mxu2 }
 0x2ef   : > { %v1652_v56 = vadd.f32 %v2946_v23, %v1651_v60 }
 0x2f1   : > { %v1681_v62 = vadd.f32 %v1928_v28, %v1652_v56 }
 0x2f3   : > { %1697 = vst.msk [vmem:[%s2972_s22 + $0x48] sm:$0xff] %vm298_vm0, %v1681_v62 }
 0x2f6   : > { %v1654_v61 = vpop.f32.mrf.mxu2 }
 0x2f7   : > { %v1655_v15 = vadd.f32 %v2946_v23, %v1654_v61 }
 0x2f9   : > { %v1682_v16 = vadd.f32 %v1929_v6, %v1655_v15 }
 0x2fb   : > { %1698 = vst.msk [vmem:[%s2972_s22 + $0x50] sm:$0xff] %vm298_vm0, %v1682_v16 }
 0x2fd   : > { %v1666_v41 = vpop.f32.mrf.mxu3 }
 0x2fe   : > { %v1667_v34 = vadd.f32 %v2946_v23, %v1666_v41  ;;  %v1657_v21 = vpop.f32.mrf.mxu2 }
 0x2ff   : > { %v1658_v45 = vadd.f32 %v2946_v23, %v1657_v21 }
 0x300   : > { %v1686_v20 = vadd.f32 %v1930_v43, %v1667_v34 }
 0x301   : > { %v1683_v44 = vadd.f32 %v1931_v17, %v1658_v45 }
 0x302   : > { %1702 = vst.msk [vmem:[%s2972_s22 + $0x70] sm:$0xff] %vm298_vm0, %v1686_v20 }
 0x303   : > { %1699 = vst.msk [vmem:[%s2972_s22 + $0x58] sm:$0xff] %vm298_vm0, %v1683_v44 }
 0x306   : > { %v1660_v12 = vpop.f32.mrf.mxu2 }
 0x307   : > { %v1661_v57 = vadd.f32 %v2946_v23, %v1660_v12 }
 0x309   : > { %v1684_v49 = vadd.f32 %v1932_v46, %v1661_v57 }
 0x30b   : > { %1700 = vst.msk [vmem:[%s2972_s22 + $0x60] sm:$0xff] %vm298_vm0, %v1684_v49 }
 0x30c   : > { %v1669_v13 = vpop.f32.mrf.mxu3 }
 0x30d   : > { %v1670_v48 = vadd.f32 %v2946_v23, %v1669_v13 }
 0x30f   : > { %v1687_v2 = vadd.f32 %v1933_v37, %v1670_v48 }
 0x311   : > { %1703 = vst.msk [vmem:[%s2972_s22 + $0x78] sm:$0xff] %vm298_vm0, %v1687_v2 }
 0x313   : > { %v1663_v11 = vpop.f32.mrf.mxu2 }
 0x314   : > { %v1664_v24 = vadd.f32 %v2946_v23, %v1663_v11 }
 0x316   : > { %v1685_v7 = vadd.f32 %v1934_v8, %v1664_v24 }
 0x318   : > { %1701 = vst.msk [vmem:[%s2972_s22 + $0x68] sm:$0xff] %vm298_vm0, %v1685_v7 }
 0x319 PF: > { %s17_s24 = sadd.s32 1, %s1941_s24  }
 0x31a   : > { %p14_p4 = scmp.ge.s32.totalorder %s17_s24, 6  }
 0x31c   :  { %16 = sbr.rel (!%p14_p4) target bundleno = 1 (0x1), region = 78 }

// kernel: transformer_forward.17
= control target key start
LH: loop header
LB: loop body
LE: loop exit
PB: predicated region body
PF: predicated region fallthrough
CT: control target
= control target key end

     0   :  { %s2134_s15 = smov 0   ;;  %s2789_s0 = inlined_call_operand.vmem [shape: f32[32,16,32], index: 0, kind: input, shape index: {}]   ;;  %s2790_s1 = inlined_call_operand.vmem [shape: f32[32,16,32], index: 1, kind: input, shape index: {}]   ;;  %s2791_s2 = inlined_call_operand.vmem [shape: f32[32,16,32], index: 2, kind: input, shape index: {}]   ;;  %s2792_s3 = inlined_call_operand.vmem [shape: f32[16,16], index: 3, kind: input, shape index: {}]   ;;  %s2793_s4 = inlined_call_operand.vmem [shape: f32[32,16,32], index: 4, kind: output, shape index: {}]  }
   0x1 LB: > { %s1846_s16 = sadd.s32 4294967295, %s2107_s15   ;;  %p1850_p0 = scmp.ge.s32.totalorder %s2107_s15, 1  ;;  %s2107_s15 = sphi %s2134_s15, %s14_s15  }
   0x2   : > { %p188_p1 = scmp.lt.s32.totalorder %s2107_s15, 3 }
   0x4   : > { %p189_p2 = pnand %p1850_p0, %p188_p1 }
   0x5   : > { %s1851_s17 = sshll.u32 (!%p189_p2), %s1846_s16, 4 }
   0x6   : > { %192 = sbr.rel (%p189_p2) target bundleno = 630 (0x276), region = 36  ;;  %p229_p3 = scmp.lt.s32.totalorder (!%p189_p2), %s1851_s17, 31 }
   0xb   : > { %s2795_s17 = smov (!%p229_p3, %s1851_s17), 31  ;;  %vm354_vm0 = vcmask 261120   ;;  %vm915_vm1 = vcmask 130048  }
   0xc   : > { %s2142_s18 = sshll.u32 %s2795_s17, 4 }
   0xd   : > { %s2148_s21 = scalar_lea.vmem %s2790_s1, %s2142_s18  ;;  %s2162_s24 = scalar_lea.vmem %s2789_s0, %s2142_s18 }
   0xe   : > { %v289_v0 = vld [vmem:[%s2148_s21 + $0x8] sm:$0xff]  ;;  %v295_v2 = vld [vmem:[%s2148_s21 + $0x38] sm:$0xff]  ;;  %v288_v3 = vld [vmem:[%s2148_s21] sm:$0xff]  ;;  %s2610_s5 = scalar_lea.vmem %s2791_s2, %s2142_s18  ;;  %s2720_s8 = scalar_lea.vmem %s2793_s4, %s2142_s18 }
   0xf   : > { %v293_v1 = vld [vmem:[%s2148_s21 + $0x28] sm:$0xff]  ;;  %1863 = vmatpush.xpose.msk.msra.mxu0 %vm354_vm0, %v289_v0  ;;  %1875 = vmatpush.xpose.msk.msra.mxu3 %vm354_vm0, %v295_v2  ;;  %v292_v4 = vld [vmem:[%s2148_s21 + $0x20] sm:$0xff]  ;;  %v291_v5 = vld [vmem:[%s2148_s21 + $0x18] sm:$0xff] }
  0x10   : > { %1871 = vmatpush.xpose.msk.msra.mxu2 %vm354_vm0, %v293_v1  ;;  %v294_v6 = vld [vmem:[%s2148_s21 + $0x30] sm:$0xff]  ;;  %1867 = vmatpush.xpose.msk.msra.mxu1 %vm354_vm0, %v291_v5  ;;  %v303_v7 = vld [vmem:[%s2148_s21 + $0x78] sm:$0xff]  ;;  %v297_v9 = vld [vmem:[%s2148_s21 + $0x48] sm:$0xff] }
  0x11   : > { %v290_v8 = vld [vmem:[%s2148_s21 + $0x10] sm:$0xff]  ;;  %v256_v10 = vld [vmem:[%s2162_s24] sm:$0xff]  ;;  %v299_v13 = vld [vmem:[%s2148_s21 + $0x58] sm:$0xff] }
  0x12   : > { %v260_v11 = vld [vmem:[%s2162_s24 + $0x20] sm:$0xff]  ;;  %v262_v12 = vld [vmem:[%s2162_s24 + $0x30] sm:$0xff]  ;;  %v301_v15 = vld [vmem:[%s2148_s21 + $0x68] sm:$0xff] }
  0x13   : > { %1864 = vmatpush.xpose.msk.msra.mxu0 %vm354_vm0, %v288_v3  ;;  %1876 = vmatpush.xpose.msk.msra.mxu3 %vm354_vm0, %v294_v6  ;;  %v258_v14 = vld [vmem:[%s2162_s24 + $0x10] sm:$0xff]  ;;  %v296_v17 = vld [vmem:[%s2148_s21 + $0x40] sm:$0xff]  ;;  %v305_v19 = vld [vmem:[%s2148_s21 + $0x88] sm:$0xff] }
  0x14   : > { %1872 = vmatpush.xpose.msk.msra.mxu2 %vm354_vm0, %v292_v4  ;;  %1868 = vmatpush.xpose.msk.msra.mxu1 %vm354_vm0, %v290_v8  ;;  %v302_v16 = vld [vmem:[%s2148_s21 + $0x70] sm:$0xff]  ;;  %v300_v20 = vld [vmem:[%s2148_s21 + $0x60] sm:$0xff]  ;;  %v307_v21 = vld [vmem:[%s2148_s21 + $0x98] sm:$0xff] }
  0x15   : > { %v298_v18 = vld [vmem:[%s2148_s21 + $0x50] sm:$0xff]  ;;  %v311_v22 = vld [vmem:[%s2148_s21 + $0xb8] sm:$0xff]  ;;  %v309_v23 = vld [vmem:[%s2148_s21 + $0xa8] sm:$0xff] }
  0x16   : > { %1865 = vmatmul.msk.f32.vlgmr.msra.gmra.mxu0 %vm354_vm0, %v256_v10  ;;  %1877 = vmatmul.msk.f32.vlgmr.msra.gmra.mxu3 %vm354_vm0, %v262_v12  ;;  %v261_v24 = vld [vmem:[%s2162_s24 + $0x28] sm:$0xff]  ;;  %v263_v26 = vld [vmem:[%s2162_s24 + $0x38] sm:$0xff]  ;;  %v304_v27 = vld [vmem:[%s2148_s21 + $0x80] sm:$0xff] }
  0x17   : > { %1879 = vmatpush.xpose.msk.msrb.mxu0 %vm354_vm0, %v297_v9  ;;  %1891 = vmatpush.xpose.msk.msrb.mxu3 %vm354_vm0, %v303_v7  ;;  %v257_v25 = vld [vmem:[%s2162_s24 + $0x8] sm:$0xff]  ;;  %v259_v28 = vld [vmem:[%s2162_s24 + $0x18] sm:$0xff]  ;;  %v310_v29 = vld [vmem:[%s2148_s21 + $0xb0] sm:$0xff] }
  0x18   : > { %1873 = vmatmul.msk.f32.vlgmr.msra.gmra.mxu2 %vm354_vm0, %v260_v11  ;;  %1883 = vmatpush.xpose.msk.msrb.mxu1 %vm354_vm0, %v299_v13  ;;  %v306_v30 = vld [vmem:[%s2148_s21 + $0x90] sm:$0xff]  ;;  %v308_v31 = vld [vmem:[%s2148_s21 + $0xa0] sm:$0xff]  ;;  %v313_v35 = vld [vmem:[%s2148_s21 + $0xc8] sm:$0xff] }
  0x19   : > { %1869 = vmatmul.msk.f32.vlgmr.msra.gmra.mxu1 %vm354_vm0, %v258_v14  ;;  %1887 = vmatpush.xpose.msk.msrb.mxu2 %vm354_vm0, %v301_v15  ;;  %v264_v32 = vld [vmem:[%s2162_s24 + $0x40] sm:$0xff]  ;;  %v270_v34 = vld [vmem:[%s2162_s24 + $0x70] sm:$0xff]  ;;  %v317_v37 = vld [vmem:[%s2148_s21 + $0xe8] sm:$0xff] }
  0x1a   : > { %v268_v33 = vld [vmem:[%s2162_s24 + $0x60] sm:$0xff]  ;;  %v266_v36 = vld [vmem:[%s2162_s24 + $0x50] sm:$0xff]  ;;  %v319_v38 = vld [vmem:[%s2148_s21 + $0xf8] sm:$0xff] }
  0x1b   : > { %1892 = vmatpush.xpose.msk.msrb.mxu3 %vm354_vm0, %v302_v16  ;;  %1880 = vmatpush.xpose.msk.msrb.mxu0 %vm354_vm0, %v296_v17  ;;  %v315_v39 = vld [vmem:[%s2148_s21 + $0xd8] sm:$0xff]  ;;  %v312_v40 = vld [vmem:[%s2148_s21 + $0xc0] sm:$0xff]  ;;  %v318_v42 = vld [vmem:[%s2148_s21 + $0xf0] sm:$0xff] }
  0x1c   : > { %1884 = vmatpush.xpose.msk.msrb.mxu1 %vm354_vm0, %v298_v18  ;;  %v316_v41 = vld [vmem:[%s2148_s21 + $0xe0] sm:$0xff]  ;;  %v314_v43 = vld [vmem:[%s2148_s21 + $0xd0] sm:$0xff]  ;;  %v269_v44 = vld [vmem:[%s2162_s24 + $0x68] sm:$0xff] }
  0x1d   : > { %1888 = vmatpush.xpose.msk.msrb.mxu2 %vm354_vm0, %v300_v20  ;;  %v265_v45 = vld [vmem:[%s2162_s24 + $0x48] sm:$0xff]  ;;  %v271_v46 = vld [vmem:[%s2162_s24 + $0x78] sm:$0xff]  ;;  %v276_v48 = vld [vmem:[%s2162_s24 + $0xa0] sm:$0xff] }
  0x1e   : > { %1866 = vmatmul.msk.f32.gmra.mxu0 %vm354_vm0, %v257_v25  ;;  %1878 = vmatmul.msk.f32.gmra.mxu3 %vm354_vm0, %v263_v26  ;;  %v267_v47 = vld [vmem:[%s2162_s24 + $0x58] sm:$0xff]  ;;  %v272_v49 = vld [vmem:[%s2162_s24 + $0x80] sm:$0xff]  ;;  %v278_v50 = vld [vmem:[%s2162_s24 + $0xb0] sm:$0xff] }
  0x1f   : > { %1895 = vmatpush.xpose.msk.msra.mxu0 %vm354_vm0, %v305_v19  ;;  %1907 = vmatpush.xpose.msk.msra.mxu3 %vm354_vm0, %v311_v22  ;;  %v274_v51 = vld [vmem:[%s2162_s24 + $0x90] sm:$0xff]  ;;  %v273_v52 = vld [vmem:[%s2162_s24 + $0x88] sm:$0xff]  ;;  %v279_v54 = vld [vmem:[%s2162_s24 + $0xb8] sm:$0xff] }
  0x20   : > { %1899 = vmatpush.xpose.msk.msra.mxu1 %vm354_vm0, %v307_v21  ;;  %1874 = vmatmul.msk.f32.gmra.mxu2 %vm354_vm0, %v261_v24  ;;  %v277_v53 = vld [vmem:[%s2162_s24 + $0xa8] sm:$0xff]  ;;  %v275_v55 = vld [vmem:[%s2162_s24 + $0x98] sm:$0xff]  ;;  %v280_v56 = vld [vmem:[%s2162_s24 + $0xc0] sm:$0xff] }
  0x21   : > { %1903 = vmatpush.xpose.msk.msra.mxu2 %vm354_vm0, %v309_v23  ;;  %1870 = vmatmul.msk.f32.gmra.mxu1 %vm354_vm0, %v259_v28  ;;  %v284_v57 = vld [vmem:[%s2162_s24 + $0xe0] sm:$0xff]  ;;  %v286_v58 = vld [vmem:[%s2162_s24 + $0xf0] sm:$0xff]  ;;  %v281_v60 = vld [vmem:[%s2162_s24 + $0xc8] sm:$0xff] }
  0x22   : > { %v282_v59 = vld [vmem:[%s2162_s24 + $0xd0] sm:$0xff]  ;;  %v285_v61 = vld [vmem:[%s2162_s24 + $0xe8] sm:$0xff]  ;;  %v287_v62 = vld [vmem:[%s2162_s24 + $0xf8] sm:$0xff] }
  0x23   : > { %1896 = vmatpush.xpose.msk.msra.mxu0 %vm354_vm0, %v304_v27  ;;  %1908 = vmatpush.xpose.msk.msra.mxu3 %vm354_vm0, %v310_v29  ;;  %v283_v63 = vld [vmem:[%s2162_s24 + $0xd8] sm:$0xff]  ;;  %v2287_v0 = vld [vmem:[%s2792_s3] sm:$0xff]  ;;  %v2307_v13 = vld [vmem:[%s2792_s3 + $0x8] sm:$0xff] }
  0x24   : > { %1900 = vmatpush.xpose.msk.msra.mxu1 %vm354_vm0, %v306_v30 }
  0x25   : > { %1904 = vmatpush.xpose.msk.msra.mxu2 %vm354_vm0, %v308_v31 }
  0x26   : > { %1881 = vmatmul.msk.f32.vlgmr.msrb.gmra.mxu0 %vm354_vm0, %v264_v32  ;;  %1893 = vmatmul.msk.f32.vlgmr.msrb.gmra.mxu3 %vm354_vm0, %v270_v34 }
  0x27   : > { %1911 = vmatpush.xpose.msk.msrb.mxu0 %vm354_vm0, %v313_v35  ;;  %1923 = vmatpush.xpose.msk.msrb.mxu3 %vm354_vm0, %v319_v38 }
  0x28   : > { %1889 = vmatmul.msk.f32.vlgmr.msrb.gmra.mxu2 %vm354_vm0, %v268_v33 }
  0x29   : > { %1885 = vmatmul.msk.f32.vlgmr.msrb.gmra.mxu1 %vm354_vm0, %v266_v36  ;;  %1919 = vmatpush.xpose.msk.msrb.mxu2 %vm354_vm0, %v317_v37 }
  0x2a   : > { %1915 = vmatpush.xpose.msk.msrb.mxu1 %vm354_vm0, %v315_v39 }
  0x2b   : > { %1912 = vmatpush.xpose.msk.msrb.mxu0 %vm354_vm0, %v312_v40  ;;  %1924 = vmatpush.xpose.msk.msrb.mxu3 %vm354_vm0, %v318_v42 }
  0x2d   : > { %1920 = vmatpush.xpose.msk.msrb.mxu2 %vm354_vm0, %v316_v41 }
  0x2e   : > { %1916 = vmatpush.xpose.msk.msrb.mxu1 %vm354_vm0, %v314_v43  ;;  %1882 = vmatmul.msk.f32.gmra.mxu0 %vm354_vm0, %v265_v45 }
  0x2f   : > { %1894 = vmatmul.msk.f32.gmra.mxu3 %vm354_vm0, %v271_v46 }
  0x30   : > { %1890 = vmatmul.msk.f32.gmra.mxu2 %vm354_vm0, %v269_v44 }
  0x31   : > { %1886 = vmatmul.msk.f32.gmra.mxu1 %vm354_vm0, %v267_v47 }
  0x36   : > { %1897 = vmatmul.msk.f32.vlgmr.msra.gmra.mxu0 %vm354_vm0, %v272_v49 }
  0x37   : > { %1909 = vmatmul.msk.f32.vlgmr.msra.gmra.mxu3 %vm354_vm0, %v278_v50 }
  0x38   : > { %1905 = vmatmul.msk.f32.vlgmr.msra.gmra.mxu2 %vm354_vm0, %v276_v48 }
  0x39   : > { %1901 = vmatmul.msk.f32.vlgmr.msra.gmra.mxu1 %vm354_vm0, %v274_v51 }
  0x3e   : > { %1898 = vmatmul.msk.f32.gmra.mxu0 %vm354_vm0, %v273_v52 }
  0x3f   : > { %1910 = vmatmul.msk.f32.gmra.mxu3 %vm354_vm0, %v279_v54 }
  0x40   : > { %1906 = vmatmul.msk.f32.gmra.mxu2 %vm354_vm0, %v277_v53 }
  0x41   : > { %1902 = vmatmul.msk.f32.gmra.mxu1 %vm354_vm0, %v275_v55 }
  0x46   : > { %1913 = vmatmul.msk.f32.vlgmr.msrb.gmra.mxu0 %vm354_vm0, %v280_v56 }
  0x47   : > { %1925 = vmatmul.msk.f32.vlgmr.msrb.gmra.mxu3 %vm354_vm0, %v286_v58 }
  0x48   : > { %1921 = vmatmul.msk.f32.vlgmr.msrb.gmra.mxu2 %vm354_vm0, %v284_v57 }
  0x49   : > { %1917 = vmatmul.msk.f32.vlgmr.msrb.gmra.mxu1 %vm354_vm0, %v282_v59 }
  0x4e   : > { %1914 = vmatmul.msk.f32.gmra.mxu0 %vm354_vm0, %v281_v60 }
  0x4f   : > { %1926 = vmatmul.msk.f32.gmra.mxu3 %vm354_vm0, %v287_v62 }
  0x50   : > { %1922 = vmatmul.msk.f32.gmra.mxu2 %vm354_vm0, %v285_v61 }
  0x51   : > { %1918 = vmatmul.msk.f32.gmra.mxu1 %vm354_vm0, %v283_v63 }
  0x93   : > { %v384_v1 = vpop.f32.mrf.mxu0 }
  0x94   : > { %v2290_v2 = vadd.f32 %v384_v1, %v2287_v0 }
  0x96   : > { %v419_v3 = vpop.f32.mrf.mxu1  ;;  %v916_v4 = vsel %vm915_vm1, %v2290_v2, -inf }
  0x97   : > { %917 = vmax.xlane.f32.xlu1 %v916_v4  ;;  %v2295_v5 = vadd.f32 %v419_v3, %v2287_v0 }
  0x99   : > { %v489_v8 = vpop.f32.mrf.mxu3  ;;  %v922_v11 = vsel %vm915_vm1, %v2295_v5, -inf }
  0x9a   : > { %v2310_v14 = vadd.f32 %v489_v8, %v2287_v0 }
  0x9b   : > { %v454_v6 = vpop.f32.mrf.mxu2  ;;  %v387_v9 = vpop.f32.mrf.mxu0 }
  0x9c   : > { %v2298_v7 = vadd.f32 %v454_v6, %v2287_v0  ;;  %v934_v20 = vsel %vm915_vm1, %v2310_v14, -inf  ;;  %v2325_v24 = vadd.f32 %v387_v9, %v2307_v13 }
  0x9e   : > { %v928_v10 = vsel %vm915_vm1, %v2298_v7, -inf  ;;  %v422_v12 = vpop.f32.mrf.mxu1  ;;  %v919_v30 = vsel %vm915_vm1, %v2325_v24, -inf }
  0x9f   : > { %929 = vmax.xlane.f32.xlu0 %v928_v10  ;;  %923 = vmax.xlane.f32.xlu1 %v922_v11  ;;  %v2313_v15 = vadd.f32 %v422_v12, %v2307_v13 }
  0xa1   : > { %v492_v18 = vpop.f32.mrf.mxu3  ;;  %v925_v21 = vsel %vm915_vm1, %v2313_v15, -inf }
  0xa2   : > { %v2328_v25 = vadd.f32 %v492_v18, %v2307_v13 }
  0xa3   : > { %v457_v16 = vpop.f32.mrf.mxu2  ;;  %v524_v22 = vpop.f32.mrf.mxu0 }
  0xa4   : > { %v2316_v17 = vadd.f32 %v457_v16, %v2307_v13  ;;  %v2331_v26 = vadd.f32 %v524_v22, %v2287_v0  ;;  %v937_v29 = vsel %vm915_vm1, %v2328_v25, -inf }
  0xa6   : > { %v931_v19 = vsel %vm915_vm1, %v2316_v17, -inf  ;;  %v559_v23 = vpop.f32.mrf.mxu1  ;;  %v940_v31 = vsel %vm915_vm1, %v2331_v26, -inf }
  0xa7   : > { %932 = vmax.xlane.f32.xlu2 %v931_v19  ;;  %935 = vmax.xlane.f32.xlu0 %v934_v20  ;;  %v2340_v34 = vadd.f32 %v559_v23, %v2287_v0 }
  0xa8   : > { %926 = vmax.xlane.f32.xlu1 %v925_v21 }
  0xa9   : > { %v629_v28 = vpop.f32.mrf.mxu3  ;;  %v946_v39 = vsel %vm915_vm1, %v2340_v34, -inf }
  0xaa   : > { %v2343_v35 = vadd.f32 %v629_v28, %v2287_v0 }
  0xab   : > { %v594_v27 = vpop.f32.mrf.mxu2  ;;  %v527_v33 = vpop.f32.mrf.mxu0 }
  0xac   : > { %v958_v40 = vsel %vm915_vm1, %v2343_v35, -inf  ;;  %v2358_v44 = vadd.f32 %v594_v27, %v2287_v0  ;;  %v2370_v51 = vadd.f32 %v527_v33, %v2307_v13 }
  0xae   : > { %v562_v32 = vpop.f32.mrf.mxu1  ;;  %v952_v47 = vsel %vm915_vm1, %v2358_v44, -inf  ;;  %v943_v56 = vsel %vm915_vm1, %v2370_v51, -inf }
  0xaf   : > { %938 = vmax.xlane.f32.xlu2 %v937_v29  ;;  %920 = vmax.xlane.f32.xlu0 %v919_v30  ;;  %v2355_v43 = vadd.f32 %v562_v32, %v2307_v13 }
  0xb0   : > { %941 = vmax.xlane.f32.xlu1 %v940_v31 }
  0xb1   : > { %v949_v48 = vsel %vm915_vm1, %v2355_v43, -inf }
  0xb2   : > { %v632_v36 = vpop.f32.mrf.mxu3 }
  0xb3   : > { %v2346_v37 = vadd.f32 %v632_v36, %v2307_v13  ;;  %v597_v38 = vpop.f32.mrf.mxu2  ;;  %v664_v46 = vpop.f32.mrf.mxu0 }
  0xb4   : > { %v2373_v52 = vadd.f32 %v597_v38, %v2307_v13  ;;  %v2388_v60 = vadd.f32 %v664_v46, %v2287_v0 }
  0xb5   : > { %v961_v41 = vsel %vm915_vm1, %v2346_v37, -inf }
  0xb6   : > { %v699_v42 = vpop.f32.mrf.mxu1  ;;  %v955_v57 = vsel %vm915_vm1, %v2373_v52, -inf  ;;  %v964_v4 = vsel %vm915_vm1, %v2388_v60, -inf }
  0xb7   : > { %947 = vmax.xlane.f32.xlu2 %v946_v39  ;;  %959 = vmax.xlane.f32.xlu0 %v958_v40  ;;  %v2361_v45 = vadd.f32 %v699_v42, %v2287_v0 }
  0xb8   : > { %962 = vmax.xlane.f32.xlu1 %v961_v41 }
  0xb9   : > { %v970_v49 = vsel %vm915_vm1, %v2361_v45, -inf }
  0xba   : > { %v769_v54 = vpop.f32.mrf.mxu3 }
  0xbb   : > { %v734_v50 = vpop.f32.mrf.mxu2  ;;  %v667_v55 = vpop.f32.mrf.mxu0  ;;  %v2385_v59 = vadd.f32 %v769_v54, %v2287_v0 }
  0xbc   : > { %v2376_v53 = vadd.f32 %v734_v50, %v2287_v0  ;;  %v2391_v61 = vadd.f32 %v667_v55, %v2307_v13 }
  0xbd   : > { %v982_v63 = vsel %vm915_vm1, %v2385_v59, -inf }
  0xbe   : > { %v976_v58 = vsel %vm915_vm1, %v2376_v53, -inf  ;;  %v702_v1 = vpop.f32.mrf.mxu1  ;;  %v967_v6 = vsel %vm915_vm1, %v2391_v61, -inf }
  0xbf   : > { %953 = vmax.xlane.f32.xlu2 %v952_v47  ;;  %950 = vmax.xlane.f32.xlu0 %v949_v48  ;;  %v2400_v9 = vadd.f32 %v702_v1, %v2307_v13 }
  0xc0   : > { %971 = vmax.xlane.f32.xlu1 %v970_v49 }
  0xc1   : > { %v973_v12 = vsel %vm915_vm1, %v2400_v9, -inf }
  0xc2   : > { %v772_v3 = vpop.f32.mrf.mxu3 }
  0xc3   : > { %v737_v62 = vpop.f32.mrf.mxu2  ;;  %v804_v8 = vpop.f32.mrf.mxu0  ;;  %v2403_v10 = vadd.f32 %v772_v3, %v2307_v13 }
  0xc4   : > { %v2406_v11 = vadd.f32 %v804_v8, %v2287_v0  ;;  %v2418_v23 = vadd.f32 %v737_v62, %v2307_v13 }
  0xc5   : > { %v985_v16 = vsel %vm915_vm1, %v2403_v10, -inf }
  0xc6   : > { %v839_v19 = vpop.f32.mrf.mxu1  ;;  %v988_v20 = vsel %vm915_vm1, %v2406_v11, -inf  ;;  %v979_v30 = vsel %vm915_vm1, %v2418_v23, -inf }
  0xc7   : > { %944 = vmax.xlane.f32.xlu2 %v943_v56  ;;  %956 = vmax.xlane.f32.xlu0 %v955_v57  ;;  %v2433_v36 = vadd.f32 %v839_v19, %v2287_v0 }
  0xc8   : > { %977 = vmax.xlane.f32.xlu1 %v976_v58 }
  0xc9   : > { %v994_v41 = vsel %vm915_vm1, %v2433_v36, -inf }
  0xca   : > { %v909_v21 = vpop.f32.mrf.mxu3 }
  0xcb   : > { %v874_v18 = vpop.f32.mrf.mxu2  ;;  %v2421_v27 = vadd.f32 %v909_v21, %v2287_v0  ;;  %v807_v29 = vpop.f32.mrf.mxu0 }
  0xcc   : > { %v2415_v22 = vadd.f32 %v874_v18, %v2287_v0  ;;  %v2430_v33 = vadd.f32 %v807_v29, %v2307_v13 }
  0xcd   : > { %v1006_v31 = vsel %vm915_vm1, %v2421_v27, -inf }
  0xce   : > { %v1000_v28 = vsel %vm915_vm1, %v2415_v22, -inf  ;;  %v842_v32 = vpop.f32.mrf.mxu1  ;;  %v991_v39 = vsel %vm915_vm1, %v2430_v33, -inf }
  0xcf   : > { %983 = vmax.xlane.f32.xlu2 %v982_v63  ;;  %965 = vmax.xlane.f32.xlu0 %v964_v4  ;;  %v2436_v38 = vadd.f32 %v842_v32, %v2307_v13 }
  0xd0   : > { %968 = vmax.xlane.f32.xlu1 %v967_v6 }
  0xd1   : > { %v997_v42 = vsel %vm915_vm1, %v2436_v38, -inf }
  0xd2   : > { %v912_v46 = vpop.f32.mrf.mxu3 }
  0xd3   : > { %v877_v40 = vpop.f32.mrf.mxu2  ;;  %v2448_v0 = vadd.f32 %v912_v46, %v2307_v13 }
  0xd4   : > { %v2445_v47 = vadd.f32 %v877_v40, %v2307_v13 }
  0xd5   : > { %v1009_v49 = vsel %vm915_vm1, %v2448_v0, -inf }
  0xd6   : > { %v1003_v48 = vsel %vm915_vm1, %v2445_v47, -inf }
  0xd7   : > { %974 = vmax.xlane.f32.xlu2 %v973_v12  ;;  %986 = vmax.xlane.f32.xlu0 %v985_v16 }
  0xd8   : > { %989 = vmax.xlane.f32.xlu1 %v988_v20 }
  0xdf   : > { %980 = vmax.xlane.f32.xlu2 %v979_v30  ;;  %1001 = vmax.xlane.f32.xlu0 %v1000_v28 }
  0xe0   : > { %1007 = vmax.xlane.f32.xlu1 %v1006_v31 }
  0xe7   : > { %995 = vmax.xlane.f32.xlu2 %v994_v41  ;;  %992 = vmax.xlane.f32.xlu0 %v991_v39 }
  0xe8   : > { %998 = vmax.xlane.f32.xlu1 %v997_v42 }
  0xef   : > { %1004 = vmax.xlane.f32.xlu0 %v1003_v48 }
  0xf0   : > { %1010 = vmax.xlane.f32.xlu1 %v1009_v49 }
 0x10a   : > { %v918_v50 = vpop.xlane.xlu1 %917 }
 0x10b   : > { %v1012_v54 = vsub.f32 %v2290_v2, %v918_v50 }
 0x10d   : > { %v1044_v55 = vmul.f32 1.442695, %v1012_v54 }
 0x10f   : > { %1973 = vpow2.f32 %v1044_v55 }
 0x112   : > { %v930_v56 = vpop.xlane.xlu0 %929  ;;  %v924_v58 = vpop.xlane.xlu1 %923 }
 0x113   : > { %v1016_v57 = vsub.f32 %v2298_v7, %v930_v56  ;;  %v1014_v13 = vsub.f32 %v2295_v5, %v924_v58 }
 0x115   : > { %v1052_v62 = vmul.f32 1.442695, %v1016_v57  ;;  %v2457_v63 = vpop.eup %1973  ;;  %v1048_v1 = vmul.f32 1.442695, %v1014_v13 }
 0x116   : > { %v1108_v3 = vsel %vm915_vm1, %v2457_v63, 0.0 }
 0x117   : > { %1975 = vpow2.f32 %v1052_v62  ;;  %1109 = vadd.xlane.f32.xlu2 %v1108_v3 }
 0x118   : > { %1977 = vpow2.f32 %v1048_v1 }
 0x11a   : > { %v933_v4 = vpop.xlane.xlu2 %932  ;;  %v936_v2 = vpop.xlane.xlu0 %935 }
 0x11b   : > { %v1017_v6 = vsub.f32 %v2316_v17, %v933_v4  ;;  %v1018_v8 = vsub.f32 %v2310_v14, %v936_v2  ;;  %v927_v7 = vpop.xlane.xlu1 %926 }
 0x11c   : > { %v1015_v19 = vsub.f32 %v2313_v15, %v927_v7 }
 0x11d   : > { %v2463_v12 = vpop.eup %1975  ;;  %v1054_v16 = vmul.f32 1.442695, %v1017_v6  ;;  %v1056_v5 = vmul.f32 1.442695, %v1018_v8 }
 0x11e   : > { %v2465_v18 = vpop.eup %1977  ;;  %v1120_v20 = vsel %vm915_vm1, %v2463_v12, 0.0  ;;  %v1050_v28 = vmul.f32 1.442695, %v1015_v19 }
 0x11f   : > { %1979 = vpow2.f32 %v1054_v16  ;;  %v1114_v21 = vsel %vm915_vm1, %v2465_v18, 0.0  ;;  %1121 = vadd.xlane.f32.xlu2 %v1120_v20 }
 0x120   : > { %1981 = vpow2.f32 %v1056_v5  ;;  %1115 = vadd.xlane.f32.xlu0 %v1114_v21 }
 0x121   : > { %1983 = vpow2.f32 %v1050_v28 }
 0x122   : > { %v939_v14 = vpop.xlane.xlu2 %938  ;;  %v921_v17 = vpop.xlane.xlu0 %920 }
 0x123   : > { %v1013_v29 = vsub.f32 %v2325_v24, %v921_v17  ;;  %v942_v30 = vpop.xlane.xlu1 %941  ;;  %v1019_v32 = vsub.f32 %v2328_v25, %v939_v14 }
 0x124   : > { %v1020_v40 = vsub.f32 %v2331_v26, %v942_v30 }
 0x125   : > { %v2473_v31 = vpop.eup %1979  ;;  %v1046_v15 = vmul.f32 1.442695, %v1013_v29  ;;  %v1058_v24 = vmul.f32 1.442695, %v1019_v32 }
 0x126   : > { %v2476_v39 = vpop.eup %1981  ;;  %v1123_v41 = vsel %vm915_vm1, %v2473_v31, 0.0  ;;  %v1060_v46 = vmul.f32 1.442695, %v1020_v40 }
 0x127   : > { %1124 = vadd.xlane.f32.xlu1 %v1123_v41  ;;  %1985 = vpow2.f32 %v1046_v15  ;;  %v1126_v42 = vsel %vm915_vm1, %v2476_v39, 0.0  ;;  %v2484_v54 = vpop.eup %1983 }
 0x128   : > { %1127 = vadd.xlane.f32.xlu0 %v1126_v42  ;;  %1987 = vpow2.f32 %v1058_v24 }
 0x129   : > { %1989 = vpow2.f32 %v1060_v46 }
 0x12a   : > { %v948_v48 = vpop.xlane.xlu2 %947  ;;  %v960_v49 = vpop.xlane.xlu0 %959 }
 0x12b   : > { %v1022_v25 = vsub.f32 %v2340_v34, %v948_v48  ;;  %v963_v50 = vpop.xlane.xlu1 %962  ;;  %v1026_v55 = vsub.f32 %v2343_v35, %v960_v49  ;;  %v1117_v34 = vsel %vm915_vm1, %v2484_v54, 0.0 }
 0x12c   : > { %v1027_v57 = vsub.f32 %v2346_v37, %v963_v50 }
 0x12d   : > { %v1064_v26 = vmul.f32 1.442695, %v1022_v25  ;;  %v2487_v56 = vpop.eup %1985  ;;  %v1072_v62 = vmul.f32 1.442695, %v1026_v55 }
 0x12e   : > { %v1111_v58 = vsel %vm915_vm1, %v2487_v56, 0.0  ;;  %v1074_v13 = vmul.f32 1.442695, %v1027_v57  ;;  %v2494_v4 = vpop.eup %1987 }
 0x12f   : > { %1991 = vpow2.f32 %v1064_v26  ;;  %1112 = vadd.xlane.f32.xlu2 %v1111_v58  ;;  %v2497_v2 = vpop.eup %1989 }
 0x130   : > { %1118 = vadd.xlane.f32.xlu0 %v1117_v34  ;;  %1993 = vpow2.f32 %v1072_v62  ;;  %v1132_v19 = vsel %vm915_vm1, %v2497_v2, 0.0 }
 0x131   : > { %1995 = vpow2.f32 %v1074_v13 }
 0x132   : > { %v954_v1 = vpop.xlane.xlu2 %953  ;;  %v951_v3 = vpop.xlane.xlu0 %950 }
 0x133   : > { %v1024_v35 = vsub.f32 %v2358_v44, %v954_v1  ;;  %v972_v37 = vpop.xlane.xlu1 %971  ;;  %v1023_v7 = vsub.f32 %v2355_v43, %v951_v3  ;;  %v1129_v44 = vsel %vm915_vm1, %v2494_v4, 0.0 }
 0x134   : > { %v1030_v16 = vsub.f32 %v2361_v45, %v972_v37 }
 0x135   : > { %v2499_v6 = vpop.eup %1991  ;;  %v1068_v8 = vmul.f32 1.442695, %v1024_v35  ;;  %v1066_v20 = vmul.f32 1.442695, %v1023_v7 }
 0x136   : > { %v1138_v5 = vsel %vm915_vm1, %v2499_v6, 0.0  ;;  %v1080_v21 = vmul.f32 1.442695, %v1030_v16  ;;  %v2509_v17 = vpop.eup %1993 }
 0x137   : > { %1997 = vpow2.f32 %v1068_v8  ;;  %1139 = vadd.xlane.f32.xlu1 %v1138_v5  ;;  %1130 = vadd.xlane.f32.xlu2 %v1129_v44  ;;  %v2512_v28 = vpop.eup %1995 }
 0x138   : > { %1133 = vadd.xlane.f32.xlu0 %v1132_v19  ;;  %1999 = vpow2.f32 %v1066_v20  ;;  %v1153_v42 = vsel %vm915_vm1, %v2512_v28, 0.0 }
 0x139   : > { %2001 = vpow2.f32 %v1080_v21 }
 0x13a   : > { %v945_v14 = vpop.xlane.xlu2 %944  ;;  %v957_v43 = vpop.xlane.xlu0 %956 }
 0x13b   : > { %v1021_v45 = vsub.f32 %v2370_v51, %v945_v14  ;;  %v978_v29 = vpop.xlane.xlu1 %977  ;;  %v1025_v15 = vsub.f32 %v2373_v52, %v957_v43  ;;  %v1150_v51 = vsel %vm915_vm1, %v2509_v17, 0.0 }
 0x13c   : > { %v1032_v40 = vsub.f32 %v2376_v53, %v978_v29 }
 0x13d   : > { %v2514_v30 = vpop.eup %1997  ;;  %v1062_v32 = vmul.f32 1.442695, %v1021_v45  ;;  %v1070_v24 = vmul.f32 1.442695, %v1025_v15 }
 0x13e   : > { %v1144_v41 = vsel %vm915_vm1, %v2514_v30, 0.0  ;;  %v1084_v46 = vmul.f32 1.442695, %v1032_v40  ;;  %v2524_v49 = vpop.eup %1999 }
 0x13f   : > { %2003 = vpow2.f32 %v1062_v32  ;;  %1145 = vadd.xlane.f32.xlu1 %v1144_v41  ;;  %1151 = vadd.xlane.f32.xlu2 %v1150_v51  ;;  %v2527_v25 = vpop.eup %2001 }
 0x140   : > { %1154 = vadd.xlane.f32.xlu0 %v1153_v42  ;;  %2005 = vpow2.f32 %v1070_v24  ;;  %v1162_v62 = vsel %vm915_vm1, %v2527_v25, 0.0 }
 0x141   : > { %2007 = vpow2.f32 %v1084_v46 }
 0x142   : > { %v984_v48 = vpop.xlane.xlu2 %983  ;;  %v966_v52 = vpop.xlane.xlu0 %965 }
 0x143   : > { %v1034_v53 = vsub.f32 %v2385_v59, %v984_v48  ;;  %v969_v50 = vpop.xlane.xlu1 %968  ;;  %v1028_v57 = vsub.f32 %v2388_v60, %v966_v52  ;;  %v1141_v59 = vsel %vm915_vm1, %v2524_v49, 0.0 }
 0x144   : > { %v1029_v58 = vsub.f32 %v2391_v61, %v969_v50 }
 0x145   : > { %v2529_v26 = vpop.eup %2003  ;;  %v1088_v55 = vmul.f32 1.442695, %v1034_v53  ;;  %v1076_v13 = vmul.f32 1.442695, %v1028_v57 }
 0x146   : > { %v1135_v34 = vsel %vm915_vm1, %v2529_v26, 0.0  ;;  %v1078_v1 = vmul.f32 1.442695, %v1029_v58  ;;  %v2539_v35 = vpop.eup %2005 }
 0x147   : > { %2009 = vpow2.f32 %v1088_v55  ;;  %1136 = vadd.xlane.f32.xlu1 %v1135_v34  ;;  %1142 = vadd.xlane.f32.xlu2 %v1141_v59  ;;  %v2542_v37 = vpop.eup %2007  ;;  %v1147_v19 = vsel %vm915_vm1, %v2539_v35, 0.0 }
 0x148   : > { %1163 = vadd.xlane.f32.xlu0 %v1162_v62  ;;  %2011 = vpow2.f32 %v1076_v13 }
 0x149   : > { %2013 = vpow2.f32 %v1078_v1 }
 0x14a   : > { %v975_v3 = vpop.xlane.xlu2 %974  ;;  %v987_v60 = vpop.xlane.xlu0 %986 }
 0x14b   : > { %v1031_v61 = vsub.f32 %v2400_v9, %v975_v3  ;;  %v990_v8 = vpop.xlane.xlu1 %989  ;;  %v1035_v5 = vsub.f32 %v2403_v10, %v987_v60  ;;  %v1168_v9 = vsel %vm915_vm1, %v2542_v37, 0.0 }
 0x14c   : > { %v1036_v15 = vsub.f32 %v2406_v11, %v990_v8 }
 0x14d   : > { %v2544_v7 = vpop.eup %2009  ;;  %v1082_v16 = vmul.f32 1.442695, %v1031_v61  ;;  %v1090_v20 = vmul.f32 1.442695, %v1035_v5 }
 0x14e   : > { %v1174_v44 = vsel %vm915_vm1, %v2544_v7, 0.0  ;;  %v2553_v43 = vpop.eup %2011  ;;  %v1092_v11 = vmul.f32 1.442695, %v1036_v15  ;;  %v321_v15 = vld [vmem:[%s2610_s5 + $0x8] sm:$0xff] }
 0x14f   : > { %2015 = vpow2.f32 %v1082_v16  ;;  %1175 = vadd.xlane.f32.xlu1 %v1174_v44  ;;  %1148 = vadd.xlane.f32.xlu2 %v1147_v19  ;;  %v2556_v45 = vpop.eup %2013 }
 0x150   : > { %1169 = vadd.xlane.f32.xlu0 %v1168_v9  ;;  %2017 = vpow2.f32 %v1090_v20  ;;  %v1159_v46 = vsel %vm915_vm1, %v2556_v45, 0.0  ;;  %1288 = vmatpush.msra.mxu0 %v321_v15 }
 0x152   : > { %v981_v21 = vpop.xlane.xlu2 %980  ;;  %v1002_v14 = vpop.xlane.xlu0 %1001 }
 0x153   : > { %v1033_v10 = vsub.f32 %v2418_v23, %v981_v21  ;;  %v1008_v29 = vpop.xlane.xlu1 %1007  ;;  %v1040_v51 = vsub.f32 %v2415_v22, %v1002_v14  ;;  %v1156_v23 = vsel %vm915_vm1, %v2553_v43, 0.0 }
 0x154   : > { %v1042_v41 = vsub.f32 %v2421_v27, %v1008_v29 }
 0x155   : > { %v2558_v32 = vpop.eup %2015  ;;  %v1086_v40 = vmul.f32 1.442695, %v1033_v10  ;;  %v1100_v27 = vmul.f32 1.442695, %v1040_v51 }
 0x156   : > { %v1165_v42 = vsel %vm915_vm1, %v2558_v32, 0.0  ;;  %v1104_v24 = vmul.f32 1.442695, %v1042_v41  ;;  %v2569_v22 = vpop.eup %2017  ;;  %v320_v41 = vld [vmem:[%s2610_s5] sm:$0xff] }
 0x157   : > { %2019 = vpow2.f32 %v1086_v40  ;;  %1166 = vadd.xlane.f32.xlu1 %v1165_v42  ;;  %1157 = vadd.xlane.f32.xlu2 %v1156_v23  ;;  %v1177_v34 = vsel %vm915_vm1, %v2569_v22, 0.0  ;;  %v325_v23 = vld [vmem:[%s2610_s5 + $0x28] sm:$0xff] }
 0x158   : > { %2021 = vpow2.f32 %v1104_v24  ;;  %1160 = vadd.xlane.f32.xlu0 %v1159_v46  ;;  %1289 = vmatpush.msra.mxu0 %v320_v41  ;;  %v323_v24 = vld [vmem:[%s2610_s5 + $0x18] sm:$0xff]  ;;  %v322_v46 = vld [vmem:[%s2610_s5 + $0x10] sm:$0xff] }
 0x159   : > { %2023 = vpow2.f32 %v1092_v11  ;;  %1317 = vmatpush.msra.mxu1 %v323_v24  ;;  %1346 = vmatpush.msra.mxu2 %v325_v23  ;;  %v324_v11 = vld [vmem:[%s2610_s5 + $0x20] sm:$0xff]  ;;  %v339_v41 = vld [vmem:[%s2610_s5 + $0x98] sm:$0xff] }
 0x15a   : > { %v993_v48 = vpop.xlane.xlu0 %992  ;;  %v996_v52 = vpop.xlane.xlu2 %995  ;;  %2025 = vpow2.f32 %v1100_v27  ;;  %v327_v27 = vld [vmem:[%s2610_s5 + $0x38] sm:$0xff] }
 0x15b   : > { %v999_v53 = vpop.xlane.xlu1 %998  ;;  %v1038_v55 = vsub.f32 %v2433_v36, %v996_v52  ;;  %v1037_v5 = vsub.f32 %v2430_v33, %v993_v48  ;;  %1318 = vmatpush.msra.mxu1 %v322_v46  ;;  %1347 = vmatpush.msra.mxu2 %v324_v11  ;;  %v326_v48 = vld [vmem:[%s2610_s5 + $0x30] sm:$0xff] }
 0x15c   : > { %v1039_v61 = vsub.f32 %v2436_v38, %v999_v53  ;;  %1375 = vmatpush.msra.mxu3 %v327_v27  ;;  %v338_v46 = vld [vmem:[%s2610_s5 + $0x90] sm:$0xff] }
 0x15d   : > { %v2571_v50 = vpop.eup %2019  ;;  %v1096_v62 = vmul.f32 1.442695, %v1038_v55  ;;  %v1094_v38 = vmul.f32 1.442695, %v1037_v5  ;;  %v329_v55 = vld [vmem:[%s2610_s5 + $0x48] sm:$0xff]  ;;  %v334_v5 = vld [vmem:[%s2610_s5 + $0x70] sm:$0xff] }
 0x15e   : > { %v1171_v57 = vsel %vm915_vm1, %v2571_v50, 0.0  ;;  %v2576_v58 = vpop.eup %2021  ;;  %1376 = vmatpush.msra.mxu3 %v326_v48  ;;  %1404 = vmatpush.msrb.mxu0 %v329_v55  ;;  %v341_v48 = vld [vmem:[%s2610_s5 + $0xa8] sm:$0xff] }
 0x15f   : > { %1172 = vadd.xlane.f32.xlu1 %v1171_v57  ;;  %1178 = vadd.xlane.f32.xlu2 %v1177_v34  ;;  %v1198_v59 = vsel %vm915_vm1, %v2576_v58, 0.0  ;;  %v2582_v1 = vpop.eup %2023  ;;  %2027 = vpow2.f32 %v1096_v62  ;;  %v331_v57 = vld [vmem:[%s2610_s5 + $0x58] sm:$0xff] }
 0x160   : > { %1199 = vadd.xlane.f32.xlu0 %v1198_v59  ;;  %v2585_v3 = vpop.eup %2025  ;;  %v1180_v44 = vsel %vm915_vm1, %v2582_v1, 0.0  ;;  %1433 = vmatpush.msrb.mxu1 %v331_v57 }
 0x161   : > { %v1192_v9 = vsel %vm915_vm1, %v2585_v3, 0.0 }
 0x162   : > { %v1005_v13 = vpop.xlane.xlu0 %1004 }
 0x163   : > { %v1041_v36 = vsub.f32 %v2445_v47, %v1005_v13  ;;  %v1011_v60 = vpop.xlane.xlu1 %1010  ;;  %v1098_v47 = vmul.f32 1.442695, %v1039_v61  ;;  %v328_v13 = vld [vmem:[%s2610_s5 + $0x40] sm:$0xff]  ;;  %v335_v61 = vld [vmem:[%s2610_s5 + $0x78] sm:$0xff] }
 0x164   : > { %v1043_v16 = vsub.f32 %v2448_v0, %v1011_v60  ;;  %1405 = vmatpush.msrb.mxu0 %v328_v13  ;;  %v333_v60 = vld [vmem:[%s2610_s5 + $0x68] sm:$0xff]  ;;  %1491 = vmatpush.msrb.mxu3 %v335_v61 }
 0x165   : > { %v1102_v8 = vmul.f32 1.442695, %v1041_v36  ;;  %v2594_v20 = vpop.eup %2027  ;;  %v330_v36 = vld [vmem:[%s2610_s5 + $0x50] sm:$0xff]  ;;  %1462 = vmatpush.msrb.mxu2 %v333_v60  ;;  %v336_v60 = vld [vmem:[%s2610_s5 + $0x80] sm:$0xff] }
 0x166   : > { %v1106_v19 = vmul.f32 1.442695, %v1043_v16  ;;  %v1186_v14 = vsel %vm915_vm1, %v2594_v20, 0.0  ;;  %1434 = vmatpush.msrb.mxu1 %v330_v36  ;;  %v332_v16 = vld [vmem:[%s2610_s5 + $0x60] sm:$0xff]  ;;  %1492 = vmatpush.msrb.mxu3 %v334_v5  ;;  %v349_v5 = vld [vmem:[%s2610_s5 + $0xe8] sm:$0xff] }
 0x167   : > { %2029 = vpow2.f32 %v1102_v8  ;;  %1181 = vadd.xlane.f32.xlu1 %v1180_v44  ;;  %1193 = vadd.xlane.f32.xlu2 %v1192_v9 }
 0x168   : > { %2031 = vpow2.f32 %v1106_v19  ;;  %1463 = vmatpush.msrb.mxu2 %v332_v16 }
 0x169   : > { %2033 = vpow2.f32 %v1098_v47 }
 0x16a   : > { %2035 = vpow2.f32 %v1094_v38 }
 0x16d   : > { %v2596_v0 = vpop.eup %2029 }
 0x16e   : > { %v1195_v33 = vsel %vm915_vm1, %v2596_v0, 0.0  ;;  %v2600_v21 = vpop.eup %2031 }
 0x16f   : > { %1196 = vadd.xlane.f32.xlu0 %v1195_v33  ;;  %1187 = vadd.xlane.f32.xlu2 %v1186_v14  ;;  %v1201_v10 = vsel %vm915_vm1, %v2600_v21, 0.0  ;;  %v2612_v29 = vpop.eup %2033 }
 0x170   : > { %1202 = vadd.xlane.f32.xlu1 %v1201_v10  ;;  %v2615_v40 = vpop.eup %2035  ;;  %v1189_v51 = vsel %vm915_vm1, %v2612_v29, 0.0 }
 0x171   : > { %v1183_v42 = vsel %vm915_vm1, %v2615_v40, 0.0 }
 0x177   : > { %1190 = vadd.xlane.f32.xlu0 %v1189_v51  ;;  %1184 = vadd.xlane.f32.xlu2 %v1183_v42 }
 0x18a   : > { %v1110_v52 = vpop.xlane.xlu2 %1109 }
 0x18b   : > { %2037 = vrcp.f32 %v1110_v52 }
 0x191   : > { %v2038_v53 = vpop.eup %2037 }
 0x192   : > { %v1236_v34 = vmul.f32 %v2038_v53, %v2457_v63  ;;  %v1122_v59 = vpop.xlane.xlu2 %1121  ;;  %v337_v53 = vld [vmem:[%s2610_s5 + $0x88] sm:$0xff] }
 0x193   : > { %v1116_v62 = vpop.xlane.xlu0 %1115  ;;  %2039 = vrcp.f32 %v1122_v59  ;;  %v340_v59 = vld [vmem:[%s2610_s5 + $0xa0] sm:$0xff] }
 0x194   : > { %2041 = vrcp.f32 %v1116_v62  ;;  %1927 = vmatmul.msk.f32.vlgmr.msra.gmra.mxu0 %vm915_vm1, %v1236_v34 }
 0x195   : > { %1520 = vmatpush.msra.mxu0 %v337_v53 }
 0x197   : > { %1521 = vmatpush.msra.mxu0 %v336_v60 }
 0x199   : > { %v2040_v63 = vpop.eup %2039 }
 0x19a   : > { %v1125_v8 = vpop.xlane.xlu1 %1124  ;;  %v2042_v44 = vpop.eup %2041  ;;  %v1240_v19 = vmul.f32 %v2040_v63, %v2463_v12 }
 0x19b   : > { %2043 = vrcp.f32 %v1125_v8  ;;  %v1128_v9 = vpop.xlane.xlu0 %1127  ;;  %v1238_v47 = vmul.f32 %v2042_v44, %v2465_v18  ;;  %v343_v18 = vld [vmem:[%s2610_s5 + $0xb8] sm:$0xff] }
 0x19c   : > { %2045 = vrcp.f32 %v1128_v9  ;;  %1931 = vmatmul.msk.f32.vlgmr.msra.gmra.mxu2 %vm915_vm1, %v1240_v19  ;;  %v351_v44 = vld [vmem:[%s2610_s5 + $0xf8] sm:$0xff] }
 0x19d   : > { %1929 = vmatmul.msk.f32.vlgmr.msra.gmra.mxu1 %vm915_vm1, %v1238_v47  ;;  %1578 = vmatpush.msra.mxu2 %v341_v48 }
 0x19e   : > { %1549 = vmatpush.msra.mxu1 %v339_v41 }
 0x19f   : > { %1579 = vmatpush.msra.mxu2 %v340_v59 }
 0x1a0   : > { %1550 = vmatpush.msra.mxu1 %v338_v46 }
 0x1a1   : > { %v2044_v38 = vpop.eup %2043 }
 0x1a2   : > { %v2046_v33 = vpop.eup %2045  ;;  %v1113_v14 = vpop.xlane.xlu2 %1112  ;;  %v1241_v15 = vmul.f32 %v2044_v38, %v2473_v31  ;;  %v342_v31 = vld [vmem:[%s2610_s5 + $0xb0] sm:$0xff]  ;;  %v345_v38 = vld [vmem:[%s2610_s5 + $0xc8] sm:$0xff] }
 0x1a3   : > { %v1242_v10 = vmul.f32 %v2046_v33, %v2476_v39  ;;  %2047 = vrcp.f32 %v1113_v14  ;;  %v1119_v12 = vpop.xlane.xlu0 %1118 }
 0x1a4   : > { %2049 = vrcp.f32 %v1119_v12  ;;  %1932 = vmatmul.msk.f32.gmra.mxu2 %vm915_vm1, %v1241_v15  ;;  %v347_v12 = vld [vmem:[%s2610_s5 + $0xd8] sm:$0xff]  ;;  %v348_v15 = vld [vmem:[%s2610_s5 + $0xe0] sm:$0xff] }
 0x1a5   : > { %1933 = vmatmul.msk.f32.vlgmr.msra.gmra.mxu3 %vm915_vm1, %v1242_v10 }
 0x1a6   : > { %1607 = vmatpush.msra.mxu3 %v343_v18  ;;  %v350_v18 = vld [vmem:[%s2610_s5 + $0xf0] sm:$0xff] }
 0x1a8   : > { %1608 = vmatpush.msra.mxu3 %v342_v31  ;;  %v346_v31 = vld [vmem:[%s2610_s5 + $0xd0] sm:$0xff] }
 0x1a9   : > { %v2048_v51 = vpop.eup %2047 }
 0x1aa   : > { %v1140_v42 = vpop.xlane.xlu1 %1139  ;;  %v2050_v24 = vpop.eup %2049  ;;  %v1237_v23 = vmul.f32 %v2048_v51, %v2487_v56  ;;  %v344_v51 = vld [vmem:[%s2610_s5 + $0xc0] sm:$0xff] }
 0x1ab   : > { %v1131_v39 = vpop.xlane.xlu2 %1130  ;;  %2051 = vrcp.f32 %v1140_v42  ;;  %v1134_v11 = vpop.xlane.xlu0 %1133  ;;  %v1239_v27 = vmul.f32 %v2050_v24, %v2484_v54 }
 0x1ac   : > { %2053 = vrcp.f32 %v1131_v39  ;;  %1928 = vmatmul.msk.f32.gmra.mxu0 %vm915_vm1, %v1237_v23 }
 0x1ad   : > { %2055 = vrcp.f32 %v1134_v11  ;;  %1930 = vmatmul.msk.f32.gmra.mxu1 %vm915_vm1, %v1239_v27 }
 0x1b1   : > { %v2052_v52 = vpop.eup %2051 }
 0x1b2   : > { %v2054_v56 = vpop.eup %2053  ;;  %v1146_v55 = vpop.xlane.xlu1 %1145  ;;  %v1246_v62 = vmul.f32 %v2052_v52, %v2499_v6 }
 0x1b3   : > { %v2056_v57 = vpop.eup %2055  ;;  %v1152_v34 = vpop.xlane.xlu2 %1151  ;;  %2057 = vrcp.f32 %v1146_v55  ;;  %v1243_v54 = vmul.f32 %v2054_v56, %v2494_v4 }
 0x1b4   : > { %v1244_v13 = vmul.f32 %v2056_v57, %v2497_v2  ;;  %2059 = vrcp.f32 %v1152_v34  ;;  %v1155_v36 = vpop.xlane.xlu0 %1154 }
 0x1b5   : > { %1934 = vmatmul.msk.f32.gmra.mxu3 %vm915_vm1, %v1243_v54  ;;  %1937 = vmatmul.msk.f32.vlgmr.msrb.gmra.mxu1 %vm915_vm1, %v1246_v62  ;;  %2061 = vrcp.f32 %v1155_v36 }
 0x1b6   : > { %1935 = vmatmul.msk.f32.vlgmr.msrb.gmra.mxu0 %vm915_vm1, %v1244_v13  ;;  %1665 = vmatpush.msrb.mxu1 %v347_v12 }
 0x1b7   : > { %1636 = vmatpush.msrb.mxu0 %v345_v38 }
 0x1b8   : > { %1666 = vmatpush.msrb.mxu1 %v346_v31 }
 0x1b9   : > { %v2058_v61 = vpop.eup %2057  ;;  %1637 = vmatpush.msrb.mxu0 %v344_v51 }
 0x1ba   : > { %v2060_v4 = vpop.eup %2059  ;;  %v1248_v8 = vmul.f32 %v2058_v61, %v2514_v30  ;;  %v1137_v6 = vpop.xlane.xlu1 %1136 }
 0x1bb   : > { %v1250_v2 = vmul.f32 %v2060_v4, %v2509_v17  ;;  %v1143_v63 = vpop.xlane.xlu2 %1142  ;;  %2063 = vrcp.f32 %v1137_v6  ;;  %v2062_v30 = vpop.eup %2061 }
 0x1bc   : > { %2065 = vrcp.f32 %v1143_v63  ;;  %v1164_v16 = vpop.xlane.xlu0 %1163  ;;  %1939 = vmatmul.msk.f32.vlgmr.msrb.gmra.mxu2 %vm915_vm1, %v1248_v8  ;;  %v1251_v14 = vmul.f32 %v2062_v30, %v2512_v28 }
 0x1bd   : > { %1941 = vmatmul.msk.f32.vlgmr.msrb.gmra.mxu3 %vm915_vm1, %v1250_v2  ;;  %1694 = vmatpush.msrb.mxu2 %v349_v5  ;;  %2067 = vrcp.f32 %v1164_v16 }
 0x1be   : > { %1723 = vmatpush.msrb.mxu3 %v351_v44 }
 0x1bf   : > { %1695 = vmatpush.msrb.mxu2 %v348_v15 }
 0x1c0   : > { %1724 = vmatpush.msrb.mxu3 %v350_v18 }
 0x1c1   : > { %v2064_v19 = vpop.eup %2063 }
 0x1c2   : > { %v2066_v9 = vpop.eup %2065  ;;  %v1176_v17 = vpop.xlane.xlu1 %1175  ;;  %v1245_v47 = vmul.f32 %v2064_v19, %v2529_v26 }
 0x1c3   : > { %v1149_v33 = vpop.xlane.xlu2 %1148  ;;  %2069 = vrcp.f32 %v1176_v17  ;;  %v1247_v10 = vmul.f32 %v2066_v9, %v2524_v49  ;;  %v2068_v28 = vpop.eup %2067 }
 0x1c4   : > { %2071 = vrcp.f32 %v1149_v33  ;;  %v1170_v41 = vpop.xlane.xlu0 %1169  ;;  %1936 = vmatmul.msk.f32.gmra.mxu0 %vm915_vm1, %v1245_v47  ;;  %v1254_v39 = vmul.f32 %v2068_v28, %v2527_v25 }
 0x1c5   : > { %1942 = vmatmul.msk.f32.gmra.mxu3 %vm915_vm1, %v1251_v14  ;;  %1938 = vmatmul.msk.f32.gmra.mxu1 %vm915_vm1, %v1247_v10  ;;  %2073 = vrcp.f32 %v1170_v41 }
 0x1c9   : > { %v2070_v49 = vpop.eup %2069 }
 0x1ca   : > { %v2072_v26 = vpop.eup %2071  ;;  %v1258_v42 = vmul.f32 %v2070_v49, %v2544_v7  ;;  %v1167_v24 = vpop.xlane.xlu1 %1166 }
 0x1cb   : > { %v1158_v23 = vpop.xlane.xlu2 %1157  ;;  %2075 = vrcp.f32 %v1167_v24  ;;  %v1249_v46 = vmul.f32 %v2072_v26, %v2539_v35  ;;  %v2074_v27 = vpop.eup %2073 }
 0x1cc   : > { %2077 = vrcp.f32 %v1158_v23  ;;  %v1161_v11 = vpop.xlane.xlu0 %1160  ;;  %v1256_v56 = vmul.f32 %v2074_v27, %v2542_v37 }
 0x1cd   : > { %1940 = vmatmul.msk.f32.gmra.mxu2 %vm915_vm1, %v1249_v46  ;;  %1945 = vmatmul.msk.f32.vlgmr.msra.gmra.mxu1 %vm915_vm1, %v1254_v39  ;;  %2079 = vrcp.f32 %v1161_v11 }
 0x1ce   : > { %1949 = vmatmul.msk.f32.vlgmr.msra.gmra.mxu3 %vm915_vm1, %v1258_v42 }
 0x1d1   : > { %v2076_v7 = vpop.eup %2075 }
 0x1d2   : > { %v2078_v48 = vpop.eup %2077  ;;  %v1173_v52 = vpop.xlane.xlu1 %1172  ;;  %v1255_v25 = vmul.f32 %v2076_v7, %v2558_v32 }
 0x1d3   : > { %v1252_v53 = vmul.f32 %v2078_v48, %v2553_v43  ;;  %v1179_v35 = vpop.xlane.xlu2 %1178  ;;  %2081 = vrcp.f32 %v1173_v52  ;;  %v2080_v57 = vpop.eup %2079 }
 0x1d4   : > { %2083 = vrcp.f32 %v1179_v35  ;;  %v1200_v55 = vpop.xlane.xlu0 %1199  ;;  %v1253_v62 = vmul.f32 %v2080_v57, %v2556_v45 }
 0x1d5   : > { %1943 = vmatmul.msk.f32.vlgmr.msra.gmra.mxu0 %vm915_vm1, %v1252_v53  ;;  %1946 = vmatmul.msk.f32.gmra.mxu1 %vm915_vm1, %v1255_v25  ;;  %2085 = vrcp.f32 %v1200_v55 }
 0x1d6   : > { %1947 = vmatmul.msk.f32.vlgmr.msra.gmra.mxu2 %vm915_vm1, %v1256_v56 }
 0x1d9   : > { %v2082_v34 = vpop.eup %2081 }
 0x1da   : > { %v2084_v54 = vpop.eup %2083  ;;  %v1182_v59 = vpop.xlane.xlu1 %1181  ;;  %v1257_v32 = vmul.f32 %v2082_v34, %v2571_v50 }
 0x1db   : > { %v1194_v43 = vpop.xlane.xlu2 %1193  ;;  %2087 = vrcp.f32 %v1182_v59  ;;  %v1259_v37 = vmul.f32 %v2084_v54, %v2569_v22  ;;  %v2086_v13 = vpop.eup %2085 }
 0x1dc   : > { %2089 = vrcp.f32 %v1194_v43  ;;  %v1266_v50 = vmul.f32 %v2086_v13, %v2576_v58 }
 0x1dd   : > { %1944 = vmatmul.msk.f32.gmra.mxu0 %vm915_vm1, %v1253_v62  ;;  %1950 = vmatmul.msk.f32.gmra.mxu3 %vm915_vm1, %v1259_v37 }
 0x1de   : > { %1948 = vmatmul.msk.f32.gmra.mxu2 %vm915_vm1, %v1257_v32 }
 0x1e1   : > { %v2088_v36 = vpop.eup %2087 }
 0x1e2   : > { %v2090_v60 = vpop.eup %2089  ;;  %v1260_v61 = vmul.f32 %v2088_v36, %v2582_v1  ;;  %v1197_v4 = vpop.xlane.xlu0 %1196 }
 0x1e3   : > { %v1264_v8 = vmul.f32 %v2090_v60, %v2585_v3  ;;  %v1188_v45 = vpop.xlane.xlu2 %1187  ;;  %2091 = vrcp.f32 %v1197_v4  ;;  %v1203_v22 = vpop.xlane.xlu1 %1202 }
 0x1e4   : > { %2093 = vrcp.f32 %v1188_v45 }
 0x1e5   : > { %1951 = vmatmul.msk.f32.vlgmr.msrb.gmra.mxu0 %vm915_vm1, %v1260_v61  ;;  %1957 = vmatmul.msk.f32.vlgmr.msrb.gmra.mxu3 %vm915_vm1, %v1266_v50  ;;  %2095 = vrcp.f32 %v1203_v22 }
 0x1e6   : > { %1955 = vmatmul.msk.f32.vlgmr.msrb.gmra.mxu2 %vm915_vm1, %v1264_v8 }
 0x1e9   : > { %v2092_v6 = vpop.eup %2091 }
 0x1ea   : > { %v2094_v2 = vpop.eup %2093  ;;  %v1191_v63 = vpop.xlane.xlu0 %1190  ;;  %v1265_v1 = vmul.f32 %v2092_v6, %v2596_v0 }
 0x1eb   : > { %v2096_v58 = vpop.eup %2095  ;;  %v1262_v3 = vmul.f32 %v2094_v2, %v2594_v20  ;;  %v1185_v16 = vpop.xlane.xlu2 %1184  ;;  %2097 = vrcp.f32 %v1191_v63 }
 0x1ec   : > { %2099 = vrcp.f32 %v1185_v16  ;;  %v1267_v5 = vmul.f32 %v2096_v58, %v2600_v21 }
 0x1ed   : > { %1953 = vmatmul.msk.f32.vlgmr.msrb.gmra.mxu1 %vm915_vm1, %v1262_v3 }
 0x1ee   : > { %1956 = vmatmul.msk.f32.gmra.mxu2 %vm915_vm1, %v1265_v1  ;;  %1958 = vmatmul.msk.f32.gmra.mxu3 %vm915_vm1, %v1267_v5 }
 0x1f1   : > { %v2098_v44 = vpop.eup %2097 }
 0x1f2   : > { %v2100_v30 = vpop.eup %2099  ;;  %v1263_v19 = vmul.f32 %v2098_v44, %v2612_v29 }
 0x1f3   : > { %v1261_v0 = vmul.f32 %v2100_v30, %v2615_v40 }
 0x1f5   : > { %1952 = vmatmul.msk.f32.gmra.mxu0 %vm915_vm1, %v1261_v0  ;;  %1954 = vmatmul.msk.f32.gmra.mxu1 %vm915_vm1, %v1263_v19 }
 0x211   : > { %v1291_v20 = vpop.f32.mrf.mxu0 }
 0x212   : > { %1732 = vst.msk [vmem:[%s2720_s8] sm:$0xff] %vm354_vm0, %v1291_v20 }
 0x21a   : > { %v1320_v21 = vpop.f32.mrf.mxu1 }
 0x21b   : > { %1734 = vst.msk [vmem:[%s2720_s8 + $0x10] sm:$0xff] %vm354_vm0, %v1320_v21 }
 0x21f   : > { %v1349_v29 = vpop.f32.mrf.mxu2 }
 0x220   : > { %1736 = vst.msk [vmem:[%s2720_s8 + $0x20] sm:$0xff] %vm354_vm0, %v1349_v29 }
 0x227   : > { %v1352_v40 = vpop.f32.mrf.mxu2 }
 0x228   : > { %v1378_v9 = vpop.f32.mrf.mxu3  ;;  %1737 = vst.msk [vmem:[%s2720_s8 + $0x28] sm:$0xff] %vm354_vm0, %v1352_v40 }
 0x229   : > { %v1294_v17 = vpop.f32.mrf.mxu0  ;;  %1738 = vst.msk [vmem:[%s2720_s8 + $0x30] sm:$0xff] %vm354_vm0, %v1378_v9 }
 0x22a   : > { %1733 = vst.msk [vmem:[%s2720_s8 + $0x8] sm:$0xff] %vm354_vm0, %v1294_v17  ;;  %v1323_v47 = vpop.f32.mrf.mxu1 }
 0x22b   : > { %1735 = vst.msk [vmem:[%s2720_s8 + $0x18] sm:$0xff] %vm354_vm0, %v1323_v47 }
 0x232   : > { %v1436_v33 = vpop.f32.mrf.mxu1 }
 0x233   : > { %v1407_v38 = vpop.f32.mrf.mxu0  ;;  %1742 = vst.msk [vmem:[%s2720_s8 + $0x50] sm:$0xff] %vm354_vm0, %v1436_v33 }
 0x234   : > { %1740 = vst.msk [vmem:[%s2720_s8 + $0x40] sm:$0xff] %vm354_vm0, %v1407_v38 }
 0x238   : > { %v1381_v14 = vpop.f32.mrf.mxu3 }
 0x239   : > { %1739 = vst.msk [vmem:[%s2720_s8 + $0x38] sm:$0xff] %vm354_vm0, %v1381_v14 }
 0x23f   : > { %v1465_v10 = vpop.f32.mrf.mxu2 }
 0x240   : > { %1744 = vst.msk [vmem:[%s2720_s8 + $0x60] sm:$0xff] %vm354_vm0, %v1465_v10  ;;  %v1494_v12 = vpop.f32.mrf.mxu3 }
 0x241   : > { %1746 = vst.msk [vmem:[%s2720_s8 + $0x70] sm:$0xff] %vm354_vm0, %v1494_v12  ;;  %v1410_v15 = vpop.f32.mrf.mxu0 }
 0x242   : > { %1741 = vst.msk [vmem:[%s2720_s8 + $0x48] sm:$0xff] %vm354_vm0, %v1410_v15  ;;  %v1439_v18 = vpop.f32.mrf.mxu1 }
 0x243   : > { %1743 = vst.msk [vmem:[%s2720_s8 + $0x58] sm:$0xff] %vm354_vm0, %v1439_v18 }
 0x248   : > { %v1497_v41 = vpop.f32.mrf.mxu3 }
 0x249   : > { %1747 = vst.msk [vmem:[%s2720_s8 + $0x78] sm:$0xff] %vm354_vm0, %v1497_v41 }
 0x24a   : > { %v1552_v51 = vpop.f32.mrf.mxu1 }
 0x24b   : > { %1750 = vst.msk [vmem:[%s2720_s8 + $0x90] sm:$0xff] %vm354_vm0, %v1552_v51 }
 0x250   : > { %v1468_v28 = vpop.f32.mrf.mxu2 }
 0x251   : > { %1745 = vst.msk [vmem:[%s2720_s8 + $0x68] sm:$0xff] %vm354_vm0, %v1468_v28  ;;  %v1610_v49 = vpop.f32.mrf.mxu3 }
 0x252   : > { %1754 = vst.msk [vmem:[%s2720_s8 + $0xb0] sm:$0xff] %vm354_vm0, %v1610_v49  ;;  %v1523_v26 = vpop.f32.mrf.mxu0  ;;  %v1555_v42 = vpop.f32.mrf.mxu1 }
 0x253   : > { %1748 = vst.msk [vmem:[%s2720_s8 + $0x80] sm:$0xff] %vm354_vm0, %v1523_v26 }
 0x254   : > { %1751 = vst.msk [vmem:[%s2720_s8 + $0x98] sm:$0xff] %vm354_vm0, %v1555_v42 }
 0x259   : > { %v1581_v24 = vpop.f32.mrf.mxu2 }
 0x25a   : > { %1752 = vst.msk [vmem:[%s2720_s8 + $0xa0] sm:$0xff] %vm354_vm0, %v1581_v24  ;;  %v1526_v39 = vpop.f32.mrf.mxu0 }
 0x25b   : > { %1749 = vst.msk [vmem:[%s2720_s8 + $0x88] sm:$0xff] %vm354_vm0, %v1526_v39 }
 0x260   : > { %v1613_v23 = vpop.f32.mrf.mxu3 }
 0x261   : > { %v1584_v46 = vpop.f32.mrf.mxu2  ;;  %1755 = vst.msk [vmem:[%s2720_s8 + $0xb8] sm:$0xff] %vm354_vm0, %v1613_v23 }
 0x262   : > { %1753 = vst.msk [vmem:[%s2720_s8 + $0xa8] sm:$0xff] %vm354_vm0, %v1584_v46  ;;  %v1639_v31 = vpop.f32.mrf.mxu0 }
 0x263   : > { %1756 = vst.msk [vmem:[%s2720_s8 + $0xc0] sm:$0xff] %vm354_vm0, %v1639_v31 }
 0x268   : > { %v1726_v11 = vpop.f32.mrf.mxu3 }
 0x269   : > { %v1697_v27 = vpop.f32.mrf.mxu2  ;;  %1762 = vst.msk [vmem:[%s2720_s8 + $0xf0] sm:$0xff] %vm354_vm0, %v1726_v11 }
 0x26a   : > { %1760 = vst.msk [vmem:[%s2720_s8 + $0xe0] sm:$0xff] %vm354_vm0, %v1697_v27  ;;  %v1668_v7 = vpop.f32.mrf.mxu1 }
 0x26b   : > { %1758 = vst.msk [vmem:[%s2720_s8 + $0xd0] sm:$0xff] %vm354_vm0, %v1668_v7 }
 0x271   : > { %v1700_v48 = vpop.f32.mrf.mxu2  ;;  %v1729_v52 = vpop.f32.mrf.mxu3 }
 0x272   : > { %1761 = vst.msk [vmem:[%s2720_s8 + $0xe8] sm:$0xff] %vm354_vm0, %v1700_v48  ;;  %v1642_v25 = vpop.f32.mrf.mxu0  ;;  %v1671_v53 = vpop.f32.mrf.mxu1 }
 0x273   : > { %1757 = vst.msk [vmem:[%s2720_s8 + $0xc8] sm:$0xff] %vm354_vm0, %v1642_v25 }
 0x274   : > { %1759 = vst.msk [vmem:[%s2720_s8 + $0xd8] sm:$0xff] %vm354_vm0, %v1671_v53 }
 0x275   : > { %1763 = vst.msk [vmem:[%s2720_s8 + $0xf8] sm:$0xff] %vm354_vm0, %v1729_v52 }
 0x276 PF: > { %s14_s15 = sadd.s32 1, %s2107_s15  }
 0x277   : > { %p11_p4 = scmp.ge.s32.totalorder %s14_s15, 4  }
 0x279   :  { %13 = sbr.rel (!%p11_p4) target bundleno = 1 (0x1), region = 72 }

// kernel: transformer_forward.21
= control target key start
LH: loop header
LB: loop body
LE: loop exit
PB: predicated region body
PF: predicated region fallthrough
CT: control target
= control target key end

     0   :  { %s1732_s15 = smov 0   ;;  %s2372_s0 = inlined_call_operand.vmem [shape: f32[8,64,32], index: 0, kind: input, shape index: {}]   ;;  %s2373_s1 = inlined_call_operand.vmem [shape: f32[8,64,32], index: 1, kind: input, shape index: {}]   ;;  %s2374_s2 = inlined_call_operand.vmem [shape: f32[8,64,32], index: 2, kind: input, shape index: {}]   ;;  %s2375_s3 = inlined_call_operand.vmem [shape: f32[64,64], index: 3, kind: input, shape index: {}]   ;;  %s2376_s4 = inlined_call_operand.vmem [shape: f32[8,64,32], index: 4, kind: output, shape index: {}]  }
   0x1 LB: > { %s1444_s16 = sadd.s32 4294967295, %s1705_s15   ;;  %p1448_p0 = scmp.ge.s32.totalorder %s1705_s15, 1  ;;  %s1705_s15 = sphi %s1732_s15, %s14_s15  }
   0x2   : > { %p188_p1 = scmp.lt.s32.totalorder %s1705_s15, 3 }
   0x4   : > { %p189_p2 = pnand %p1448_p0, %p188_p1 }
   0x5   : > { %s1449_s17 = sshll.u32 (!%p189_p2), %s1444_s16, 2 }
   0x6   : > { %192 = sbr.rel (%p189_p2) target bundleno = 656 (0x290), region = 36  ;;  %p229_p3 = scmp.lt.s32.totalorder (!%p189_p2), %s1449_s17, 7 }
   0xb   : > { %s2378_s17 = smov (!%p229_p3, %s1449_s17), 7  ;;  %vm360_vm0 = vcmask 261120   ;;  %vm717_vm1 = vcmask 523264  }
   0xc   : > { %s1740_s18 = sshll.u32 %s2378_s17, 6 }
   0xd   : > { %s1746_s21 = scalar_lea.vmem %s2373_s1, %s1740_s18  ;;  %s1809_s24 = scalar_lea.vmem %s2372_s0, %s1740_s18 }
   0xe   : > { %v295_v0 = vld [vmem:[%s1746_s21 + $0x38] sm:$0xff]  ;;  %v294_v3 = vld [vmem:[%s1746_s21 + $0x30] sm:$0xff]  ;;  %v293_v8 = vld [vmem:[%s1746_s21 + $0x28] sm:$0xff]  ;;  %s2145_s19 = scalar_lea.vmem %s2374_s2, %s1740_s18  ;;  %s2303_s22 = scalar_lea.vmem %s2376_s4, %s1740_s18 }
   0xf   : > { %v311_v1 = vld [vmem:[%s1746_s21 + $0xb8] sm:$0xff]  ;;  %1461 = vmatpush.xpose.msk.msra.mxu0 %vm360_vm0, %v295_v0  ;;  %v310_v4 = vld [vmem:[%s1746_s21 + $0xb0] sm:$0xff]  ;;  %v309_v9 = vld [vmem:[%s1746_s21 + $0xa8] sm:$0xff] }
  0x10   : > { %v319_v2 = vld [vmem:[%s1746_s21 + $0xf8] sm:$0xff]  ;;  %1493 = vmatpush.xpose.msk.msra.mxu2 %vm360_vm0, %v311_v1  ;;  %v318_v6 = vld [vmem:[%s1746_s21 + $0xf0] sm:$0xff]  ;;  %v317_v10 = vld [vmem:[%s1746_s21 + $0xe8] sm:$0xff] }
  0x11   : > { %1509 = vmatpush.xpose.msk.msra.mxu3 %vm360_vm0, %v319_v2  ;;  %v303_v5 = vld [vmem:[%s1746_s21 + $0x78] sm:$0xff]  ;;  %v302_v7 = vld [vmem:[%s1746_s21 + $0x70] sm:$0xff]  ;;  %v301_v11 = vld [vmem:[%s1746_s21 + $0x68] sm:$0xff] }
  0x12   : > { %1477 = vmatpush.xpose.msk.msra.mxu1 %vm360_vm0, %v303_v5  ;;  %v292_v12 = vld [vmem:[%s1746_s21 + $0x20] sm:$0xff]  ;;  %v291_v16 = vld [vmem:[%s1746_s21 + $0x18] sm:$0xff]  ;;  %v290_v20 = vld [vmem:[%s1746_s21 + $0x10] sm:$0xff] }
  0x13   : > { %1462 = vmatpush.xpose.msk.msra.mxu0 %vm360_vm0, %v294_v3  ;;  %v308_v13 = vld [vmem:[%s1746_s21 + $0xa0] sm:$0xff]  ;;  %v307_v17 = vld [vmem:[%s1746_s21 + $0x98] sm:$0xff]  ;;  %v306_v21 = vld [vmem:[%s1746_s21 + $0x90] sm:$0xff] }
  0x14   : > { %1494 = vmatpush.xpose.msk.msra.mxu2 %vm360_vm0, %v310_v4  ;;  %v316_v14 = vld [vmem:[%s1746_s21 + $0xe0] sm:$0xff]  ;;  %v315_v18 = vld [vmem:[%s1746_s21 + $0xd8] sm:$0xff]  ;;  %v314_v22 = vld [vmem:[%s1746_s21 + $0xd0] sm:$0xff] }
  0x15   : > { %1510 = vmatpush.xpose.msk.msra.mxu3 %vm360_vm0, %v318_v6  ;;  %v300_v15 = vld [vmem:[%s1746_s21 + $0x60] sm:$0xff]  ;;  %v299_v19 = vld [vmem:[%s1746_s21 + $0x58] sm:$0xff]  ;;  %v298_v23 = vld [vmem:[%s1746_s21 + $0x50] sm:$0xff] }
  0x16   : > { %1478 = vmatpush.xpose.msk.msra.mxu1 %vm360_vm0, %v302_v7  ;;  %v289_v24 = vld [vmem:[%s1746_s21 + $0x8] sm:$0xff]  ;;  %v288_v28 = vld [vmem:[%s1746_s21] sm:$0xff]  ;;  %v258_v40 = vld [vmem:[%s1809_s24 + $0x10] sm:$0xff] }
  0x17   : > { %1463 = vmatpush.xpose.msk.msra.mxu0 %vm360_vm0, %v293_v8  ;;  %v305_v25 = vld [vmem:[%s1746_s21 + $0x88] sm:$0xff]  ;;  %v304_v29 = vld [vmem:[%s1746_s21 + $0x80] sm:$0xff]  ;;  %v274_v41 = vld [vmem:[%s1809_s24 + $0x90] sm:$0xff] }
  0x18   : > { %1495 = vmatpush.xpose.msk.msra.mxu2 %vm360_vm0, %v309_v9  ;;  %v313_v26 = vld [vmem:[%s1746_s21 + $0xc8] sm:$0xff]  ;;  %v312_v30 = vld [vmem:[%s1746_s21 + $0xc0] sm:$0xff]  ;;  %v282_v42 = vld [vmem:[%s1809_s24 + $0xd0] sm:$0xff] }
  0x19   : > { %1511 = vmatpush.xpose.msk.msra.mxu3 %vm360_vm0, %v317_v10  ;;  %v297_v27 = vld [vmem:[%s1746_s21 + $0x48] sm:$0xff]  ;;  %v296_v31 = vld [vmem:[%s1746_s21 + $0x40] sm:$0xff]  ;;  %v266_v43 = vld [vmem:[%s1809_s24 + $0x50] sm:$0xff] }
  0x1a   : > { %1479 = vmatpush.xpose.msk.msra.mxu1 %vm360_vm0, %v301_v11  ;;  %v256_v32 = vld [vmem:[%s1809_s24] sm:$0xff]  ;;  %v273_v36 = vld [vmem:[%s1809_s24 + $0x88] sm:$0xff]  ;;  %v275_v44 = vld [vmem:[%s1809_s24 + $0x98] sm:$0xff] }
  0x1b   : > { %1464 = vmatpush.xpose.msk.msra.mxu0 %vm360_vm0, %v292_v12  ;;  %v272_v33 = vld [vmem:[%s1809_s24 + $0x80] sm:$0xff]  ;;  %v257_v37 = vld [vmem:[%s1809_s24 + $0x8] sm:$0xff]  ;;  %v259_v45 = vld [vmem:[%s1809_s24 + $0x18] sm:$0xff] }
  0x1c   : > { %1496 = vmatpush.xpose.msk.msra.mxu2 %vm360_vm0, %v308_v13  ;;  %v280_v34 = vld [vmem:[%s1809_s24 + $0xc0] sm:$0xff]  ;;  %v281_v38 = vld [vmem:[%s1809_s24 + $0xc8] sm:$0xff]  ;;  %v283_v46 = vld [vmem:[%s1809_s24 + $0xd8] sm:$0xff] }
  0x1d   : > { %1512 = vmatpush.xpose.msk.msra.mxu3 %vm360_vm0, %v316_v14  ;;  %v264_v35 = vld [vmem:[%s1809_s24 + $0x40] sm:$0xff]  ;;  %v265_v39 = vld [vmem:[%s1809_s24 + $0x48] sm:$0xff]  ;;  %v267_v47 = vld [vmem:[%s1809_s24 + $0x58] sm:$0xff] }
  0x1e   : > { %1480 = vmatpush.xpose.msk.msra.mxu1 %vm360_vm0, %v300_v15  ;;  %v276_v48 = vld [vmem:[%s1809_s24 + $0xa0] sm:$0xff]  ;;  %v261_v52 = vld [vmem:[%s1809_s24 + $0x28] sm:$0xff]  ;;  %v278_v56 = vld [vmem:[%s1809_s24 + $0xb0] sm:$0xff] }
  0x1f   : > { %1465 = vmatpush.xpose.msk.msra.mxu0 %vm360_vm0, %v291_v16  ;;  %v260_v49 = vld [vmem:[%s1809_s24 + $0x20] sm:$0xff]  ;;  %v277_v53 = vld [vmem:[%s1809_s24 + $0xa8] sm:$0xff]  ;;  %v262_v57 = vld [vmem:[%s1809_s24 + $0x30] sm:$0xff] }
  0x20   : > { %1497 = vmatpush.xpose.msk.msra.mxu2 %vm360_vm0, %v307_v17  ;;  %v284_v50 = vld [vmem:[%s1809_s24 + $0xe0] sm:$0xff]  ;;  %v285_v54 = vld [vmem:[%s1809_s24 + $0xe8] sm:$0xff]  ;;  %v286_v58 = vld [vmem:[%s1809_s24 + $0xf0] sm:$0xff] }
  0x21   : > { %1513 = vmatpush.xpose.msk.msra.mxu3 %vm360_vm0, %v315_v18  ;;  %v268_v51 = vld [vmem:[%s1809_s24 + $0x60] sm:$0xff]  ;;  %v269_v55 = vld [vmem:[%s1809_s24 + $0x68] sm:$0xff]  ;;  %v270_v59 = vld [vmem:[%s1809_s24 + $0x70] sm:$0xff] }
  0x22   : > { %1481 = vmatpush.xpose.msk.msra.mxu1 %vm360_vm0, %v299_v19  ;;  %v263_v60 = vld [vmem:[%s1809_s24 + $0x38] sm:$0xff]  ;;  %v352_v0 = vld [vmem:[%s2375_s3] sm:$0xff]  ;;  %v353_v14 = vld [vmem:[%s2375_s3 + $0x8] sm:$0xff] }
  0x23   : > { %1466 = vmatpush.xpose.msk.msra.mxu0 %vm360_vm0, %v290_v20  ;;  %v279_v61 = vld [vmem:[%s1809_s24 + $0xb8] sm:$0xff] }
  0x24   : > { %1498 = vmatpush.xpose.msk.msra.mxu2 %vm360_vm0, %v306_v21  ;;  %v287_v62 = vld [vmem:[%s1809_s24 + $0xf8] sm:$0xff] }
  0x25   : > { %1514 = vmatpush.xpose.msk.msra.mxu3 %vm360_vm0, %v314_v22  ;;  %v271_v63 = vld [vmem:[%s1809_s24 + $0x78] sm:$0xff]  ;;  %v354_v22 = vld [vmem:[%s2375_s3 + $0x10] sm:$0xff] }
  0x26   : > { %1482 = vmatpush.xpose.msk.msra.mxu1 %vm360_vm0, %v298_v23 }
  0x27   : > { %1467 = vmatpush.xpose.msk.msra.mxu0 %vm360_vm0, %v289_v24 }
  0x28   : > { %1499 = vmatpush.xpose.msk.msra.mxu2 %vm360_vm0, %v305_v25 }
  0x29   : > { %1515 = vmatpush.xpose.msk.msra.mxu3 %vm360_vm0, %v313_v26 }
  0x2a   : > { %1483 = vmatpush.xpose.msk.msra.mxu1 %vm360_vm0, %v297_v27 }
  0x2b   : > { %1468 = vmatpush.xpose.msk.msra.mxu0 %vm360_vm0, %v288_v28 }
  0x2c   : > { %1500 = vmatpush.xpose.msk.msra.mxu2 %vm360_vm0, %v304_v29 }
  0x2d   : > { %1516 = vmatpush.xpose.msk.msra.mxu3 %vm360_vm0, %v312_v30 }
  0x2e   : > { %1484 = vmatpush.xpose.msk.msra.mxu1 %vm360_vm0, %v296_v31  ;;  %1469 = vmatmul.msk.f32.vlgmr.msra.gmra.mxu0 %vm360_vm0, %v256_v32 }
  0x2f   : > { %1501 = vmatmul.msk.f32.vlgmr.msra.gmra.mxu2 %vm360_vm0, %v272_v33 }
  0x30   : > { %1517 = vmatmul.msk.f32.vlgmr.msra.gmra.mxu3 %vm360_vm0, %v280_v34 }
  0x31   : > { %1485 = vmatmul.msk.f32.vlgmr.msra.gmra.mxu1 %vm360_vm0, %v264_v35 }
  0x36   : > { %1470 = vmatmul.msk.f32.gmra.mxu0 %vm360_vm0, %v257_v37 }
  0x37   : > { %1502 = vmatmul.msk.f32.gmra.mxu2 %vm360_vm0, %v273_v36  ;;  %v355_v36 = vld [vmem:[%s2375_s3 + $0x18] sm:$0xff] }
  0x38   : > { %1518 = vmatmul.msk.f32.gmra.mxu3 %vm360_vm0, %v281_v38 }
  0x39   : > { %1486 = vmatmul.msk.f32.gmra.mxu1 %vm360_vm0, %v265_v39 }
  0x3e   : > { %1471 = vmatmul.msk.f32.gmra.mxu0 %vm360_vm0, %v258_v40 }
  0x3f   : > { %1503 = vmatmul.msk.f32.gmra.mxu2 %vm360_vm0, %v274_v41 }
  0x40   : > { %1519 = vmatmul.msk.f32.gmra.mxu3 %vm360_vm0, %v282_v42 }
  0x41   : > { %1487 = vmatmul.msk.f32.gmra.mxu1 %vm360_vm0, %v266_v43 }
  0x46   : > { %1472 = vmatmul.msk.f32.gmra.mxu0 %vm360_vm0, %v259_v45 }
  0x47   : > { %1504 = vmatmul.msk.f32.gmra.mxu2 %vm360_vm0, %v275_v44  ;;  %v356_v44 = vld [vmem:[%s2375_s3 + $0x20] sm:$0xff] }
  0x48   : > { %1520 = vmatmul.msk.f32.gmra.mxu3 %vm360_vm0, %v283_v46 }
  0x49   : > { %1488 = vmatmul.msk.f32.gmra.mxu1 %vm360_vm0, %v267_v47 }
  0x4e   : > { %1473 = vmatmul.msk.f32.gmra.mxu0 %vm360_vm0, %v260_v49 }
  0x4f   : > { %1505 = vmatmul.msk.f32.gmra.mxu2 %vm360_vm0, %v276_v48 }
  0x50   : > { %1521 = vmatmul.msk.f32.gmra.mxu3 %vm360_vm0, %v284_v50 }
  0x51   : > { %1489 = vmatmul.msk.f32.gmra.mxu1 %vm360_vm0, %v268_v51 }
  0x56   : > { %1474 = vmatmul.msk.f32.gmra.mxu0 %vm360_vm0, %v261_v52 }
  0x57   : > { %1506 = vmatmul.msk.f32.gmra.mxu2 %vm360_vm0, %v277_v53 }
  0x58   : > { %1522 = vmatmul.msk.f32.gmra.mxu3 %vm360_vm0, %v285_v54 }
  0x59   : > { %1490 = vmatmul.msk.f32.gmra.mxu1 %vm360_vm0, %v269_v55 }
  0x5e   : > { %1475 = vmatmul.msk.f32.gmra.mxu0 %vm360_vm0, %v262_v57 }
  0x5f   : > { %1507 = vmatmul.msk.f32.gmra.mxu2 %vm360_vm0, %v278_v56 }
  0x60   : > { %1523 = vmatmul.msk.f32.gmra.mxu3 %vm360_vm0, %v286_v58 }
  0x61   : > { %1491 = vmatmul.msk.f32.gmra.mxu1 %vm360_vm0, %v270_v59 }
  0x66   : > { %1476 = vmatmul.msk.f32.gmra.mxu0 %vm360_vm0, %v263_v60 }
  0x67   : > { %1508 = vmatmul.msk.f32.gmra.mxu2 %vm360_vm0, %v279_v61 }
  0x68   : > { %1524 = vmatmul.msk.f32.gmra.mxu3 %vm360_vm0, %v287_v62  ;;  %v357_v62 = vld [vmem:[%s2375_s3 + $0x28] sm:$0xff] }
  0x69   : > { %1492 = vmatmul.msk.f32.gmra.mxu1 %vm360_vm0, %v271_v63 }
  0xab   : > { %v426_v1 = vpop.f32.mrf.mxu0 }
  0xac   : > { %v1885_v2 = vadd.f32 %v426_v1, %v352_v0 }
  0xae   : > { %v515_v3 = vpop.f32.mrf.mxu1  ;;  %v718_v4 = vsel %vm717_vm1, %v1885_v2, -inf }
  0xaf   : > { %719 = vmax.xlane.f32.xlu1 %v718_v4  ;;  %v1889_v5 = vadd.f32 %v515_v3, %v352_v0 }
  0xb1   : > { %v742_v11 = vsel %vm717_vm1, %v1889_v5, -inf }
  0xb2   : > { %v604_v6 = vpop.f32.mrf.mxu2 }
  0xb3   : > { %v1891_v7 = vadd.f32 %v604_v6, %v352_v0  ;;  %v693_v8 = vpop.f32.mrf.mxu3  ;;  %v429_v9 = vpop.f32.mrf.mxu0 }
  0xb4   : > { %v1897_v13 = vadd.f32 %v693_v8, %v352_v0  ;;  %v1915_v25 = vadd.f32 %v429_v9, %v353_v14 }
  0xb5   : > { %v766_v10 = vsel %vm717_vm1, %v1891_v7, -inf }
  0xb6   : > { %767 = vmax.xlane.f32.xlu0 %v766_v10  ;;  %v518_v12 = vpop.f32.mrf.mxu1  ;;  %v790_v19 = vsel %vm717_vm1, %v1897_v13, -inf  ;;  %v721_v31 = vsel %vm717_vm1, %v1915_v25, -inf }
  0xb7   : > { %743 = vmax.xlane.f32.xlu1 %v742_v11  ;;  %v1902_v15 = vadd.f32 %v518_v12, %v353_v14  ;;  %v358_v11 = vld [vmem:[%s2375_s3 + $0x30] sm:$0xff] }
  0xb9   : > { %v745_v21 = vsel %vm717_vm1, %v1902_v15, -inf }
  0xba   : > { %v607_v16 = vpop.f32.mrf.mxu2 }
  0xbb   : > { %v1904_v17 = vadd.f32 %v607_v16, %v353_v14  ;;  %v696_v18 = vpop.f32.mrf.mxu3  ;;  %v432_v23 = vpop.f32.mrf.mxu0 }
  0xbc   : > { %v1917_v26 = vadd.f32 %v696_v18, %v353_v14  ;;  %v1919_v27 = vadd.f32 %v432_v23, %v354_v22 }
  0xbd   : > { %v769_v20 = vsel %vm717_vm1, %v1904_v17, -inf }
  0xbe   : > { %770 = vmax.xlane.f32.xlu2 %v769_v20  ;;  %791 = vmax.xlane.f32.xlu0 %v790_v19  ;;  %v521_v24 = vpop.f32.mrf.mxu1  ;;  %v793_v30 = vsel %vm717_vm1, %v1917_v26, -inf  ;;  %v724_v32 = vsel %vm717_vm1, %v1919_v27, -inf }
  0xbf   : > { %746 = vmax.xlane.f32.xlu1 %v745_v21  ;;  %v1927_v34 = vadd.f32 %v521_v24, %v354_v22 }
  0xc1   : > { %v748_v39 = vsel %vm717_vm1, %v1927_v34, -inf }
  0xc2   : > { %v610_v28 = vpop.f32.mrf.mxu2 }
  0xc3   : > { %v699_v29 = vpop.f32.mrf.mxu3  ;;  %v435_v37 = vpop.f32.mrf.mxu0  ;;  %v1947_v47 = vadd.f32 %v610_v28, %v354_v22 }
  0xc4   : > { %v1929_v35 = vadd.f32 %v699_v29, %v354_v22  ;;  %v1957_v54 = vadd.f32 %v435_v37, %v355_v36 }
  0xc5   : > { %v772_v49 = vsel %vm717_vm1, %v1947_v47, -inf }
  0xc6   : > { %794 = vmax.xlane.f32.xlu2 %v793_v30  ;;  %722 = vmax.xlane.f32.xlu0 %v721_v31  ;;  %v524_v33 = vpop.f32.mrf.mxu1  ;;  %v796_v40 = vsel %vm717_vm1, %v1929_v35, -inf  ;;  %v727_v58 = vsel %vm717_vm1, %v1957_v54, -inf }
  0xc7   : > { %725 = vmax.xlane.f32.xlu1 %v724_v32  ;;  %v1945_v46 = vadd.f32 %v524_v33, %v355_v36  ;;  %v359_v32 = vld [vmem:[%s2375_s3 + $0x38] sm:$0xff] }
  0xc9   : > { %v751_v50 = vsel %vm717_vm1, %v1945_v46, -inf }
  0xca   : > { %v613_v42 = vpop.f32.mrf.mxu2 }
  0xcb   : > { %v702_v38 = vpop.f32.mrf.mxu3  ;;  %v438_v51 = vpop.f32.mrf.mxu0  ;;  %v1959_v55 = vadd.f32 %v613_v42, %v355_v36 }
  0xcc   : > { %v1938_v41 = vadd.f32 %v702_v38, %v355_v36  ;;  %v1972_v0 = vadd.f32 %v438_v51, %v356_v44 }
  0xcd   : > { %v775_v59 = vsel %vm717_vm1, %v1959_v55, -inf }
  0xce   : > { %749 = vmax.xlane.f32.xlu2 %v748_v39  ;;  %797 = vmax.xlane.f32.xlu0 %v796_v40  ;;  %v799_v43 = vsel %vm717_vm1, %v1938_v41, -inf  ;;  %v527_v45 = vpop.f32.mrf.mxu1  ;;  %v730_v8 = vsel %vm717_vm1, %v1972_v0, -inf }
  0xcf   : > { %800 = vmax.xlane.f32.xlu1 %v799_v43  ;;  %v1949_v48 = vadd.f32 %v527_v45, %v356_v44 }
  0xd1   : > { %v754_v52 = vsel %vm717_vm1, %v1949_v48, -inf }
  0xd2   : > { %v616_v53 = vpop.f32.mrf.mxu2 }
  0xd3   : > { %v1961_v56 = vadd.f32 %v616_v53, %v356_v44  ;;  %v705_v57 = vpop.f32.mrf.mxu3  ;;  %v441_v63 = vpop.f32.mrf.mxu0 }
  0xd4   : > { %v1974_v1 = vadd.f32 %v705_v57, %v356_v44  ;;  %v1976_v3 = vadd.f32 %v441_v63, %v357_v62 }
  0xd5   : > { %v778_v61 = vsel %vm717_vm1, %v1961_v56, -inf }
  0xd6   : > { %773 = vmax.xlane.f32.xlu2 %v772_v49  ;;  %752 = vmax.xlane.f32.xlu0 %v751_v50  ;;  %v530_v60 = vpop.f32.mrf.mxu1  ;;  %v802_v6 = vsel %vm717_vm1, %v1974_v1, -inf  ;;  %v733_v10 = vsel %vm717_vm1, %v1976_v3, -inf }
  0xd7   : > { %755 = vmax.xlane.f32.xlu1 %v754_v52  ;;  %v1987_v14 = vadd.f32 %v530_v60, %v357_v62 }
  0xd9   : > { %v757_v19 = vsel %vm717_vm1, %v1987_v14, -inf }
  0xda   : > { %v619_v4 = vpop.f32.mrf.mxu2 }
  0xdb   : > { %v708_v9 = vpop.f32.mrf.mxu3  ;;  %v444_v22 = vpop.f32.mrf.mxu0  ;;  %v2001_v29 = vadd.f32 %v619_v4, %v357_v62 }
  0xdc   : > { %v1989_v16 = vadd.f32 %v708_v9, %v357_v62  ;;  %v2014_v39 = vadd.f32 %v444_v22, %v358_v11 }
  0xdd   : > { %v781_v36 = vsel %vm717_vm1, %v2001_v29, -inf }
  0xde   : > { %728 = vmax.xlane.f32.xlu2 %v727_v58  ;;  %776 = vmax.xlane.f32.xlu0 %v775_v59  ;;  %v533_v12 = vpop.f32.mrf.mxu1  ;;  %v805_v20 = vsel %vm717_vm1, %v1989_v16, -inf  ;;  %v736_v43 = vsel %vm717_vm1, %v2014_v39, -inf }
  0xdf   : > { %779 = vmax.xlane.f32.xlu1 %v778_v61  ;;  %v1991_v18 = vadd.f32 %v533_v12, %v358_v11 }
  0xe1   : > { %v760_v23 = vsel %vm717_vm1, %v1991_v18, -inf }
  0xe2   : > { %v622_v21 = vpop.f32.mrf.mxu2 }
  0xe3   : > { %v711_v24 = vpop.f32.mrf.mxu3  ;;  %v1999_v28 = vadd.f32 %v622_v21, %v358_v11  ;;  %v447_v38 = vpop.f32.mrf.mxu0 }
  0xe4   : > { %v2003_v30 = vadd.f32 %v711_v24, %v358_v11  ;;  %v2018_v42 = vadd.f32 %v447_v38, %v359_v32 }
  0xe5   : > { %v784_v31 = vsel %vm717_vm1, %v1999_v28, -inf }
  0xe6   : > { %803 = vmax.xlane.f32.xlu2 %v802_v6  ;;  %731 = vmax.xlane.f32.xlu0 %v730_v8  ;;  %v536_v33 = vpop.f32.mrf.mxu1  ;;  %v808_v37 = vsel %vm717_vm1, %v2003_v30, -inf  ;;  %v739_v50 = vsel %vm717_vm1, %v2018_v42, -inf }
  0xe7   : > { %734 = vmax.xlane.f32.xlu1 %v733_v10  ;;  %v2016_v40 = vadd.f32 %v536_v33, %v359_v32 }
  0xe9   : > { %v763_v44 = vsel %vm717_vm1, %v2016_v40, -inf }
  0xea   : > { %v625_v45 = vpop.f32.mrf.mxu2 }
  0xeb   : > { %v714_v49 = vpop.f32.mrf.mxu3  ;;  %v2026_v51 = vadd.f32 %v625_v45, %v359_v32 }
  0xec   : > { %v2028_v52 = vadd.f32 %v714_v49, %v359_v32 }
  0xed   : > { %v787_v57 = vsel %vm717_vm1, %v2026_v51, -inf }
  0xee   : > { %758 = vmax.xlane.f32.xlu2 %v757_v19  ;;  %806 = vmax.xlane.f32.xlu0 %v805_v20  ;;  %v811_v53 = vsel %vm717_vm1, %v2028_v52, -inf }
  0xef   : > { %761 = vmax.xlane.f32.xlu1 %v760_v23 }
  0xf6   : > { %782 = vmax.xlane.f32.xlu2 %v781_v36  ;;  %785 = vmax.xlane.f32.xlu0 %v784_v31 }
  0xf7   : > { %809 = vmax.xlane.f32.xlu1 %v808_v37 }
  0xfe   : > { %737 = vmax.xlane.f32.xlu2 %v736_v43  ;;  %764 = vmax.xlane.f32.xlu0 %v763_v44 }
  0xff   : > { %740 = vmax.xlane.f32.xlu1 %v739_v50 }
 0x106   : > { %812 = vmax.xlane.f32.xlu2 %v811_v53  ;;  %788 = vmax.xlane.f32.xlu0 %v787_v57 }
 0x122   : > { %v720_v58 = vpop.xlane.xlu1 %719 }
 0x123   : > { %v814_v59 = vsub.f32 %v1885_v2, %v720_v58 }
 0x125   : > { %v846_v60 = vmul.f32 1.442695, %v814_v59 }
 0x127   : > { %1571 = vpow2.f32 %v846_v60 }
 0x129   : > { %v768_v61 = vpop.xlane.xlu0 %767 }
 0x12a   : > { %v744_v62 = vpop.xlane.xlu1 %743  ;;  %v830_v6 = vsub.f32 %v1891_v7, %v768_v61 }
 0x12b   : > { %v822_v63 = vsub.f32 %v1889_v5, %v744_v62 }
 0x12c   : > { %v878_v12 = vmul.f32 1.442695, %v830_v6 }
 0x12d   : > { %v2036_v4 = vpop.eup %1571  ;;  %v862_v8 = vmul.f32 1.442695, %v822_v63 }
 0x12e   : > { %v910_v9 = vsel %vm717_vm1, %v2036_v4, 0.0 }
 0x12f   : > { %1573 = vpow2.f32 %v862_v8  ;;  %911 = vadd.xlane.f32.xlu1 %v910_v9 }
 0x130   : > { %1575 = vpow2.f32 %v878_v12 }
 0x131   : > { %v771_v10 = vpop.xlane.xlu2 %770  ;;  %v792_v11 = vpop.xlane.xlu0 %791 }
 0x132   : > { %v838_v2 = vsub.f32 %v1897_v13, %v792_v11  ;;  %v747_v19 = vpop.xlane.xlu1 %746 }
 0x133   : > { %v823_v21 = vsub.f32 %v1902_v15, %v747_v19  ;;  %v831_v15 = vsub.f32 %v1904_v17, %v771_v10 }
 0x134   : > { %v894_v20 = vmul.f32 1.442695, %v838_v2 }
 0x135   : > { %v2043_v5 = vpop.eup %1573  ;;  %v864_v22 = vmul.f32 1.442695, %v823_v21 }
 0x136   : > { %1577 = vpow2.f32 %v894_v20  ;;  %v934_v7 = vsel %vm717_vm1, %v2043_v5, 0.0  ;;  %v2049_v33 = vpop.eup %1575 }
 0x137   : > { %935 = vadd.xlane.f32.xlu0 %v934_v7  ;;  %1579 = vpow2.f32 %v864_v22 }
 0x139   : > { %v795_v23 = vpop.xlane.xlu2 %794  ;;  %v723_v24 = vpop.xlane.xlu0 %722 }
 0x13a   : > { %v839_v31 = vsub.f32 %v1917_v26, %v795_v23  ;;  %v815_v32 = vsub.f32 %v1915_v25, %v723_v24  ;;  %v726_v13 = vpop.xlane.xlu1 %725  ;;  %v958_v25 = vsel %vm717_vm1, %v2049_v33, 0.0  ;;  %v880_v26 = vmul.f32 1.442695, %v831_v15 }
 0x13b   : > { %v816_v43 = vsub.f32 %v1919_v27, %v726_v13 }
 0x13c   : > { %v896_v36 = vmul.f32 1.442695, %v839_v31  ;;  %v848_v37 = vmul.f32 1.442695, %v815_v32  ;;  %v2052_v38 = vpop.eup %1577 }
 0x13d   : > { %v982_v44 = vsel %vm717_vm1, %v2052_v38, 0.0  ;;  %v850_v45 = vmul.f32 1.442695, %v816_v43  ;;  %v2060_v53 = vpop.eup %1579 }
 0x13e   : > { %1581 = vpow2.f32 %v896_v36  ;;  %983 = vadd.xlane.f32.xlu2 %v982_v44  ;;  %v937_v63 = vsel %vm717_vm1, %v2060_v53, 0.0 }
 0x13f   : > { %1583 = vpow2.f32 %v848_v37  ;;  %959 = vadd.xlane.f32.xlu0 %v958_v25 }
 0x140   : > { %1585 = vpow2.f32 %v880_v26 }
 0x141   : > { %v750_v17 = vpop.xlane.xlu2 %749  ;;  %v798_v49 = vpop.xlane.xlu0 %797  ;;  %1587 = vpow2.f32 %v850_v45 }
 0x142   : > { %v824_v50 = vsub.f32 %v1927_v34, %v750_v17  ;;  %v801_v57 = vpop.xlane.xlu1 %800  ;;  %v840_v59 = vsub.f32 %v1929_v35, %v798_v49 }
 0x143   : > { %v841_v61 = vsub.f32 %v1938_v41, %v801_v57 }
 0x144   : > { %v2062_v27 = vpop.eup %1581  ;;  %v866_v58 = vmul.f32 1.442695, %v824_v50  ;;  %v898_v6 = vmul.f32 1.442695, %v840_v59 }
 0x145   : > { %v2065_v60 = vpop.eup %1583  ;;  %v985_v62 = vsel %vm717_vm1, %v2062_v27, 0.0  ;;  %v900_v35 = vmul.f32 1.442695, %v841_v61 }
 0x146   : > { %1589 = vpow2.f32 %v866_v58  ;;  %v913_v34 = vsel %vm717_vm1, %v2065_v60, 0.0  ;;  %986 = vadd.xlane.f32.xlu1 %v985_v62  ;;  %v2074_v10 = vpop.eup %1585 }
 0x147   : > { %914 = vadd.xlane.f32.xlu2 %v913_v34  ;;  %938 = vadd.xlane.f32.xlu0 %v937_v63  ;;  %v2077_v11 = vpop.eup %1587  ;;  %1591 = vpow2.f32 %v898_v6  ;;  %v961_v22 = vsel %vm717_vm1, %v2074_v10, 0.0 }
 0x148   : > { %1593 = vpow2.f32 %v900_v35 }
 0x149   : > { %v774_v8 = vpop.xlane.xlu2 %773  ;;  %v753_v9 = vpop.xlane.xlu0 %752 }
 0x14a   : > { %v832_v41 = vsub.f32 %v1947_v47, %v774_v8  ;;  %v756_v12 = vpop.xlane.xlu1 %755  ;;  %v825_v20 = vsub.f32 %v1945_v46, %v753_v9  ;;  %v916_v47 = vsel %vm717_vm1, %v2077_v11, 0.0 }
 0x14b   : > { %v826_v21 = vsub.f32 %v1949_v48, %v756_v12 }
 0x14c   : > { %v2079_v2 = vpop.eup %1589  ;;  %v882_v19 = vmul.f32 1.442695, %v832_v41  ;;  %v868_v23 = vmul.f32 1.442695, %v825_v20 }
 0x14d   : > { %v940_v7 = vsel %vm717_vm1, %v2079_v2, 0.0  ;;  %v870_v24 = vmul.f32 1.442695, %v826_v21  ;;  %v2089_v32 = vpop.eup %1591 }
 0x14e   : > { %1595 = vpow2.f32 %v882_v19  ;;  %941 = vadd.xlane.f32.xlu1 %v940_v7  ;;  %v2092_v13 = vpop.eup %1593  ;;  %v988_v26 = vsel %vm717_vm1, %v2089_v32, 0.0 }
 0x14f   : > { %962 = vadd.xlane.f32.xlu2 %v961_v22  ;;  %917 = vadd.xlane.f32.xlu0 %v916_v47  ;;  %1597 = vpow2.f32 %v868_v23 }
 0x150   : > { %1599 = vpow2.f32 %v870_v24 }
 0x151   : > { %v729_v31 = vpop.xlane.xlu2 %728  ;;  %v777_v46 = vpop.xlane.xlu0 %776 }
 0x152   : > { %v817_v48 = vsub.f32 %v1957_v54, %v729_v31  ;;  %v780_v15 = vpop.xlane.xlu1 %779  ;;  %v833_v43 = vsub.f32 %v1959_v55, %v777_v46  ;;  %v991_v54 = vsel %vm717_vm1, %v2092_v13, 0.0 }
 0x153   : > { %v834_v44 = vsub.f32 %v1961_v56, %v780_v15 }
 0x154   : > { %v2094_v36 = vpop.eup %1595  ;;  %v852_v37 = vmul.f32 1.442695, %v817_v48  ;;  %v884_v45 = vmul.f32 1.442695, %v833_v43 }
 0x155   : > { %v964_v25 = vsel %vm717_vm1, %v2094_v36, 0.0  ;;  %v886_v17 = vmul.f32 1.442695, %v834_v44  ;;  %v2104_v50 = vpop.eup %1597 }
 0x156   : > { %1601 = vpow2.f32 %v852_v37  ;;  %965 = vadd.xlane.f32.xlu1 %v964_v25  ;;  %v2107_v57 = vpop.eup %1599  ;;  %v943_v6 = vsel %vm717_vm1, %v2104_v50, 0.0  ;;  %v343_v25 = vld [vmem:[%s2145_s19 + $0xb8] sm:$0xff] }
 0x157   : > { %989 = vadd.xlane.f32.xlu2 %v988_v26  ;;  %992 = vadd.xlane.f32.xlu0 %v991_v54  ;;  %1603 = vpow2.f32 %v884_v45  ;;  %v351_v26 = vld [vmem:[%s2145_s19 + $0xf8] sm:$0xff] }
 0x158   : > { %1605 = vpow2.f32 %v886_v17  ;;  %v327_v54 = vld [vmem:[%s2145_s19 + $0x38] sm:$0xff]  ;;  %1232 = vmatpush.msrb.mxu2 %v343_v25  ;;  %v342_v17 = vld [vmem:[%s2145_s19 + $0xb0] sm:$0xff]  ;;  %1297 = vmatpush.msrb.mxu3 %v351_v26  ;;  %v333_v25 = vld [vmem:[%s2145_s19 + $0x68] sm:$0xff] }
 0x159   : > { %v804_v49 = vpop.xlane.xlu2 %803  ;;  %v732_v55 = vpop.xlane.xlu0 %731  ;;  %1102 = vmatpush.msrb.mxu0 %v327_v54 }
 0x15a   : > { %v842_v56 = vsub.f32 %v1974_v1, %v804_v49  ;;  %v735_v58 = vpop.xlane.xlu1 %734  ;;  %v818_v62 = vsub.f32 %v1972_v0, %v732_v55  ;;  %v946_v1 = vsel %vm717_vm1, %v2107_v57, 0.0  ;;  %v350_v49 = vld [vmem:[%s2145_s19 + $0xf0] sm:$0xff]  ;;  %1233 = vmatpush.msrb.mxu2 %v342_v17 }
 0x15b   : > { %v819_v63 = vsub.f32 %v1976_v3, %v735_v58  ;;  %1298 = vmatpush.msrb.mxu3 %v350_v49 }
 0x15c   : > { %v2109_v59 = vpop.eup %1601  ;;  %v902_v61 = vmul.f32 1.442695, %v842_v56  ;;  %v854_v35 = vmul.f32 1.442695, %v818_v62  ;;  %v334_v62 = vld [vmem:[%s2145_s19 + $0x70] sm:$0xff] }
 0x15d   : > { %v919_v34 = vsel %vm717_vm1, %v2109_v59, 0.0  ;;  %v2119_v41 = vpop.eup %1603  ;;  %v856_v0 = vmul.f32 1.442695, %v819_v63  ;;  %v341_v63 = vld [vmem:[%s2145_s19 + $0xa8] sm:$0xff] }
 0x15e   : > { %1607 = vpow2.f32 %v902_v61  ;;  %920 = vadd.xlane.f32.xlu1 %v919_v34  ;;  %v2121_v12 = vpop.eup %1605  ;;  %v967_v7 = vsel %vm717_vm1, %v2119_v41, 0.0  ;;  %v326_v61 = vld [vmem:[%s2145_s19 + $0x30] sm:$0xff]  ;;  %v325_v34 = vld [vmem:[%s2145_s19 + $0x28] sm:$0xff]  ;;  %1234 = vmatpush.msrb.mxu2 %v341_v63  ;;  %v320_v63 = vld [vmem:[%s2145_s19] sm:$0xff] }
 0x15f   : > { %944 = vadd.xlane.f32.xlu2 %v943_v6  ;;  %947 = vadd.xlane.f32.xlu0 %v946_v1  ;;  %1609 = vpow2.f32 %v854_v35  ;;  %v970_v22 = vsel %vm717_vm1, %v2121_v12, 0.0  ;;  %v349_v6 = vld [vmem:[%s2145_s19 + $0xe8] sm:$0xff] }
 0x160   : > { %1611 = vpow2.f32 %v856_v0  ;;  %1103 = vmatpush.msrb.mxu0 %v326_v61  ;;  %1299 = vmatpush.msrb.mxu3 %v349_v6  ;;  %v321_v61 = vld [vmem:[%s2145_s19 + $0x8] sm:$0xff]  ;;  %v332_v6 = vld [vmem:[%s2145_s19 + $0x60] sm:$0xff] }
 0x161   : > { %v759_v8 = vpop.xlane.xlu2 %758  ;;  %v807_v9 = vpop.xlane.xlu0 %806 }
 0x162   : > { %v2123_v19 = vpop.xlane.xlu1 %761  ;;  %v843_v20 = vsub.f32 %v1989_v16, %v807_v9  ;;  %v827_v15 = vsub.f32 %v1987_v14, %v759_v8  ;;  %1104 = vmatpush.msrb.mxu0 %v325_v34 }
 0x163   : > { %v828_v9 = vsub.f32 %v1991_v18, %v2123_v19 }
 0x164   : > { %v2125_v3 = vpop.eup %1607  ;;  %v904_v47 = vmul.f32 1.442695, %v843_v20  ;;  %v872_v45 = vmul.f32 1.442695, %v827_v15 }
 0x165   : > { %v994_v21 = vsel %vm717_vm1, %v2125_v3, 0.0  ;;  %v2135_v16 = vpop.eup %1609 }
 0x166   : > { %995 = vadd.xlane.f32.xlu1 %v994_v21  ;;  %v2137_v48 = vpop.eup %1611  ;;  %1613 = vpow2.f32 %v904_v47  ;;  %v922_v14 = vsel %vm717_vm1, %v2135_v16, 0.0 }
 0x167   : > { %968 = vadd.xlane.f32.xlu2 %v967_v7  ;;  %971 = vadd.xlane.f32.xlu0 %v970_v22  ;;  %v874_v22 = vmul.f32 1.442695, %v828_v9  ;;  %v331_v9 = vld [vmem:[%s2145_s19 + $0x58] sm:$0xff] }
 0x169   : > { %v783_v23 = vpop.xlane.xlu2 %782  ;;  %v786_v24 = vpop.xlane.xlu0 %785 }
 0x16a   : > { %v835_v31 = vsub.f32 %v2001_v29, %v783_v23  ;;  %v810_v46 = vpop.xlane.xlu1 %809  ;;  %v836_v29 = vsub.f32 %v1999_v28, %v786_v24  ;;  %v335_v28 = vld [vmem:[%s2145_s19 + $0x78] sm:$0xff] }
 0x16b   : > { %v844_v43 = vsub.f32 %v2003_v30, %v810_v46  ;;  %v925_v30 = vsel %vm717_vm1, %v2137_v48, 0.0  ;;  %1167 = vmatpush.msrb.mxu1 %v335_v28  ;;  %v340_v28 = vld [vmem:[%s2145_s19 + $0xa0] sm:$0xff] }
 0x16c   : > { %v888_v37 = vmul.f32 1.442695, %v835_v31  ;;  %v890_v55 = vmul.f32 1.442695, %v836_v29  ;;  %v2163_v1 = vpop.eup %1613  ;;  %1235 = vmatpush.msrb.mxu2 %v340_v28 }
 0x16d   : > { %v906_v44 = vmul.f32 1.442695, %v844_v43  ;;  %1168 = vmatpush.msrb.mxu1 %v334_v62  ;;  %v997_v21 = vsel %vm717_vm1, %v2163_v1, 0.0 }
 0x16e   : > { %1615 = vpow2.f32 %v888_v37 }
 0x16f   : > { %923 = vadd.xlane.f32.xlu2 %v922_v14  ;;  %1617 = vpow2.f32 %v906_v44  ;;  %926 = vadd.xlane.f32.xlu0 %v925_v30 }
 0x170   : > { %1619 = vpow2.f32 %v872_v45  ;;  %v323_v45 = vld [vmem:[%s2145_s19 + $0x18] sm:$0xff]  ;;  %1169 = vmatpush.msrb.mxu1 %v333_v25 }
 0x171   : > { %v738_v56 = vpop.xlane.xlu2 %737  ;;  %v765_v58 = vpop.xlane.xlu0 %764  ;;  %1621 = vpow2.f32 %v890_v55  ;;  %v348_v55 = vld [vmem:[%s2145_s19 + $0xe0] sm:$0xff] }
 0x172   : > { %v820_v8 = vsub.f32 %v2014_v39, %v738_v56  ;;  %v741_v23 = vpop.xlane.xlu1 %740  ;;  %v829_v46 = vsub.f32 %v2016_v40, %v765_v58  ;;  %v322_v56 = vld [vmem:[%s2145_s19 + $0x10] sm:$0xff]  ;;  %1300 = vmatpush.msrb.mxu3 %v348_v55  ;;  %1170 = vmatpush.msrb.mxu1 %v332_v6 }
 0x173   : > { %v821_v43 = vsub.f32 %v2018_v42, %v741_v23  ;;  %v324_v42 = vld [vmem:[%s2145_s19 + $0x20] sm:$0xff]  ;;  %v346_v23 = vld [vmem:[%s2145_s19 + $0xd0] sm:$0xff] }
 0x174   : > { %v2165_v35 = vpop.eup %1615  ;;  %v858_v7 = vmul.f32 1.442695, %v820_v8  ;;  %1105 = vmatpush.msrb.mxu0 %v324_v42  ;;  %1171 = vmatpush.msrb.mxu1 %v331_v9 }
 0x175   : > { %v973_v0 = vsel %vm717_vm1, %v2165_v35, 0.0  ;;  %v2172_v20 = vpop.eup %1617 }
 0x176   : > { %974 = vadd.xlane.f32.xlu1 %v973_v0  ;;  %v1000_v39 = vsel %vm717_vm1, %v2172_v20, 0.0  ;;  %v2178_v47 = vpop.eup %1619  ;;  %1623 = vpow2.f32 %v858_v7  ;;  %1106 = vmatpush.msrb.mxu0 %v323_v45  ;;  %v329_v7 = vld [vmem:[%s2145_s19 + $0x48] sm:$0xff] }
 0x177   : > { %998 = vadd.xlane.f32.xlu2 %v997_v21  ;;  %1001 = vadd.xlane.f32.xlu0 %v1000_v39  ;;  %v2181_v31 = vpop.eup %1621  ;;  %1625 = vpow2.f32 %v874_v22  ;;  %v949_v29 = vsel %vm717_vm1, %v2178_v47, 0.0  ;;  %v330_v39 = vld [vmem:[%s2145_s19 + $0x50] sm:$0xff]  ;;  %v339_v22 = vld [vmem:[%s2145_s19 + $0x98] sm:$0xff] }
 0x178   : > { %v976_v44 = vsel %vm717_vm1, %v2181_v31, 0.0  ;;  %1107 = vmatpush.msrb.mxu0 %v322_v56  ;;  %1172 = vmatpush.msrb.mxu1 %v330_v39 }
 0x179   : > { %v813_v18 = vpop.xlane.xlu2 %812  ;;  %v789_v19 = vpop.xlane.xlu0 %788  ;;  %1236 = vmatpush.msrb.mxu2 %v339_v22 }
 0x17a   : > { %v837_v24 = vsub.f32 %v2026_v51, %v789_v19  ;;  %v845_v15 = vsub.f32 %v2028_v52, %v813_v18  ;;  %v876_v51 = vmul.f32 1.442695, %v829_v46  ;;  %v860_v52 = vmul.f32 1.442695, %v821_v43  ;;  %1108 = vmatpush.msrb.mxu0 %v321_v61  ;;  %v347_v18 = vld [vmem:[%s2145_s19 + $0xd8] sm:$0xff]  ;;  %1173 = vmatpush.msrb.mxu1 %v329_v7  ;;  %v328_v19 = vld [vmem:[%s2145_s19 + $0x40] sm:$0xff] }
 0x17b   : > { %1301 = vmatpush.msrb.mxu3 %v347_v18  ;;  %v345_v46 = vld [vmem:[%s2145_s19 + $0xc8] sm:$0xff]  ;;  %v336_v43 = vld [vmem:[%s2145_s19 + $0x80] sm:$0xff] }
 0x17c   : > { %v892_v37 = vmul.f32 1.442695, %v837_v24  ;;  %v908_v40 = vmul.f32 1.442695, %v845_v15  ;;  %v2190_v14 = vpop.eup %1623  ;;  %1109 = vmatpush.msrb.mxu0 %v320_v63  ;;  %v338_v24 = vld [vmem:[%s2145_s19 + $0x90] sm:$0xff]  ;;  %1174 = vmatpush.msrb.mxu1 %v328_v19  ;;  %v337_v15 = vld [vmem:[%s2145_s19 + $0x88] sm:$0xff] }
 0x17d   : > { %v2192_v30 = vpop.eup %1625  ;;  %v928_v54 = vsel %vm717_vm1, %v2190_v14, 0.0  ;;  %1237 = vmatpush.msrb.mxu2 %v338_v24  ;;  %1302 = vmatpush.msrb.mxu3 %v346_v23 }
 0x17e   : > { %950 = vadd.xlane.f32.xlu1 %v949_v29  ;;  %1627 = vpow2.f32 %v892_v37  ;;  %v952_v17 = vsel %vm717_vm1, %v2192_v30, 0.0  ;;  %v344_v37 = vld [vmem:[%s2145_s19 + $0xc0] sm:$0xff] }
 0x17f   : > { %977 = vadd.xlane.f32.xlu2 %v976_v44  ;;  %1629 = vpow2.f32 %v876_v51  ;;  %1303 = vmatpush.msrb.mxu3 %v345_v46 }
 0x180   : > { %1631 = vpow2.f32 %v908_v40  ;;  %1238 = vmatpush.msrb.mxu2 %v337_v15 }
 0x181   : > { %1633 = vpow2.f32 %v860_v52  ;;  %1304 = vmatpush.msrb.mxu3 %v344_v37 }
 0x182   : > { %1239 = vmatpush.msrb.mxu2 %v336_v43 }
 0x184   : > { %v2196_v26 = vpop.eup %1627 }
 0x185   : > { %v979_v49 = vsel %vm717_vm1, %v2196_v26, 0.0  ;;  %v2208_v58 = vpop.eup %1629 }
 0x186   : > { %929 = vadd.xlane.f32.xlu1 %v928_v54  ;;  %980 = vadd.xlane.f32.xlu0 %v979_v49  ;;  %v2211_v62 = vpop.eup %1631  ;;  %v955_v0 = vsel %vm717_vm1, %v2208_v58, 0.0 }
 0x187   : > { %953 = vadd.xlane.f32.xlu2 %v952_v17  ;;  %v2213_v34 = vpop.eup %1633  ;;  %v1003_v8 = vsel %vm717_vm1, %v2211_v62, 0.0 }
 0x188   : > { %v931_v21 = vsel %vm717_vm1, %v2213_v34, 0.0 }
 0x18e   : > { %1004 = vadd.xlane.f32.xlu1 %v1003_v8  ;;  %956 = vadd.xlane.f32.xlu0 %v955_v0 }
 0x18f   : > { %932 = vadd.xlane.f32.xlu2 %v931_v21 }
 0x1a2   : > { %v912_v29 = vpop.xlane.xlu1 %911 }
 0x1a3   : > { %1635 = vrcp.f32 %v912_v29 }
 0x1a9   : > { %v1636_v44 = vpop.eup %1635 }
 0x1aa   : > { %v936_v51 = vpop.xlane.xlu0 %935  ;;  %v1038_v40 = vmul.f32 %v1636_v44, %v2036_v4 }
 0x1ab   : > { %1637 = vrcp.f32 %v936_v51 }
 0x1ac   : > { %1525 = vmatmul.msk.f32.vlgmr.msrb.gmra.mxu0 %vm717_vm1, %v1038_v40 }
 0x1b1   : > { %v1638_v52 = vpop.eup %1637  ;;  %v984_v42 = vpop.xlane.xlu2 %983 }
 0x1b2   : > { %1639 = vrcp.f32 %v984_v42  ;;  %v960_v25 = vpop.xlane.xlu0 %959  ;;  %v1046_v54 = vmul.f32 %v1638_v52, %v2043_v5 }
 0x1b3   : > { %1641 = vrcp.f32 %v960_v25 }
 0x1b4   : > { %1533 = vmatmul.msk.f32.vlgmr.msrb.gmra.mxu1 %vm717_vm1, %v1046_v54 }
 0x1b8   : > { %v1640_v45 = vpop.eup %1639 }
 0x1b9   : > { %v987_v28 = vpop.xlane.xlu1 %986  ;;  %v1642_v17 = vpop.eup %1641  ;;  %v1062_v55 = vmul.f32 %v1640_v45, %v2052_v38 }
 0x1ba   : > { %v915_v49 = vpop.xlane.xlu2 %914  ;;  %1643 = vrcp.f32 %v987_v28  ;;  %v939_v4 = vpop.xlane.xlu0 %938  ;;  %v1054_v56 = vmul.f32 %v1642_v17, %v2049_v33 }
 0x1bb   : > { %1645 = vrcp.f32 %v915_v49  ;;  %1549 = vmatmul.msk.f32.vlgmr.msrb.gmra.mxu3 %vm717_vm1, %v1062_v55 }
 0x1bc   : > { %1647 = vrcp.f32 %v939_v4  ;;  %1541 = vmatmul.msk.f32.vlgmr.msrb.gmra.mxu2 %vm717_vm1, %v1054_v56 }
 0x1c0   : > { %v1644_v5 = vpop.eup %1643 }
 0x1c1   : > { %v1646_v61 = vpop.eup %1645  ;;  %v942_v63 = vpop.xlane.xlu1 %941  ;;  %v1063_v6 = vmul.f32 %v1644_v5, %v2062_v27 }
 0x1c2   : > { %v1648_v8 = vpop.eup %1647  ;;  %v963_v9 = vpop.xlane.xlu2 %962  ;;  %1649 = vrcp.f32 %v942_v63  ;;  %v1039_v0 = vmul.f32 %v1646_v61, %v2065_v60 }
 0x1c3   : > { %1651 = vrcp.f32 %v963_v9  ;;  %v918_v38 = vpop.xlane.xlu0 %917  ;;  %v1047_v21 = vmul.f32 %v1648_v8, %v2060_v53  ;;  %1550 = vmatmul.msk.f32.gmra.mxu3 %vm717_vm1, %v1063_v6 }
 0x1c4   : > { %1653 = vrcp.f32 %v918_v38  ;;  %1526 = vmatmul.msk.f32.gmra.mxu0 %vm717_vm1, %v1039_v0 }
 0x1c5   : > { %1534 = vmatmul.msk.f32.gmra.mxu1 %vm717_vm1, %v1047_v21 }
 0x1c8   : > { %v1650_v33 = vpop.eup %1649 }
 0x1c9   : > { %v1652_v39 = vpop.eup %1651  ;;  %v966_v7 = vpop.xlane.xlu1 %965  ;;  %v1048_v53 = vmul.f32 %v1650_v33, %v2079_v2 }
 0x1ca   : > { %v1654_v27 = vpop.eup %1653  ;;  %v990_v22 = vpop.xlane.xlu2 %989  ;;  %1655 = vrcp.f32 %v966_v7  ;;  %v1055_v18 = vmul.f32 %v1652_v39, %v2074_v10 }
 0x1cb   : > { %1657 = vrcp.f32 %v990_v22  ;;  %v993_v60 = vpop.xlane.xlu0 %992  ;;  %v1040_v19 = vmul.f32 %v1654_v27, %v2077_v11 }
 0x1cc   : > { %1542 = vmatmul.msk.f32.gmra.mxu2 %vm717_vm1, %v1055_v18  ;;  %1659 = vrcp.f32 %v993_v60 }
 0x1cd   : > { %1527 = vmatmul.msk.f32.gmra.mxu0 %vm717_vm1, %v1040_v19  ;;  %1535 = vmatmul.msk.f32.gmra.mxu1 %vm717_vm1, %v1048_v53 }
 0x1d0   : > { %v1656_v23 = vpop.eup %1655 }
 0x1d1   : > { %v1658_v24 = vpop.eup %1657  ;;  %v921_v46 = vpop.xlane.xlu1 %920  ;;  %v1056_v15 = vmul.f32 %v1656_v23, %v2094_v36 }
 0x1d2   : > { %v945_v37 = vpop.xlane.xlu2 %944  ;;  %1661 = vrcp.f32 %v921_v46  ;;  %v1064_v10 = vmul.f32 %v1658_v24, %v2089_v32  ;;  %v1660_v2 = vpop.eup %1659 }
 0x1d3   : > { %1663 = vrcp.f32 %v945_v37  ;;  %v948_v11 = vpop.xlane.xlu0 %947  ;;  %v1065_v52 = vmul.f32 %v1660_v2, %v2092_v13 }
 0x1d4   : > { %1543 = vmatmul.msk.f32.gmra.mxu2 %vm717_vm1, %v1056_v15  ;;  %1551 = vmatmul.msk.f32.gmra.mxu3 %vm717_vm1, %v1064_v10  ;;  %1665 = vrcp.f32 %v948_v11 }
 0x1d8   : > { %v1662_v43 = vpop.eup %1661 }
 0x1d9   : > { %v1664_v29 = vpop.eup %1663  ;;  %v996_v44 = vpop.xlane.xlu1 %995  ;;  %v1041_v51 = vmul.f32 %v1662_v43, %v2109_v59 }
 0x1da   : > { %v969_v40 = vpop.xlane.xlu2 %968  ;;  %1667 = vrcp.f32 %v996_v44  ;;  %v1049_v36 = vmul.f32 %v1664_v29, %v2104_v50  ;;  %v1666_v42 = vpop.eup %1665 }
 0x1db   : > { %1669 = vrcp.f32 %v969_v40  ;;  %v972_v32 = vpop.xlane.xlu0 %971  ;;  %1528 = vmatmul.msk.f32.gmra.mxu0 %vm717_vm1, %v1041_v51  ;;  %v1050_v28 = vmul.f32 %v1666_v42, %v2107_v57 }
 0x1dc   : > { %1536 = vmatmul.msk.f32.gmra.mxu1 %vm717_vm1, %v1049_v36  ;;  %1552 = vmatmul.msk.f32.gmra.mxu3 %vm717_vm1, %v1065_v52  ;;  %1671 = vrcp.f32 %v972_v32 }
 0x1e0   : > { %v1668_v25 = vpop.eup %1667 }
 0x1e1   : > { %v1670_v54 = vpop.eup %1669  ;;  %v1066_v59 = vmul.f32 %v1668_v25, %v2125_v3 }
 0x1e2   : > { %v924_v45 = vpop.xlane.xlu2 %923  ;;  %v1057_v50 = vmul.f32 %v1670_v54, %v2119_v41  ;;  %v1672_v17 = vpop.eup %1671 }
 0x1e3   : > { %1673 = vrcp.f32 %v924_v45  ;;  %v927_v13 = vpop.xlane.xlu0 %926  ;;  %v1058_v57 = vmul.f32 %v1672_v17, %v2121_v12 }
 0x1e4   : > { %1537 = vmatmul.msk.f32.gmra.mxu1 %vm717_vm1, %v1050_v28  ;;  %1544 = vmatmul.msk.f32.gmra.mxu2 %vm717_vm1, %v1057_v50  ;;  %1675 = vrcp.f32 %v927_v13 }
 0x1e5   : > { %1553 = vmatmul.msk.f32.gmra.mxu3 %vm717_vm1, %v1066_v59 }
 0x1e9   : > { %v1674_v49 = vpop.eup %1673  ;;  %v975_v55 = vpop.xlane.xlu1 %974 }
 0x1ea   : > { %v999_v4 = vpop.xlane.xlu2 %998  ;;  %1677 = vrcp.f32 %v975_v55  ;;  %v1042_v3 = vmul.f32 %v1674_v49, %v2135_v16  ;;  %v1676_v56 = vpop.eup %1675 }
 0x1eb   : > { %1679 = vrcp.f32 %v999_v4  ;;  %v1002_v41 = vpop.xlane.xlu0 %1001  ;;  %v1043_v9 = vmul.f32 %v1676_v56, %v2137_v48 }
 0x1ec   : > { %1529 = vmatmul.msk.f32.gmra.mxu0 %vm717_vm1, %v1042_v3  ;;  %1545 = vmatmul.msk.f32.gmra.mxu2 %vm717_vm1, %v1058_v57  ;;  %1681 = vrcp.f32 %v1002_v41 }
 0x1f0   : > { %v1678_v5 = vpop.eup %1677 }
 0x1f1   : > { %v1680_v61 = vpop.eup %1679  ;;  %v951_v63 = vpop.xlane.xlu1 %950  ;;  %v1059_v6 = vmul.f32 %v1678_v5, %v2165_v35 }
 0x1f2   : > { %v978_v8 = vpop.xlane.xlu2 %977  ;;  %1683 = vrcp.f32 %v951_v63  ;;  %v1067_v16 = vmul.f32 %v1680_v61, %v2163_v1  ;;  %v1682_v12 = vpop.eup %1681 }
 0x1f3   : > { %1685 = vrcp.f32 %v978_v8  ;;  %v1068_v1 = vmul.f32 %v1682_v12, %v2172_v20 }
 0x1f4   : > { %1530 = vmatmul.msk.f32.gmra.mxu0 %vm717_vm1, %v1043_v9  ;;  %1546 = vmatmul.msk.f32.gmra.mxu2 %vm717_vm1, %v1059_v6 }
 0x1f5   : > { %1554 = vmatmul.msk.f32.gmra.mxu3 %vm717_vm1, %v1067_v16 }
 0x1f8   : > { %v1684_v0 = vpop.eup %1683 }
 0x1f9   : > { %v1686_v38 = vpop.eup %1685  ;;  %v930_v21 = vpop.xlane.xlu1 %929  ;;  %v1051_v33 = vmul.f32 %v1684_v0, %v2178_v47 }
 0x1fa   : > { %v954_v35 = vpop.xlane.xlu2 %953  ;;  %v981_v39 = vpop.xlane.xlu0 %980  ;;  %1687 = vrcp.f32 %v930_v21  ;;  %v1060_v48 = vmul.f32 %v1686_v38, %v2181_v31 }
 0x1fb   : > { %1689 = vrcp.f32 %v954_v35  ;;  %1538 = vmatmul.msk.f32.gmra.mxu1 %vm717_vm1, %v1051_v33 }
 0x1fc   : > { %1691 = vrcp.f32 %v981_v39  ;;  %1547 = vmatmul.msk.f32.gmra.mxu2 %vm717_vm1, %v1060_v48 }
 0x1fd   : > { %1555 = vmatmul.msk.f32.gmra.mxu3 %vm717_vm1, %v1068_v1 }
 0x200   : > { %v1688_v7 = vpop.eup %1687 }
 0x201   : > { %v1690_v27 = vpop.eup %1689  ;;  %v1005_v22 = vpop.xlane.xlu1 %1004  ;;  %v1044_v47 = vmul.f32 %v1688_v7, %v2190_v14 }
 0x202   : > { %v1692_v18 = vpop.eup %1691  ;;  %v957_v60 = vpop.xlane.xlu0 %956  ;;  %1693 = vrcp.f32 %v1005_v22  ;;  %v1052_v31 = vmul.f32 %v1690_v27, %v2192_v30 }
 0x203   : > { %v933_v19 = vpop.xlane.xlu2 %932  ;;  %1695 = vrcp.f32 %v957_v60  ;;  %1531 = vmatmul.msk.f32.gmra.mxu0 %vm717_vm1, %v1044_v47  ;;  %v1061_v20 = vmul.f32 %v1692_v18, %v2196_v26 }
 0x204   : > { %1697 = vrcp.f32 %v933_v19  ;;  %1539 = vmatmul.msk.f32.gmra.mxu1 %vm717_vm1, %v1052_v31 }
 0x205   : > { %1548 = vmatmul.msk.f32.gmra.mxu2 %vm717_vm1, %v1061_v20 }
 0x208   : > { %v1694_v53 = vpop.eup %1693 }
 0x209   : > { %v1696_v23 = vpop.eup %1695  ;;  %v1069_v14 = vmul.f32 %v1694_v53, %v2211_v62 }
 0x20a   : > { %v1698_v24 = vpop.eup %1697  ;;  %v1053_v46 = vmul.f32 %v1696_v23, %v2208_v58 }
 0x20b   : > { %v1045_v30 = vmul.f32 %v1698_v24, %v2213_v34  ;;  %1556 = vmatmul.msk.f32.gmra.mxu3 %vm717_vm1, %v1069_v14 }
 0x20c   : > { %1540 = vmatmul.msk.f32.gmra.mxu1 %vm717_vm1, %v1053_v46 }
 0x20d   : > { %1532 = vmatmul.msk.f32.gmra.mxu0 %vm717_vm1, %v1045_v30 }
 0x229   : > { %v1111_v26 = vpop.f32.mrf.mxu0 }
 0x22a   : > { %1330 = vst.msk [vmem:[%s2303_s22] sm:$0xff] %vm360_vm0, %v1111_v26 }
 0x231   : > { %v1176_v58 = vpop.f32.mrf.mxu1 }
 0x232   : > { %1338 = vst.msk [vmem:[%s2303_s22 + $0x40] sm:$0xff] %vm360_vm0, %v1176_v58 }
 0x23e   : > { %v1306_v15 = vpop.f32.mrf.mxu3 }
 0x23f   : > { %v1241_v62 = vpop.f32.mrf.mxu2  ;;  %1354 = vst.msk [vmem:[%s2303_s22 + $0xc0] sm:$0xff] %vm360_vm0, %v1306_v15 }
 0x240   : > { %1346 = vst.msk [vmem:[%s2303_s22 + $0x80] sm:$0xff] %vm360_vm0, %v1241_v62 }
 0x241   : > { %v1114_v34 = vpop.f32.mrf.mxu0 }
 0x242   : > { %1331 = vst.msk [vmem:[%s2303_s22 + $0x8] sm:$0xff] %vm360_vm0, %v1114_v34  ;;  %v1179_v37 = vpop.f32.mrf.mxu1 }
 0x243   : > { %1339 = vst.msk [vmem:[%s2303_s22 + $0x48] sm:$0xff] %vm360_vm0, %v1179_v37 }
 0x246   : > { %v1309_v2 = vpop.f32.mrf.mxu3 }
 0x247   : > { %1355 = vst.msk [vmem:[%s2303_s22 + $0xc8] sm:$0xff] %vm360_vm0, %v1309_v2 }
 0x24a   : > { %v1117_v10 = vpop.f32.mrf.mxu0  ;;  %v1182_v11 = vpop.f32.mrf.mxu1 }
 0x24b   : > { %1332 = vst.msk [vmem:[%s2303_s22 + $0x10] sm:$0xff] %vm360_vm0, %v1117_v10 }
 0x24c   : > { %1340 = vst.msk [vmem:[%s2303_s22 + $0x50] sm:$0xff] %vm360_vm0, %v1182_v11 }
 0x24f   : > { %v1244_v43 = vpop.f32.mrf.mxu2 }
 0x250   : > { %1347 = vst.msk [vmem:[%s2303_s22 + $0x88] sm:$0xff] %vm360_vm0, %v1244_v43 }
 0x257   : > { %v1247_v29 = vpop.f32.mrf.mxu2  ;;  %v1312_v44 = vpop.f32.mrf.mxu3 }
 0x258   : > { %1348 = vst.msk [vmem:[%s2303_s22 + $0x90] sm:$0xff] %vm360_vm0, %v1247_v29  ;;  %v1120_v51 = vpop.f32.mrf.mxu0 }
 0x259   : > { %1356 = vst.msk [vmem:[%s2303_s22 + $0xd0] sm:$0xff] %vm360_vm0, %v1312_v44  ;;  %v1185_v40 = vpop.f32.mrf.mxu1 }
 0x25a   : > { %1333 = vst.msk [vmem:[%s2303_s22 + $0x18] sm:$0xff] %vm360_vm0, %v1120_v51 }
 0x25b   : > { %1341 = vst.msk [vmem:[%s2303_s22 + $0x58] sm:$0xff] %vm360_vm0, %v1185_v40 }
 0x25f   : > { %v1315_v36 = vpop.f32.mrf.mxu3 }
 0x260   : > { %1357 = vst.msk [vmem:[%s2303_s22 + $0xd8] sm:$0xff] %vm360_vm0, %v1315_v36 }
 0x261   : > { %v1188_v42 = vpop.f32.mrf.mxu1 }
 0x262   : > { %1342 = vst.msk [vmem:[%s2303_s22 + $0x60] sm:$0xff] %vm360_vm0, %v1188_v42 }
 0x267   : > { %v1250_v52 = vpop.f32.mrf.mxu2 }
 0x268   : > { %1349 = vst.msk [vmem:[%s2303_s22 + $0x98] sm:$0xff] %vm360_vm0, %v1250_v52  ;;  %v1318_v54 = vpop.f32.mrf.mxu3 }
 0x269   : > { %v1123_v32 = vpop.f32.mrf.mxu0  ;;  %1358 = vst.msk [vmem:[%s2303_s22 + $0xe0] sm:$0xff] %vm360_vm0, %v1318_v54 }
 0x26a   : > { %1334 = vst.msk [vmem:[%s2303_s22 + $0x20] sm:$0xff] %vm360_vm0, %v1123_v32 }
 0x26f   : > { %v1253_v25 = vpop.f32.mrf.mxu2 }
 0x270   : > { %1350 = vst.msk [vmem:[%s2303_s22 + $0xa0] sm:$0xff] %vm360_vm0, %v1253_v25 }
 0x271   : > { %v1126_v59 = vpop.f32.mrf.mxu0 }
 0x272   : > { %1335 = vst.msk [vmem:[%s2303_s22 + $0x28] sm:$0xff] %vm360_vm0, %v1126_v59 }
 0x277   : > { %v1256_v45 = vpop.f32.mrf.mxu2 }
 0x278   : > { %v1191_v28 = vpop.f32.mrf.mxu1  ;;  %v1321_v50 = vpop.f32.mrf.mxu3  ;;  %1351 = vst.msk [vmem:[%s2303_s22 + $0xa8] sm:$0xff] %vm360_vm0, %v1256_v45 }
 0x279   : > { %1343 = vst.msk [vmem:[%s2303_s22 + $0x68] sm:$0xff] %vm360_vm0, %v1191_v28 }
 0x27a   : > { %1359 = vst.msk [vmem:[%s2303_s22 + $0xe8] sm:$0xff] %vm360_vm0, %v1321_v50 }
 0x27f   : > { %v1259_v49 = vpop.f32.mrf.mxu2 }
 0x280   : > { %v1129_v13 = vpop.f32.mrf.mxu0  ;;  %v1324_v55 = vpop.f32.mrf.mxu3  ;;  %1352 = vst.msk [vmem:[%s2303_s22 + $0xb0] sm:$0xff] %vm360_vm0, %v1259_v49 }
 0x281   : > { %1336 = vst.msk [vmem:[%s2303_s22 + $0x30] sm:$0xff] %vm360_vm0, %v1129_v13  ;;  %v1194_v17 = vpop.f32.mrf.mxu1 }
 0x282   : > { %1344 = vst.msk [vmem:[%s2303_s22 + $0x70] sm:$0xff] %vm360_vm0, %v1194_v17 }
 0x283   : > { %1360 = vst.msk [vmem:[%s2303_s22 + $0xf0] sm:$0xff] %vm360_vm0, %v1324_v55 }
 0x288   : > { %v1262_v57 = vpop.f32.mrf.mxu2 }
 0x289   : > { %v1197_v4 = vpop.f32.mrf.mxu1  ;;  %1353 = vst.msk [vmem:[%s2303_s22 + $0xb8] sm:$0xff] %vm360_vm0, %v1262_v57 }
 0x28a   : > { %v1132_v3 = vpop.f32.mrf.mxu0  ;;  %1345 = vst.msk [vmem:[%s2303_s22 + $0x78] sm:$0xff] %vm360_vm0, %v1197_v4 }
 0x28b   : > { %1337 = vst.msk [vmem:[%s2303_s22 + $0x38] sm:$0xff] %vm360_vm0, %v1132_v3 }
 0x28e   : > { %v1327_v41 = vpop.f32.mrf.mxu3 }
 0x28f   : > { %1361 = vst.msk [vmem:[%s2303_s22 + $0xf8] sm:$0xff] %vm360_vm0, %v1327_v41 }
 0x290 PF: > { %s14_s15 = sadd.s32 1, %s1705_s15  }
 0x291   : > { %p11_p4 = scmp.ge.s32.totalorder %s14_s15, 4  }
 0x293   :  { %13 = sbr.rel (!%p11_p4) target bundleno = 1 (0x1), region = 72 }

// kernel: transformer_forward.31
= control target key start
LH: loop header
LB: loop body
LE: loop exit
PB: predicated region body
PF: predicated region fallthrough
CT: control target
= control target key end

     0   :  { %12 = vsyncpa [#allocation3], 0  ;;  %s3290_s0 = inlined_call_operand.vmem [shape: f32[512,32], index: 0, kind: input, shape index: {}]   ;;  %s3291_s1 = inlined_call_operand.vmem [shape: f32[1,32], index: 1, kind: input, shape index: {}]   ;;  %s3292_s2 = inlined_call_operand.vmem [shape: f32[1,32], index: 2, kind: input, shape index: {}]   ;;  %s3293_s3 = inlined_call_operand.vmem [shape: f32[32,128], index: 3, kind: input, shape index: {}]   ;;  %s3294_s4 = inlined_call_operand.vmem [shape: f32[1,128], index: 4, kind: input, shape index: {}]   ;;  %s3295_s5 = inlined_call_operand.vmem [shape: f32[128,32], index: 5, kind: input, shape index: {}]   ;;  %s3296_s6 = inlined_call_operand.vmem [shape: f32[1,32], index: 6, kind: input, shape index: {}]   ;;  %s3297_s7 = inlined_call_operand.hbm [shape: f32[512,32], index: 7, kind: output, shape index: {}]  }
   0x1   :  { %14 = vsyncpa [#allocation3 + $0x1], 0  ;;  %s2097_s24 = smov 0   ;;  %s2099_s25 = smov 0  }
   0x2   :  { %s2101_s26 = smov 0   ;;  %s2103_s27 = smov 0  }
   0x3 LB: > { %s2118_s28 = sadd.s32 4294967295, %s2052_s27   ;;  %s1780_s29 = sadd.s32 4294967294, %s2052_s27   ;;  %s2052_s27 = sphi %s2103_s27, %s3323_s27   ;;  %s2048_s26 = sphi %s2101_s26, %s3322_s26   ;;  %s2044_s25 = sphi %s2099_s25, %s3321_s25   ;;  %s2040_s24 = sphi %s2097_s24, %s3320_s24  }
   0x4   : > { %s2122_s30 = sadd.s32 1, %s2052_s27   ;;  %s179_s8 = sadd.s32 1, %s2048_s26 }
   0x5   : > { %s176_s9 = ssub.s32 %s2052_s27, %s2122_s30  ;;  %p189_p0 = scmp.ne.s32.totalorder %s2048_s26, %s2044_s25 }
   0x6   : > { %p177_p1 = scmp.eq.s32.totalorder %s176_s9, 0  ;;  %p190_p2 = scmp.eq.s32.totalorder %s2118_s28, 3 }
   0x7   : > { %p195_p3 = scmp.ne.s32.totalorder %s2044_s25, %s2040_s24  ;;  %p196_p4 = scmp.eq.s32.totalorder %s1780_s29, 3 }
   0x8   : > { %s2133_s10 = scalar_select %p177_p1, %s2048_s26, %s179_s8  }
   0x9   : > { %p2135_p5 = por %p190_p2, %p189_p0  ;;  %p2139_p6 = por %p196_p4, %p195_p3 }
   0xa   : > { %p1783_p7 = scmp.ge.s32.totalorder %s2052_s27, 1  ;;  %p241_p8 = scmp.lt.s32.totalorder %s2052_s27, 5 }
   0xc   : > { %p242_p9 = pnand %p1783_p7, %p241_p8 }
   0xd   : > { %s1785_s13 = sshll.u32 (!%p242_p9), %s2118_s28, 4  ;;  %s1824_s19 = sshll.u32 (!%p242_p9), %s2118_s28, 7 }
   0xe   : > { %245 = sbr.rel (%p242_p9) target bundleno = 804 (0x324), region = 48  ;;  %p274_p10 = scmp.lt.s32.totalorder (!%p242_p9), %s1785_s13, 63 }
   0xf   : > { %s1714_s22 = scalar_lea.hbm (!%p242_p9), %s3297_s7, %s1824_s19 }
  0x10   : > { %s1717_s29 = sshll.u32 (!%p242_p9), %s1714_s22, 4  ;;  %s1718_s29 = int_to_ptr.hbm [resolvable:$true] %s1717_s29 }
  0x11   : > { %s2004_s8 = sshra.s32 (!%p242_p9), %s1718_s29, 4  ;;  %s2005_s8 = int_to_ptr.hbm [resolvable:$true] %s2004_s8 }
  0x12   : > { %s2006_s9 = scalar_lea.hbm (!%p242_p9), %s2005_s8, 128  ;;  %p2011_p0 = scmp.lt.s32.totalorder (!%p242_p9), %s2005_s8, %s3297_s7 }
  0x13   : > { %s3325_s13 = smov (!%p274_p10, %s1785_s13), 63  ;;  %vm296_vm0 = vcmask 261120   ;;  %v2054_v18 = vmov 32.0   ;;  %p2007_p11 = scmp.ne.s32.totalorder %s2005_s8, %s2006_s9 }
  0x14   : > { %s1786_s14 = sshll.u32 %s3325_s13, 3  ;;  %1907 = vrcp.f32 %v2054_v18  ;;  %s270_s13 = sand.u32 1, %s2044_s25  }
  0x15   : > { %s2149_s17 = scalar_lea.vmem %s3290_s0, %s1786_s14  ;;  %s3106_s16 = sshll.u32 %s270_s13, 7 }
  0x16   : > { %v2152_v0 = vld [vmem:[%s2149_s17 + $0x20] sm:$0xff]  ;;  %v282_v4 = vld [vmem:[%s2149_s17 + $0x10] sm:$0xff]  ;;  %v285_v6 = vld [vmem:[%s2149_s17 + $0x28] sm:$0xff]  ;;  %s3131_s18 = scalar_lea.vmem [#allocation2], %s3106_s16  ;;  %s1703_s28 = scalar_lea.sflag [#allocation3], %s270_s13 }
  0x17   : > { %v280_v1 = vld [vmem:[%s2149_s17] sm:$0xff]  ;;  %v309_v2 = vsel %vm296_vm0, %v2152_v0, 0.0  ;;  %v303_v5 = vsel %vm296_vm0, %v282_v4, 0.0  ;;  %v281_v7 = vld [vmem:[%s2149_s17 + $0x8] sm:$0xff]  ;;  %v283_v8 = vld [vmem:[%s2149_s17 + $0x18] sm:$0xff]  ;;  %v312_v9 = vsel %vm296_vm0, %v285_v6, 0.0  ;;  %p2008_p12 = pnand %p2007_p11, %p2135_p5 }
  0x18   : > { %v297_v3 = vsel %vm296_vm0, %v280_v1, 0.0  ;;  %310 = vadd.xlane.f32.xlu2 %v309_v2  ;;  %304 = vadd.xlane.f32.xlu1 %v303_v5  ;;  %v300_v10 = vsel %vm296_vm0, %v281_v7, 0.0  ;;  %v306_v11 = vsel %vm296_vm0, %v283_v8, 0.0  ;;  %v2167_v12 = vld [vmem:[%s2149_s17 + $0x30] sm:$0xff]  ;;  %v2177_v16 = vld [vmem:[%s2149_s17 + $0x58] sm:$0xff]  ;;  %v2182_v19 = vld [vmem:[%s2149_s17 + $0x60] sm:$0xff] }
  0x19   : > { %298 = vadd.xlane.f32.xlu0 %v297_v3  ;;  %v315_v13 = vsel %vm296_vm0, %v2167_v12, 0.0  ;;  %v2172_v14 = vld [vmem:[%s2149_s17 + $0x50] sm:$0xff]  ;;  %v330_v17 = vsel %vm296_vm0, %v2177_v16, 0.0  ;;  %v333_v20 = vsel %vm296_vm0, %v2182_v19, 0.0  ;;  %v2198_v39 = vld [vmem:[%s2149_s17 + $0x38] sm:$0xff]  ;;  %v2216_v50 = vld [vmem:[%s2149_s17 + $0x40] sm:$0xff]  ;;  %p2009_p13 = pneg %p2008_p12 }
  0x1a   : > { %v327_v15 = vsel %vm296_vm0, %v2172_v14, 0.0  ;;  %v1908_v21 = vpop.eup %1907  ;;  %v318_v43 = vsel %vm296_vm0, %v2198_v39, 0.0  ;;  %v2221_v52 = vld [vmem:[%s2149_s17 + $0x78] sm:$0xff]  ;;  %v321_v53 = vsel %vm296_vm0, %v2216_v50, 0.0  ;;  %v2232_v58 = vld [vmem:[%s2149_s17 + $0x48] sm:$0xff]  ;;  %s1715_s23 = sshll.u32 %s3131_s18, 4  ;;  %s1716_s23 = int_to_ptr.vmem [resolvable:$true] %s1715_s23 }
  0x1b   : > { %v346_v22 = vmul.f32 32.0, %v1908_v21  ;;  %vm350_vm1 = vweird.f32 %v1908_v21  ;;  %v342_v54 = vsel %vm296_vm0, %v2221_v52, 0.0  ;;  %v324_v61 = vsel %vm296_vm0, %v2232_v58, 0.0  ;;  %v2244_v2 = vld [vmem:[%s2149_s17 + $0x68] sm:$0xff]  ;;  %s2010_s16 = scalar_lea.hbm %s3297_s7, 512 }
  0x1c   : > { %v336_v5 = vsel %vm296_vm0, %v2244_v2, 0.0  ;;  %p2012_p1 = scmp.lt.s32.totalorder %s2010_s16, %s2006_s9 }
  0x1d   : > { %v347_v23 = vsub.f32 1.0, %v346_v22 }
  0x1e   : > { %p2013_p2 = por %p2012_p1, %p2011_p0 }
  0x1f   : > { %v348_v24 = vmul.f32 %v1908_v21, %v347_v23 }
  0x20   : > { %313 = vadd.xlane.f32.xlu2 %v312_v9  ;;  %307 = vadd.xlane.f32.xlu1 %v306_v11  ;;  %v2258_v9 = vld [vmem:[%s2149_s17 + $0x70] sm:$0xff]  ;;  %p2014_p3 = pnand %p2013_p2, %p2009_p13 }
  0x21   : > { %301 = vadd.xlane.f32.xlu0 %v300_v10  ;;  %v349_v25 = vadd.f32 %v1908_v21, %v348_v24 }
  0x23   : > { %v2186_v26 = vsel %vm350_vm1, %v1908_v21, %v349_v25  ;;  %v760_v21 = vld [vmem:[%s3293_s3] sm:$0xff] }
  0x28   : > { %316 = vadd.xlane.f32.xlu1 %v315_v13 }
  0x30   : > { %328 = vadd.xlane.f32.xlu1 %v327_v15 }
  0x38   : > { %331 = vadd.xlane.f32.xlu1 %v330_v17  ;;  %v763_v17 = vld [vmem:[%s3293_s3 + $0x18] sm:$0xff] }
  0x39   : > { %828 = vmatpush.msra.mxu0 %v763_v17  ;;  %1825 = vmatpush.msra.mxu3 %v763_v17 }
  0x40   : > { %334 = vadd.xlane.f32.xlu1 %v333_v20  ;;  %v761_v20 = vld [vmem:[%s3293_s3 + $0x8] sm:$0xff] }
  0x8b   : > { %v311_v27 = vpop.xlane.xlu2 %310  ;;  %v305_v32 = vpop.xlane.xlu1 %304 }
  0x8c   : > { %v299_v28 = vpop.xlane.xlu0 %298  ;;  %v354_v38 = vmul.f32 %v2186_v26, %v305_v32  ;;  %v356_v57 = vmul.f32 %v2186_v26, %v311_v27 }
  0x8d   : > { %v352_v29 = vmul.f32 %v2186_v26, %v299_v28 }
  0x8e   : > { %v2210_v45 = vsub.f32 %v282_v4, %v354_v38  ;;  %v2239_v62 = vsub.f32 %v2152_v0, %v356_v57 }
  0x8f   : > { %v2189_v30 = vsub.f32 %v280_v1, %v352_v29 }
  0x90   : > { %v386_v51 = vmul.f32 %v2210_v45, %v2210_v45  ;;  %v388_v3 = vmul.f32 %v2239_v62, %v2239_v62 }
  0x91   : > { %v384_v31 = vmul.f32 %v2189_v30, %v2189_v30 }
  0x92   : > { %v406_v56 = vsel %vm296_vm0, %v386_v51, 0.0  ;;  %v412_v0 = vsel %vm296_vm0, %v388_v3, 0.0 }
  0x93   : > { %v400_v33 = vsel %vm296_vm0, %v384_v31, 0.0  ;;  %v314_v34 = vpop.xlane.xlu2 %313  ;;  %v308_v48 = vpop.xlane.xlu1 %307 }
  0x94   : > { %401 = vadd.xlane.f32.xlu0 %v400_v33  ;;  %v302_v35 = vpop.xlane.xlu0 %301  ;;  %v357_v36 = vmul.f32 %v2186_v26, %v314_v34  ;;  %v355_v49 = vmul.f32 %v2186_v26, %v308_v48 }
  0x95   : > { %v353_v37 = vmul.f32 %v2186_v26, %v302_v35 }
  0x96   : > { %v2200_v40 = vsub.f32 %v285_v6, %v357_v36  ;;  %v2227_v55 = vsub.f32 %v283_v8, %v355_v49 }
  0x97   : > { %v2202_v41 = vsub.f32 %v281_v7, %v353_v37 }
  0x98   : > { %v389_v42 = vmul.f32 %v2200_v40, %v2200_v40  ;;  %v387_v59 = vmul.f32 %v2227_v55, %v2227_v55 }
  0x99   : > { %v385_v44 = vmul.f32 %v2202_v41, %v2202_v41 }
  0x9a   : > { %v415_v46 = vsel %vm296_vm0, %v389_v42, 0.0  ;;  %v409_v63 = vsel %vm296_vm0, %v387_v59, 0.0 }
  0x9b   : > { %v403_v47 = vsel %vm296_vm0, %v385_v44, 0.0  ;;  %416 = vadd.xlane.f32.xlu1 %v415_v46  ;;  %v317_v60 = vpop.xlane.xlu1 %316 }
  0x9c   : > { %319 = vadd.xlane.f32.xlu0 %v318_v43  ;;  %404 = vadd.xlane.f32.xlu2 %v403_v47  ;;  %v358_v1 = vmul.f32 %v2186_v26, %v317_v60 }
  0x9e   : > { %v2249_v4 = vsub.f32 %v2167_v12, %v358_v1  ;;  %v339_v12 = vsel %vm296_vm0, %v2258_v9, 0.0 }
  0xa0   : > { %v390_v8 = vmul.f32 %v2249_v4, %v2249_v4 }
  0xa2   : > { %v418_v11 = vsel %vm296_vm0, %v390_v8, 0.0 }
  0xa3   : > { %343 = vadd.xlane.f32.xlu1 %v342_v54  ;;  %v329_v6 = vpop.xlane.xlu1 %328 }
  0xa4   : > { %322 = vadd.xlane.f32.xlu0 %v321_v53  ;;  %407 = vadd.xlane.f32.xlu2 %v406_v56  ;;  %v362_v7 = vmul.f32 %v2186_v26, %v329_v6 }
  0xa6   : > { %v2261_v10 = vsub.f32 %v2172_v14, %v362_v7  ;;  %v762_v14 = vld [vmem:[%s3293_s3 + $0x10] sm:$0xff] }
  0xa7   : > { %829 = vmatpush.msra.mxu0 %v762_v14  ;;  %1826 = vmatpush.msra.mxu3 %v762_v14 }
  0xa8   : > { %v394_v13 = vmul.f32 %v2261_v10, %v2261_v10 }
  0xa9   : > { %830 = vmatpush.msra.mxu0 %v761_v20  ;;  %1827 = vmatpush.msra.mxu3 %v761_v20 }
  0xaa   : > { %v430_v15 = vsel %vm296_vm0, %v394_v13, 0.0 }
  0xab   : > { %v332_v18 = vpop.xlane.xlu1 %331  ;;  %831 = vmatpush.msra.mxu0 %v760_v21  ;;  %1828 = vmatpush.msra.mxu3 %v760_v21 }
  0xac   : > { %325 = vadd.xlane.f32.xlu0 %v324_v61  ;;  %410 = vadd.xlane.f32.xlu2 %v409_v63  ;;  %v363_v28 = vmul.f32 %v2186_v26, %v332_v18 }
  0xae   : > { %v2291_v37 = vsub.f32 %v2177_v16, %v363_v28 }
  0xb0   : > { %v395_v53 = vmul.f32 %v2291_v37, %v2291_v37 }
  0xb3   : > { %v335_v24 = vpop.xlane.xlu1 %334 }
  0xb4   : > { %337 = vadd.xlane.f32.xlu0 %v336_v5  ;;  %413 = vadd.xlane.f32.xlu2 %v412_v0  ;;  %v364_v43 = vmul.f32 %v2186_v26, %v335_v24 }
  0xb6   : > { %v2302_v54 = vsub.f32 %v2182_v19, %v364_v43  ;;  %v433_v19 = vsel %vm296_vm0, %v395_v53, 0.0 }
  0xb8   : > { %v396_v8 = vmul.f32 %v2302_v54, %v2302_v54 }
  0xbc   : > { %419 = vadd.xlane.f32.xlu0 %v418_v11  ;;  %340 = vadd.xlane.f32.xlu2 %v339_v12 }
  0xc4   : > { %431 = vadd.xlane.f32.xlu0 %v430_v15  ;;  %v2328_v15 = vld [vmem:[%s3292_s2] ss:$0 sm:$0xff] }
 0x107   : > { %v402_v22 = vpop.xlane.xlu0 %401 }
 0x108   : > { %v448_v23 = vmul.f32 %v402_v22, %v2186_v26 }
 0x10a   : > { %v464_v25 = vadd.f32 1e-05, %v448_v23 }
 0x10c   : > { %1909 = vrcp.f32 %v464_v25  ;;  %v491_v46 = vand.u32 2147483648, %v464_v25  ;;  %v489_v49 = vand.u32 2147483647, %v464_v25  ;;  %vm485_vm3 = vweird.f32 %v464_v25 }
 0x10e   : > { %v417_v38 = vpop.xlane.xlu1 %416  ;;  %v492_v60 = vor.u32 1.1754944e-38, %v491_v46  ;;  %vm490_vm5 = vcmp.eq.f32.partialorder %v489_v49, 8.507059e+37 }
 0x10f   : > { %v320_v27 = vpop.xlane.xlu0 %319  ;;  %v405_v29 = vpop.xlane.xlu2 %404  ;;  %v453_v63 = vmul.f32 %v417_v38, %v2186_v26 }
 0x110   : > { %v359_v31 = vmul.f32 %v2186_v26, %v320_v27  ;;  %v449_v32 = vmul.f32 %v405_v29, %v2186_v26  ;;  %v436_v27 = vsel %vm296_vm0, %v396_v8, 0.0 }
 0x111   : > { %v2330_v17 = vadd.f32 1e-05, %v453_v63 }
 0x112   : > { %v1910_v33 = vpop.eup %1909  ;;  %v2286_v34 = vsub.f32 %v2198_v39, %v359_v31  ;;  %v2288_v36 = vadd.f32 1e-05, %v449_v32 }
 0x113   : > { %v481_v35 = vmul.f32 %v1910_v33, %v464_v25  ;;  %vm486_vm2 = vweird.f32 %v1910_v33 }
 0x114   : > { %v391_v42 = vmul.f32 %v2286_v34, %v2286_v34  ;;  %1911 = vrcp.f32 %v2288_v36  ;;  %vm487_vm4 = vmor %vm485_vm3, %vm486_vm2  ;;  %v506_v14 = vand.u32 2147483648, %v2288_v36  ;;  %v504_v21 = vand.u32 2147483647, %v2288_v36 }
 0x115   : > { %v482_v44 = vsub.f32 1.0, %v481_v35  ;;  %vm500_vm7 = vweird.f32 %v2288_v36  ;;  %vm560_vm3 = vweird.f32 %v2330_v17 }
 0x116   : > { %v421_v47 = vsel %vm296_vm0, %v391_v42, 0.0  ;;  %v344_v7 = vpop.xlane.xlu1 %343  ;;  %v507_v38 = vor.u32 1.1754944e-38, %v506_v14  ;;  %vm505_vm9 = vcmp.eq.f32.partialorder %v504_v21, 8.507059e+37 }
 0x117   : > { %v483_v39 = vmul.f32 %v1910_v33, %v482_v44  ;;  %422 = vadd.xlane.f32.xlu2 %v421_v47  ;;  %v323_v48 = vpop.xlane.xlu0 %322  ;;  %v408_v51 = vpop.xlane.xlu2 %407  ;;  %v367_v20 = vmul.f32 %v2186_v26, %v344_v7 }
 0x118   : > { %v360_v16 = vmul.f32 %v2186_v26, %v323_v48  ;;  %v450_v56 = vmul.f32 %v408_v51, %v2186_v26 }
 0x119   : > { %v484_v57 = vadd.f32 %v1910_v33, %v483_v39  ;;  %v2348_v35 = vsub.f32 %v2221_v52, %v367_v20 }
 0x11a   : > { %v2306_v59 = vsub.f32 %v2216_v50, %v360_v16  ;;  %v1912_v61 = vpop.eup %1911  ;;  %v2309_v1 = vadd.f32 1e-05, %v450_v56  ;;  %v2318_v50 = vld [vmem:[%s3291_s1] ss:$0 sm:$0xff] }
 0x11b   : > { %v488_v3 = vsel %vm487_vm4, %v1910_v33, %v484_v57  ;;  %v496_v5 = vmul.f32 %v1912_v61, %v2288_v36  ;;  %vm501_vm6 = vweird.f32 %v1912_v61  ;;  %v399_v48 = vmul.f32 %v2348_v35, %v2348_v35 }
 0x11c   : > { %v392_v0 = vmul.f32 %v2306_v59, %v2306_v59  ;;  %v493_v6 = vsel %vm490_vm5, %v492_v60, %v488_v3  ;;  %1913 = vrcp.f32 %v2309_v1  ;;  %vm502_vm8 = vmor %vm500_vm7, %vm501_vm6  ;;  %v521_v47 = vand.u32 2147483648, %v2309_v1 }
 0x11d   : > { %v497_v11 = vsub.f32 1.0, %v496_v5  ;;  %v494_v13 = vmul.f32 %v493_v6, %v2189_v30  ;;  %1915 = vrcp.f32 %v2330_v17  ;;  %v519_v49 = vand.u32 2147483647, %v2309_v1 }
 0x11e   : > { %v424_v12 = vsel %vm296_vm0, %v392_v0, 0.0  ;;  %vm515_vm11 = vweird.f32 %v2309_v1  ;;  %v522_v0 = vor.u32 1.1754944e-38, %v521_v47 }
 0x11f   : > { %434 = vadd.xlane.f32.xlu2 %v433_v19  ;;  %425 = vadd.xlane.f32.xlu1 %v424_v12  ;;  %v326_v18 = vpop.xlane.xlu0 %325  ;;  %v498_v22 = vmul.f32 %v1912_v61, %v497_v11  ;;  %v411_v23 = vpop.xlane.xlu2 %410  ;;  %v724_v24 = vmul.f32 %v2318_v50, %v494_v13  ;;  %v445_v19 = vsel %vm296_vm0, %v399_v48, 0.0  ;;  %vm520_vm13 = vcmp.eq.f32.partialorder %v519_v49, 8.507059e+37 }
 0x120   : > { %v361_v30 = vmul.f32 %v2186_v26, %v326_v18  ;;  %v451_v25 = vmul.f32 %v411_v23, %v2186_v26 }
 0x121   : > { %v744_v29 = vadd.f32 %v2328_v15, %v724_v24  ;;  %v499_v31 = vadd.f32 %v1912_v61, %v498_v22 }
 0x122   : > { %v2341_v28 = vsub.f32 %v2232_v58, %v361_v30  ;;  %v1914_v32 = vpop.eup %1913  ;;  %v2345_v33 = vadd.f32 1e-05, %v451_v25 }
 0x123   : > { %v511_v42 = vmul.f32 %v1914_v32, %v2309_v1  ;;  %1787 = vmatmul.msk.f32.vlgmr.msra.gmra.mxu0 %vm296_vm0, %v744_v29  ;;  %v503_v36 = vsel %vm502_vm8, %v1912_v61, %v499_v31  ;;  %vm516_vm10 = vweird.f32 %v1914_v32  ;;  %v2363_v57 = vpop.eup %1915 }
 0x124   : > { %v393_v58 = vmul.f32 %v2341_v28, %v2341_v28  ;;  %1917 = vrcp.f32 %v2345_v33  ;;  %v508_v43 = vsel %vm505_vm9, %v507_v38, %v503_v36  ;;  %vm517_vm12 = vmor %vm515_vm11, %vm516_vm10  ;;  %v536_v20 = vand.u32 2147483648, %v2345_v33 }
 0x125   : > { %v512_v44 = vsub.f32 1.0, %v511_v42  ;;  %v509_v52 = vmul.f32 %v508_v43, %v2202_v41  ;;  %v534_v25 = vand.u32 2147483647, %v2345_v33  ;;  %vm530_vm15 = vweird.f32 %v2345_v33 }
 0x126   : > { %v427_v46 = vsel %vm296_vm0, %v393_v58, 0.0  ;;  %v537_v42 = vor.u32 1.1754944e-38, %v536_v20  ;;  %vm561_vm4 = vweird.f32 %v2363_v57 }
 0x127   : > { %437 = vadd.xlane.f32.xlu1 %v436_v27  ;;  %428 = vadd.xlane.f32.xlu0 %v427_v46  ;;  %v338_v39 = vpop.xlane.xlu0 %337  ;;  %v513_v51 = vmul.f32 %v1914_v32, %v512_v44  ;;  %v414_v16 = vpop.xlane.xlu2 %413  ;;  %v725_v56 = vmul.f32 %v2318_v50, %v509_v52  ;;  %vm535_vm2 = vcmp.eq.f32.partialorder %v534_v25, 8.507059e+37  ;;  %vm2415_vm7 = vmor %vm560_vm3, %vm561_vm4 }
 0x128   : > { %v365_v53 = vmul.f32 %v2186_v26, %v338_v39  ;;  %v452_v41 = vmul.f32 %v414_v16, %v2186_v26 }
 0x129   : > { %v745_v61 = vadd.f32 %v2328_v15, %v725_v56  ;;  %v514_v63 = vadd.f32 %v1914_v32, %v513_v51  ;;  %v564_v56 = vand.u32 2147483647, %v2330_v17 }
 0x12a   : > { %v2368_v60 = vsub.f32 %v2244_v2, %v365_v53  ;;  %v1918_v3 = vpop.eup %1917  ;;  %v2371_v5 = vadd.f32 1e-05, %v452_v41  ;;  %v556_v2 = vmul.f32 %v2363_v57, %v2330_v17 }
 0x12b   : > { %v526_v6 = vmul.f32 %v1918_v3, %v2345_v33  ;;  %1788 = vmatmul.msk.f32.gmra.mxu0 %vm296_vm0, %v745_v61  ;;  %v518_v7 = vsel %vm517_vm12, %v1914_v32, %v514_v63  ;;  %vm531_vm14 = vweird.f32 %v1918_v3  ;;  %vm565_vm10 = vcmp.eq.f32.partialorder %v564_v56, 8.507059e+37 }
 0x12c   : > { %v397_v1 = vmul.f32 %v2368_v60, %v2368_v60  ;;  %1919 = vrcp.f32 %v2371_v5  ;;  %v523_v8 = vsel %vm520_vm13, %v522_v0, %v518_v7  ;;  %v557_v30 = vsub.f32 1.0, %v556_v2  ;;  %vm532_vm1 = vmor %vm530_vm15, %vm531_vm14 }
 0x12d   : > { %v527_v11 = vsub.f32 1.0, %v526_v6  ;;  %v524_v13 = vmul.f32 %v523_v8, %v2210_v45  ;;  %v551_v46 = vand.u32 2147483648, %v2371_v5  ;;  %v549_v51 = vand.u32 2147483647, %v2371_v5 }
 0x12e   : > { %v439_v12 = vsel %vm296_vm0, %v397_v1, 0.0  ;;  %v558_v58 = vmul.f32 %v2363_v57, %v557_v30  ;;  %vm545_vm6 = vweird.f32 %v2371_v5 }
 0x12f   : > { %446 = vadd.xlane.f32.xlu1 %v445_v19  ;;  %440 = vadd.xlane.f32.xlu2 %v439_v12  ;;  %v420_v14 = vpop.xlane.xlu0 %419  ;;  %v528_v18 = vmul.f32 %v1918_v3, %v527_v11  ;;  %v341_v21 = vpop.xlane.xlu2 %340  ;;  %v726_v23 = vmul.f32 %v2318_v50, %v524_v13  ;;  %v552_v0 = vor.u32 1.1754944e-38, %v551_v46  ;;  %vm550_vm9 = vcmp.eq.f32.partialorder %v549_v51, 8.507059e+37 }
 0x130   : > { %v454_v22 = vmul.f32 %v420_v14, %v2186_v26  ;;  %v366_v24 = vmul.f32 %v2186_v26, %v341_v21  ;;  %v559_v53 = vadd.f32 %v2363_v57, %v558_v58 }
 0x131   : > { %v746_v45 = vadd.f32 %v2328_v15, %v726_v23  ;;  %v529_v29 = vadd.f32 %v1918_v3, %v528_v18 }
 0x132   : > { %v2388_v27 = vadd.f32 1e-05, %v454_v22  ;;  %v1920_v31 = vpop.eup %1919  ;;  %v2393_v32 = vsub.f32 %v2258_v9, %v366_v24  ;;  %v566_v9 = vand.u32 2147483648, %v2330_v17  ;;  %v563_v17 = vsel %vm2415_vm7, %v2363_v57, %v559_v53 }
 0x133   : > { %v541_v38 = vmul.f32 %v1920_v31, %v2371_v5  ;;  %1789 = vmatmul.msk.f32.gmra.mxu0 %vm296_vm0, %v746_v45  ;;  %v533_v43 = vsel %vm532_vm1, %v1918_v3, %v529_v29  ;;  %vm546_vm5 = vweird.f32 %v1920_v31 }
 0x134   : > { %1921 = vrcp.f32 %v2388_v27  ;;  %v398_v36 = vmul.f32 %v2393_v32, %v2393_v32  ;;  %v538_v44 = vsel %vm535_vm2, %v537_v42, %v533_v43  ;;  %vm547_vm8 = vmor %vm545_vm6, %vm546_vm5  ;;  %v567_v1 = vor.u32 1.1754944e-38, %v566_v9 }
 0x135   : > { %v542_v33 = vsub.f32 1.0, %v541_v38  ;;  %v539_v39 = vmul.f32 %v538_v44, %v2227_v55  ;;  %vm575_vm11 = vweird.f32 %v2388_v27  ;;  %v581_v11 = vand.u32 2147483648, %v2388_v27 }
 0x136   : > { %v442_v52 = vsel %vm296_vm0, %v398_v36, 0.0  ;;  %v568_v13 = vsel %vm565_vm10, %v567_v1, %v563_v17  ;;  %v579_v14 = vand.u32 2147483647, %v2388_v27 }
 0x137   : > { %v432_v47 = vpop.xlane.xlu0 %431  ;;  %v543_v48 = vmul.f32 %v1920_v31, %v542_v33  ;;  %443 = vadd.xlane.f32.xlu0 %v442_v52  ;;  %v727_v16 = vmul.f32 %v2318_v50, %v539_v39  ;;  %v569_v22 = vmul.f32 %v568_v13, %v2200_v40  ;;  %v582_v23 = vor.u32 1.1754944e-38, %v581_v11 }
 0x138   : > { %v458_v49 = vmul.f32 %v432_v47, %v2186_v26  ;;  %vm580_vm15 = vcmp.eq.f32.partialorder %v579_v14, 8.507059e+37 }
 0x139   : > { %v544_v55 = vadd.f32 %v1920_v31, %v543_v48  ;;  %v747_v19 = vadd.f32 %v2328_v15, %v727_v16 }
 0x13a   : > { %v1922_v41 = vpop.eup %1921  ;;  %v474_v61 = vadd.f32 1e-05, %v458_v49 }
 0x13b   : > { %v571_v3 = vmul.f32 %v1922_v41, %v2388_v27  ;;  %v548_v6 = vsel %vm547_vm8, %v1920_v31, %v544_v55  ;;  %1790 = vmatmul.msk.f32.gmra.mxu0 %vm296_vm0, %v747_v19  ;;  %vm576_vm12 = vweird.f32 %v1922_v41  ;;  %v729_v27 = vmul.f32 %v2318_v50, %v569_v22 }
 0x13c   : > { %1923 = vrcp.f32 %v474_v61  ;;  %v553_v5 = vsel %vm550_vm9, %v552_v0, %v548_v6  ;;  %vm577_vm13 = vmor %vm575_vm11, %vm576_vm12  ;;  %vm635_vm14 = vweird.f32 %v474_v61  ;;  %v639_v25 = vand.u32 2147483647, %v474_v61 }
 0x13d   : > { %v572_v7 = vsub.f32 1.0, %v571_v3  ;;  %v554_v2 = vmul.f32 %v553_v5, %v2239_v62  ;;  %v641_v62 = vand.u32 2147483648, %v474_v61  ;;  %v749_v40 = vadd.f32 %v2328_v15, %v729_v27 }
 0x13e   : > { %vm640_vm3 = vcmp.eq.f32.partialorder %v639_v25, 8.507059e+37 }
 0x13f   : > { %v573_v8 = vmul.f32 %v1922_v41, %v572_v7  ;;  %v728_v12 = vmul.f32 %v2318_v50, %v554_v2  ;;  %v642_v31 = vor.u32 1.1754944e-38, %v641_v62 }
 0x141   : > { %v574_v18 = vadd.f32 %v1922_v41, %v573_v8  ;;  %v748_v21 = vadd.f32 %v2328_v15, %v728_v12 }
 0x142   : > { %v1924_v20 = vpop.eup %1923 }
 0x143   : > { %v631_v57 = vmul.f32 %v1924_v20, %v474_v61  ;;  %1791 = vmatmul.msk.f32.gmra.mxu0 %vm296_vm0, %v748_v21  ;;  %v578_v24 = vsel %vm577_vm13, %v1922_v41, %v574_v18  ;;  %vm636_vm1 = vweird.f32 %v1924_v20 }
 0x144   : > { %v583_v29 = vsel %vm580_vm15, %v582_v23, %v578_v24  ;;  %vm637_vm2 = vmor %vm635_vm14, %vm636_vm1 }
 0x145   : > { %v632_v30 = vsub.f32 1.0, %v631_v57  ;;  %v584_v42 = vmul.f32 %v583_v29, %v2249_v4 }
 0x147   : > { %v633_v45 = vmul.f32 %v1924_v20, %v632_v30  ;;  %v730_v9 = vmul.f32 %v2318_v50, %v584_v42 }
 0x149   : > { %v634_v38 = vadd.f32 %v1924_v20, %v633_v45  ;;  %v750_v46 = vadd.f32 %v2328_v15, %v730_v9 }
 0x14b   : > { %v638_v58 = vsel %vm637_vm2, %v1924_v20, %v634_v38  ;;  %1792 = vmatmul.msk.f32.gmra.mxu0 %vm296_vm0, %v749_v40  ;;  %v2470_v20 = vld [vmem:[%s3294_s4] ss:$0 sm:$0xff] }
 0x14c   : > { %v643_v36 = vsel %vm640_vm3, %v642_v31, %v638_v58 }
 0x14d   : > { %v644_v43 = vmul.f32 %v643_v36, %v2261_v10 }
 0x14f   : > { %v734_v33 = vmul.f32 %v2318_v50, %v644_v43 }
 0x151   : > { %v754_v44 = vadd.f32 %v2328_v15, %v734_v33 }
 0x153   : > { %1797 = vmatmul.msk.f32.vlgmr.msra.gmra.mxu3 %vm296_vm0, %v754_v44  ;;  %1793 = vmatmul.msk.f32.gmra.mxu0 %vm296_vm0, %v750_v46 }
 0x18a   : > { %v423_v52 = vpop.xlane.xlu2 %422 }
 0x18b   : > { %v455_v4 = vmul.f32 %v423_v52, %v2186_v26 }
 0x18d   : > { %v471_v47 = vadd.f32 1e-05, %v455_v4 }
 0x18f   : > { %1925 = vrcp.f32 %v471_v47  ;;  %v596_v3 = vand.u32 2147483648, %v471_v47  ;;  %vm590_vm5 = vweird.f32 %v471_v47  ;;  %v594_v1 = vand.u32 2147483647, %v471_v47 }
 0x191   : > { %v597_v13 = vor.u32 1.1754944e-38, %v596_v3  ;;  %vm595_vm7 = vcmp.eq.f32.partialorder %v594_v1, 8.507059e+37 }
 0x192   : > { %v435_v39 = vpop.xlane.xlu2 %434  ;;  %v426_v48 = vpop.xlane.xlu1 %425 }
 0x193   : > { %v459_v10 = vmul.f32 %v435_v39, %v2186_v26  ;;  %v456_v49 = vmul.f32 %v426_v48, %v2186_v26  ;;  %v1594_v39 = vld [vmem:[%s3295_s5 + $0x48] sm:$0xff] }
 0x195   : > { %v1926_v51 = vpop.eup %1925  ;;  %v2447_v16 = vadd.f32 1e-05, %v459_v10  ;;  %v2449_v53 = vadd.f32 1e-05, %v456_v49  ;;  %v1600_v10 = vld [vmem:[%s3295_s5 + $0x78] sm:$0xff] }
 0x196   : > { %v586_v56 = vmul.f32 %v1926_v51, %v471_v47  ;;  %vm591_vm4 = vweird.f32 %v1926_v51  ;;  %1605 = vmatpush.msra.mxu1 %v1600_v10  ;;  %1829 = vmatpush.msra.mxu2 %v1600_v10 }
 0x197   : > { %1927 = vrcp.f32 %v2447_v16  ;;  %vm592_vm6 = vmor %vm590_vm5, %vm591_vm4  ;;  %vm650_vm8 = vweird.f32 %v2447_v16  ;;  %v656_v62 = vand.u32 2147483648, %v2447_v16  ;;  %v609_v29 = vand.u32 2147483647, %v2449_v53  ;;  %1830 = vmatpush.msrb.mxu3 %v1600_v10 }
 0x198   : > { %v587_v41 = vsub.f32 1.0, %v586_v56  ;;  %1929 = vrcp.f32 %v2449_v53  ;;  %v611_v31 = vand.u32 2147483648, %v2449_v53  ;;  %v654_v42 = vand.u32 2147483647, %v2447_v16 }
 0x199   : > { %vm605_vm12 = vweird.f32 %v2449_v53  ;;  %vm2508_vm13 = vcmp.eq.f32.partialorder %v609_v29, 8.507059e+37  ;;  %v657_v48 = vor.u32 1.1754944e-38, %v656_v62 }
 0x19a   : > { %v588_v61 = vmul.f32 %v1926_v51, %v587_v41  ;;  %v438_v55 = vpop.xlane.xlu1 %437  ;;  %v429_v63 = vpop.xlane.xlu0 %428  ;;  %vm655_vm15 = vcmp.eq.f32.partialorder %v654_v42, 8.507059e+37 }
 0x19b   : > { %v460_v19 = vmul.f32 %v438_v55, %v2186_v26  ;;  %v457_v0 = vmul.f32 %v429_v63, %v2186_v26  ;;  %v1599_v63 = vld [vmem:[%s3295_s5 + $0x70] sm:$0xff] }
 0x19c   : > { %v589_v6 = vadd.f32 %v1926_v51, %v588_v61  ;;  %1606 = vmatpush.msra.mxu1 %v1599_v63  ;;  %1831 = vmatpush.msra.mxu2 %v1599_v63 }
 0x19d   : > { %v1928_v7 = vpop.eup %1927  ;;  %v2455_v5 = vadd.f32 1e-05, %v460_v19  ;;  %v2457_v17 = vadd.f32 1e-05, %v457_v0  ;;  %1832 = vmatpush.msrb.mxu3 %v1599_v63 }
 0x19e   : > { %v2459_v2 = vpop.eup %1929  ;;  %v646_v8 = vmul.f32 %v1928_v7, %v2447_v16  ;;  %v593_v11 = vsel %vm592_vm6, %v1926_v51, %v589_v6  ;;  %vm651_vm9 = vweird.f32 %v1928_v7  ;;  %v612_v16 = vor.u32 1.1754944e-38, %v611_v31 }
 0x19f   : > { %v601_v12 = vmul.f32 %v2459_v2, %v2449_v53  ;;  %1931 = vrcp.f32 %v2455_v5  ;;  %v598_v57 = vsel %vm595_vm7, %v597_v13, %v593_v11  ;;  %vm606_vm10 = vweird.f32 %v2459_v2  ;;  %vm2492_vm11 = vmor %vm650_vm8, %vm651_vm9 }
 0x1a0   : > { %v647_v14 = vsub.f32 1.0, %v646_v8  ;;  %1933 = vrcp.f32 %v2457_v17  ;;  %v833_v21 = vpop.f32.mrf.mxu0  ;;  %v599_v24 = vmul.f32 %v598_v57, %v2286_v34  ;;  %v626_v49 = vand.u32 2147483648, %v2457_v17  ;;  %vm2520_vm14 = vmor %vm605_vm12, %vm606_vm10  ;;  %v1598_v8 = vld [vmem:[%s3295_s5 + $0x68] sm:$0xff] }
 0x1a1   : > { %v602_v18 = vsub.f32 1.0, %v601_v12  ;;  %v2484_v34 = vadd.f32 %v2470_v20, %v833_v21  ;;  %vm620_vm2 = vweird.f32 %v2457_v17  ;;  %v624_v13 = vand.u32 2147483647, %v2457_v17  ;;  %1607 = vmatpush.msra.mxu1 %v1598_v8  ;;  %v1597_v21 = vld [vmem:[%s3295_s5 + $0x60] sm:$0xff]  ;;  %1833 = vmatpush.msra.mxu2 %v1598_v8 }
 0x1a2   : > { %v648_v22 = vmul.f32 %v1928_v7, %v647_v14  ;;  %v447_v23 = vpop.xlane.xlu1 %446  ;;  %v441_v30 = vpop.xlane.xlu2 %440  ;;  %v731_v38 = vmul.f32 %v2318_v50, %v599_v24  ;;  %1834 = vmatpush.msrb.mxu3 %v1598_v8  ;;  %vm665_vm5 = vweird.f32 %v2455_v5 }
 0x1a3   : > { %v603_v25 = vmul.f32 %v2459_v2, %v602_v18  ;;  %v463_v45 = vmul.f32 %v447_v23, %v2186_v26  ;;  %v461_v27 = vmul.f32 %v441_v30, %v2186_v26  ;;  %v2531_v3 = vmul.f32 0.70710677, %v2484_v34  ;;  %1608 = vmatpush.msra.mxu1 %v1597_v21  ;;  %1835 = vmatpush.msra.mxu2 %v1597_v21 }
 0x1a4   : > { %v649_v40 = vadd.f32 %v1928_v7, %v648_v22  ;;  %v751_v52 = vadd.f32 %v2328_v15, %v731_v38  ;;  %v627_v30 = vor.u32 1.1754944e-38, %v626_v49  ;;  %vm625_vm4 = vcmp.eq.f32.partialorder %v624_v13, 8.507059e+37  ;;  %1836 = vmatpush.msrb.mxu3 %v1597_v21 }
 0x1a5   : > { %v2481_v58 = vpop.eup %1931  ;;  %v2486_v36 = vadd.f32 1e-05, %v461_v27  ;;  %v604_v43 = vadd.f32 %v2459_v2, %v603_v25  ;;  %v2500_v46 = vadd.f32 1e-05, %v463_v45  ;;  %v913_v22 = vmul.f32 %v2531_v3, %v2531_v3 }
 0x1a6   : > { %v2496_v33 = vpop.eup %1933  ;;  %v661_v44 = vmul.f32 %v2481_v58, %v2455_v5  ;;  %v653_v4 = vsel %vm2492_vm11, %v1928_v7, %v649_v40  ;;  %1794 = vmatmul.msk.f32.gmra.mxu0 %vm296_vm0, %v751_v52  ;;  %v669_v38 = vand.u32 2147483647, %v2455_v5  ;;  %vm666_vm7 = vweird.f32 %v2481_v58 }
 0x1a7   : > { %v616_v47 = vmul.f32 %v2496_v33, %v2457_v17  ;;  %1935 = vrcp.f32 %v2486_v36  ;;  %v608_v61 = vsel %vm2520_vm14, %v2459_v2, %v604_v43  ;;  %v658_v55 = vsel %vm655_vm15, %v657_v48, %v653_v4  ;;  %v1596_v17 = vld [vmem:[%s3295_s5 + $0x58] sm:$0xff]  ;;  %vm667_vm8 = vmor %vm665_vm5, %vm666_vm7 }
 0x1a8   : > { %v662_v53 = vsub.f32 1.0, %v661_v44  ;;  %v836_v41 = vpop.f32.mrf.mxu0  ;;  %1937 = vrcp.f32 %v2500_v46  ;;  %v613_v0 = vsel %vm2508_vm13, %v612_v16, %v608_v61  ;;  %v659_v2 = vmul.f32 %v658_v55, %v2291_v37  ;;  %1609 = vmatpush.msra.mxu1 %v1596_v17  ;;  %1837 = vmatpush.msra.mxu2 %v1596_v17 }
 0x1a9   : > { %v617_v56 = vsub.f32 1.0, %v616_v47  ;;  %v2535_v19 = vadd.f32 %v2470_v20, %v836_v41  ;;  %v614_v7 = vmul.f32 %v613_v0, %v2306_v59  ;;  %vm621_vm1 = vweird.f32 %v2496_v33  ;;  %1838 = vmatpush.msrb.mxu3 %v1596_v17 }
 0x1aa   : > { %v444_v1 = vpop.xlane.xlu0 %443  ;;  %v663_v37 = vmul.f32 %v2481_v58, %v662_v53  ;;  %v735_v14 = vmul.f32 %v2318_v50, %v659_v2  ;;  %vm2570_vm3 = vmor %vm620_vm2, %vm621_vm1  ;;  %v2597_v44 = vmin.f32 %v913_v22, 16.0  ;;  %vm680_vm6 = vweird.f32 %v2486_v36  ;;  %v1593_v53 = vld [vmem:[%s3295_s5 + $0x40] sm:$0xff] }
 0x1ab   : > { %v618_v6 = vmul.f32 %v2496_v33, %v617_v56  ;;  %v2548_v11 = vmul.f32 0.70710677, %v2535_v19  ;;  %v462_v12 = vmul.f32 %v444_v1, %v2186_v26  ;;  %v732_v59 = vmul.f32 %v2318_v50, %v614_v7  ;;  %v1592_v1 = vld [vmem:[%s3295_s5 + $0x38] sm:$0xff] }
 0x1ac   : > { %v671_v26 = vand.u32 2147483648, %v2455_v5  ;;  %v755_v45 = vadd.f32 %v2328_v15, %v735_v14  ;;  %v664_v9 = vadd.f32 %v2481_v58, %v663_v37  ;;  %vm670_vm9 = vcmp.eq.f32.partialorder %v669_v38, 8.507059e+37  ;;  %v1591_v14 = vld [vmem:[%s3295_s5 + $0x30] sm:$0xff] }
 0x1ad   : > { %v619_v18 = vadd.f32 %v2496_v33, %v618_v6  ;;  %v2559_v57 = vpop.eup %1935  ;;  %v2564_v62 = vadd.f32 1e-05, %v462_v12  ;;  %v752_v25 = vadd.f32 %v2328_v15, %v732_v59  ;;  %v953_v31 = vmul.f32 %v2548_v11, %v2548_v11 }
 0x1ae   : > { %v676_v24 = vmul.f32 %v2559_v57, %v2486_v36  ;;  %v2584_v29 = vpop.eup %1937  ;;  %1798 = vmatmul.msk.f32.gmra.mxu3 %vm296_vm0, %v755_v45  ;;  %v672_v10 = vor.u32 1.1754944e-38, %v671_v26  ;;  %v668_v51 = vsel %vm667_vm8, %v2481_v58, %v664_v9  ;;  %v915_v41 = vmul.f32 2.1237322e-06, %v2597_v44 }
 0x1af   : > { %v623_v27 = vsel %vm2570_vm3, %v2496_v33, %v619_v18  ;;  %1939 = vrcp.f32 %v2564_v62  ;;  %1795 = vmatmul.msk.f32.gmra.mxu0 %vm296_vm0, %v752_v25  ;;  %v1595_v33 = vld [vmem:[%s3295_s5 + $0x50] sm:$0xff]  ;;  %v706_v5 = vmul.f32 %v2584_v29, %v2500_v46  ;;  %v2611_v48 = vmin.f32 %v953_v31, 16.0 }
 0x1b0   : > { %v677_v40 = vsub.f32 1.0, %v676_v24  ;;  %v839_v42 = vpop.f32.mrf.mxu0  ;;  %v628_v43 = vsel %vm625_vm4, %v627_v30, %v623_v27  ;;  %1610 = vmatpush.msra.mxu1 %v1595_v33  ;;  %1839 = vmatpush.msra.mxu2 %v1595_v33  ;;  %v686_v61 = vand.u32 2147483648, %v2486_v36  ;;  %v673_v55 = vsel %vm670_vm9, %v672_v10, %v668_v51  ;;  %v1590_v24 = vld [vmem:[%s3295_s5 + $0x28] sm:$0xff] }
 0x1b1   : > { %v2600_v52 = vadd.f32 %v2470_v20, %v839_v42  ;;  %v629_v47 = vmul.f32 %v628_v43, %v2341_v28  ;;  %1840 = vmatpush.msrb.mxu3 %v1595_v33  ;;  %vm681_vm10 = vweird.f32 %v2559_v57  ;;  %v674_v6 = vmul.f32 %v673_v55, %v2302_v54 }
 0x1b2   : > { %v678_v4 = vmul.f32 %v2559_v57, %v677_v40  ;;  %1611 = vmatpush.msra.mxu1 %v1594_v39  ;;  %1841 = vmatpush.msra.mxu2 %v1594_v39  ;;  %v707_v7 = vsub.f32 1.0, %v706_v5  ;;  %v955_v2 = vmul.f32 2.1237322e-06, %v2611_v48  ;;  %vm2639_vm11 = vmor %vm680_vm6, %vm681_vm10  ;;  %v684_v12 = vand.u32 2147483647, %v2486_v36  ;;  %v1589_v40 = vld [vmem:[%s3295_s5 + $0x20] sm:$0xff] }
 0x1b3   : > { %v2614_v49 = vmul.f32 0.70710677, %v2600_v52  ;;  %v733_v28 = vmul.f32 %v2318_v50, %v629_v47  ;;  %1842 = vmatpush.msrb.mxu3 %v1594_v39  ;;  %v736_v37 = vmul.f32 %v2318_v50, %v674_v6  ;;  %v916_v18 = vadd.f32 0.00028619796, %v915_v41 }
 0x1b4   : > { %v679_v16 = vadd.f32 %v2559_v57, %v678_v4  ;;  %1612 = vmatpush.msra.mxu1 %v1593_v53  ;;  %1843 = vmatpush.msra.mxu2 %v1593_v53  ;;  %v701_v36 = vand.u32 2147483648, %v2564_v62  ;;  %vm685_vm12 = vcmp.eq.f32.partialorder %v684_v12, 8.507059e+37  ;;  %v687_v26 = vor.u32 1.1754944e-38, %v686_v61 }
 0x1b5   : > { %v2622_v56 = vpop.eup %1939  ;;  %v993_v63 = vmul.f32 %v2614_v49, %v2614_v49  ;;  %v753_v0 = vadd.f32 %v2328_v15, %v733_v28  ;;  %1844 = vmatpush.msrb.mxu3 %v1593_v53  ;;  %v756_v30 = vadd.f32 %v2328_v15, %v736_v37  ;;  %v956_v25 = vadd.f32 0.00028619796, %v955_v2  ;;  %v1585_v2 = vld [vmem:[%s3295_s5] sm:$0xff] }
 0x1b6   : > { %v691_v58 = vmul.f32 %v2622_v56, %v2564_v62  ;;  %1613 = vmatpush.msra.mxu1 %v1592_v1  ;;  %v683_v59 = vsel %vm2639_vm11, %v2559_v57, %v679_v16  ;;  %1845 = vmatpush.msra.mxu2 %v1592_v1  ;;  %vm696_vm13 = vweird.f32 %v2622_v56  ;;  %v699_v27 = vand.u32 2147483647, %v2564_v62  ;;  %v1587_v16 = vld [vmem:[%s3295_s5 + $0x10] sm:$0xff] }
 0x1b7   : > { %v2644_v54 = vmin.f32 %v993_v63, 16.0  ;;  %1796 = vmatmul.msk.f32.gmra.mxu0 %vm296_vm0, %v753_v0  ;;  %1846 = vmatpush.msrb.mxu3 %v1592_v1  ;;  %v688_v45 = vsel %vm685_vm12, %v687_v26, %v683_v59  ;;  %v708_v17 = vmul.f32 %v2584_v29, %v707_v7  ;;  %vm710_vm14 = vweird.f32 %v2500_v46  ;;  %v1586_v0 = vld [vmem:[%s3295_s5 + $0x8] sm:$0xff] }
 0x1b8   : > { %v692_v13 = vsub.f32 1.0, %v691_v58  ;;  %v842_v21 = vpop.f32.mrf.mxu0  ;;  %1614 = vmatpush.msra.mxu1 %v1591_v14  ;;  %1847 = vmatpush.msra.mxu2 %v1591_v14  ;;  %v689_v38 = vmul.f32 %v688_v45, %v2368_v60  ;;  %v716_v42 = vand.u32 2147483648, %v2500_v46  ;;  %vm695_vm15 = vweird.f32 %v2564_v62  ;;  %v1588_v62 = vld [vmem:[%s3295_s5 + $0x18] sm:$0xff] }
 0x1b9   : > { %v995_v23 = vmul.f32 2.1237322e-06, %v2644_v54  ;;  %v2659_v57 = vadd.f32 %v2470_v20, %v842_v21  ;;  %1799 = vmatmul.msk.f32.gmra.mxu3 %vm296_vm0, %v756_v30  ;;  %v917_v33 = vmul.f32 %v916_v18, %v2597_v44  ;;  %vm697_vm1 = vmor %vm695_vm15, %vm696_vm13  ;;  %v702_v47 = vor.u32 1.1754944e-38, %v701_v36 }
 0x1ba   : > { %v693_v22 = vmul.f32 %v2622_v56, %v692_v13  ;;  %1615 = vmatpush.msra.mxu1 %v1590_v24  ;;  %1849 = vmatpush.msra.mxu2 %v1590_v24  ;;  %v737_v60 = vmul.f32 %v2318_v50, %v689_v38  ;;  %v957_v39 = vmul.f32 %v956_v25, %v2611_v48  ;;  %vm700_vm2 = vcmp.eq.f32.partialorder %v699_v27, 8.507059e+37 }
 0x1bb   : > { %v2670_v31 = vmul.f32 0.70710677, %v2659_v57  ;;  %v996_v43 = vadd.f32 0.00028619796, %v995_v23  ;;  %1848 = vmatpush.msrb.mxu3 %v1591_v14  ;;  %vm711_vm3 = vweird.f32 %v2584_v29  ;;  %v709_v51 = vadd.f32 %v2584_v29, %v708_v17 }
 0x1bc   : > { %v694_v9 = vadd.f32 %v2622_v56, %v693_v22  ;;  %1616 = vmatpush.msra.mxu1 %v1589_v40  ;;  %1851 = vmatpush.msra.mxu2 %v1589_v40  ;;  %v757_v10 = vadd.f32 %v2328_v15, %v737_v60  ;;  %vm2700_vm4 = vmor %vm710_vm14, %vm711_vm3  ;;  %v714_v55 = vand.u32 2147483647, %v2500_v46  ;;  %v918_v58 = vadd.f32 0.0036580483, %v917_v33 }
 0x1bd   : > { %v1033_v4 = vmul.f32 %v2670_v31, %v2670_v31  ;;  %1850 = vmatpush.msrb.mxu3 %v1590_v24  ;;  %v997_v53 = vmul.f32 %v996_v43, %v2644_v54  ;;  %v958_v6 = vadd.f32 0.0036580483, %v957_v39  ;;  %v926_v1 = vmul.f32 3.8918573e-05, %v2597_v44 }
 0x1be   : > { %v698_v5 = vsel %vm697_vm1, %v2622_v56, %v694_v9  ;;  %1617 = vmatpush.msra.mxu1 %v1588_v62  ;;  %1853 = vmatpush.msra.mxu2 %v1588_v62  ;;  %v713_v7 = vsel %vm2700_vm4, %v2584_v29, %v709_v51  ;;  %vm715_vm5 = vcmp.eq.f32.partialorder %v714_v55, 8.507059e+37  ;;  %v966_v37 = vmul.f32 3.8918573e-05, %v2611_v48 }
 0x1bf   : > { %v703_v28 = vsel %vm700_vm2, %v702_v47, %v698_v5  ;;  %v2705_v63 = vmin.f32 %v1033_v4, 16.0  ;;  %1852 = vmatpush.msrb.mxu3 %v1589_v40  ;;  %v998_v8 = vadd.f32 0.0036580483, %v997_v53  ;;  %v927_v13 = vadd.f32 0.001143296, %v926_v1 }
 0x1c0   : > { %v845_v41 = vpop.f32.mrf.mxu0  ;;  %v704_v56 = vmul.f32 %v703_v28, %v2393_v32  ;;  %1618 = vmatpush.msra.mxu1 %v1587_v16  ;;  %v717_v32 = vor.u32 1.1754944e-38, %v716_v42  ;;  %1855 = vmatpush.msra.mxu2 %v1587_v16  ;;  %v919_v59 = vmul.f32 %v918_v58, %v2597_v44  ;;  %v959_v14 = vmul.f32 %v958_v6, %v2611_v48 }
 0x1c1   : > { %1800 = vmatmul.msk.f32.gmra.mxu3 %vm296_vm0, %v757_v10  ;;  %v1035_v12 = vmul.f32 2.1237322e-06, %v2705_v63  ;;  %v1006_v29 = vmul.f32 3.8918573e-05, %v2644_v54  ;;  %v2725_v36 = vadd.f32 %v2470_v20, %v845_v41  ;;  %v928_v26 = vmul.f32 %v927_v13, %v2597_v44 }
 0x1c2   : > { %1619 = vmatpush.msra.mxu1 %v1586_v0  ;;  %v738_v46 = vmul.f32 %v2318_v50, %v704_v56  ;;  %1857 = vmatpush.msra.mxu2 %v1586_v0  ;;  %v718_v18 = vsel %vm715_vm5, %v717_v32, %v713_v7  ;;  %v967_v22 = vadd.f32 0.001143296, %v966_v37  ;;  %v999_v23 = vmul.f32 %v998_v8, %v2644_v54 }
 0x1c3   : > { %1854 = vmatpush.msrb.mxu3 %v1588_v62  ;;  %v1007_v24 = vadd.f32 0.001143296, %v1006_v29  ;;  %v1036_v25 = vadd.f32 0.00028619796, %v1035_v12  ;;  %v719_v45 = vmul.f32 %v718_v18, %v2348_v35  ;;  %v929_v27 = vadd.f32 0.014752088, %v928_v26 }
 0x1c4   : > { %1620 = vmatpush.msra.mxu1 %v1585_v2  ;;  %1859 = vmatpush.msra.mxu2 %v1585_v2  ;;  %v758_v21 = vadd.f32 %v2328_v15, %v738_v46  ;;  %v920_v17 = vadd.f32 0.05243302, %v919_v59  ;;  %v968_v38 = vmul.f32 %v967_v22, %v2611_v48  ;;  %v960_v42 = vadd.f32 0.05243302, %v959_v14 }
 0x1c5   : > { %1856 = vmatpush.msrb.mxu3 %v1587_v16  ;;  %v1008_v40 = vmul.f32 %v1007_v24, %v2644_v54  ;;  %v2734_v43 = vmul.f32 0.70710677, %v2725_v36  ;;  %v930_v33 = vmul.f32 %v929_v27, %v2597_v44  ;;  %v1000_v4 = vadd.f32 0.05243302, %v999_v23 }
 0x1c6   : > { %v969_v35 = vadd.f32 0.014752088, %v968_v38  ;;  %v1046_v60 = vmul.f32 3.8918573e-05, %v2705_v63  ;;  %v1037_v47 = vmul.f32 %v1036_v25, %v2705_v63  ;;  %v739_v62 = vmul.f32 %v2318_v50, %v719_v45 }
 0x1c7   : > { %1858 = vmatpush.msrb.mxu3 %v1586_v0  ;;  %v931_v39 = vadd.f32 0.112945676, %v930_v33  ;;  %v1009_v5 = vadd.f32 0.014752088, %v1008_v40  ;;  %v921_v10 = vmul.f32 %v920_v17, %v2597_v44  ;;  %v1073_v51 = vmul.f32 %v2734_v43, %v2734_v43 }
 0x1c8   : > { %v848_v30 = vpop.f32.mrf.mxu0  ;;  %v970_v28 = vmul.f32 %v969_v35, %v2611_v48  ;;  %v961_v56 = vmul.f32 %v960_v42, %v2611_v48  ;;  %v1001_v50 = vmul.f32 %v1000_v4, %v2644_v54  ;;  %v1047_v58 = vadd.f32 0.001143296, %v1046_v60 }
 0x1c9   : > { %1801 = vmatmul.msk.f32.gmra.mxu3 %vm296_vm0, %v758_v21  ;;  %v2738_v9 = vadd.f32 %v2470_v20, %v848_v30  ;;  %v932_v53 = vmul.f32 %v931_v39, %v2597_v44  ;;  %v1010_v41 = vmul.f32 %v1009_v5, %v2644_v54  ;;  %v1038_v0 = vadd.f32 0.0036580483, %v1037_v47 }
 0x1ca   : > { %1860 = vmatpush.msrb.mxu3 %v1585_v2  ;;  %v971_v55 = vadd.f32 0.112945676, %v970_v28  ;;  %v759_v6 = vadd.f32 %v2328_v15, %v739_v62  ;;  %v922_v46 = vadd.f32 0.18741608, %v921_v10  ;;  %v2757_v2 = vmin.f32 %v1073_v51, 16.0 }
 0x1cb   : > { %v2749_v16 = vmul.f32 0.70710677, %v2738_v9  ;;  %v933_v32 = vadd.f32 0.4994258, %v932_v53  ;;  %v1011_v1 = vadd.f32 0.112945676, %v1010_v41  ;;  %v1048_v14 = vmul.f32 %v1047_v58, %v2705_v63 }
 0x1cc   : > { %v972_v7 = vmul.f32 %v971_v55, %v2611_v48  ;;  %v962_v37 = vadd.f32 0.18741608, %v961_v56  ;;  %v1002_v18 = vadd.f32 0.18741608, %v1001_v50  ;;  %v1039_v29 = vmul.f32 %v1038_v0, %v2705_v63 }
 0x1cd   : > { %v1113_v8 = vmul.f32 %v2749_v16, %v2749_v16  ;;  %v934_v13 = vmul.f32 %v933_v32, %v2597_v44  ;;  %v1012_v15 = vmul.f32 %v1011_v1, %v2644_v54  ;;  %v923_v26 = vmul.f32 %v922_v46, %v2597_v44 }
 0x1ce   : > { %v973_v59 = vadd.f32 0.4994258, %v972_v7  ;;  %v1075_v30 = vmul.f32 2.1237322e-06, %v2757_v2  ;;  %v963_v45 = vmul.f32 %v962_v37, %v2611_v48  ;;  %v1049_v27 = vadd.f32 0.014752088, %v1048_v14 }
 0x1cf   : > { %v935_v21 = vadd.f32 1.0, %v934_v13  ;;  %v1013_v23 = vadd.f32 0.4994258, %v1012_v15  ;;  %v2772_v24 = vmin.f32 %v1113_v8, 16.0  ;;  %v1003_v17 = vmul.f32 %v1002_v18, %v2644_v54 }
 0x1d0   : > { %v851_v61 = vpop.f32.mrf.mxu0  ;;  %v974_v22 = vmul.f32 %v973_v59, %v2611_v48  ;;  %v1040_v38 = vadd.f32 0.05243302, %v1039_v29  ;;  %v924_v42 = vadd.f32 1.1283791, %v923_v26  ;;  %v1076_v33 = vadd.f32 0.00028619796, %v1075_v30 }
 0x1d1   : > { %1802 = vmatmul.msk.f32.gmra.mxu3 %vm296_vm0, %v759_v6  ;;  %v2763_v12 = vadd.f32 %v2470_v20, %v851_v61  ;;  %1941 = vrcp.f32 %v935_v21  ;;  %v1014_v44 = vmul.f32 %v1013_v23, %v2644_v54  ;;  %v1115_v4 = vmul.f32 2.1237322e-06, %v2772_v24 }
 0x1d2   : > { %v975_v40 = vadd.f32 1.0, %v974_v22  ;;  %v964_v60 = vadd.f32 1.1283791, %v963_v45  ;;  %v1050_v47 = vmul.f32 %v1049_v27, %v2705_v63  ;;  %v1004_v48 = vadd.f32 1.1283791, %v1003_v17 }
 0x1d3   : > { %v2775_v25 = vmul.f32 0.70710677, %v2763_v12  ;;  %v1041_v39 = vmul.f32 %v1040_v38, %v2705_v63  ;;  %v2785_v5 = vadd.f32 1.0, %v1014_v44  ;;  %v2788_v10 = vmul.f32 0.5, %v2484_v34 }
 0x1d4   : > { %1943 = vrcp.f32 %v975_v40  ;;  %v925_v28 = vmul.f32 %v924_v42, %v2531_v3  ;;  %v1077_v51 = vmul.f32 %v1076_v33, %v2757_v2  ;;  %v1116_v53 = vadd.f32 0.00028619796, %v1115_v4 }
 0x1d5   : > { %v1153_v35 = vmul.f32 %v2775_v25, %v2775_v25  ;;  %v965_v56 = vmul.f32 %v964_v60, %v2548_v11  ;;  %1945 = vrcp.f32 %v2785_v5  ;;  %v1051_v61 = vadd.f32 0.112945676, %v1050_v47 }
 0x1d6   : > { %v2797_v58 = vmul.f32 %v1004_v48, %v2614_v49  ;;  %v1042_v34 = vadd.f32 0.18741608, %v1041_v39  ;;  %v945_v0 = vand.u32 2147483647, %v935_v21  ;;  %v947_v6 = vand.u32 2147483648, %v935_v21 }
 0x1d7   : > { %v1942_v62 = vpop.eup %1941  ;;  %v2792_v41 = vmin.f32 %v1153_v35, 16.0  ;;  %v1086_v1 = vmul.f32 3.8918573e-05, %v2757_v2  ;;  %v1078_v46 = vadd.f32 0.0036580483, %v1077_v51  ;;  %v1117_v7 = vmul.f32 %v1116_v53, %v2772_v24 }
 0x1d8   : > { %v937_v54 = vmul.f32 %v1942_v62, %v935_v21  ;;  %vm942_vm6 = vweird.f32 %v1942_v62  ;;  %vm941_vm7 = vweird.f32 %v935_v21  ;;  %v985_v37 = vand.u32 2147483647, %v975_v40 }
 0x1d9   : > { %v1155_v11 = vmul.f32 2.1237322e-06, %v2792_v41  ;;  %v1052_v49 = vmul.f32 %v1051_v61, %v2705_v63  ;;  %vm943_vm8 = vmor %vm941_vm7, %vm942_vm6  ;;  %vm946_vm9 = vcmp.eq.f32.partialorder %v945_v0, 8.507059e+37  ;;  %v948_v59 = vor.u32 1.1754944e-38, %v947_v6  ;;  %v863_v61 = vpop.f32.mrf.mxu3 }
 0x1da   : > { %v938_v50 = vsub.f32 1.0, %v937_v54  ;;  %v1944_v55 = vpop.eup %1943  ;;  %v987_v15 = vand.u32 2147483648, %v975_v40  ;;  %v1087_v22 = vadd.f32 0.001143296, %v1086_v1  ;;  %vm981_vm11 = vweird.f32 %v975_v40 }
 0x1db   : > { %v977_v3 = vmul.f32 %v1944_v55, %v975_v40  ;;  %vm982_vm10 = vweird.f32 %v1944_v55  ;;  %v1946_v14 = vpop.eup %1945  ;;  %v1053_v26 = vadd.f32 0.4994258, %v1052_v49  ;;  %v1126_v21 = vmul.f32 3.8918573e-05, %v2772_v24 }
 0x1dc   : > { %v939_v32 = vmul.f32 %v1942_v62, %v938_v50  ;;  %v1017_v30 = vmul.f32 %v1946_v14, %v2785_v5  ;;  %vm986_vm12 = vcmp.eq.f32.partialorder %v985_v37, 8.507059e+37  ;;  %vm983_vm13 = vmor %vm981_vm11, %vm982_vm10  ;;  %v988_v38 = vor.u32 1.1754944e-38, %v987_v15 }
 0x1dd   : > { %v978_v13 = vsub.f32 1.0, %v977_v3  ;;  %v1054_v17 = vmul.f32 %v1053_v26, %v2705_v63  ;;  %v1025_v44 = vand.u32 2147483647, %v2785_v5  ;;  %v1027_v33 = vand.u32 2147483648, %v2785_v5 }
 0x1de   : > { %v940_v8 = vadd.f32 %v1942_v62, %v939_v32  ;;  %v1018_v42 = vsub.f32 1.0, %v1017_v30  ;;  %v1088_v60 = vmul.f32 %v1087_v22, %v2757_v2  ;;  %vm1022_vm14 = vweird.f32 %v1946_v14 }
 0x1df   : > { %v979_v29 = vmul.f32 %v1944_v55, %v978_v13  ;;  %v2809_v40 = vadd.f32 1.0, %v1054_v17  ;;  %v1127_v48 = vadd.f32 0.001143296, %v1126_v21  ;;  %v1043_v39 = vmul.f32 %v1042_v34, %v2705_v63 }
 0x1e0   : > { %v944_v18 = vsel %vm943_vm8, %v1942_v62, %v940_v8  ;;  %v1019_v62 = vmul.f32 %v1946_v14, %v1018_v42  ;;  %v1079_v51 = vmul.f32 %v1078_v46, %v2757_v2  ;;  %v1118_v53 = vadd.f32 0.0036580483, %v1117_v7 }
 0x1e1   : > { %v949_v23 = vsel %vm946_vm9, %v948_v59, %v944_v18  ;;  %v980_v27 = vadd.f32 %v1944_v55, %v979_v29  ;;  %1947 = vrcp.f32 %v2809_v40  ;;  %vm1021_vm15 = vweird.f32 %v2785_v5 }
 0x1e2   : > { %v950_v45 = vmul.f32 %v949_v23, %v925_v28  ;;  %v1020_v50 = vadd.f32 %v1946_v14, %v1019_v62  ;;  %vm1023_vm1 = vmor %vm1021_vm15, %vm1022_vm14  ;;  %v1028_v6 = vor.u32 1.1754944e-38, %v1027_v33  ;;  %v1089_v32 = vadd.f32 0.014752088, %v1088_v60 }
 0x1e3   : > { %v984_v35 = vsel %vm983_vm13, %v1944_v55, %v980_v27  ;;  %v1156_v3 = vadd.f32 0.00028619796, %v1155_v11  ;;  %vm1026_vm2 = vcmp.eq.f32.partialorder %v1025_v44, 8.507059e+37  ;;  %v1128_v63 = vmul.f32 %v1127_v48, %v2772_v24 }
 0x1e4   : > { %v1803_v4 = vclamps-f32 %v950_v45, 1.0  ;;  %v989_v47 = vsel %vm986_vm12, %v988_v38, %v984_v35  ;;  %v1024_v1 = vsel %vm1023_vm1, %v1946_v14, %v1020_v50  ;;  %v1090_v7 = vmul.f32 %v1089_v32, %v2757_v2 }
 0x1e5   : > { %v990_v28 = vmul.f32 %v989_v47, %v965_v56  ;;  %v1044_v56 = vadd.f32 1.1283791, %v1043_v39  ;;  %v1029_v46 = vsel %vm1026_vm2, %v1028_v6, %v1024_v1  ;;  %v2820_v5 = vadd.f32 %v2470_v20, %v863_v61 }
 0x1e6   : > { %v1553_v54 = vadd.f32 1.0, %v1803_v4  ;;  %v1129_v8 = vadd.f32 0.014752088, %v1128_v63  ;;  %v1166_v13 = vmul.f32 3.8918573e-05, %v2792_v41  ;;  %v882_v11 = vmul.f32 0.5, %v2535_v19 }
 0x1e7   : > { %v1804_v0 = vclamps-f32 %v990_v28, 1.0  ;;  %v1948_v37 = vpop.eup %1947  ;;  %v883_v49 = vmul.f32 0.5, %v2600_v52  ;;  %v1119_v59 = vmul.f32 %v1118_v53, %v2772_v24  ;;  %v1091_v15 = vadd.f32 0.112945676, %v1090_v7 }
 0x1e8   : > { %v1569_v55 = vmul.f32 %v1553_v54, %v2788_v10  ;;  %v1030_v10 = vmul.f32 %v1029_v46, %v2797_v58  ;;  %v1080_v14 = vadd.f32 0.05243302, %v1079_v51  ;;  %v1157_v18 = vmul.f32 %v1156_v3, %v2792_v41 }
 0x1e9   : > { %v1554_v34 = vadd.f32 1.0, %v1804_v0  ;;  %v1057_v29 = vmul.f32 %v1948_v37, %v2809_v40  ;;  %v1130_v20 = vmul.f32 %v1129_v8, %v2772_v24  ;;  %v1092_v22 = vmul.f32 %v1091_v15, %v2757_v2 }
 0x1ea   : > { %1621 = vmatmul.f32.vlgmr.msra.gmra.mxu1 %v1569_v55  ;;  %v1805_v58 = vclamps-f32 %v1030_v10, 1.0  ;;  %v1167_v23 = vadd.f32 0.001143296, %v1166_v13  ;;  %v1045_v30 = vmul.f32 %v1044_v56, %v2670_v31  ;;  %v2833_v19 = vmul.f32 0.70710677, %v2820_v5 }
 0x1eb   : > { %v1570_v26 = vmul.f32 %v1554_v34, %v882_v11  ;;  %v1058_v52 = vsub.f32 1.0, %v1057_v29  ;;  %v1131_v21 = vadd.f32 0.112945676, %v1130_v20  ;;  %v1120_v45 = vadd.f32 0.05243302, %v1119_v59 }
 0x1ec   : > { %v1067_v27 = vand.u32 2147483648, %v2809_v40  ;;  %v1093_v17 = vadd.f32 0.4994258, %v1092_v22  ;;  %v1168_v38 = vmul.f32 %v1167_v23, %v2792_v41  ;;  %vm1062_vm3 = vweird.f32 %v1948_v37 }
 0x1ed   : > { %v1059_v42 = vmul.f32 %v1948_v37, %v1058_v52  ;;  %v1065_v44 = vand.u32 2147483647, %v2809_v40  ;;  %v1132_v33 = vmul.f32 %v1131_v21, %v2772_v24  ;;  %v1158_v4 = vadd.f32 0.0036580483, %v1157_v18 }
 0x1ee   : > { %v1555_v31 = vadd.f32 1.0, %v1805_v58  ;;  %v1094_v35 = vmul.f32 %v1093_v17, %v2757_v2  ;;  %v1169_v60 = vadd.f32 0.014752088, %v1168_v38  ;;  %v1313_v47 = vmul.f32 %v2833_v19, %v2833_v19 }
 0x1ef   : > { %v1060_v62 = vadd.f32 %v1948_v37, %v1059_v42  ;;  %vm1061_vm4 = vweird.f32 %v2809_v40  ;;  %v1133_v48 = vadd.f32 0.4994258, %v1132_v33  ;;  %v1081_v39 = vmul.f32 %v1080_v14, %v2757_v2 }
 0x1f0   : > { %vm1063_vm5 = vmor %vm1061_vm4, %vm1062_vm3  ;;  %v1068_v54 = vor.u32 1.1754944e-38, %v1067_v27  ;;  %v1095_v28 = vadd.f32 1.0, %v1094_v35  ;;  %v1170_v51 = vmul.f32 %v1169_v60, %v2792_v41  ;;  %v1121_v53 = vmul.f32 %v1120_v45, %v2772_v24 }
 0x1f1   : > { %v1064_v50 = vsel %vm1063_vm5, %v1948_v37, %v1060_v62  ;;  %vm1066_vm6 = vcmp.eq.f32.partialorder %v1065_v44, 8.507059e+37  ;;  %v1134_v61 = vmul.f32 %v1133_v48, %v2772_v24  ;;  %v1159_v55 = vmul.f32 %v1158_v4, %v2792_v41 }
 0x1f2   : > { %1624 = vmatmul.f32.gmra.mxu1 %v1570_v26  ;;  %v1571_v0 = vmul.f32 %v1555_v31, %v883_v49  ;;  %v1069_v6 = vsel %vm1066_vm6, %v1068_v54, %v1064_v50  ;;  %1949 = vrcp.f32 %v1095_v28  ;;  %v2848_v40 = vmin.f32 %v1313_v47, 16.0 }
 0x1f3   : > { %v1070_v32 = vmul.f32 %v1069_v6, %v1045_v30  ;;  %v1135_v3 = vadd.f32 1.0, %v1134_v61  ;;  %v1171_v1 = vadd.f32 0.112945676, %v1170_v51  ;;  %v1082_v63 = vadd.f32 0.18741608, %v1081_v39 }
 0x1f4   : > { %v1122_v34 = vadd.f32 0.18741608, %v1121_v53  ;;  %v1160_v46 = vadd.f32 0.05243302, %v1159_v55  ;;  %v1326_v8 = vmul.f32 3.8918573e-05, %v2848_v40  ;;  %vm1101_vm8 = vweird.f32 %v1095_v28 }
 0x1f5   : > { %v1806_v56 = vclamps-f32 %v1070_v32, 1.0  ;;  %1951 = vrcp.f32 %v1135_v3  ;;  %v1172_v7 = vmul.f32 %v1171_v1, %v2792_v41  ;;  %v884_v37 = vmul.f32 0.5, %v2659_v57 }
 0x1f6   : > { %v1083_v49 = vmul.f32 %v1082_v63, %v2757_v2  ;;  %v1123_v15 = vmul.f32 %v1122_v34, %v2772_v24  ;;  %v1161_v14 = vmul.f32 %v1160_v46, %v2792_v41  ;;  %v1327_v58 = vadd.f32 0.001143296, %v1326_v8 }
 0x1f7   : > { %v1556_v10 = vadd.f32 1.0, %v1806_v56  ;;  %v1173_v11 = vadd.f32 0.4994258, %v1172_v7  ;;  %v1107_v22 = vand.u32 2147483648, %v1095_v28  ;;  %v1105_v57 = vand.u32 2147483647, %v1095_v28 }
 0x1f8   : > { %v1950_v13 = vpop.eup %1949  ;;  %v1084_v52 = vadd.f32 1.1283791, %v1083_v49  ;;  %v1124_v45 = vadd.f32 1.1283791, %v1123_v15  ;;  %v1162_v2 = vadd.f32 0.18741608, %v1161_v14  ;;  %v1328_v38 = vmul.f32 %v1327_v58, %v2848_v40 }
 0x1f9   : > { %v1097_v59 = vmul.f32 %v1950_v13, %v1095_v28  ;;  %v1572_v18 = vmul.f32 %v1556_v10, %v884_v37  ;;  %v1174_v29 = vmul.f32 %v1173_v11, %v2792_v41  ;;  %vm1102_vm7 = vweird.f32 %v1950_v13  ;;  %v2872_v58 = vld [vmem:[%s3294_s4] ss:$0 sm:$0xff] }
 0x1fa   : > { %1627 = vmatmul.f32.gmra.mxu1 %v1571_v0  ;;  %v1147_v17 = vand.u32 2147483648, %v1135_v3  ;;  %vm1103_vm9 = vmor %vm1101_vm8, %vm1102_vm7  ;;  %v1108_v42 = vor.u32 1.1754944e-38, %v1107_v22  ;;  %v1145_v33 = vand.u32 2147483647, %v1135_v3  ;;  %v1085_v4 = vmul.f32 %v1084_v52, %v2734_v43 }
 0x1fb   : > { %v1952_v20 = vpop.eup %1951  ;;  %v1098_v26 = vsub.f32 1.0, %v1097_v59  ;;  %v1175_v30 = vadd.f32 1.0, %v1174_v29  ;;  %vm1106_vm11 = vcmp.eq.f32.partialorder %v1105_v57, 8.507059e+37  ;;  %vm1141_vm12 = vweird.f32 %v1135_v3 }
 0x1fc   : > { %v1137_v23 = vmul.f32 %v1952_v20, %v1135_v3  ;;  %vm1142_vm10 = vweird.f32 %v1952_v20  ;;  %v1125_v47 = vmul.f32 %v1124_v45, %v2749_v16  ;;  %v1148_v48 = vor.u32 1.1754944e-38, %v1147_v17 }
 0x1fd   : > { %v1099_v21 = vmul.f32 %v1950_v13, %v1098_v26  ;;  %1953 = vrcp.f32 %v1175_v30  ;;  %vm1143_vm13 = vmor %vm1141_vm12, %vm1142_vm10  ;;  %v1163_v54 = vmul.f32 %v1162_v2, %v2792_v41  ;;  %vm1146_vm14 = vcmp.eq.f32.partialorder %v1145_v33, 8.507059e+37 }
 0x1fe   : > { %v1138_v27 = vsub.f32 1.0, %v1137_v23  ;;  %v1329_v51 = vadd.f32 0.014752088, %v1328_v38  ;;  %v885_v55 = vmul.f32 0.5, %v2725_v36  ;;  %v1187_v16 = vand.u32 2147483648, %v1175_v30 }
 0x1ff   : > { %v1100_v24 = vadd.f32 %v1950_v13, %v1099_v21  ;;  %v1164_v32 = vadd.f32 1.1283791, %v1163_v54  ;;  %v1185_v41 = vand.u32 2147483647, %v1175_v30  ;;  %vm1181_vm1 = vweird.f32 %v1175_v30 }
 0x200   : > { %v1139_v44 = vmul.f32 %v1952_v20, %v1138_v27  ;;  %v1330_v1 = vmul.f32 %v1329_v51, %v2848_v40  ;;  %v886_v7 = vmul.f32 0.5, %v2738_v9  ;;  %v1188_v10 = vor.u32 1.1754944e-38, %v1187_v16 }
 0x201   : > { %v1104_v31 = vsel %vm1103_vm9, %v1950_v13, %v1100_v24  ;;  %v1165_v36 = vmul.f32 %v1164_v32, %v2775_v25  ;;  %vm1186_vm3 = vcmp.eq.f32.partialorder %v1185_v41, 8.507059e+37  ;;  %v1315_v9 = vmul.f32 2.1237322e-06, %v2848_v40 }
 0x202   : > { %1630 = vmatmul.f32.gmra.mxu1 %v1572_v18  ;;  %v1109_v35 = vsel %vm1106_vm11, %v1108_v42, %v1104_v31  ;;  %v1140_v60 = vadd.f32 %v1952_v20, %v1139_v44  ;;  %v1331_v13 = vadd.f32 0.112945676, %v1330_v1  ;;  %v887_v18 = vmul.f32 0.5, %v2763_v12 }
 0x203   : > { %v1110_v62 = vmul.f32 %v1109_v35, %v1085_v4  ;;  %v1954_v39 = vpop.eup %1953  ;;  %v1316_v23 = vadd.f32 0.00028619796, %v1315_v9 }
 0x204   : > { %v1144_v28 = vsel %vm1143_vm13, %v1952_v20, %v1140_v60  ;;  %v1177_v61 = vmul.f32 %v1954_v39, %v1175_v30  ;;  %vm1182_vm15 = vweird.f32 %v1954_v39  ;;  %v1332_v15 = vmul.f32 %v1331_v13, %v2848_v40 }
 0x205   : > { %v1807_v53 = vclamps-f32 %v1110_v62, 1.0  ;;  %v1149_v50 = vsel %vm1146_vm14, %v1148_v48, %v1144_v28  ;;  %vm1183_vm2 = vmor %vm1181_vm1, %vm1182_vm15  ;;  %v1317_v21 = vmul.f32 %v1316_v23, %v2848_v40 }
 0x206   : > { %v1150_v43 = vmul.f32 %v1149_v50, %v1125_v47  ;;  %v1178_v6 = vsub.f32 1.0, %v1177_v61  ;;  %v1333_v29 = vadd.f32 0.4994258, %v1332_v15 }
 0x207   : > { %v1557_v0 = vadd.f32 1.0, %v1807_v53  ;;  %v1318_v17 = vadd.f32 0.0036580483, %v1317_v21 }
 0x208   : > { %v1808_v3 = vclamps-f32 %v1150_v43, 1.0  ;;  %v1179_v56 = vmul.f32 %v1954_v39, %v1178_v6  ;;  %v1334_v25 = vmul.f32 %v1333_v29, %v2848_v40 }
 0x209   : > { %v1573_v63 = vmul.f32 %v1557_v0, %v885_v55  ;;  %v1319_v60 = vmul.f32 %v1318_v17, %v2848_v40 }
 0x20a   : > { %v1558_v34 = vadd.f32 1.0, %v1808_v3  ;;  %v1180_v46 = vadd.f32 %v1954_v39, %v1179_v56  ;;  %v2880_v12 = vadd.f32 1.0, %v1334_v25 }
 0x20b   : > { %1633 = vmatmul.f32.gmra.mxu1 %v1573_v63  ;;  %v1320_v0 = vadd.f32 0.05243302, %v1319_v60 }
 0x20c   : > { %v1184_v8 = vsel %vm1183_vm2, %v1954_v39, %v1180_v46  ;;  %v1574_v11 = vmul.f32 %v1558_v34, %v886_v7  ;;  %1955 = vrcp.f32 %v2880_v12  ;;  %vm1341_vm5 = vweird.f32 %v2880_v12 }
 0x20d   : > { %v1189_v37 = vsel %vm1186_vm3, %v1188_v10, %v1184_v8 }
 0x20e   : > { %v1190_v49 = vmul.f32 %v1189_v37, %v1165_v36  ;;  %v1321_v36 = vmul.f32 %v1320_v0, %v2848_v40 }
 0x210   : > { %v1809_v59 = vclamps-f32 %v1190_v49, 1.0 }
 0x212   : > { %v1559_v14 = vadd.f32 1.0, %v1809_v59  ;;  %v2898_v31 = vpop.eup %1955 }
 0x213   : > { %1636 = vmatmul.f32.gmra.mxu1 %v1574_v11  ;;  %v1337_v53 = vmul.f32 %v2898_v31, %v2880_v12  ;;  %vm1342_vm4 = vweird.f32 %v2898_v31 }
 0x214   : > { %v1575_v20 = vmul.f32 %v1559_v14, %v887_v18  ;;  %vm2968_vm6 = vmor %vm1341_vm5, %vm1342_vm4 }
 0x215   : > { %v1338_v41 = vsub.f32 1.0, %v1337_v53 }
 0x217   : > { %v1339_v14 = vmul.f32 %v2898_v31, %v1338_v41 }
 0x21b   : > { %1639 = vmatmul.f32.gmra.mxu1 %v1575_v20 }
 0x223   : > { %v854_v26 = vpop.f32.mrf.mxu0 }
 0x224   : > { %v2875_v22 = vadd.f32 %v2872_v58, %v854_v26  ;;  %v1322_v26 = vadd.f32 0.18741608, %v1321_v36 }
 0x226   : > { %v2878_v30 = vmul.f32 0.70710677, %v2875_v22 }
 0x228   : > { %v1193_v52 = vmul.f32 %v2878_v30, %v2878_v30 }
 0x22a   : > { %v2885_v57 = vmin.f32 %v1193_v52, 16.0 }
 0x22c   : > { %v1195_v45 = vmul.f32 2.1237322e-06, %v2885_v57  ;;  %v857_v2 = vpop.f32.mrf.mxu0  ;;  %v1206_v27 = vmul.f32 3.8918573e-05, %v2885_v57 }
 0x22d   : > { %v2891_v24 = vadd.f32 %v2872_v58, %v857_v2 }
 0x22e   : > { %v1196_v38 = vadd.f32 0.00028619796, %v1195_v45  ;;  %v1207_v42 = vadd.f32 0.001143296, %v1206_v27 }
 0x22f   : > { %v2894_v44 = vmul.f32 0.70710677, %v2891_v24 }
 0x230   : > { %v1197_v33 = vmul.f32 %v1196_v38, %v2885_v57  ;;  %v1208_v4 = vmul.f32 %v1207_v42, %v2885_v57 }
 0x231   : > { %v1233_v35 = vmul.f32 %v2894_v44, %v2894_v44  ;;  %v866_v62 = vpop.f32.mrf.mxu3 }
 0x232   : > { %v1198_v47 = vadd.f32 0.0036580483, %v1197_v33  ;;  %v1209_v48 = vadd.f32 0.014752088, %v1208_v4  ;;  %v2906_v54 = vadd.f32 %v2872_v58, %v866_v62  ;;  %v1340_v33 = vadd.f32 %v2898_v31, %v1339_v14 }
 0x233   : > { %v2903_v39 = vmin.f32 %v1233_v35, 16.0  ;;  %v1323_v62 = vmul.f32 %v1322_v26, %v2848_v40 }
 0x234   : > { %v860_v28 = vpop.f32.mrf.mxu0  ;;  %v1210_v51 = vmul.f32 %v1209_v48, %v2885_v57  ;;  %v1199_v50 = vmul.f32 %v1198_v47, %v2885_v57  ;;  %v2914_v43 = vmul.f32 0.70710677, %v2906_v54  ;;  %v1344_v41 = vsel %vm2968_vm6, %v2898_v31, %v1340_v33 }
 0x235   : > { %v1235_v61 = vmul.f32 2.1237322e-06, %v2903_v39  ;;  %v2917_v55 = vadd.f32 %v2872_v58, %v860_v28  ;;  %v1246_v32 = vmul.f32 3.8918573e-05, %v2903_v39  ;;  %v1347_v28 = vand.u32 2147483648, %v2880_v12 }
 0x236   : > { %v1211_v6 = vadd.f32 0.112945676, %v1210_v51  ;;  %v1353_v16 = vmul.f32 %v2914_v43, %v2914_v43  ;;  %v1200_v34 = vadd.f32 0.05243302, %v1199_v50 }
 0x237   : > { %v1236_v3 = vadd.f32 0.00028619796, %v1235_v61  ;;  %v2923_v1 = vmul.f32 0.70710677, %v2917_v55  ;;  %v1247_v56 = vadd.f32 0.001143296, %v1246_v32 }
 0x238   : > { %v1212_v63 = vmul.f32 %v1211_v6, %v2885_v57  ;;  %v2927_v7 = vmin.f32 %v1353_v16, 16.0  ;;  %v1201_v18 = vmul.f32 %v1200_v34, %v2885_v57  ;;  %v1345_v61 = vand.u32 2147483647, %v2880_v12 }
 0x239   : > { %v1237_v46 = vmul.f32 %v1236_v3, %v2903_v39  ;;  %v1273_v10 = vmul.f32 %v2923_v1, %v2923_v1  ;;  %v1248_v13 = vmul.f32 %v1247_v56, %v2903_v39  ;;  %v1324_v34 = vadd.f32 1.1283791, %v1323_v62 }
 0x23a   : > { %v1213_v8 = vadd.f32 0.4994258, %v1212_v63  ;;  %v1355_v11 = vmul.f32 2.1237322e-06, %v2927_v7  ;;  %v1366_v27 = vmul.f32 3.8918573e-05, %v2927_v7 }
 0x23b   : > { %v1238_v37 = vadd.f32 0.0036580483, %v1237_v46  ;;  %v2934_v49 = vmin.f32 %v1273_v10, 16.0  ;;  %v1249_v15 = vadd.f32 0.014752088, %v1248_v13  ;;  %vm1346_vm7 = vcmp.eq.f32.partialorder %v1345_v61, 8.507059e+37 }
 0x23c   : > { %v1214_v59 = vmul.f32 %v1213_v8, %v2885_v57  ;;  %v1356_v20 = vadd.f32 0.00028619796, %v1355_v11  ;;  %v869_v25 = vpop.f32.mrf.mxu3  ;;  %v1202_v17 = vadd.f32 0.18741608, %v1201_v18  ;;  %v1367_v51 = vadd.f32 0.001143296, %v1366_v27 }
 0x23d   : > { %v1239_v29 = vmul.f32 %v1238_v37, %v2903_v39  ;;  %v1275_v9 = vmul.f32 2.1237322e-06, %v2934_v49  ;;  %v1250_v52 = vmul.f32 %v1249_v15, %v2903_v39  ;;  %v2945_v2 = vadd.f32 %v2872_v58, %v869_v25 }
 0x23e   : > { %v2941_v23 = vadd.f32 1.0, %v1214_v59  ;;  %v1357_v38 = vmul.f32 %v1356_v20, %v2927_v7  ;;  %v1286_v47 = vmul.f32 3.8918573e-05, %v2934_v49  ;;  %v1203_v0 = vmul.f32 %v1202_v17, %v2885_v57 }
 0x23f   : > { %v1240_v21 = vadd.f32 0.05243302, %v1239_v29  ;;  %v1276_v45 = vadd.f32 0.00028619796, %v1275_v9  ;;  %v2955_v35 = vmul.f32 0.70710677, %v2945_v2  ;;  %v1368_v46 = vmul.f32 %v1367_v51, %v2927_v7 }
 0x240   : > { %1957 = vrcp.f32 %v2941_v23  ;;  %v1251_v60 = vadd.f32 0.112945676, %v1250_v52  ;;  %v1358_v6 = vadd.f32 0.0036580483, %v1357_v38  ;;  %v1287_v56 = vadd.f32 0.001143296, %v1286_v47 }
 0x241   : > { %v1277_v42 = vmul.f32 %v1276_v45, %v2934_v49  ;;  %v1241_v4 = vmul.f32 %v1240_v21, %v2903_v39  ;;  %v1393_v53 = vmul.f32 %v2955_v35, %v2955_v35  ;;  %v1348_v57 = vor.u32 1.1754944e-38, %v1347_v28 }
 0x242   : > { %v1252_v50 = vmul.f32 %v1251_v60, %v2903_v39  ;;  %v1204_v13 = vadd.f32 1.1283791, %v1203_v0  ;;  %v1359_v37 = vmul.f32 %v1358_v6, %v2927_v7  ;;  %v1225_v11 = vand.u32 2147483647, %v2941_v23 }
 0x243   : > { %v1278_v48 = vadd.f32 0.0036580483, %v1277_v42  ;;  %v1242_v3 = vadd.f32 0.18741608, %v1241_v4  ;;  %v2977_v10 = vmin.f32 %v1393_v53, 16.0  ;;  %v1349_v59 = vsel %vm1346_vm7, %v1348_v57, %v1344_v41 }
 0x244   : > { %v872_v16 = vpop.f32.mrf.mxu3  ;;  %v1253_v63 = vadd.f32 0.4994258, %v1252_v50  ;;  %v1288_v18 = vmul.f32 %v1287_v56, %v2934_v49  ;;  %v1325_v29 = vmul.f32 %v1324_v34, %v2833_v19  ;;  %v1227_v9 = vand.u32 2147483648, %v2941_v23 }
 0x245   : > { %v1279_v12 = vmul.f32 %v1278_v48, %v2934_v49  ;;  %v1243_v31 = vmul.f32 %v1242_v3, %v2903_v39  ;;  %v1369_v26 = vadd.f32 0.014752088, %v1368_v46  ;;  %v1395_v25 = vmul.f32 2.1237322e-06, %v2977_v10 }
 0x246   : > { %v1958_v32 = vpop.eup %1957  ;;  %v1254_v8 = vmul.f32 %v1253_v63, %v2903_v39  ;;  %v1205_v21 = vmul.f32 %v1204_v13, %v2878_v30  ;;  %vm1221_vm9 = vweird.f32 %v2941_v23  ;;  %v2993_v39 = vmul.f32 %v1349_v59, %v1325_v29 }
 0x247   : > { %v1217_v36 = vmul.f32 %v1958_v32, %v2941_v23  ;;  %v1280_v20 = vadd.f32 0.05243302, %v1279_v12  ;;  %vm1222_vm8 = vweird.f32 %v1958_v32  ;;  %v1244_v45 = vadd.f32 1.1283791, %v1243_v31 }
 0x248   : > { %v2984_v14 = vadd.f32 1.0, %v1254_v8  ;;  %v1360_v27 = vadd.f32 0.05243302, %v1359_v37  ;;  %v1289_v38 = vadd.f32 0.014752088, %v1288_v18  ;;  %v2996_v42 = vadd.f32 %v2872_v58, %v872_v16  ;;  %vm1223_vm10 = vmor %vm1221_vm9, %vm1222_vm8 }
 0x249   : > { %v1218_v15 = vsub.f32 1.0, %v1217_v36  ;;  %v1228_v4 = vor.u32 1.1754944e-38, %v1227_v9  ;;  %v1370_v60 = vmul.f32 %v1369_v26, %v2927_v7  ;;  %v1281_v30 = vmul.f32 %v1280_v20, %v2934_v49 }
 0x24a   : > { %1959 = vrcp.f32 %v2984_v14  ;;  %v1396_v23 = vadd.f32 0.00028619796, %v1395_v25  ;;  %vm1226_vm11 = vcmp.eq.f32.partialorder %v1225_v11, 8.507059e+37  ;;  %v888_v62 = vmul.f32 0.5, %v2875_v22 }
 0x24b   : > { %v1219_v52 = vmul.f32 %v1958_v32, %v1218_v15  ;;  %v1813_v51 = vclamps-f32 %v2993_v39, 1.0  ;;  %v1245_v50 = vmul.f32 %v1244_v45, %v2894_v44  ;;  %v1361_v61 = vmul.f32 %v1360_v27, %v2927_v7 }
 0x24c   : > { %v875_v17 = vpop.f32.mrf.mxu3  ;;  %v1290_v6 = vmul.f32 %v1289_v38, %v2934_v49  ;;  %v3012_v40 = vmul.f32 0.70710677, %v2996_v42  ;;  %v1371_v3 = vadd.f32 0.112945676, %v1370_v60  ;;  %v1282_v16 = vadd.f32 0.18741608, %v1281_v30 }
 0x24d   : > { %v1220_v19 = vadd.f32 %v1958_v32, %v1219_v52  ;;  %v2999_v33 = vadd.f32 %v2872_v58, %v875_v17  ;;  %v1397_v63 = vmul.f32 %v1396_v23, %v2977_v10  ;;  %v1265_v12 = vand.u32 2147483647, %v2984_v14 }
 0x24e   : > { %v1291_v41 = vadd.f32 0.112945676, %v1290_v6  ;;  %v1267_v57 = vand.u32 2147483648, %v2984_v14  ;;  %v1372_v13 = vmul.f32 %v1371_v3, %v2927_v7  ;;  %v1433_v15 = vmul.f32 %v3012_v40, %v3012_v40 }
 0x24f   : > { %v1224_v47 = vsel %vm1223_vm10, %v1958_v32, %v1220_v19  ;;  %v3005_v48 = vmul.f32 0.70710677, %v2999_v33  ;;  %vm1261_vm13 = vweird.f32 %v2984_v14  ;;  %v1398_v20 = vadd.f32 0.0036580483, %v1397_v63 }
 0x250   : > { %v1229_v28 = vsel %vm1226_vm11, %v1228_v4, %v1224_v47  ;;  %v1960_v53 = vpop.eup %1959  ;;  %v1292_v8 = vmul.f32 %v1291_v41, %v2934_v49  ;;  %vm1266_vm15 = vcmp.eq.f32.partialorder %v1265_v12, 8.507059e+37  ;;  %v1373_v17 = vadd.f32 0.4994258, %v1372_v13 }
 0x251   : > { %v1230_v0 = vmul.f32 %v1229_v28, %v1205_v21  ;;  %v1473_v22 = vmul.f32 %v3005_v48, %v3005_v48  ;;  %v1257_v32 = vmul.f32 %v1960_v53, %v2984_v14  ;;  %vm1262_vm12 = vweird.f32 %v1960_v53 }
 0x252   : > { %v1293_v29 = vadd.f32 0.4994258, %v1292_v8  ;;  %vm1263_vm14 = vmor %vm1261_vm13, %vm1262_vm12  ;;  %v3039_v19 = vmin.f32 %v1433_v15, 16.0  ;;  %v1406_v60 = vmul.f32 3.8918573e-05, %v2977_v10  ;;  %v1399_v63 = vmul.f32 %v1398_v20, %v2977_v10 }
 0x253   : > { %v1810_v56 = vclamps-f32 %v1230_v0, 1.0  ;;  %v3018_v44 = vmin.f32 %v1473_v22, 16.0  ;;  %v1258_v34 = vsub.f32 1.0, %v1257_v32  ;;  %v1362_v28 = vadd.f32 0.18741608, %v1361_v61 }
 0x254   : > { %v878_v46 = vpop.f32.mrf.mxu3  ;;  %v1294_v21 = vmul.f32 %v1293_v29, %v2934_v49  ;;  %v1283_v0 = vmul.f32 %v1282_v16, %v2934_v49  ;;  %v1407_v61 = vadd.f32 0.001143296, %v1406_v60  ;;  %v889_v49 = vmul.f32 0.5, %v2891_v24 }
 0x255   : > { %v1560_v36 = vadd.f32 1.0, %v1810_v56  ;;  %v1475_v37 = vmul.f32 2.1237322e-06, %v3018_v44  ;;  %v1486_v11 = vmul.f32 3.8918573e-05, %v3018_v44  ;;  %v3027_v59 = vadd.f32 %v2872_v58, %v878_v46 }
 0x256   : > { %v1259_v31 = vmul.f32 %v1960_v53, %v1258_v34  ;;  %v1268_v58 = vor.u32 1.1754944e-38, %v1267_v57  ;;  %v1363_v12 = vmul.f32 %v1362_v28, %v2927_v7  ;;  %v1284_v57 = vadd.f32 1.1283791, %v1283_v0 }
 0x257   : > { %v1576_v18 = vmul.f32 %v1560_v36, %v888_v62  ;;  %v1476_v9 = vadd.f32 0.00028619796, %v1475_v37  ;;  %v1487_v26 = vadd.f32 0.001143296, %v1486_v11  ;;  %v3033_v52 = vmul.f32 0.70710677, %v3027_v59 }
 0x258   : > { %v1260_v25 = vadd.f32 %v1960_v53, %v1259_v31  ;;  %v3044_v62 = vadd.f32 1.0, %v1294_v21  ;;  %v1400_v37 = vadd.f32 0.05243302, %v1399_v63  ;;  %v3063_v31 = vadd.f32 1.0, %v1813_v51 }
 0x259   : > { %1642 = vmatmul.f32.vlgmr.msra.gmra.mxu2 %v1576_v18  ;;  %v1477_v45 = vmul.f32 %v1476_v9, %v3018_v44  ;;  %v1488_v27 = vmul.f32 %v1487_v26, %v3018_v44  ;;  %v1513_v38 = vmul.f32 %v3033_v52, %v3033_v52  ;;  %v3067_v15 = vmul.f32 0.5, %v2917_v55 }
 0x25a   : > { %v1264_v14 = vsel %vm1263_vm14, %v1960_v53, %v1260_v25  ;;  %v1374_v53 = vmul.f32 %v1373_v17, %v2927_v7  ;;  %1961 = vrcp.f32 %v3044_v62  ;;  %v1408_v29 = vmul.f32 %v1407_v61, %v2977_v10 }
 0x25b   : > { %v1269_v4 = vsel %vm1266_vm15, %v1268_v58, %v1264_v14  ;;  %v1478_v30 = vadd.f32 0.0036580483, %v1477_v45  ;;  %v1489_v23 = vadd.f32 0.014752088, %v1488_v27  ;;  %v3047_v6 = vmin.f32 %v1513_v38, 16.0 }
 0x25c   : > { %v1270_v47 = vmul.f32 %v1269_v4, %v1245_v50  ;;  %v1435_v50 = vmul.f32 2.1237322e-06, %v3039_v19  ;;  %v3058_v36 = vadd.f32 1.0, %v1374_v53  ;;  %v3071_v20 = vadd.f32 1.1283791, %v1363_v12 }
 0x25d   : > { %v1479_v22 = vmul.f32 %v1478_v30, %v3018_v44  ;;  %v1490_v32 = vmul.f32 %v1489_v23, %v3018_v44  ;;  %v1515_v56 = vmul.f32 2.1237322e-06, %v3047_v6  ;;  %v1285_v9 = vmul.f32 %v1284_v57, %v2923_v1  ;;  %v3096_v23 = vld [vmem:[%s3296_s6] ss:$0 sm:$0xff] }
 0x25e   : > { %v1811_v3 = vclamps-f32 %v1270_v47, 1.0  ;;  %v1436_v11 = vadd.f32 0.00028619796, %v1435_v50  ;;  %1963 = vrcp.f32 %v3058_v36  ;;  %v1305_v55 = vand.u32 2147483647, %v3044_v62 }
 0x25f   : > { %v1480_v16 = vadd.f32 0.05243302, %v1479_v22  ;;  %v1491_v41 = vadd.f32 0.112945676, %v1490_v32  ;;  %v1516_v46 = vadd.f32 0.00028619796, %v1515_v56  ;;  %v3080_v21 = vmul.f32 %v1400_v37, %v2977_v10 }
 0x260   : > { %v1561_v34 = vadd.f32 1.0, %v1811_v3  ;;  %v1962_v24 = vpop.eup %1961  ;;  %v1307_v25 = vand.u32 2147483648, %v3044_v62  ;;  %v1409_v58 = vadd.f32 0.014752088, %v1408_v29  ;;  %v3083_v45 = vmul.f32 %v1436_v11, %v3039_v19 }
 0x261   : > { %v1492_v8 = vmul.f32 %v1491_v41, %v3018_v44  ;;  %v1481_v7 = vmul.f32 %v1480_v16, %v3018_v44  ;;  %v1517_v39 = vmul.f32 %v1516_v46, %v3047_v6  ;;  %v1297_v51 = vmul.f32 %v1962_v24, %v3044_v62 }
 0x262   : > { %v1577_v13 = vmul.f32 %v1561_v34, %v889_v49  ;;  %v1526_v1 = vmul.f32 3.8918573e-05, %v3047_v6  ;;  %v1385_v38 = vand.u32 2147483647, %v3058_v36  ;;  %v1410_v4 = vmul.f32 %v1409_v58, %v2977_v10 }
 0x263   : > { %v1493_v18 = vadd.f32 0.4994258, %v1492_v8  ;;  %v1298_v27 = vsub.f32 1.0, %v1297_v51  ;;  %v1482_v14 = vadd.f32 0.18741608, %v1481_v7  ;;  %vm1302_vm1 = vweird.f32 %v1962_v24  ;;  %v1974_v8 = vld [vmem:[%s2149_s17] sm:$0xff] }
 0x264   : > { %1645 = vmatmul.f32.gmra.mxu2 %v1577_v13  ;;  %v3091_v60 = vpop.eup %1963  ;;  %v1518_v30 = vadd.f32 0.0036580483, %v1517_v39  ;;  %v1527_v28 = vadd.f32 0.001143296, %v1526_v1  ;;  %vm1301_vm2 = vweird.f32 %v3044_v62  ;;  %vm3100_vm3 = vcmp.eq.f32.partialorder %v1305_v55, 8.507059e+37 }
 0x265   : > { %v1494_v26 = vmul.f32 %v1493_v18, %v3018_v44  ;;  %v1299_v47 = vmul.f32 %v1962_v24, %v1298_v27  ;;  %v1308_v53 = vor.u32 1.1754944e-38, %v1307_v25  ;;  %v1377_v32 = vmul.f32 %v3091_v60, %v3058_v36  ;;  %vm1303_vm4 = vmor %vm1301_vm2, %vm1302_vm1 }
 0x266   : > { %v1387_v3 = vand.u32 2147483648, %v3058_v36  ;;  %v1446_v63 = vmul.f32 3.8918573e-05, %v3039_v19  ;;  %v1483_v50 = vmul.f32 %v1482_v14, %v3018_v44  ;;  %vm1381_vm5 = vweird.f32 %v3058_v36 }
 0x267   : > { %v3086_v17 = vadd.f32 1.0, %v1494_v26  ;;  %v1300_v22 = vadd.f32 %v1962_v24, %v1299_v47  ;;  %v1622_v62 = vpop.f32.mrf.mxu1  ;;  %v1411_v56 = vadd.f32 0.112945676, %v1410_v4  ;;  %v1528_v61 = vmul.f32 %v1527_v28, %v3047_v6 }
 0x268   : > { %v1519_v49 = vmul.f32 %v1518_v30, %v3047_v6  ;;  %v1623_v16 = vadd.f32 %v3096_v23, %v1622_v62  ;;  %vm3117_vm6 = vcmp.eq.f32.partialorder %v1385_v38, 8.507059e+37  ;;  %v1378_v44 = vsub.f32 1.0, %v1377_v32 }
 0x269   : > { %1965 = vrcp.f32 %v3086_v17  ;;  %v1304_v41 = vsel %vm1303_vm4, %v1962_v24, %v1300_v22  ;;  %v1412_v57 = vmul.f32 %v1411_v56, %v2977_v10  ;;  %v1529_v46 = vadd.f32 0.014752088, %v1528_v61  ;;  %v1975_v56 = vld [vmem:[%s2149_s17 + $0x8] sm:$0xff] }
 0x26a   : > { %v1309_v12 = vsel %vm3100_vm3, %v1308_v53, %v1304_v41  ;;  %v1670_v13 = vadd.f32 %v1974_v8, %v1623_v16  ;;  %v1388_v11 = vor.u32 1.1754944e-38, %v1387_v3  ;;  %v1447_v7 = vadd.f32 0.001143296, %v1446_v63 }
 0x26b   : > { %v1310_v37 = vmul.f32 %v1309_v12, %v1285_v9  ;;  %v1379_v24 = vmul.f32 %v3091_v60, %v1378_v44  ;;  %vm1382_vm7 = vweird.f32 %v3091_v60  ;;  %v1413_v29 = vadd.f32 0.4994258, %v1412_v57 }
 0x26c   : > { %v1530_v39 = vmul.f32 %v1529_v46, %v3047_v6  ;;  %v1484_v51 = vadd.f32 1.1283791, %v1483_v50  ;;  %v1505_v55 = vand.u32 2147483647, %v3086_v17  ;;  %1686 = vst.msk [vmem:[%s3131_s18] sm:$0xff] %vm296_vm0, %v1670_v13  ;;  %v1448_v1 = vmul.f32 %v1447_v7, %v3039_v19  ;;  %vm1383_vm9 = vmor %vm1381_vm5, %vm1382_vm7 }
 0x26d   : > { %v1812_v9 = vclamps-f32 %v1310_v37, 1.0  ;;  %v1380_v25 = vadd.f32 %v3091_v60, %v1379_v24  ;;  %v1414_v58 = vmul.f32 %v1413_v29, %v2977_v10  ;;  %v1507_v38 = vand.u32 2147483648, %v3086_v17 }
 0x26e   : > { %v1531_v27 = vadd.f32 0.112945676, %v1530_v39  ;;  %v1449_v53 = vadd.f32 0.014752088, %v1448_v1  ;;  %v1365_v36 = vmul.f32 %v3071_v20, %v2914_v43  ;;  %v1402_v50 = vadd.f32 0.18741608, %v3080_v21 }
 0x26f   : > { %v1966_v18 = vpop.eup %1965  ;;  %v1562_v4 = vadd.f32 1.0, %v1812_v9  ;;  %v1625_v30 = vpop.f32.mrf.mxu1  ;;  %v1384_v47 = vsel %vm1383_vm9, %v3091_v60, %v1380_v25  ;;  %v3144_v28 = vadd.f32 1.0, %v1414_v58  ;;  %v1438_v60 = vadd.f32 0.0036580483, %v3083_v45 }
 0x270   : > { %v1497_v26 = vmul.f32 %v1966_v18, %v3086_v17  ;;  %vm1502_vm8 = vweird.f32 %v1966_v18  ;;  %v1532_v0 = vmul.f32 %v1531_v27, %v3047_v6  ;;  %v1626_v32 = vadd.f32 %v3096_v23, %v1625_v30 }
 0x271   : > { %v1578_v3 = vmul.f32 %v1562_v4, %v3067_v15  ;;  %v1389_v63 = vsel %vm3117_vm6, %v1388_v11, %v1384_v47  ;;  %1967 = vrcp.f32 %v3144_v28  ;;  %vm1501_vm10 = vweird.f32 %v3086_v17 }
 0x272   : > { %v1498_v14 = vsub.f32 1.0, %v1497_v26  ;;  %v1671_v61 = vadd.f32 %v1975_v56, %v1626_v32  ;;  %v1533_v15 = vadd.f32 0.4994258, %v1532_v0  ;;  %vm1503_vm11 = vmor %vm1501_vm10, %vm1502_vm8  ;;  %v1508_v16 = vor.u32 1.1754944e-38, %v1507_v38  ;;  %v1976_v26 = vld [vmem:[%s2149_s17 + $0x10] sm:$0xff] }
 0x273   : > { %1648 = vmatmul.f32.gmra.mxu2 %v1578_v3  ;;  %v1520_v41 = vadd.f32 0.05243302, %v1519_v49  ;;  %v1390_v34 = vmul.f32 %v1389_v63, %v1365_v36  ;;  %v1450_v43 = vmul.f32 %v1449_v53, %v3039_v19  ;;  %v1485_v20 = vmul.f32 %v1484_v51, %v3005_v48 }
 0x274   : > { %v1499_v22 = vmul.f32 %v1966_v18, %v1498_v14  ;;  %vm1506_vm12 = vcmp.eq.f32.partialorder %v1505_v55, 8.507059e+37  ;;  %1687 = vst.msk [vmem:[%s3131_s18 + $0x8] sm:$0xff] %vm296_vm0, %v1671_v61  ;;  %v1534_v45 = vmul.f32 %v1533_v15, %v3047_v6  ;;  %v1403_v17 = vmul.f32 %v1402_v50, %v2977_v10 }
 0x275   : > { %v1439_v12 = vmul.f32 %v1438_v60, %v3039_v19  ;;  %v1451_v57 = vadd.f32 0.112945676, %v1450_v43  ;;  %v891_v46 = vmul.f32 0.5, %v2820_v5  ;;  %v1521_v48 = vmul.f32 %v1520_v41, %v3047_v6 }
 0x276   : > { %v1500_v62 = vadd.f32 %v1966_v18, %v1499_v22  ;;  %v3167_v8 = vadd.f32 1.0, %v1534_v45  ;;  %v1814_v11 = vclamps-f32 %v1390_v34, 1.0  ;;  %v1404_v5 = vadd.f32 1.1283791, %v1403_v17 }
 0x277   : > { %v1968_v13 = vpop.eup %1967  ;;  %v1628_v37 = vpop.f32.mrf.mxu1  ;;  %v1452_v7 = vmul.f32 %v1451_v57, %v3039_v19  ;;  %v1579_v10 = vmul.f32 %v3063_v31, %v891_v46  ;;  %v1440_v39 = vadd.f32 0.05243302, %v1439_v12  ;;  %v895_v51 = vmul.f32 0.5, %v2999_v33 }
 0x278   : > { %v1504_v21 = vsel %vm1503_vm11, %v1966_v18, %v1500_v62  ;;  %v1629_v18 = vadd.f32 %v3096_v23, %v1628_v37  ;;  %v1417_v29 = vmul.f32 %v1968_v13, %v3144_v28  ;;  %1969 = vrcp.f32 %v3167_v8 }
 0x279   : > { %v1509_v44 = vsel %vm1506_vm12, %v1508_v16, %v1504_v21  ;;  %v1453_v58 = vadd.f32 0.4994258, %v1452_v7  ;;  %v1522_v27 = vadd.f32 0.18741608, %v1521_v48  ;;  %v1564_v1 = vadd.f32 1.0, %v1814_v11 }
 0x27a   : > { %v1510_v49 = vmul.f32 %v1509_v44, %v1485_v20  ;;  %v1672_v55 = vadd.f32 %v1976_v26, %v1629_v18  ;;  %v1418_v25 = vsub.f32 1.0, %v1417_v29  ;;  %v1425_v31 = vand.u32 2147483647, %v3144_v28 }
 0x27b   : > { %1651 = vmatmul.f32.gmra.mxu2 %v1579_v10  ;;  %v1427_v14 = vand.u32 2147483648, %v3144_v28  ;;  %vm1422_vm13 = vweird.f32 %v1968_v13  ;;  %v1454_v33 = vmul.f32 %v1453_v58, %v3039_v19  ;;  %v892_v30 = vmul.f32 0.5, %v2906_v54 }
 0x27c   : > { %v1817_v24 = vclamps-f32 %v1510_v49, 1.0  ;;  %1688 = vst.msk [vmem:[%s3131_s18 + $0x10] sm:$0xff] %vm296_vm0, %v1672_v55  ;;  %v1419_v4 = vmul.f32 %v1968_v13, %v1418_v25  ;;  %v1405_v47 = vmul.f32 %v1404_v5, %v2955_v35  ;;  %vm1421_vm14 = vweird.f32 %v3144_v28  ;;  %v1977_v28 = vld [vmem:[%s2149_s17 + $0x18] sm:$0xff] }
 0x27d   : > { %v3185_v53 = vadd.f32 1.0, %v1454_v33  ;;  %v1441_v32 = vmul.f32 %v1440_v39, %v3039_v19  ;;  %v1523_v3 = vmul.f32 %v1522_v27, %v3047_v6  ;;  %vm1423_vm15 = vmor %vm1421_vm14, %vm1422_vm13  ;;  %vm1426_vm1 = vcmp.eq.f32.partialorder %v1425_v31, 8.507059e+37 }
 0x27e   : > { %v1567_v9 = vadd.f32 1.0, %v1817_v24  ;;  %v1420_v0 = vadd.f32 %v1968_v13, %v1419_v4  ;;  %v1970_v22 = vpop.eup %1969  ;;  %v1428_v36 = vor.u32 1.1754944e-38, %v1427_v14  ;;  %v1580_v35 = vmul.f32 %v1564_v1, %v892_v30  ;;  %v1979_v4 = vld [vmem:[%s2149_s17 + $0x28] sm:$0xff] }
 0x27f   : > { %v1631_v63 = vpop.f32.mrf.mxu1  ;;  %v1537_v60 = vmul.f32 %v1970_v22, %v3167_v8  ;;  %1971 = vrcp.f32 %v3185_v53  ;;  %v1442_v6 = vadd.f32 0.18741608, %v1441_v32  ;;  %v1524_v16 = vadd.f32 1.1283791, %v1523_v3  ;;  %v1981_v3 = vld [vmem:[%s2149_s17 + $0x38] sm:$0xff] }
 0x280   : > { %v1583_v38 = vmul.f32 %v1567_v9, %v895_v51  ;;  %v1632_v54 = vadd.f32 %v3096_v23, %v1631_v63  ;;  %v1424_v50 = vsel %vm1423_vm15, %v1968_v13, %v1420_v0  ;;  %v1547_v41 = vand.u32 2147483648, %v3167_v8  ;;  %v1978_v51 = vld [vmem:[%s2149_s17 + $0x20] sm:$0xff] }
 0x281   : > { %v1429_v62 = vsel %vm1426_vm1, %v1428_v36, %v1424_v50  ;;  %v1538_v15 = vsub.f32 1.0, %v1537_v60  ;;  %vm1542_vm2 = vweird.f32 %v1970_v22  ;;  %v1545_v20 = vand.u32 2147483647, %v3167_v8 }
 0x282   : > { %1663 = vmatmul.f32.vlgmr.msrb.gmra.mxu3 %v1583_v38  ;;  %v1673_v56 = vadd.f32 %v1977_v28, %v1632_v54  ;;  %v1430_v61 = vmul.f32 %v1429_v62, %v1405_v47  ;;  %v893_v21 = vmul.f32 0.5, %v2945_v2  ;;  %vm1541_vm3 = vweird.f32 %v3167_v8  ;;  %v1983_v28 = vld [vmem:[%s2149_s17 + $0x48] sm:$0xff] }
 0x283   : > { %1654 = vmatmul.f32.gmra.mxu2 %v1580_v35  ;;  %v1539_v43 = vmul.f32 %v1970_v22, %v1538_v15  ;;  %v1443_v44 = vmul.f32 %v1442_v6, %v3039_v19  ;;  %v1525_v57 = vmul.f32 %v1524_v16, %v3033_v52  ;;  %vm1543_vm4 = vmor %vm1541_vm3, %vm1542_vm2  ;;  %v1548_v46 = vor.u32 1.1754944e-38, %v1547_v41  ;;  %v1982_v35 = vld [vmem:[%s2149_s17 + $0x40] sm:$0xff]  ;;  %v1984_v6 = vld [vmem:[%s2149_s17 + $0x50] sm:$0xff] }
 0x284   : > { %1689 = vst.msk [vmem:[%s3131_s18 + $0x18] sm:$0xff] %vm296_vm0, %v1673_v56  ;;  %v1815_v34 = vclamps-f32 %v1430_v61, 1.0  ;;  %vm1546_vm5 = vcmp.eq.f32.partialorder %v1545_v20, 8.507059e+37  ;;  %v1467_v8 = vand.u32 2147483648, %v3185_v53  ;;  %v1465_v52 = vand.u32 2147483647, %v3185_v53 }
 0x285   : > { %v1540_v17 = vadd.f32 %v1970_v22, %v1539_v43  ;;  %v1972_v12 = vpop.eup %1971  ;;  %v1444_v7 = vadd.f32 1.1283791, %v1443_v44  ;;  %v896_v29 = vmul.f32 0.5, %v3027_v59  ;;  %vm1461_vm7 = vweird.f32 %v3185_v53  ;;  %v1985_v43 = vld [vmem:[%s2149_s17 + $0x70] sm:$0xff] }
 0x286   : > { %v1565_v45 = vadd.f32 1.0, %v1815_v34  ;;  %v1457_v48 = vmul.f32 %v1972_v12, %v3185_v53  ;;  %vm1462_vm6 = vweird.f32 %v1972_v12  ;;  %v1468_v55 = vor.u32 1.1754944e-38, %v1467_v8  ;;  %v1980_v53 = vld [vmem:[%s2149_s17 + $0x30] sm:$0xff]  ;;  %v1989_v8 = vld [vmem:[%s2149_s17 + $0x68] sm:$0xff] }
 0x287   : > { %v1544_v13 = vsel %vm1543_vm4, %v1970_v22, %v1540_v17  ;;  %vm1463_vm8 = vmor %vm1461_vm7, %vm1462_vm6  ;;  %v1445_v9 = vmul.f32 %v1444_v7, %v3012_v40  ;;  %vm1466_vm9 = vcmp.eq.f32.partialorder %v1465_v52, 8.507059e+37  ;;  %v894_v38 = vmul.f32 0.5, %v2996_v42  ;;  %v1986_v17 = vld [vmem:[%s2149_s17 + $0x58] sm:$0xff] }
 0x288   : > { %v1581_v49 = vmul.f32 %v1565_v45, %v893_v21  ;;  %v1549_v37 = vsel %vm1546_vm5, %v1548_v46, %v1544_v13  ;;  %v1458_v11 = vsub.f32 1.0, %v1457_v48  ;;  %v1634_v18 = vpop.f32.mrf.mxu1  ;;  %v1987_v46 = vld [vmem:[%s2149_s17 + $0x60] sm:$0xff] }
 0x289   : > { %v1550_v2 = vmul.f32 %v1549_v37, %v1525_v57  ;;  %v1635_v24 = vadd.f32 %v3096_v23, %v1634_v18  ;;  %v1988_v37 = vld [vmem:[%s2149_s17 + $0x78] sm:$0xff] }
 0x28a   : > { %v1459_v19 = vmul.f32 %v1972_v12, %v1458_v11 }
 0x28b   : > { %1657 = vmatmul.f32.gmra.mxu2 %v1581_v49  ;;  %v1818_v10 = vclamps-f32 %v1550_v2, 1.0  ;;  %v1674_v26 = vadd.f32 %v1978_v51, %v1635_v24 }
 0x28c   : > { %v1460_v39 = vadd.f32 %v1972_v12, %v1459_v19 }
 0x28d   : > { %v1568_v5 = vadd.f32 1.0, %v1818_v10  ;;  %1690 = vst.msk [vmem:[%s3131_s18 + $0x20] sm:$0xff] %vm296_vm0, %v1674_v26 }
 0x28e   : > { %v1464_v58 = vsel %vm1463_vm8, %v1972_v12, %v1460_v39 }
 0x28f   : > { %v1584_v25 = vmul.f32 %v1568_v5, %v896_v29  ;;  %v1469_v27 = vsel %vm1466_vm9, %v1468_v55, %v1464_v58 }
 0x290   : > { %v1470_v59 = vmul.f32 %v1469_v27, %v1445_v9  ;;  %v1637_v1 = vpop.f32.mrf.mxu1 }
 0x291   : > { %1666 = vmatmul.f32.gmra.mxu3 %v1584_v25  ;;  %v1638_v14 = vadd.f32 %v3096_v23, %v1637_v1 }
 0x292   : > { %v1816_v31 = vclamps-f32 %v1470_v59, 1.0 }
 0x293   : > { %v1675_v33 = vadd.f32 %v1979_v4, %v1638_v14 }
 0x294   : > { %v1566_v40 = vadd.f32 1.0, %v1816_v31 }
 0x295   : > { %1691 = vst.msk [vmem:[%s3131_s18 + $0x28] sm:$0xff] %vm296_vm0, %v1675_v33 }
 0x296   : > { %v1582_v30 = vmul.f32 %v1566_v40, %v894_v38 }
 0x298   : > { %1660 = vmatmul.f32.gmra.mxu2 %v1582_v30  ;;  %v1640_v47 = vpop.f32.mrf.mxu1 }
 0x299   : > { %v1641_v0 = vadd.f32 %v3096_v23, %v1640_v47 }
 0x29b   : > { %v1676_v22 = vadd.f32 %v1980_v53, %v1641_v0 }
 0x29d   : > { %1692 = vst.msk [vmem:[%s3131_s18 + $0x30] sm:$0xff] %vm296_vm0, %v1676_v22 }
 0x2dc   : > { %v1643_v42 = vpop.f32.mrf.mxu2 }
 0x2dd   : > { %v1644_v32 = vadd.f32 %v3096_v23, %v1643_v42 }
 0x2df   : > { %v1677_v63 = vadd.f32 %v1981_v3, %v1644_v32 }
 0x2e1   : > { %1693 = vst.msk [vmem:[%s3131_s18 + $0x38] sm:$0xff] %vm296_vm0, %v1677_v63 }
 0x2e7   : > { %v1646_v36 = vpop.f32.mrf.mxu2 }
 0x2e8   : > { %v1647_v54 = vadd.f32 %v3096_v23, %v1646_v36 }
 0x2ea   : > { %v1678_v50 = vadd.f32 %v1982_v35, %v1647_v54 }
 0x2ec   : > { %1694 = vst.msk [vmem:[%s3131_s18 + $0x40] sm:$0xff] %vm296_vm0, %v1678_v50 }
 0x2f6   : > { %v1649_v60 = vpop.f32.mrf.mxu2 }
 0x2f7   : > { %v1650_v62 = vadd.f32 %v3096_v23, %v1649_v60 }
 0x2f9   : > { %v1679_v56 = vadd.f32 %v1983_v28, %v1650_v62 }
 0x2fb   : > { %1695 = vst.msk [vmem:[%s3131_s18 + $0x48] sm:$0xff] %vm296_vm0, %v1679_v56 }
 0x2fe   : > { %v1652_v61 = vpop.f32.mrf.mxu2 }
 0x2ff   : > { %v1653_v15 = vadd.f32 %v3096_v23, %v1652_v61 }
 0x301   : > { %v1680_v16 = vadd.f32 %v1984_v6, %v1653_v15 }
 0x303   : > { %1696 = vst.msk [vmem:[%s3131_s18 + $0x50] sm:$0xff] %vm296_vm0, %v1680_v16 }
 0x305   : > { %v1664_v41 = vpop.f32.mrf.mxu3 }
 0x306   : > { %v1665_v34 = vadd.f32 %v3096_v23, %v1664_v41  ;;  %v1655_v21 = vpop.f32.mrf.mxu2 }
 0x307   : > { %v1656_v45 = vadd.f32 %v3096_v23, %v1655_v21 }
 0x308   : > { %v1684_v20 = vadd.f32 %v1985_v43, %v1665_v34 }
 0x309   : > { %v1681_v12 = vadd.f32 %v1986_v17, %v1656_v45 }
 0x30a   : > { %1700 = vst.msk [vmem:[%s3131_s18 + $0x70] sm:$0xff] %vm296_vm0, %v1684_v20 }
 0x30b   : > { %1697 = vst.msk [vmem:[%s3131_s18 + $0x58] sm:$0xff] %vm296_vm0, %v1681_v12 }
 0x30e   : > { %v1658_v44 = vpop.f32.mrf.mxu2 }
 0x30f   : > { %v1659_v57 = vadd.f32 %v3096_v23, %v1658_v44 }
 0x311   : > { %v1682_v49 = vadd.f32 %v1987_v46, %v1659_v57 }
 0x313   : > { %1698 = vst.msk [vmem:[%s3131_s18 + $0x60] sm:$0xff] %vm296_vm0, %v1682_v49 }
 0x314   : > { %v1667_v13 = vpop.f32.mrf.mxu3 }
 0x315   : > { %v1668_v48 = vadd.f32 %v3096_v23, %v1667_v13 }
 0x317   : > { %v1685_v2 = vadd.f32 %v1988_v37, %v1668_v48 }
 0x319   : > { %1701 = vst.msk [vmem:[%s3131_s18 + $0x78] sm:$0xff] %vm296_vm0, %v1685_v2 }
 0x31b   : > { %v1661_v11 = vpop.f32.mrf.mxu2 }
 0x31c   : > { %v1662_v7 = vadd.f32 %v3096_v23, %v1661_v11 }
 0x31e   : > { %v1683_v18 = vadd.f32 %v1989_v8, %v1662_v7 }
 0x320   : > { %1699 = vst.msk [vmem:[%s3131_s18 + $0x68] sm:$0xff] %vm296_vm0, %v1683_v18 }
 0x321   : > { %2017 = shalt.err (!%p2014_p3)
}
 0x322   : > { %s2055_s17 = smov 128   ;;  %s2056_s13 = smov 8  }
 0x323   : > { %1861 = dma.vmem_to_hbm [thread:$0]  (%p2135_p5), %s1716_s23, 2048, %s1718_s29, %s1703_s28, %s2055_s17, %s2055_s17, %s2056_s13  }
 0x324 PF: > { %p1867_p4 = scmp.ge.s32.totalorder %s2052_s27, 2  ;;  %s1732_s18 = sand.u32 1, %s2040_s24  }
 0x325   : > { %s1733_s21 = scalar_lea.sflag [#allocation3], %s1732_s18 }
 0x326   : > { %p1864_p7 = pnand %p1867_p4, %p2139_p6 }
 0x328   : > { %p1865_p8 = pneg %p1864_p7 }
 0x32a   : > { %2035 = dma.done.wait (%p1865_p8), %s1733_s21, 2048  }
 0x32b   : > { %2037 = vsyncadd (%p1865_p8), %s1733_s21, 4294965248  ;;  %p17_p9 = scmp.ge.s32.totalorder %s2122_s30, 6   ;;  %s3320_s24 = smov %s2044_s25 }
 0x32c   : > { %s3321_s25 = smov %s2048_s26  ;;  %s3322_s26 = smov %s2133_s10 }
 0x32d   : > { %s3323_s27 = smov %s2122_s30  ;;  %19 = sbr.rel (!%p17_p9) target bundleno = 3 (0x3), region = 83 }
 0x332   :  { %1739 = vsyncpa [#allocation3], 1 }
 0x333   :  { %1741 = vsyncpa [#allocation3 + $0x1], 1 }

</bundles_post_ra>
